<compile_context>
chip_gen: v5e
topology: v5e:2x2
jax: 0.10.0
libtpu: 0.0.40
codegen_flags: <defaults>
</compile_context>

<pallas_src>
import jax
import jax.numpy as jnp
import numpy as np
from jax.experimental import pallas as pl

# ----------------------------- sizes -----------------------------------------
F = 8                      # n_frames
B = 8                      # n_beads
N = B - 1                  # n_neighbors per bead (all other beads)
FB = F * B                 # 64
FBN = F * B * N            # 448
NP = B * (B - 1) // 2      # number of unique pairwise distances (28)
NA = B - 2                 # number of backbone angles (6)
ND = B - 3                 # number of dihedrals (5)
NFEAT = NP + NA + 2 * ND   # GeometryFeature output width (44)
C = 32                     # embedding dim == n_filters
G = 32                     # n_gaussians
NBLOCKS = 2                # SchNet interaction blocks
VOCAB = 5                  # embedding vocabulary (index 0 = padding)
RBF_HIGH = 5.0
SPACING = RBF_HIGH / (G - 1)
COEFF = -0.5 / (SPACING * SPACING)   # cgnet GaussianRBF coefficient
LOG2 = 0.6931471805599453


# ----------------------------- fused kernel ----------------------------------
def _combiner_kernel(xyz_ref, x0_ref, dsel_ref, wfilt_ref, bfilt_ref,
                     wstack_ref, bstack_ref, geo_ref, feat_ref):
    f32 = jnp.float32
    eps = 1e-12

    # ---- index structure generated in-kernel (replaces ~180 KB of one-hot DMA) ----
    def fdiv(x, d):
        # exact floor-division of small non-negative integers carried in f32;
        # avoids relying on vector i32 div/rem lowering.
        return jnp.floor((x + 0.5) * (1.0 / d))

    r = jax.lax.broadcasted_iota(jnp.int32, (FBN, 1), 0).astype(f32)   # flat row id
    frm = fdiv(r, 56.0)                       # frame f
    rem = r - frm * 56.0
    bead = fdiv(rem, 7.0)                     # bead i
    col = rem - bead * 7.0                    # neighbor slot c
    nb = col + (col >= bead).astype(f32)      # neighbor bead j (all beads != i, ascending)
    pa = jnp.minimum(bead, nb)
    pb = jnp.maximum(bead, nb)
    # index of unique pair (pa, pb), pa < pb, in upper-triangular row-major order
    pair = pa * B - pa * (pa + 1.0) * 0.5 + pb - pa - 1.0

    lane_f = jax.lax.broadcasted_iota(jnp.int32, (FBN, F), 1).astype(f32)
    lane_p = jax.lax.broadcasted_iota(jnp.int32, (FBN, NP), 1).astype(f32)
    lane_q = jax.lax.broadcasted_iota(jnp.int32, (FBN, FB), 1).astype(f32)
    frep = (lane_f == frm).astype(f32)                 # [FBN, F]   frame replication
    colmask = (lane_p == pair).astype(f32)             # [FBN, NP]  redundant re-index pick
    gat = (lane_q == frm * B + nb).astype(f32)         # [FBN, FB]  neighbor gather
    pr = jax.lax.broadcasted_iota(jnp.int32, (FB, FBN), 0).astype(f32)
    pc = jax.lax.broadcasted_iota(jnp.int32, (FB, FBN), 1).astype(f32)
    pool = (pr == fdiv(pc, 7.0)).astype(f32)           # [FB, FBN]  neighbor-sum pooling
    mu = jax.lax.broadcasted_iota(jnp.int32, (1, G), 1).astype(f32) * SPACING   # RBF centers

    # ---------------- GeometryFeature ----------------
    xyz = xyz_ref[...]                                  # [3F, B] stacked x/y/z planes
    xx = xyz[0:F, :]
    xy = xyz[F:2 * F, :]
    xz = xyz[2 * F:3 * F, :]

    # single matmul for all three axes: +1/-1 pair-difference select
    d3 = jnp.dot(xyz, dsel_ref[...], preferred_element_type=f32)      # [3F, NP]
    dx = d3[0:F, :]
    dy = d3[F:2 * F, :]
    dz = d3[2 * F:3 * F, :]
    dist = jnp.sqrt(dx * dx + dy * dy + dz * dz)                      # [F, NP]

    # backbone angle cosines (triples i, i+1, i+2)
    ux = xx[:, :-2] - xx[:, 1:-1]
    uy = xy[:, :-2] - xy[:, 1:-1]
    uz = xz[:, :-2] - xz[:, 1:-1]
    vx = xx[:, 2:] - xx[:, 1:-1]
    vy = xy[:, 2:] - xy[:, 1:-1]
    vz = xz[:, 2:] - xz[:, 1:-1]
    duv = ux * vx + uy * vy + uz * vz
    nu = jnp.sqrt(ux * ux + uy * uy + uz * uz)
    nv = jnp.sqrt(vx * vx + vy * vy + vz * vz)
    angcos = jnp.clip(duv / jnp.maximum(nu * nv, eps), -1.0, 1.0)     # [F, NA]

    # dihedral cos/sin (quads i..i+3)
    b1x = xx[:, 1:-2] - xx[:, :-3]
    b1y = xy[:, 1:-2] - xy[:, :-3]
    b1z = xz[:, 1:-2] - xz[:, :-3]
    b2x = xx[:, 2:-1] - xx[:, 1:-2]
    b2y = xy[:, 2:-1] - xy[:, 1:-2]
    b2z = xz[:, 2:-1] - xz[:, 1:-2]
    b3x = xx[:, 3:] - xx[:, 2:-1]
    b3y = xy[:, 3:] - xy[:, 2:-1]
    b3z = xz[:, 3:] - xz[:, 2:-1]
    n1x = b1y * b2z - b1z * b2y
    n1y = b1z * b2x - b1x * b2z
    n1z = b1x * b2y - b1y * b2x
    n2x = b2y * b3z - b2z * b3y
    n2y = b2z * b3x - b2x * b3z
    n2z = b2x * b3y - b2y * b3x
    n1n2 = n1x * n2x + n1y * n2y + n1z * n2z
    n1n = jnp.sqrt(n1x * n1x + n1y * n1y + n1z * n1z)
    n2n = jnp.sqrt(n2x * n2x + n2y * n2y + n2z * n2z)
    b2n = jnp.sqrt(b2x * b2x + b2y * b2y + b2z * b2z)
    cx = n1y * n2z - n1z * n2y
    cy = n1z * n2x - n1x * n2z
    cz = n1x * n2y - n1y * n2x
    sin_num = cx * b2x + cy * b2y + cz * b2z
    dihcos = jnp.clip(n1n2 / jnp.maximum(n1n * n2n, eps), -1.0, 1.0)            # [F, ND]
    dihsin = jnp.clip(sin_num / jnp.maximum(b2n * n1n * n2n, eps), -1.0, 1.0)   # [F, ND]
    # TODO(synk): verify the dihedral sin sign convention ((n1 x n2).b2) matches cgnet's.

    # fused geometry slab [F, NFEAT]: each piece placed at its lane offset with a tiny
    # in-kernel one-hot matmul (guaranteed lowering; avoids unaligned lane concat).
    def place(x, off):
        w = x.shape[1]
        lane = jax.lax.broadcasted_iota(jnp.int32, (w, NFEAT), 1)
        row = jax.lax.broadcasted_iota(jnp.int32, (w, NFEAT), 0)
        pm = (lane == row + off).astype(f32)
        return jnp.dot(x, pm, preferred_element_type=f32)

    geo_ref[...] = (place(dist, 0) + place(angcos, NP)
                    + place(dihcos, NP + NA) + place(dihsin, NP + NA + ND))
    # TODO(synk): angle columns hold cosines; arccos is applied in the XLA epilogue
    # (acos has no guaranteed Mosaic lowering).

    # ------- FeatureCombiner.distance_reindex + Gaussian RBF (all frames batched) -----
    dist_rep = jnp.dot(frep, dist, preferred_element_type=f32)        # [FBN, NP]
    d_col = jnp.sum(dist_rep * colmask, axis=1, keepdims=True)        # [FBN, 1]
    diff = d_col - mu                                                  # [FBN, G]
    rbf16 = jnp.exp(COEFF * diff * diff).astype(jnp.bfloat16)

    # ---------------- SchnetFeature: interaction blocks ----------------
    def ssp(v):  # shifted softplus, branch-free stable form
        return jnp.maximum(v, 0.0) + jnp.log(1.0 + jnp.exp(-jnp.abs(v))) - LOG2

    # filter-generator MLP of BOTH blocks in one batched pass (depends only on the
    # RBF features, so it is hoisted off the residual critical path).
    wf1a = wfilt_ref[0:G, :]                           # [G, 2C]   bf16
    wf2bd = wfilt_ref[G:G + NBLOCKS * C, :]            # [2C, 2C]  bf16 block-diagonal
    bf1a = bfilt_ref[0:1, :]                           # [1, 2C]   f32
    bf2a = bfilt_ref[1:2, :]
    h_all = ssp(jnp.dot(rbf16, wf1a, preferred_element_type=f32) + bf1a)        # [FBN, 2C]
    w_all = jnp.dot(h_all.astype(jnp.bfloat16), wf2bd,
                    preferred_element_type=f32) + bf2a                           # [FBN, 2C]

    x = x0_ref[...]                                    # [FB, C] embeddings (f32)
    for blk in range(NBLOCKS):
        w_blk = w_all[:, blk * C:(blk + 1) * C]        # this block's cfconv filters
        wi = wstack_ref[blk, 0:C, :]
        wo1 = wstack_ref[blk, C:2 * C, :]
        wo2 = wstack_ref[blk, 2 * C:3 * C, :]
        bo1 = bstack_ref[blk, 0:1, :]
        bo2 = bstack_ref[blk, 1:2, :]

        # initial dense (no bias) -> neighbor gather -> cfconv elementwise -> pooled sum
        y = jnp.dot(x.astype(jnp.bfloat16), wi, preferred_element_type=f32)     # [FB, C]
        y_nbh = jnp.dot(gat, y, preferred_element_type=f32)                     # [FBN, C]
        conv = jnp.dot(pool, y_nbh * w_blk, preferred_element_type=f32)         # [FB, C]

        # output MLP + residual
        h2 = ssp(jnp.dot(conv.astype(jnp.bfloat16), wo1,
                         preferred_element_type=f32) + bo1)
        out = jnp.dot(h2.astype(jnp.bfloat16), wo2,
                      preferred_element_type=f32) + bo2
        x = x + out

    feat_ref[...] = x


# ----------------------------- wrapper ----------------------------------------
def feature_combiner_forward(coords, embedding_property, params, dsel):
    """FeatureCombiner.forward -> (feature_output [F,B,C], geometry_features [F,NFEAT])."""
    # stacked coordinate planes [3F, B]: rows 0:F = x, F:2F = y, 2F:3F = z
    xyz = jnp.transpose(coords, (2, 0, 1)).reshape(3 * F, B)
    # glue: embedding lookup (tiny gather, fused by XLA under jit)
    x0 = params["embedding"][embedding_property].reshape(FB, C)

    geo_pre, feat = pl.pallas_call(
        _combiner_kernel,
        out_shape=(
            jax.ShapeDtypeStruct((F, NFEAT), jnp.float32),
            jax.ShapeDtypeStruct((FB, C), jnp.float32),
        ),
    )(xyz, x0, dsel, params["wfilt"], params["bfilt"],
      params["wstack"], params["bstack"])

    # glue: arccos on the 6 angle-cosine columns of the fused slab (XLA epilogue)
    geometry_features = geo_pre.at[:, NP:NP + NA].set(
        jnp.arccos(geo_pre[:, NP:NP + NA]))
    feature_output = feat.reshape(F, B, C)
    return feature_output, geometry_features


# ----------------------------- constants ---------------------------------------
def build_dsel():
    """+1/-1 difference-select matrix over the 28 unique bead pairs (only data const)."""
    pairs = [(i, j) for i in range(B) for j in range(i + 1, B)]
    dsel = np.zeros((B, NP), np.float32)
    for p, (i, j) in enumerate(pairs):
        dsel[i, p] = 1.0
        dsel[j, p] = -1.0
    return jnp.asarray(dsel)


# ----------------------------- parameters --------------------------------------
def init_params(key):
    keys = jax.random.split(key, 1 + NBLOCKS)
    emb = jax.random.normal(keys[0], (VOCAB, C), jnp.float32) * 0.1
    emb = emb.at[0].set(0.0)   # padding_idx=0 semantics of CGBeadEmbedding

    def dense(k, fin, fout):
        return jax.random.normal(k, (fin, fout), jnp.float32) / jnp.sqrt(float(fin))

    wf1s, wf2s, bf1s, bf2s, wstack, bstack = [], [], [], [], [], []
    for blk in range(NBLOCKS):
        ks = jax.random.split(keys[1 + blk], 9)
        wf1 = dense(ks[0], G, C)
        wf2 = dense(ks[1], C, C)
        wi = dense(ks[2], C, C)
        wo1 = dense(ks[3], C, C)
        wo2 = dense(ks[4], C, C)
        bf1 = 0.01 * jax.random.normal(ks[5], (1, C), jnp.float32)
        bf2 = 0.01 * jax.random.normal(ks[6], (1, C), jnp.float32)
        bo1 = 0.01 * jax.random.normal(ks[7], (1, C), jnp.float32)
        bo2 = 0.01 * jax.random.normal(ks[8], (1, C), jnp.float32)
        wf1s.append(wf1); wf2s.append(wf2); bf1s.append(bf1); bf2s.append(bf2)
        wstack.append(jnp.concatenate([wi, wo1, wo2], axis=0))   # [3C, C]
        bstack.append(jnp.concatenate([bo1, bo2], axis=0))       # [2, C]

    # Filter-generator MLP of both blocks, packed for one batched in-kernel pass:
    #   rows 0:G      -> [wf1_b0 | wf1_b1]            ([G, 2C])
    #   rows G:G+2C   -> block-diag(wf2_b0, wf2_b1)   ([2C, 2C])
    wf1_all = jnp.concatenate(wf1s, axis=1)                                   # [G, 2C]
    wf2_bd = jnp.zeros((NBLOCKS * C, NBLOCKS * C), jnp.float32)
    for blk in range(NBLOCKS):
        wf2_bd = wf2_bd.at[blk * C:(blk + 1) * C,
                           blk * C:(blk + 1) * C].set(wf2s[blk])
    wfilt = jnp.concatenate([wf1_all, wf2_bd], axis=0)                        # [G+2C, 2C]
    bfilt = jnp.concatenate([jnp.concatenate(bf1s, axis=1),
                             jnp.concatenate(bf2s, axis=1)], axis=0)          # [2, 2C]

    return {
        "embedding": emb,
        "wfilt": wfilt.astype(jnp.bfloat16),                 # [G+2C, 2C]
        "bfilt": bfilt.astype(jnp.float32),                  # [2, 2C]
        "wstack": jnp.stack(wstack).astype(jnp.bfloat16),    # [NBLOCKS, 3C, C]
        "bstack": jnp.stack(bstack).astype(jnp.float32),     # [NBLOCKS, 2, C]
    }


# ----------------------------- main --------------------------------------------
if __name__ == "__main__":
    key = jax.random.PRNGKey(0)
    k_coords, k_prop, k_params = jax.random.split(key, 3)

    coords = 2.0 * jax.random.normal(k_coords, (F, B, 3), jnp.float32)
    embedding_property = jax.random.randint(k_prop, (F, B), 1, VOCAB)

    params = init_params(k_params)
    dsel = build_dsel()

    fwd = jax.jit(feature_combiner_forward)
    feature_output, geometry_features = fwd(coords, embedding_property, params, dsel)

    feature_output = jax.block_until_ready(feature_output)
    geometry_features = jax.block_until_ready(geometry_features)

    assert feature_output.shape == (F, B, C)
    assert geometry_features.shape == (F, NFEAT)
    assert bool(jnp.all(jnp.isfinite(feature_output)))
    assert bool(jnp.all(jnp.isfinite(geometry_features)))

    print("KERNEL_OK")
</pallas_src>

<mosaic_0001>
module attributes {stable_mosaic.version = 11 : i64} {
  func.func @_combiner_kernel(%arg0: memref<24x8xf32, #tpu.memory_space<vmem>>, %arg1: memref<64x32xf32, #tpu.memory_space<vmem>>, %arg2: memref<8x28xf32, #tpu.memory_space<vmem>>, %arg3: memref<96x64xbf16, #tpu.memory_space<vmem>>, %arg4: memref<2x64xf32, #tpu.memory_space<vmem>>, %arg5: memref<2x96x32xbf16, #tpu.memory_space<vmem>>, %arg6: memref<2x2x32xf32, #tpu.memory_space<vmem>>, %arg7: memref<8x44xf32, #tpu.memory_space<vmem>>, %arg8: memref<64x32xf32, #tpu.memory_space<vmem>>) attributes {dimension_semantics = [], scalar_prefetch = 0 : i64, scratch_operands = 0 : i64, tpu.core_type = #tpu.core_type<tc>} {
    %0 = tpu.iota {dimensions = array<i32: 0>} : vector<448x1xi32>
    %1 = arith.sitofp %0 : vector<448x1xi32> to vector<448x1xf32>
    %cst = arith.constant 5.000000e-01 : f32
    %2 = vector.broadcast %cst : f32 to vector<448x1xf32>
    %3 = arith.addf %1, %2 : vector<448x1xf32>
    %cst_0 = arith.constant 0.0178571437 : f32
    %4 = vector.broadcast %cst_0 : f32 to vector<448x1xf32>
    %5 = arith.mulf %3, %4 : vector<448x1xf32>
    %6 = math.floor %5 : vector<448x1xf32>
    %cst_1 = arith.constant 5.600000e+01 : f32
    %7 = vector.broadcast %cst_1 : f32 to vector<448x1xf32>
    %8 = arith.mulf %6, %7 : vector<448x1xf32>
    %9 = arith.subf %1, %8 : vector<448x1xf32>
    %cst_2 = arith.constant 5.000000e-01 : f32
    %10 = vector.broadcast %cst_2 : f32 to vector<448x1xf32>
    %11 = arith.addf %9, %10 : vector<448x1xf32>
    %cst_3 = arith.constant 0.142857149 : f32
    %12 = vector.broadcast %cst_3 : f32 to vector<448x1xf32>
    %13 = arith.mulf %11, %12 : vector<448x1xf32>
    %14 = math.floor %13 : vector<448x1xf32>
    %cst_4 = arith.constant 7.000000e+00 : f32
    %15 = vector.broadcast %cst_4 : f32 to vector<448x1xf32>
    %16 = arith.mulf %14, %15 : vector<448x1xf32>
    %17 = arith.subf %9, %16 : vector<448x1xf32>
    %18 = arith.cmpf oge, %17, %14 : vector<448x1xf32>
    %19 = arith.extui %18 : vector<448x1xi1> to vector<448x1xi32>
    %20 = arith.sitofp %19 : vector<448x1xi32> to vector<448x1xf32>
    %21 = arith.addf %17, %20 : vector<448x1xf32>
    %22 = arith.minimumf %14, %21 : vector<448x1xf32>
    %23 = arith.maximumf %14, %21 : vector<448x1xf32>
    %cst_5 = arith.constant 8.000000e+00 : f32
    %24 = vector.broadcast %cst_5 : f32 to vector<448x1xf32>
    %25 = arith.mulf %22, %24 : vector<448x1xf32>
    %cst_6 = arith.constant 1.000000e+00 : f32
    %26 = vector.broadcast %cst_6 : f32 to vector<448x1xf32>
    %27 = arith.addf %22, %26 : vector<448x1xf32>
    %28 = arith.mulf %22, %27 : vector<448x1xf32>
    %cst_7 = arith.constant 5.000000e-01 : f32
    %29 = vector.broadcast %cst_7 : f32 to vector<448x1xf32>
    %30 = arith.mulf %28, %29 : vector<448x1xf32>
    %31 = arith.subf %25, %30 : vector<448x1xf32>
    %32 = arith.addf %31, %23 : vector<448x1xf32>
    %33 = arith.subf %32, %22 : vector<448x1xf32>
    %cst_8 = arith.constant 1.000000e+00 : f32
    %34 = vector.broadcast %cst_8 : f32 to vector<448x1xf32>
    %35 = arith.subf %33, %34 : vector<448x1xf32>
    %36 = tpu.iota {dimensions = array<i32: 1>} : vector<448x8xi32>
    %37 = arith.sitofp %36 : vector<448x8xi32> to vector<448x8xf32>
    %38 = tpu.iota {dimensions = array<i32: 1>} : vector<448x28xi32>
    %39 = arith.sitofp %38 : vector<448x28xi32> to vector<448x28xf32>
    %40 = tpu.iota {dimensions = array<i32: 1>} : vector<448x64xi32>
    %41 = arith.sitofp %40 : vector<448x64xi32> to vector<448x64xf32>
    %42 = vector.broadcast %6 : vector<448x1xf32> to vector<448x8xf32>
    %43 = arith.cmpf oeq, %37, %42 : vector<448x8xf32>
    %44 = arith.extui %43 : vector<448x8xi1> to vector<448x8xi32>
    %45 = arith.sitofp %44 : vector<448x8xi32> to vector<448x8xf32>
    %46 = vector.broadcast %35 : vector<448x1xf32> to vector<448x28xf32>
    %47 = arith.cmpf oeq, %39, %46 : vector<448x28xf32>
    %48 = arith.extui %47 : vector<448x28xi1> to vector<448x28xi32>
    %49 = arith.sitofp %48 : vector<448x28xi32> to vector<448x28xf32>
    %cst_9 = arith.constant 8.000000e+00 : f32
    %50 = vector.broadcast %cst_9 : f32 to vector<448x1xf32>
    %51 = arith.mulf %6, %50 : vector<448x1xf32>
    %52 = arith.addf %51, %21 : vector<448x1xf32>
    %53 = vector.broadcast %52 : vector<448x1xf32> to vector<448x64xf32>
    %54 = arith.cmpf oeq, %41, %53 : vector<448x64xf32>
    %55 = arith.extui %54 : vector<448x64xi1> to vector<448x64xi32>
    %56 = arith.sitofp %55 : vector<448x64xi32> to vector<448x64xf32>
    %57 = tpu.iota {dimensions = array<i32: 0>} : vector<64x448xi32>
    %58 = arith.sitofp %57 : vector<64x448xi32> to vector<64x448xf32>
    %59 = tpu.iota {dimensions = array<i32: 1>} : vector<64x448xi32>
    %60 = arith.sitofp %59 : vector<64x448xi32> to vector<64x448xf32>
    %cst_10 = arith.constant 5.000000e-01 : f32
    %61 = vector.broadcast %cst_10 : f32 to vector<64x448xf32>
    %62 = arith.addf %60, %61 : vector<64x448xf32>
    %cst_11 = arith.constant 0.142857149 : f32
    %63 = vector.broadcast %cst_11 : f32 to vector<64x448xf32>
    %64 = arith.mulf %62, %63 : vector<64x448xf32>
    %65 = math.floor %64 : vector<64x448xf32>
    %66 = arith.cmpf oeq, %58, %65 : vector<64x448xf32>
    %67 = arith.extui %66 : vector<64x448xi1> to vector<64x448xi32>
    %68 = arith.sitofp %67 : vector<64x448xi32> to vector<64x448xf32>
    %69 = tpu.iota {dimensions = array<i32: 1>} : vector<1x32xi32>
    %70 = arith.sitofp %69 : vector<1x32xi32> to vector<1x32xf32>
    %cst_12 = arith.constant 0.161290318 : f32
    %71 = vector.broadcast %cst_12 : f32 to vector<1x32xf32>
    %72 = arith.mulf %70, %71 : vector<1x32xf32>
    %c0 = arith.constant 0 : index
    %c0_13 = arith.constant 0 : index
    %73 = vector.load %arg0[%c0, %c0_13] : memref<24x8xf32, #tpu.memory_space<vmem>>, vector<24x8xf32>
    %74 = vector.extract_strided_slice %73 {offsets = [0, 0], sizes = [8, 8], strides = [1, 1]} : vector<24x8xf32> to vector<8x8xf32>
    %75 = vector.extract_strided_slice %73 {offsets = [8, 0], sizes = [8, 8], strides = [1, 1]} : vector<24x8xf32> to vector<8x8xf32>
    %76 = vector.extract_strided_slice %73 {offsets = [16, 0], sizes = [8, 8], strides = [1, 1]} : vector<24x8xf32> to vector<8x8xf32>
    %c0_14 = arith.constant 0 : index
    %c0_15 = arith.constant 0 : index
    %77 = vector.load %arg2[%c0_14, %c0_15] : memref<8x28xf32, #tpu.memory_space<vmem>>, vector<8x28xf32>
    %cst_16 = arith.constant dense<0.000000e+00> : vector<24x28xf32>
    %78 = tpu.matmul %73, %77, %cst_16 {dimension_numbers = #tpu.dot_dimension_numbers<[1], [0], [0], [1], [0, 0, 1, 1], [], []>} : vector<24x8xf32>, vector<8x28xf32>, vector<24x28xf32> -> vector<24x28xf32>
    %79 = vector.extract_strided_slice %78 {offsets = [0, 0], sizes = [8, 28], strides = [1, 1]} : vector<24x28xf32> to vector<8x28xf32>
    %80 = vector.extract_strided_slice %78 {offsets = [8, 0], sizes = [8, 28], strides = [1, 1]} : vector<24x28xf32> to vector<8x28xf32>
    %81 = vector.extract_strided_slice %78 {offsets = [16, 0], sizes = [8, 28], strides = [1, 1]} : vector<24x28xf32> to vector<8x28xf32>
    %82 = arith.mulf %79, %79 : vector<8x28xf32>
    %83 = arith.mulf %80, %80 : vector<8x28xf32>
    %84 = arith.addf %82, %83 : vector<8x28xf32>
    %85 = arith.mulf %81, %81 : vector<8x28xf32>
    %86 = arith.addf %84, %85 : vector<8x28xf32>
    %87 = math.sqrt %86 : vector<8x28xf32>
    %88 = vector.extract_strided_slice %74 {offsets = [0, 0], sizes = [8, 6], strides = [1, 1]} : vector<8x8xf32> to vector<8x6xf32>
    %89 = vector.extract_strided_slice %74 {offsets = [0, 1], sizes = [8, 6], strides = [1, 1]} : vector<8x8xf32> to vector<8x6xf32>
    %90 = arith.subf %88, %89 : vector<8x6xf32>
    %91 = vector.extract_strided_slice %75 {offsets = [0, 0], sizes = [8, 6], strides = [1, 1]} : vector<8x8xf32> to vector<8x6xf32>
    %92 = vector.extract_strided_slice %75 {offsets = [0, 1], sizes = [8, 6], strides = [1, 1]} : vector<8x8xf32> to vector<8x6xf32>
    %93 = arith.subf %91, %92 : vector<8x6xf32>
    %94 = vector.extract_strided_slice %76 {offsets = [0, 0], sizes = [8, 6], strides = [1, 1]} : vector<8x8xf32> to vector<8x6xf32>
    %95 = vector.extract_strided_slice %76 {offsets = [0, 1], sizes = [8, 6], strides = [1, 1]} : vector<8x8xf32> to vector<8x6xf32>
    %96 = arith.subf %94, %95 : vector<8x6xf32>
    %97 = vector.extract_strided_slice %74 {offsets = [0, 2], sizes = [8, 6], strides = [1, 1]} : vector<8x8xf32> to vector<8x6xf32>
    %98 = vector.extract_strided_slice %74 {offsets = [0, 1], sizes = [8, 6], strides = [1, 1]} : vector<8x8xf32> to vector<8x6xf32>
    %99 = arith.subf %97, %98 : vector<8x6xf32>
    %100 = vector.extract_strided_slice %75 {offsets = [0, 2], sizes = [8, 6], strides = [1, 1]} : vector<8x8xf32> to vector<8x6xf32>
    %101 = vector.extract_strided_slice %75 {offsets = [0, 1], sizes = [8, 6], strides = [1, 1]} : vector<8x8xf32> to vector<8x6xf32>
    %102 = arith.subf %100, %101 : vector<8x6xf32>
    %103 = vector.extract_strided_slice %76 {offsets = [0, 2], sizes = [8, 6], strides = [1, 1]} : vector<8x8xf32> to vector<8x6xf32>
    %104 = vector.extract_strided_slice %76 {offsets = [0, 1], sizes = [8, 6], strides = [1, 1]} : vector<8x8xf32> to vector<8x6xf32>
    %105 = arith.subf %103, %104 : vector<8x6xf32>
    %106 = arith.mulf %90, %99 : vector<8x6xf32>
    %107 = arith.mulf %93, %102 : vector<8x6xf32>
    %108 = arith.addf %106, %107 : vector<8x6xf32>
    %109 = arith.mulf %96, %105 : vector<8x6xf32>
    %110 = arith.addf %108, %109 : vector<8x6xf32>
    %111 = arith.mulf %90, %90 : vector<8x6xf32>
    %112 = arith.mulf %93, %93 : vector<8x6xf32>
    %113 = arith.addf %111, %112 : vector<8x6xf32>
    %114 = arith.mulf %96, %96 : vector<8x6xf32>
    %115 = arith.addf %113, %114 : vector<8x6xf32>
    %116 = math.sqrt %115 : vector<8x6xf32>
    %117 = arith.mulf %99, %99 : vector<8x6xf32>
    %118 = arith.mulf %102, %102 : vector<8x6xf32>
    %119 = arith.addf %117, %118 : vector<8x6xf32>
    %120 = arith.mulf %105, %105 : vector<8x6xf32>
    %121 = arith.addf %119, %120 : vector<8x6xf32>
    %122 = math.sqrt %121 : vector<8x6xf32>
    %123 = arith.mulf %116, %122 : vector<8x6xf32>
    %cst_17 = arith.constant 9.99999996E-13 : f32
    %124 = vector.broadcast %cst_17 : f32 to vector<8x6xf32>
    %125 = arith.maximumf %123, %124 : vector<8x6xf32>
    %126 = arith.divf %110, %125 : vector<8x6xf32>
    %cst_18 = arith.constant -1.000000e+00 : f32
    %cst_19 = arith.constant 1.000000e+00 : f32
    %127 = vector.broadcast %cst_18 : f32 to vector<8x6xf32>
    %128 = arith.maximumf %127, %126 : vector<8x6xf32>
    %129 = vector.broadcast %cst_19 : f32 to vector<8x6xf32>
    %130 = arith.minimumf %129, %128 : vector<8x6xf32>
    %131 = vector.extract_strided_slice %74 {offsets = [0, 1], sizes = [8, 5], strides = [1, 1]} : vector<8x8xf32> to vector<8x5xf32>
    %132 = vector.extract_strided_slice %74 {offsets = [0, 0], sizes = [8, 5], strides = [1, 1]} : vector<8x8xf32> to vector<8x5xf32>
    %133 = arith.subf %131, %132 : vector<8x5xf32>
    %134 = vector.extract_strided_slice %75 {offsets = [0, 1], sizes = [8, 5], strides = [1, 1]} : vector<8x8xf32> to vector<8x5xf32>
    %135 = vector.extract_strided_slice %75 {offsets = [0, 0], sizes = [8, 5], strides = [1, 1]} : vector<8x8xf32> to vector<8x5xf32>
    %136 = arith.subf %134, %135 : vector<8x5xf32>
    %137 = vector.extract_strided_slice %76 {offsets = [0, 1], sizes = [8, 5], strides = [1, 1]} : vector<8x8xf32> to vector<8x5xf32>
    %138 = vector.extract_strided_slice %76 {offsets = [0, 0], sizes = [8, 5], strides = [1, 1]} : vector<8x8xf32> to vector<8x5xf32>
    %139 = arith.subf %137, %138 : vector<8x5xf32>
    %140 = vector.extract_strided_slice %74 {offsets = [0, 2], sizes = [8, 5], strides = [1, 1]} : vector<8x8xf32> to vector<8x5xf32>
    %141 = vector.extract_strided_slice %74 {offsets = [0, 1], sizes = [8, 5], strides = [1, 1]} : vector<8x8xf32> to vector<8x5xf32>
    %142 = arith.subf %140, %141 : vector<8x5xf32>
    %143 = vector.extract_strided_slice %75 {offsets = [0, 2], sizes = [8, 5], strides = [1, 1]} : vector<8x8xf32> to vector<8x5xf32>
    %144 = vector.extract_strided_slice %75 {offsets = [0, 1], sizes = [8, 5], strides = [1, 1]} : vector<8x8xf32> to vector<8x5xf32>
    %145 = arith.subf %143, %144 : vector<8x5xf32>
    %146 = vector.extract_strided_slice %76 {offsets = [0, 2], sizes = [8, 5], strides = [1, 1]} : vector<8x8xf32> to vector<8x5xf32>
    %147 = vector.extract_strided_slice %76 {offsets = [0, 1], sizes = [8, 5], strides = [1, 1]} : vector<8x8xf32> to vector<8x5xf32>
    %148 = arith.subf %146, %147 : vector<8x5xf32>
    %149 = vector.extract_strided_slice %74 {offsets = [0, 3], sizes = [8, 5], strides = [1, 1]} : vector<8x8xf32> to vector<8x5xf32>
    %150 = vector.extract_strided_slice %74 {offsets = [0, 2], sizes = [8, 5], strides = [1, 1]} : vector<8x8xf32> to vector<8x5xf32>
    %151 = arith.subf %149, %150 : vector<8x5xf32>
    %152 = vector.extract_strided_slice %75 {offsets = [0, 3], sizes = [8, 5], strides = [1, 1]} : vector<8x8xf32> to vector<8x5xf32>
    %153 = vector.extract_strided_slice %75 {offsets = [0, 2], sizes = [8, 5], strides = [1, 1]} : vector<8x8xf32> to vector<8x5xf32>
    %154 = arith.subf %152, %153 : vector<8x5xf32>
    %155 = vector.extract_strided_slice %76 {offsets = [0, 3], sizes = [8, 5], strides = [1, 1]} : vector<8x8xf32> to vector<8x5xf32>
    %156 = vector.extract_strided_slice %76 {offsets = [0, 2], sizes = [8, 5], strides = [1, 1]} : vector<8x8xf32> to vector<8x5xf32>
    %157 = arith.subf %155, %156 : vector<8x5xf32>
    %158 = arith.mulf %136, %148 : vector<8x5xf32>
    %159 = arith.mulf %139, %145 : vector<8x5xf32>
    %160 = arith.subf %158, %159 : vector<8x5xf32>
    %161 = arith.mulf %139, %142 : vector<8x5xf32>
    %162 = arith.mulf %133, %148 : vector<8x5xf32>
    %163 = arith.subf %161, %162 : vector<8x5xf32>
    %164 = arith.mulf %133, %145 : vector<8x5xf32>
    %165 = arith.mulf %136, %142 : vector<8x5xf32>
    %166 = arith.subf %164, %165 : vector<8x5xf32>
    %167 = arith.mulf %145, %157 : vector<8x5xf32>
    %168 = arith.mulf %148, %154 : vector<8x5xf32>
    %169 = arith.subf %167, %168 : vector<8x5xf32>
    %170 = arith.mulf %148, %151 : vector<8x5xf32>
    %171 = arith.mulf %142, %157 : vector<8x5xf32>
    %172 = arith.subf %170, %171 : vector<8x5xf32>
    %173 = arith.mulf %142, %154 : vector<8x5xf32>
    %174 = arith.mulf %145, %151 : vector<8x5xf32>
    %175 = arith.subf %173, %174 : vector<8x5xf32>
    %176 = arith.mulf %160, %169 : vector<8x5xf32>
    %177 = arith.mulf %163, %172 : vector<8x5xf32>
    %178 = arith.addf %176, %177 : vector<8x5xf32>
    %179 = arith.mulf %166, %175 : vector<8x5xf32>
    %180 = arith.addf %178, %179 : vector<8x5xf32>
    %181 = arith.mulf %160, %160 : vector<8x5xf32>
    %182 = arith.mulf %163, %163 : vector<8x5xf32>
    %183 = arith.addf %181, %182 : vector<8x5xf32>
    %184 = arith.mulf %166, %166 : vector<8x5xf32>
    %185 = arith.addf %183, %184 : vector<8x5xf32>
    %186 = math.sqrt %185 : vector<8x5xf32>
    %187 = arith.mulf %169, %169 : vector<8x5xf32>
    %188 = arith.mulf %172, %172 : vector<8x5xf32>
    %189 = arith.addf %187, %188 : vector<8x5xf32>
    %190 = arith.mulf %175, %175 : vector<8x5xf32>
    %191 = arith.addf %189, %190 : vector<8x5xf32>
    %192 = math.sqrt %191 : vector<8x5xf32>
    %193 = arith.mulf %142, %142 : vector<8x5xf32>
    %194 = arith.mulf %145, %145 : vector<8x5xf32>
    %195 = arith.addf %193, %194 : vector<8x5xf32>
    %196 = arith.mulf %148, %148 : vector<8x5xf32>
    %197 = arith.addf %195, %196 : vector<8x5xf32>
    %198 = math.sqrt %197 : vector<8x5xf32>
    %199 = arith.mulf %163, %175 : vector<8x5xf32>
    %200 = arith.mulf %166, %172 : vector<8x5xf32>
    %201 = arith.subf %199, %200 : vector<8x5xf32>
    %202 = arith.mulf %166, %169 : vector<8x5xf32>
    %203 = arith.mulf %160, %175 : vector<8x5xf32>
    %204 = arith.subf %202, %203 : vector<8x5xf32>
    %205 = arith.mulf %160, %172 : vector<8x5xf32>
    %206 = arith.mulf %163, %169 : vector<8x5xf32>
    %207 = arith.subf %205, %206 : vector<8x5xf32>
    %208 = arith.mulf %201, %142 : vector<8x5xf32>
    %209 = arith.mulf %204, %145 : vector<8x5xf32>
    %210 = arith.addf %208, %209 : vector<8x5xf32>
    %211 = arith.mulf %207, %148 : vector<8x5xf32>
    %212 = arith.addf %210, %211 : vector<8x5xf32>
    %213 = arith.mulf %186, %192 : vector<8x5xf32>
    %cst_20 = arith.constant 9.99999996E-13 : f32
    %214 = vector.broadcast %cst_20 : f32 to vector<8x5xf32>
    %215 = arith.maximumf %213, %214 : vector<8x5xf32>
    %216 = arith.divf %180, %215 : vector<8x5xf32>
    %cst_21 = arith.constant -1.000000e+00 : f32
    %cst_22 = arith.constant 1.000000e+00 : f32
    %217 = vector.broadcast %cst_21 : f32 to vector<8x5xf32>
    %218 = arith.maximumf %217, %216 : vector<8x5xf32>
    %219 = vector.broadcast %cst_22 : f32 to vector<8x5xf32>
    %220 = arith.minimumf %219, %218 : vector<8x5xf32>
    %221 = arith.mulf %198, %186 : vector<8x5xf32>
    %222 = arith.mulf %221, %192 : vector<8x5xf32>
    %cst_23 = arith.constant 9.99999996E-13 : f32
    %223 = vector.broadcast %cst_23 : f32 to vector<8x5xf32>
    %224 = arith.maximumf %222, %223 : vector<8x5xf32>
    %225 = arith.divf %212, %224 : vector<8x5xf32>
    %cst_24 = arith.constant -1.000000e+00 : f32
    %cst_25 = arith.constant 1.000000e+00 : f32
    %226 = vector.broadcast %cst_24 : f32 to vector<8x5xf32>
    %227 = arith.maximumf %226, %225 : vector<8x5xf32>
    %228 = vector.broadcast %cst_25 : f32 to vector<8x5xf32>
    %229 = arith.minimumf %228, %227 : vector<8x5xf32>
    %230 = tpu.iota {dimensions = array<i32: 1>} : vector<28x44xi32>
    %231 = tpu.iota {dimensions = array<i32: 0>} : vector<28x44xi32>
    %c0_i32 = arith.constant 0 : i32
    %232 = vector.broadcast %c0_i32 : i32 to vector<28x44xi32>
    %233 = arith.addi %231, %232 : vector<28x44xi32>
    %234 = arith.cmpi eq, %230, %233 : vector<28x44xi32>
    %235 = arith.extui %234 : vector<28x44xi1> to vector<28x44xi32>
    %236 = arith.sitofp %235 : vector<28x44xi32> to vector<28x44xf32>
    %cst_26 = arith.constant dense<0.000000e+00> : vector<8x44xf32>
    %237 = tpu.matmul %87, %236, %cst_26 {dimension_numbers = #tpu.dot_dimension_numbers<[1], [0], [0], [1], [0, 0, 1, 1], [], []>} : vector<8x28xf32>, vector<28x44xf32>, vector<8x44xf32> -> vector<8x44xf32>
    %238 = tpu.iota {dimensions = array<i32: 1>} : vector<6x44xi32>
    %239 = tpu.iota {dimensions = array<i32: 0>} : vector<6x44xi32>
    %c28_i32 = arith.constant 28 : i32
    %240 = vector.broadcast %c28_i32 : i32 to vector<6x44xi32>
    %241 = arith.addi %239, %240 : vector<6x44xi32>
    %242 = arith.cmpi eq, %238, %241 : vector<6x44xi32>
    %243 = arith.extui %242 : vector<6x44xi1> to vector<6x44xi32>
    %244 = arith.sitofp %243 : vector<6x44xi32> to vector<6x44xf32>
    %cst_27 = arith.constant dense<0.000000e+00> : vector<8x44xf32>
    %245 = tpu.matmul %130, %244, %cst_27 {dimension_numbers = #tpu.dot_dimension_numbers<[1], [0], [0], [1], [0, 0, 1, 1], [], []>} : vector<8x6xf32>, vector<6x44xf32>, vector<8x44xf32> -> vector<8x44xf32>
    %246 = arith.addf %237, %245 : vector<8x44xf32>
    %247 = tpu.iota {dimensions = array<i32: 1>} : vector<5x44xi32>
    %248 = tpu.iota {dimensions = array<i32: 0>} : vector<5x44xi32>
    %c34_i32 = arith.constant 34 : i32
    %249 = vector.broadcast %c34_i32 : i32 to vector<5x44xi32>
    %250 = arith.addi %248, %249 : vector<5x44xi32>
    %251 = arith.cmpi eq, %247, %250 : vector<5x44xi32>
    %252 = arith.extui %251 : vector<5x44xi1> to vector<5x44xi32>
    %253 = arith.sitofp %252 : vector<5x44xi32> to vector<5x44xf32>
    %cst_28 = arith.constant dense<0.000000e+00> : vector<8x44xf32>
    %254 = tpu.matmul %220, %253, %cst_28 {dimension_numbers = #tpu.dot_dimension_numbers<[1], [0], [0], [1], [0, 0, 1, 1], [], []>} : vector<8x5xf32>, vector<5x44xf32>, vector<8x44xf32> -> vector<8x44xf32>
    %255 = arith.addf %246, %254 : vector<8x44xf32>
    %256 = tpu.iota {dimensions = array<i32: 1>} : vector<5x44xi32>
    %257 = tpu.iota {dimensions = array<i32: 0>} : vector<5x44xi32>
    %c39_i32 = arith.constant 39 : i32
    %258 = vector.broadcast %c39_i32 : i32 to vector<5x44xi32>
    %259 = arith.addi %257, %258 : vector<5x44xi32>
    %260 = arith.cmpi eq, %256, %259 : vector<5x44xi32>
    %261 = arith.extui %260 : vector<5x44xi1> to vector<5x44xi32>
    %262 = arith.sitofp %261 : vector<5x44xi32> to vector<5x44xf32>
    %cst_29 = arith.constant dense<0.000000e+00> : vector<8x44xf32>
    %263 = tpu.matmul %229, %262, %cst_29 {dimension_numbers = #tpu.dot_dimension_numbers<[1], [0], [0], [1], [0, 0, 1, 1], [], []>} : vector<8x5xf32>, vector<5x44xf32>, vector<8x44xf32> -> vector<8x44xf32>
    %264 = arith.addf %255, %263 : vector<8x44xf32>
    %c0_30 = arith.constant 0 : index
    %c0_31 = arith.constant 0 : index
    %265 = vector.load %arg7[%c0_30, %c0_31] : memref<8x44xf32, #tpu.memory_space<vmem>>, vector<8x44xf32>
    tpu.vector_store %arg7[%c0_30, %c0_31], %264 {strides = array<i32>} : memref<8x44xf32, #tpu.memory_space<vmem>>, vector<8x44xf32>,
    %cst_32 = arith.constant dense<0.000000e+00> : vector<448x28xf32>
    %266 = tpu.matmul %45, %87, %cst_32 {dimension_numbers = #tpu.dot_dimension_numbers<[1], [0], [0], [1], [0, 0, 1, 1], [], []>} : vector<448x8xf32>, vector<8x28xf32>, vector<448x28xf32> -> vector<448x28xf32>
    %267 = arith.mulf %266, %49 : vector<448x28xf32>
    %cst_33 = arith.constant dense<0.000000e+00> : vector<448xf32>
    %268 = vector.multi_reduction <add>, %267, %cst_33 [1] : vector<448x28xf32> to vector<448xf32>
    %269 = vector.shape_cast %268 : vector<448xf32> to vector<448x1xf32>
    %270 = vector.broadcast %269 : vector<448x1xf32> to vector<448x32xf32>
    %271 = vector.broadcast %72 : vector<1x32xf32> to vector<448x32xf32>
    %272 = arith.subf %270, %271 : vector<448x32xf32>
    %cst_34 = arith.constant -1.922000e+01 : f32
    %273 = vector.broadcast %cst_34 : f32 to vector<448x32xf32>
    %274 = arith.mulf %273, %272 : vector<448x32xf32>
    %275 = arith.mulf %274, %272 : vector<448x32xf32>
    %276 = math.exp %275 : vector<448x32xf32>
    %277 = arith.truncf %276 : vector<448x32xf32> to vector<448x32xbf16>
    %c0_35 = arith.constant 0 : index
    %c0_36 = arith.constant 0 : index
    %278 = vector.load %arg3[%c0_35, %c0_36] : memref<96x64xbf16, #tpu.memory_space<vmem>>, vector<32x64xbf16>
    %c32 = arith.constant 32 : index
    %c0_37 = arith.constant 0 : index
    %279 = vector.load %arg3[%c32, %c0_37] : memref<96x64xbf16, #tpu.memory_space<vmem>>, vector<64x64xbf16>
    %c0_38 = arith.constant 0 : index
    %c0_39 = arith.constant 0 : index
    %280 = vector.load %arg4[%c0_38, %c0_39] : memref<2x64xf32, #tpu.memory_space<vmem>>, vector<1x64xf32>
    %c1 = arith.constant 1 : index
    %c0_40 = arith.constant 0 : index
    %281 = vector.load %arg4[%c1, %c0_40] : memref<2x64xf32, #tpu.memory_space<vmem>>, vector<1x64xf32>
    %cst_41 = arith.constant dense<0.000000e+00> : vector<448x64xf32>
    %282 = tpu.matmul %277, %278, %cst_41 {dimension_numbers = #tpu.dot_dimension_numbers<[1], [0], [0], [1], [0, 0, 1, 1], [], []>} : vector<448x32xbf16>, vector<32x64xbf16>, vector<448x64xf32> -> vector<448x64xf32>
    %283 = vector.broadcast %280 : vector<1x64xf32> to vector<448x64xf32>
    %284 = arith.addf %282, %283 : vector<448x64xf32>
    %cst_42 = arith.constant 0.000000e+00 : f32
    %285 = vector.broadcast %cst_42 : f32 to vector<448x64xf32>
    %286 = arith.maximumf %284, %285 : vector<448x64xf32>
    %287 = math.absf %284 : vector<448x64xf32>
    %cst_43 = arith.constant 0.000000e+00 : f32
    %288 = vector.broadcast %cst_43 : f32 to vector<448x64xf32>
    %289 = arith.subf %288, %287 : vector<448x64xf32>
    %290 = math.exp %289 : vector<448x64xf32>
    %cst_44 = arith.constant 1.000000e+00 : f32
    %291 = vector.broadcast %cst_44 : f32 to vector<448x64xf32>
    %292 = arith.addf %291, %290 : vector<448x64xf32>
    %293 = math.log %292 : vector<448x64xf32>
    %294 = arith.addf %286, %293 : vector<448x64xf32>
    %cst_45 = arith.constant 0.693147182 : f32
    %295 = vector.broadcast %cst_45 : f32 to vector<448x64xf32>
    %296 = arith.subf %294, %295 : vector<448x64xf32>
    %297 = arith.truncf %296 : vector<448x64xf32> to vector<448x64xbf16>
    %cst_46 = arith.constant dense<0.000000e+00> : vector<448x64xf32>
    %298 = tpu.matmul %297, %279, %cst_46 {dimension_numbers = #tpu.dot_dimension_numbers<[1], [0], [0], [1], [0, 0, 1, 1], [], []>} : vector<448x64xbf16>, vector<64x64xbf16>, vector<448x64xf32> -> vector<448x64xf32>
    %299 = vector.broadcast %281 : vector<1x64xf32> to vector<448x64xf32>
    %300 = arith.addf %298, %299 : vector<448x64xf32>
    %c0_47 = arith.constant 0 : index
    %c0_48 = arith.constant 0 : index
    %301 = vector.load %arg1[%c0_47, %c0_48] : memref<64x32xf32, #tpu.memory_space<vmem>>, vector<64x32xf32>
    %302 = vector.extract_strided_slice %300 {offsets = [0, 0], sizes = [448, 32], strides = [1, 1]} : vector<448x64xf32> to vector<448x32xf32>
    %c0_49 = arith.constant 0 : index
    %c0_50 = arith.constant 0 : index
    %c0_51 = arith.constant 0 : index
    %303 = vector.load %arg5[%c0_49, %c0_50, %c0_51] : memref<2x96x32xbf16, #tpu.memory_space<vmem>>, vector<1x32x32xbf16>
    %304 = vector.shape_cast %303 : vector<1x32x32xbf16> to vector<32x32xbf16>
    %c0_52 = arith.constant 0 : index
    %c32_53 = arith.constant 32 : index
    %c0_54 = arith.constant 0 : index
    %305 = vector.load %arg5[%c0_52, %c32_53, %c0_54] : memref<2x96x32xbf16, #tpu.memory_space<vmem>>, vector<1x32x32xbf16>
    %306 = vector.shape_cast %305 : vector<1x32x32xbf16> to vector<32x32xbf16>
    %c0_55 = arith.constant 0 : index
    %c64 = arith.constant 64 : index
    %c0_56 = arith.constant 0 : index
    %307 = vector.load %arg5[%c0_55, %c64, %c0_56] : memref<2x96x32xbf16, #tpu.memory_space<vmem>>, vector<1x32x32xbf16>
    %308 = vector.shape_cast %307 : vector<1x32x32xbf16> to vector<32x32xbf16>
    %c0_57 = arith.constant 0 : index
    %c0_58 = arith.constant 0 : index
    %c0_59 = arith.constant 0 : index
    %309 = vector.load %arg6[%c0_57, %c0_58, %c0_59] : memref<2x2x32xf32, #tpu.memory_space<vmem>>, vector<1x1x32xf32>
    %310 = vector.shape_cast %309 : vector<1x1x32xf32> to vector<1x32xf32>
    %c0_60 = arith.constant 0 : index
    %c1_61 = arith.constant 1 : index
    %c0_62 = arith.constant 0 : index
    %311 = vector.load %arg6[%c0_60, %c1_61, %c0_62] : memref<2x2x32xf32, #tpu.memory_space<vmem>>, vector<1x1x32xf32>
    %312 = vector.shape_cast %311 : vector<1x1x32xf32> to vector<1x32xf32>
    %313 = arith.truncf %301 : vector<64x32xf32> to vector<64x32xbf16>
    %cst_63 = arith.constant dense<0.000000e+00> : vector<64x32xf32>
    %314 = tpu.matmul %313, %304, %cst_63 {dimension_numbers = #tpu.dot_dimension_numbers<[1], [0], [0], [1], [0, 0, 1, 1], [], []>} : vector<64x32xbf16>, vector<32x32xbf16>, vector<64x32xf32> -> vector<64x32xf32>
    %cst_64 = arith.constant dense<0.000000e+00> : vector<448x32xf32>
    %315 = tpu.matmul %56, %314, %cst_64 {dimension_numbers = #tpu.dot_dimension_numbers<[1], [0], [0], [1], [0, 0, 1, 1], [], []>} : vector<448x64xf32>, vector<64x32xf32>, vector<448x32xf32> -> vector<448x32xf32>
    %316 = arith.mulf %315, %302 : vector<448x32xf32>
    %cst_65 = arith.constant dense<0.000000e+00> : vector<64x32xf32>
    %317 = tpu.matmul %68, %316, %cst_65 {dimension_numbers = #tpu.dot_dimension_numbers<[1], [0], [0], [1], [0, 0, 1, 1], [], []>} : vector<64x448xf32>, vector<448x32xf32>, vector<64x32xf32> -> vector<64x32xf32>
    %318 = arith.truncf %317 : vector<64x32xf32> to vector<64x32xbf16>
    %cst_66 = arith.constant dense<0.000000e+00> : vector<64x32xf32>
    %319 = tpu.matmul %318, %306, %cst_66 {dimension_numbers = #tpu.dot_dimension_numbers<[1], [0], [0], [1], [0, 0, 1, 1], [], []>} : vector<64x32xbf16>, vector<32x32xbf16>, vector<64x32xf32> -> vector<64x32xf32>
    %320 = vector.broadcast %310 : vector<1x32xf32> to vector<64x32xf32>
    %321 = arith.addf %319, %320 : vector<64x32xf32>
    %cst_67 = arith.constant 0.000000e+00 : f32
    %322 = vector.broadcast %cst_67 : f32 to vector<64x32xf32>
    %323 = arith.maximumf %321, %322 : vector<64x32xf32>
    %324 = math.absf %321 : vector<64x32xf32>
    %cst_68 = arith.constant 0.000000e+00 : f32
    %325 = vector.broadcast %cst_68 : f32 to vector<64x32xf32>
    %326 = arith.subf %325, %324 : vector<64x32xf32>
    %327 = math.exp %326 : vector<64x32xf32>
    %cst_69 = arith.constant 1.000000e+00 : f32
    %328 = vector.broadcast %cst_69 : f32 to vector<64x32xf32>
    %329 = arith.addf %328, %327 : vector<64x32xf32>
    %330 = math.log %329 : vector<64x32xf32>
    %331 = arith.addf %323, %330 : vector<64x32xf32>
    %cst_70 = arith.constant 0.693147182 : f32
    %332 = vector.broadcast %cst_70 : f32 to vector<64x32xf32>
    %333 = arith.subf %331, %332 : vector<64x32xf32>
    %334 = arith.truncf %333 : vector<64x32xf32> to vector<64x32xbf16>
    %cst_71 = arith.constant dense<0.000000e+00> : vector<64x32xf32>
    %335 = tpu.matmul %334, %308, %cst_71 {dimension_numbers = #tpu.dot_dimension_numbers<[1], [0], [0], [1], [0, 0, 1, 1], [], []>} : vector<64x32xbf16>, vector<32x32xbf16>, vector<64x32xf32> -> vector<64x32xf32>
    %336 = vector.broadcast %312 : vector<1x32xf32> to vector<64x32xf32>
    %337 = arith.addf %335, %336 : vector<64x32xf32>
    %338 = arith.addf %301, %337 : vector<64x32xf32>
    %339 = vector.extract_strided_slice %300 {offsets = [0, 32], sizes = [448, 32], strides = [1, 1]} : vector<448x64xf32> to vector<448x32xf32>
    %c1_72 = arith.constant 1 : index
    %c0_73 = arith.constant 0 : index
    %c0_74 = arith.constant 0 : index
    %340 = vector.load %arg5[%c1_72, %c0_73, %c0_74] : memref<2x96x32xbf16, #tpu.memory_space<vmem>>, vector<1x32x32xbf16>
    %341 = vector.shape_cast %340 : vector<1x32x32xbf16> to vector<32x32xbf16>
    %c1_75 = arith.constant 1 : index
    %c32_76 = arith.constant 32 : index
    %c0_77 = arith.constant 0 : index
    %342 = vector.load %arg5[%c1_75, %c32_76, %c0_77] : memref<2x96x32xbf16, #tpu.memory_space<vmem>>, vector<1x32x32xbf16>
    %343 = vector.shape_cast %342 : vector<1x32x32xbf16> to vector<32x32xbf16>
    %c1_78 = arith.constant 1 : index
    %c64_79 = arith.constant 64 : index
    %c0_80 = arith.constant 0 : index
    %344 = vector.load %arg5[%c1_78, %c64_79, %c0_80] : memref<2x96x32xbf16, #tpu.memory_space<vmem>>, vector<1x32x32xbf16>
    %345 = vector.shape_cast %344 : vector<1x32x32xbf16> to vector<32x32xbf16>
    %c1_81 = arith.constant 1 : index
    %c0_82 = arith.constant 0 : index
    %c0_83 = arith.constant 0 : index
    %346 = vector.load %arg6[%c1_81, %c0_82, %c0_83] : memref<2x2x32xf32, #tpu.memory_space<vmem>>, vector<1x1x32xf32>
    %347 = vector.shape_cast %346 : vector<1x1x32xf32> to vector<1x32xf32>
    %c1_84 = arith.constant 1 : index
    %c1_85 = arith.constant 1 : index
    %c0_86 = arith.constant 0 : index
    %348 = vector.load %arg6[%c1_84, %c1_85, %c0_86] : memref<2x2x32xf32, #tpu.memory_space<vmem>>, vector<1x1x32xf32>
    %349 = vector.shape_cast %348 : vector<1x1x32xf32> to vector<1x32xf32>
    %350 = arith.truncf %338 : vector<64x32xf32> to vector<64x32xbf16>
    %cst_87 = arith.constant dense<0.000000e+00> : vector<64x32xf32>
    %351 = tpu.matmul %350, %341, %cst_87 {dimension_numbers = #tpu.dot_dimension_numbers<[1], [0], [0], [1], [0, 0, 1, 1], [], []>} : vector<64x32xbf16>, vector<32x32xbf16>, vector<64x32xf32> -> vector<64x32xf32>
    %cst_88 = arith.constant dense<0.000000e+00> : vector<448x32xf32>
    %352 = tpu.matmul %56, %351, %cst_88 {dimension_numbers = #tpu.dot_dimension_numbers<[1], [0], [0], [1], [0, 0, 1, 1], [], []>} : vector<448x64xf32>, vector<64x32xf32>, vector<448x32xf32> -> vector<448x32xf32>
    %353 = arith.mulf %352, %339 : vector<448x32xf32>
    %cst_89 = arith.constant dense<0.000000e+00> : vector<64x32xf32>
    %354 = tpu.matmul %68, %353, %cst_89 {dimension_numbers = #tpu.dot_dimension_numbers<[1], [0], [0], [1], [0, 0, 1, 1], [], []>} : vector<64x448xf32>, vector<448x32xf32>, vector<64x32xf32> -> vector<64x32xf32>
    %355 = arith.truncf %354 : vector<64x32xf32> to vector<64x32xbf16>
    %cst_90 = arith.constant dense<0.000000e+00> : vector<64x32xf32>
    %356 = tpu.matmul %355, %343, %cst_90 {dimension_numbers = #tpu.dot_dimension_numbers<[1], [0], [0], [1], [0, 0, 1, 1], [], []>} : vector<64x32xbf16>, vector<32x32xbf16>, vector<64x32xf32> -> vector<64x32xf32>
    %357 = vector.broadcast %347 : vector<1x32xf32> to vector<64x32xf32>
    %358 = arith.addf %356, %357 : vector<64x32xf32>
    %cst_91 = arith.constant 0.000000e+00 : f32
    %359 = vector.broadcast %cst_91 : f32 to vector<64x32xf32>
    %360 = arith.maximumf %358, %359 : vector<64x32xf32>
    %361 = math.absf %358 : vector<64x32xf32>
    %cst_92 = arith.constant 0.000000e+00 : f32
    %362 = vector.broadcast %cst_92 : f32 to vector<64x32xf32>
    %363 = arith.subf %362, %361 : vector<64x32xf32>
    %364 = math.exp %363 : vector<64x32xf32>
    %cst_93 = arith.constant 1.000000e+00 : f32
    %365 = vector.broadcast %cst_93 : f32 to vector<64x32xf32>
    %366 = arith.addf %365, %364 : vector<64x32xf32>
    %367 = math.log %366 : vector<64x32xf32>
    %368 = arith.addf %360, %367 : vector<64x32xf32>
    %cst_94 = arith.constant 0.693147182 : f32
    %369 = vector.broadcast %cst_94 : f32 to vector<64x32xf32>
    %370 = arith.subf %368, %369 : vector<64x32xf32>
    %371 = arith.truncf %370 : vector<64x32xf32> to vector<64x32xbf16>
    %cst_95 = arith.constant dense<0.000000e+00> : vector<64x32xf32>
    %372 = tpu.matmul %371, %345, %cst_95 {dimension_numbers = #tpu.dot_dimension_numbers<[1], [0], [0], [1], [0, 0, 1, 1], [], []>} : vector<64x32xbf16>, vector<32x32xbf16>, vector<64x32xf32> -> vector<64x32xf32>
    %373 = vector.broadcast %349 : vector<1x32xf32> to vector<64x32xf32>
    %374 = arith.addf %372, %373 : vector<64x32xf32>
    %375 = arith.addf %338, %374 : vector<64x32xf32>
    %c0_96 = arith.constant 0 : index
    %c0_97 = arith.constant 0 : index
    %376 = vector.load %arg8[%c0_96, %c0_97] : memref<64x32xf32, #tpu.memory_space<vmem>>, vector<64x32xf32>
    tpu.vector_store %arg8[%c0_96, %c0_97], %375 {strides = array<i32>} : memref<64x32xf32, #tpu.memory_space<vmem>>, vector<64x32xf32>,
    return
  }
}

</mosaic_0001>

<bundles_post_ra>
// kernel: feature_combiner_forward.1
= control target key start
LH: loop header
LB: loop body
LE: loop exit
PB: predicated region body
PF: predicated region fallthrough
CT: control target
= control target key end

     0   :  { %s7738_s9 = smov 1   ;;  %s12780_s0 = inlined_call_operand.vmem [shape: f32[24,8], index: 0, kind: input, shape index: {}]   ;;  %s12781_s1 = inlined_call_operand.vmem [shape: f32[64,32], index: 1, kind: input, shape index: {}]   ;;  %s12782_s2 = inlined_call_operand.vmem [shape: f32[8,28], index: 2, kind: input, shape index: {}]   ;;  %s12783_s3 = inlined_call_operand.vmem [shape: bf16[96,64], index: 3, kind: input, shape index: {}]   ;;  %s12784_s4 = inlined_call_operand.vmem [shape: f32[2,64], index: 4, kind: input, shape index: {}]   ;;  %s12785_s5 = inlined_call_operand.vmem [shape: bf16[2,96,32], index: 5, kind: input, shape index: {}]   ;;  %s12786_s6 = inlined_call_operand.vmem [shape: f32[2,2,32], index: 6, kind: input, shape index: {}]   ;;  %s12787_s7 = inlined_call_operand.vmem [shape: f32[8,44], index: 7, kind: output, shape index: {0}]   ;;  %s12788_s8 = inlined_call_operand.hbm [shape: f32[64,32], index: 8, kind: output, shape index: {1}]  }
   0x1   :  { %v7795_v0 = vld [vmem:[%s12780_s0 + $0x10] sm:$0xff]  ;;  %v7800_v1 = vld [vmem:[%s12780_s0] sm:$0xff] }
   0x2   :  { %2298 = vrot.lane.b32.xlu1 %v7795_v0, %s7738_s9  ;;  %2290 = vrot.lane.b32.xlu0 %v7800_v1, %s7738_s9 }
   0x3   :  { %14 = vsyncpa [#allocation3], 0  ;;  %v7809_v2 = vld [vmem:[%s12780_s0 + $0x8] sm:$0xff]  ;;  %v2224_v3 = vld [vmem:[%s12782_s2] sm:$0xff]  ;;  %vm2225_vm0 = vcmask 64512   ;;  %s7739_s0 = smov 127   ;;  %v30_v57 = vlaneseq }
   0x4   :  { %2250 = vmatpush.msra.mxu0 %v2224_v3  ;;  %s7740_s2 = smov 126   ;;  %vm2540_vm5 = vcmask 1043456   ;;  %vm2536_vm12 = vcmask 228352   ;;  %s7743_s26 = smov 96  }
   0x5   :  { %6755 = vmatmul.msk.f32.vlgmr.msra.gmra.mxu0 %vm2225_vm0, %v7800_v1  ;;  %v7879_v60 = vshrl.u32 %v30_v57, 7  ;;  %v7881_v61 = vand.u32 127, %v30_v57  ;;  %s6429_s28 = sshll.u32 %s12788_s8, 4  ;;  %s7745_s29 = smov 128   ;;  %s6430_s28 = int_to_ptr.hbm [resolvable:$true] %s6429_s28 }
   0x6   :  { %s7746_s30 = smov 8  }
   0x7   :  { %13101 = vst [vmem:[#allocation5_spill] sm:$0xff] %v7881_v61  ;;  %v34_v63 = vadd.s32 24, %v7879_v60  ;;  %v33_v3 = vadd.s32 16, %v7879_v60  ;;  %vm2492_vm9 = vcmp.eq.s32.totalorder %v7881_v61, %v7879_v60  ;;  %v37_v57 = vadd.s32 48, %v7879_v60 }
   0x9   :  { %vm2495_vm6 = vcmp.eq.s32.totalorder %v7881_v61, %v34_v63  ;;  %vm2494_vm7 = vcmp.eq.s32.totalorder %v7881_v61, %v33_v3 }
   0xa   :  { %2294 = vrot.lane.b32.xlu0 %v7809_v2, %s7738_s9 }
   0xd   :  { %6756 = vmatmul.msk.f32.gmra.mxu0 %vm2225_vm0, %v7809_v2 }
  0x15   :  { %6757 = vmatmul.msk.f32.gmra.mxu0 %vm2225_vm0, %v7795_v0 }
  0x74   :  { %v2299_v4 = vpop.permute.xlu1 %2298  ;;  %v2291_v5 = vpop.permute.xlu0 %2290 }
  0x75   :  { %v2301_v6 = vsub.f32 %v7795_v0, %v2299_v4  ;;  %v2293_v9 = vsub.f32 %v7800_v1, %v2291_v5  ;;  %v32_v4 = vadd.s32 8, %v7879_v60  ;;  %v12791_v5 = vmov 0.0  }
  0x77   :  { %2376 = vrot.lane.b32.xlu1 %v2301_v6, %s7739_s0  ;;  %v2336_v10 = vmul.f32 %v2293_v9, %v2293_v9  ;;  %v2339_v13 = vmul.f32 %v2301_v6, %v2301_v6  ;;  %vm2493_vm8 = vcmp.eq.s32.totalorder %v7881_v61, %v32_v4 }
  0x7c   :  { %v2295_v7 = vpop.permute.xlu0 %2294 }
  0x7d   :  { %v7825_v8 = vsub.f32 %v7809_v2, %v2295_v7  ;;  %v12789_v7 = vmov 1.0  }
  0x7f   :  { %2380 = vrot.lane.b32.xlu2 %v7825_v8, %s7739_s0  ;;  %2278 = vrot.lane.b32.xlu1 %v7800_v1, %s7739_s0  ;;  %v2337_v11 = vmul.f32 %v7825_v8, %v7825_v8 }
  0x81   :  { %v2338_v12 = vadd.f32 %v2337_v11, %v2336_v10 }
  0x82   :  { %v2252_v52 = vpop.f32.mrf.mxu0 }
  0x83   :  { %v2340_v14 = vadd.f32 %v2339_v13, %v2338_v12  ;;  %v2261_v54 = vmul.f32 %v2252_v52, %v2252_v52 }
  0x85   :  { %7285 = vrsqrt.f32 %v2340_v14  ;;  %vm2348_vm1 = vcmp.eq.f32.partialorder %v2340_v14, inf  ;;  %v2351_v40 = vand.u32 2147483648, %v2340_v14  ;;  %vm2350_vm2 = vcmp.eq.f32.partialorder %v2340_v14, 0.0 }
  0x87   :  { %2385 = vrot.lane.b32.xlu2 %v2293_v9, %s7739_s0 }
  0x8a   :  { %v2255_v53 = vpop.f32.mrf.mxu0 }
  0x8b   :  { %v7286_v15 = vpop.eup %7285  ;;  %v2262_v55 = vmul.f32 %v2255_v53, %v2255_v53 }
  0x8c   :  { %v2342_v16 = vmul.f32 %v7286_v15, %v2340_v14 }
  0x8d   :  { %v2263_v56 = vadd.f32 %v2262_v55, %v2261_v54 }
  0x8e   :  { %v2343_v18 = vmul.f32 %v7286_v15, %v2342_v16 }
  0x8f   :  { %2282 = vrot.lane.b32.xlu2 %v7809_v2, %s7739_s0 }
  0x90   :  { %v2344_v19 = vmul.f32 0.5, %v2343_v18 }
  0x92   :  { %v2345_v21 = vsub.f32 1.5, %v2344_v19  ;;  %v2258_v58 = vpop.f32.mrf.mxu0 }
  0x93   :  { %v2264_v59 = vmul.f32 %v2258_v58, %v2258_v58 }
  0x94   :  { %v2346_v25 = vmul.f32 %v7286_v15, %v2345_v21  ;;  %v7898_v21 = vcvt.s32.f32 %v7879_v60 }
  0x95   :  { %v2265_v62 = vadd.f32 %v2264_v59, %v2263_v56 }
  0x96   :  { %v2347_v35 = vmul.f32 %v2346_v25, %v2340_v14  ;;  %13102 = vst [vmem:[#allocation6_spill] sm:$0xff] %v7898_v21 }
  0x97   :  { %vm2273_vm10 = vcmp.eq.f32.partialorder %v2265_v62, inf  ;;  %v2276_v15 = vand.u32 2147483648, %v2265_v62  ;;  %vm2275_vm11 = vcmp.eq.f32.partialorder %v2265_v62, 0.0 }
  0x98   :  { %v2349_v39 = vsel %vm2348_vm1, %v2340_v14, %v2347_v35 }
  0x99   :  { %v7865_v41 = vsel %vm2350_vm2, %v2351_v40, %v2349_v39  ;;  %vm2574_vm2 = vcmask 1044480  }
  0xd9   :  { %v7837_v17 = vpop.permute.xlu2 %2380 }
  0xda   :  { %v2383_v23 = vmul.f32 %v7837_v17, %v2301_v6  ;;  %v2391_v26 = vmul.f32 %v7837_v17, %v2293_v9 }
  0xe1   :  { %v7839_v20 = vpop.permute.xlu2 %2385 }
  0xe2   :  { %v2392_v22 = vmul.f32 %v7839_v20, %v7825_v8  ;;  %v2388_v27 = vmul.f32 %v7839_v20, %v2301_v6 }
  0xe4   :  { %v7851_v30 = vsub.f32 %v2391_v26, %v2392_v22  ;;  %v143_v22 = vadd.f32 0.5, %v7898_v21  ;;  %v7908_v26 = vcvt.s32.f32 %v32_v4  ;;  %v7962_v4 = vcvt.s32.f32 %v37_v57 }
  0xe6   :  { %v2414_v36 = vmul.f32 %v7851_v30, %v7851_v30  ;;  %v199_v25 = vmul.f32 0.017857144, %v143_v22  ;;  %13103 = vst [vmem:[#allocation7_spill] sm:$0xff] %v7908_v26 }
  0xe7   :  { %13113 = vst [vmem:[#allocation17_spill] sm:$0xff] %v7962_v4 }
  0xe9   :  { %v7844_v24 = vpop.permute.xlu1 %2376 }
  0xea   :  { %v2379_v28 = vmul.f32 %v7844_v24, %v7825_v8  ;;  %v2389_v29 = vmul.f32 %v7844_v24, %v2293_v9 }
  0xec   :  { %v7853_v31 = vsub.f32 %v2379_v28, %v2383_v23  ;;  %v7855_v32 = vsub.f32 %v2388_v27, %v2389_v29  ;;  %v7906_v23 = vcvt.s32.f32 %v7881_v61  ;;  %v7910_v27 = vfloor.f32 %v199_v25 }
  0xed   :  { %v144_v29 = vadd.f32 0.5, %v7908_v26 }
  0xee   :  { %v2411_v33 = vmul.f32 %v7853_v31, %v7853_v31  ;;  %v2412_v34 = vmul.f32 %v7855_v32, %v7855_v32  ;;  %2395 = vrot.lane.b32.xlu2 %v7853_v31, %s7739_s0  ;;  %13104 = vst [vmem:[#allocation8_spill] sm:$0xff] %v7910_v27  ;;  %vm1490_vm13 = vcmp.eq.f32.partialorder %v7906_v23, %v7910_v27 }
  0xef   :  { %v6555_v28 = vsel %vm1490_vm13, 1.0, %v12791_v5 }
  0xf0   :  { %v2413_v37 = vadd.f32 %v2412_v34, %v2411_v33  ;;  %v200_v33 = vmul.f32 0.017857144, %v144_v29  ;;  %v7917_v34 = vcvt.s32.f32 %v33_v3  ;;  %v2283_v29 = vpop.permute.xlu2 %2282 }
  0xf2   :  { %v2415_v38 = vadd.f32 %v2414_v36, %v2413_v37  ;;  %13105 = vst [vmem:[#allocation9_spill] sm:$0xff] %v7917_v34  ;;  %v7919_v35 = vfloor.f32 %v200_v33  ;;  %v145_v37 = vadd.f32 0.5, %v7917_v34  ;;  %v7996_v33 = vsub.f32 %v7809_v2, %v2283_v29 }
  0xf4   :  { %7287 = vrsqrt.f32 %v2415_v38  ;;  %vm2423_vm3 = vcmp.eq.f32.partialorder %v2415_v38, inf  ;;  %v2426_v49 = vand.u32 2147483648, %v2415_v38  ;;  %vm2425_vm4 = vcmp.eq.f32.partialorder %v2415_v38, 0.0  ;;  %13106 = vst [vmem:[#allocation10_spill] sm:$0xff] %v7919_v35 }
  0xf5   :  { %7289 = vrsqrt.f32 %v2265_v62  ;;  %vm1491_vm14 = vcmp.eq.f32.partialorder %v7906_v23, %v7919_v35 }
  0xf6   :  { %2354 = vrot.lane.b32.xlu2 %v7865_v41, %s7740_s2  ;;  %v6556_v36 = vsel %vm1491_vm14, 1.0, %v12791_v5 }
  0xfa   :  { %v7288_v42 = vpop.eup %7287 }
  0xfb   :  { %v2417_v43 = vmul.f32 %v7288_v42, %v2415_v38 }
  0xfd   :  { %v2418_v44 = vmul.f32 %v7288_v42, %v2417_v43 }
  0xfe   :  { %2314 = vrot.lane.b32.xlu2 %v2301_v6, %s7740_s2  ;;  %v6764_v6 = vsel %vm2495_vm6, 1.0, %v12791_v5 }
  0xff   :  { %v2419_v45 = vmul.f32 0.5, %v2418_v44  ;;  %6768 = vmatpush.msk.msrb.mxu0 %vm2540_vm5, %v6764_v6  ;;  %v35_v44 = vadd.s32 32, %v7879_v60 }
 0x101   :  { %v2420_v46 = vsub.f32 1.5, %v2419_v45  ;;  %6769 = vmatpush.msk.msrb.mxu0 %vm2494_vm7, %v12789_v7  ;;  %v36_v45 = vadd.s32 40, %v7879_v60 }
 0x103   :  { %v2421_v47 = vmul.f32 %v7288_v42, %v2420_v46  ;;  %6770 = vmatpush.msk.msrb.mxu0 %vm2493_vm8, %v12789_v7  ;;  %v7932_v42 = vcvt.s32.f32 %v34_v63  ;;  %v2564_v46 = vadd.s32 34, %v7879_v60  ;;  %v7941_v52 = vcvt.s32.f32 %v36_v45 }
 0x105   :  { %v2422_v48 = vmul.f32 %v2421_v47, %v2415_v38  ;;  %6771 = vmatpush.msk.msrb.mxu0 %vm2492_vm9, %v12789_v7  ;;  %13108 = vst [vmem:[#allocation12_spill] sm:$0xff] %v7932_v42  ;;  %v146_v43 = vadd.f32 0.5, %v7932_v42  ;;  %vm2565_vm1 = vcmp.eq.s32.totalorder %v7881_v61, %v2564_v46  ;;  %v148_v59 = vadd.f32 0.5, %v7941_v52 }
 0x106   :  { %13110 = vst [vmem:[#allocation14_spill] sm:$0xff] %v7941_v52  ;;  %v6773_v56 = vsel %vm2565_vm1, 1.0, %v12791_v5 }
 0x107   :  { %v2424_v50 = vsel %vm2423_vm3, %v2415_v38, %v2422_v48  ;;  %v201_v38 = vmul.f32 0.017857144, %v145_v37  ;;  %6774 = vmatpush.msk.msra.mxu3 %vm2574_vm2, %v6773_v56  ;;  %v204_v3 = vmul.f32 0.017857144, %v148_v59 }
 0x108   :  { %v7870_v51 = vsel %vm2425_vm4, %v2426_v49, %v2424_v50  ;;  %v202_v49 = vmul.f32 0.017857144, %v146_v43  ;;  %v7939_v50 = vcvt.s32.f32 %v35_v44 }
 0x109   :  { %2465 = vrot.lane.b32.xlu0 %v7870_v51, %s7738_s9  ;;  %v7926_v39 = vfloor.f32 %v201_v38  ;;  %v2320_v38 = vmul.f32 %v7996_v33, %v7996_v33 }
 0x10a   :  { %13109 = vst [vmem:[#allocation13_spill] sm:$0xff] %v7939_v50  ;;  %v7945_v54 = vfloor.f32 %v202_v49  ;;  %v147_v55 = vadd.f32 0.5, %v7939_v50 }
 0x10b   :  { %13107 = vst [vmem:[#allocation11_spill] sm:$0xff] %v7926_v39  ;;  %vm1492_vm15 = vcmp.eq.f32.partialorder %v7906_v23, %v7926_v39  ;;  %v313_v2 = vmul.f32 56.0, %v7926_v39 }
 0x10c   :  { %v6557_v40 = vsel %vm1492_vm15, 1.0, %v12791_v5  ;;  %13111 = vst [vmem:[#allocation15_spill] sm:$0xff] %v7945_v54  ;;  %vm1493_vm3 = vcmp.eq.f32.partialorder %v7906_v23, %v7945_v54  ;;  %vm2512_vm15 = vcmask 1045504  }
 0x111   :  { %2286 = vrot.lane.b32.xlu0 %v7795_v0, %s7739_s0 }
 0x119   :  { %2400 = vrot.lane.b32.xlu0 %v7855_v32, %s7739_s0 }
 0x121   :  { %2303 = vrot.lane.b32.xlu0 %v2293_v9, %s7740_s2  ;;  %v7290_v9 = vpop.eup %7289 }
 0x122   :  { %v2267_v10 = vmul.f32 %v7290_v9, %v2265_v62 }
 0x124   :  { %v2268_v11 = vmul.f32 %v7290_v9, %v2267_v10  ;;  %v149_v10 = vadd.f32 0.5, %v7962_v4 }
 0x126   :  { %v2269_v12 = vmul.f32 0.5, %v2268_v11  ;;  %v38_v11 = vadd.s32 56, %v7879_v60 }
 0x128   :  { %v2270_v13 = vsub.f32 1.5, %v2269_v12  ;;  %v205_v12 = vmul.f32 0.017857144, %v149_v10 }
 0x12a   :  { %v2271_v14 = vmul.f32 %v7290_v9, %v2270_v13  ;;  %v7965_v9 = vfloor.f32 %v204_v3  ;;  %v7974_v13 = vcvt.s32.f32 %v38_v11 }
 0x12c   :  { %v2272_v16 = vmul.f32 %v2271_v14, %v2265_v62  ;;  %13114 = vst [vmem:[#allocation18_spill] sm:$0xff] %v7965_v9  ;;  %vm1495_vm5 = vcmp.eq.f32.partialorder %v7906_v23, %v7965_v9 }
 0x12d   :  { %13115 = vst [vmem:[#allocation19_spill] sm:$0xff] %v7974_v13  ;;  %v6560_v14 = vsel %vm1495_vm5, 1.0, %v12791_v5 }
 0x12e   :  { %v2274_v18 = vsel %vm2273_vm10, %v2265_v62, %v2272_v16  ;;  %v6558_v62 = vsel %vm1493_vm3, 1.0, %v12791_v5  ;;  %v150_v16 = vadd.f32 0.5, %v7974_v13 }
 0x12f   :  { %v7895_v19 = vsel %vm2275_vm11, %v2276_v15, %v2274_v18  ;;  %v7977_v15 = vfloor.f32 %v205_v12 }
 0x130   :  { %6772 = vmatmul.msk.f32.vlgmr.msrb.gmra.mxu0 %vm2536_vm12, %v7895_v19  ;;  %7268 = vmatpush.msra.mxu2 %v7895_v19  ;;  %v206_v18 = vmul.f32 0.017857144, %v150_v16 }
 0x131   :  { %2817 = vmatpush.msra.mxu0 %v7895_v19  ;;  %7269 = vmatpush.msrb.mxu3 %v7895_v19  ;;  %13116 = vst [vmem:[#allocation20_spill] sm:$0xff] %v7977_v15  ;;  %vm1496_vm6 = vcmp.eq.f32.partialorder %v7906_v23, %v7977_v15 }
 0x132   :  { %v6561_v22 = vsel %vm1496_vm6, 1.0, %v12791_v5  ;;  %v7986_v25 = vfloor.f32 %v206_v18 }
 0x134   :  { %13117 = vst [vmem:[#allocation21_spill] sm:$0xff] %v7986_v25  ;;  %vm1497_vm7 = vcmp.eq.f32.partialorder %v7906_v23, %v7986_v25 }
 0x138   :  { %6779 = vmatmul.msk.f32.vlgmr.msra.gmra.mxu0 %vm2225_vm0, %v6555_v28  ;;  %v2279_v28 = vpop.permute.xlu1 %2278 }
 0x140   :  { %6780 = vmatmul.msk.f32.gmra.mxu0 %vm2225_vm0, %v6556_v36  ;;  %v7999_v36 = vsub.f32 %v7800_v1, %v2279_v28  ;;  %v369_v1 = vsub.f32 %v7917_v34, %v313_v2 }
 0x148   :  { %6781 = vmatmul.msk.f32.gmra.mxu0 %vm2225_vm0, %v6557_v40  ;;  %v2319_v40 = vmul.f32 %v7999_v36, %v7999_v36  ;;  %v8022_v16 = vpop.permute.xlu2 %2395 }
 0x14a   :  { %v2321_v44 = vadd.f32 %v2320_v38, %v2319_v40 }
 0x150   :  { %6782 = vmatmul.msk.f32.gmra.mxu0 %vm2225_vm0, %v6558_v62  ;;  %v312_v62 = vmul.f32 56.0, %v7919_v35 }
 0x152   :  { %v368_v11 = vsub.f32 %v7908_v26, %v312_v62 }
 0x154   :  { %v424_v28 = vadd.f32 0.5, %v368_v11 }
 0x17b   :  { %v2466_v47 = vpop.permute.xlu0 %2465 }
 0x17c   :  { %v2468_v48 = vmul.f32 %v2466_v47, %v7865_v41  ;;  %v203_v41 = vmul.f32 0.017857144, %v147_v55 }
 0x17e   :  { %v2469_v53 = vmul.f32 %v2468_v48, %v7870_v51  ;;  %v7958_v63 = vfloor.f32 %v203_v41  ;;  %v425_v48 = vadd.f32 0.5, %v369_v1 }
 0x180   :  { %v2470_v58 = vmax.f32 %v2469_v53, 1e-12  ;;  %13112 = vst [vmem:[#allocation16_spill] sm:$0xff] %v7958_v63  ;;  %vm1494_vm4 = vcmp.eq.f32.partialorder %v7906_v23, %v7958_v63  ;;  %v481_v53 = vmul.f32 0.14285715, %v425_v48 }
 0x181   :  { %v6559_v6 = vsel %vm1494_vm4, 1.0, %v12791_v5 }
 0x182   :  { %2472 = vrot.lane.b32.xlu1 %v2470_v58, %s7739_s0  ;;  %6783 = vmatmul.msk.f32.gmra.mxu0 %vm2225_vm0, %v6559_v6  ;;  %v537_v56 = vfloor.f32 %v481_v53 }
 0x183   :  { %v2287_v37 = vpop.permute.xlu0 %2286 }
 0x184   :  { %v8006_v43 = vsub.f32 %v7795_v0, %v2287_v37  ;;  %v593_v0 = vmul.f32 7.0, %v537_v56 }
 0x186   :  { %v2322_v45 = vmul.f32 %v8006_v43, %v8006_v43  ;;  %v649_v41 = vsub.f32 %v369_v1, %v593_v0 }
 0x188   :  { %v2323_v46 = vadd.f32 %v2322_v45, %v2321_v44  ;;  %vm705_vm8 = vcmp.ge.f32.partialorder %v649_v41, %v537_v56  ;;  %v480_v45 = vmul.f32 0.14285715, %v424_v28  ;;  %v2504_v28 = vadd.s32 28, %v7879_v60 }
 0x189   :  { %v6445_v3 = vsel %vm705_vm8, 1.0, %v12791_v5 }
 0x18a   :  { %2406 = vrot.lane.b32.xlu1 %v7851_v30, %s7739_s0  ;;  %6784 = vmatmul.msk.f32.gmra.mxu0 %vm2225_vm0, %v6560_v14  ;;  %7291 = vrsqrt.f32 %v2323_v46  ;;  %v8016_v6 = vadd.f32 %v6445_v3, %v649_v41  ;;  %vm2331_vm9 = vcmp.eq.f32.partialorder %v2323_v46, inf  ;;  %v2334_v40 = vand.u32 2147483648, %v2323_v46 }
 0x18b   :  { %vm2333_vm10 = vcmp.eq.f32.partialorder %v2323_v46, 0.0  ;;  %v8029_v0 = vfloor.f32 %v480_v45  ;;  %vm2505_vm13 = vcmp.eq.s32.totalorder %v7881_v61, %v2504_v28 }
 0x18c   :  { %13118 = vst [vmem:[#allocation22_spill] sm:$0xff] %v8016_v6  ;;  %v929_v12 = vmin.f32 %v537_v56, %v8016_v6  ;;  %v985_v1 = vmax.f32 %v537_v56, %v8016_v6  ;;  %v6765_v45 = vsel %vm2505_vm13, 1.0, %v12791_v5  ;;  %vm2508_vm13 = vcmask 48128  }
 0x18d   :  { %6766 = vmatpush.msk.msra.mxu1 %vm2512_vm15, %v6765_v45  ;;  %v315_v45 = vmul.f32 56.0, %v7958_v63 }
 0x18e   :  { %v1097_v18 = vadd.f32 1.0, %v929_v12  ;;  %v1041_v37 = vmul.f32 8.0, %v929_v12 }
 0x190   :  { %v7292_v47 = vpop.eup %7291  ;;  %v1153_v29 = vmul.f32 %v1097_v18, %v929_v12  ;;  %v592_v18 = vmul.f32 7.0, %v8029_v0 }
 0x191   :  { %v2325_v49 = vmul.f32 %v7292_v47, %v2323_v46 }
 0x192   :  { %2308 = vrot.lane.b32.xlu1 %v7825_v8, %s7740_s2  ;;  %6785 = vmatmul.msk.f32.gmra.mxu0 %vm2225_vm0, %v6561_v22  ;;  %v6562_v8 = vsel %vm1497_vm7, 1.0, %v12791_v5  ;;  %v1209_v38 = vmul.f32 0.5, %v1153_v29 }
 0x193   :  { %v2326_v55 = vmul.f32 %v7292_v47, %v2325_v49 }
 0x195   :  { %v2327_v57 = vmul.f32 0.5, %v2326_v55 }
 0x197   :  { %v2328_v59 = vsub.f32 1.5, %v2327_v57  ;;  %v2355_v57 = vpop.permute.xlu2 %2354 }
 0x199   :  { %v2329_v10 = vmul.f32 %v7292_v47, %v2328_v59  ;;  %v1265_v47 = vsub.f32 %v1041_v37, %v1209_v38 }
 0x19a   :  { %2443 = vrot.lane.b32.xlu1 %v7870_v51, %s7739_s0  ;;  %6786 = vmatmul.msk.f32.gmra.mxu0 %vm2225_vm0, %v6562_v8  ;;  %v311_v8 = vmul.f32 56.0, %v7910_v27 }
 0x19b   :  { %v2330_v22 = vmul.f32 %v2329_v10, %v2323_v46  ;;  %v1321_v53 = vadd.f32 %v1265_v47, %v985_v1 }
 0x19c   :  { %v367_v2 = vsub.f32 %v7898_v21, %v311_v8 }
 0x19d   :  { %v2332_v44 = vsel %vm2331_vm9, %v2323_v46, %v2330_v22  ;;  %v1377_v59 = vsub.f32 %v1321_v53, %v929_v12  ;;  %v314_v46 = vmul.f32 56.0, %v7945_v54  ;;  %v2599_v12 = vadd.s32 39, %v7879_v60 }
 0x19e   :  { %v423_v49 = vadd.f32 0.5, %v367_v2  ;;  %v2335_v55 = vsel %vm2333_vm10, %v2334_v40, %v2332_v44  ;;  %v648_v44 = vsub.f32 %v368_v11, %v592_v18  ;;  %v316_v53 = vmul.f32 56.0, %v7965_v9 }
 0x19f   :  { %v2357_v62 = vmul.f32 %v2355_v57, %v2335_v55  ;;  %v6501_v10 = vadd.f32 -1.0, %v1377_v59  ;;  %v8040_v40 = vsub.f32 %v7932_v42, %v314_v46  ;;  %vm2600_vm1 = vcmp.eq.s32.totalorder %v7881_v61, %v2599_v12  ;;  %v8056_v57 = vpop.permute.xlu0 %2400 }
 0x1a0   :  { %v479_v41 = vmul.f32 0.14285715, %v423_v49  ;;  %v6776_v49 = vsel %vm2600_vm1, 1.0, %v12791_v5  ;;  %vm704_vm3 = vcmp.ge.f32.partialorder %v648_v44, %v8029_v0  ;;  %v2435_v12 = vmul.f32 %v8022_v16, %v7855_v32 }
 0x1a1   :  { %vm1660_vm11 = vcmp.eq.f32.partialorder %v7906_v23, %v6501_v10  ;;  %v8036_v29 = vmax.f32 %v2357_v62, 1e-12  ;;  %v426_v11 = vadd.f32 0.5, %v8040_v40  ;;  %6777 = vmatpush.msk.msrb.mxu1 %vm2574_vm2, %v6776_v49  ;;  %v8061_v10 = vsub.f32 %v7941_v52, %v316_v53 }
 0x1a2   :  { %v535_v3 = vfloor.f32 %v479_v41  ;;  %v6613_v56 = vsel %vm1660_vm11, 1.0, %v12791_v5  ;;  %v8081_v52 = vsub.f32 %v7939_v50, %v315_v45 }
 0x1a3   :  { %7293 = vrcp.f32 %v8036_v29  ;;  %v482_v62 = vmul.f32 0.14285715, %v426_v11  ;;  %v428_v49 = vadd.f32 0.5, %v8061_v10  ;;  %vm2364_vm9 = vweird.f32 %v8036_v29 }
 0x1a4   :  { %v591_v22 = vmul.f32 7.0, %v535_v3 }
 0x1a6   :  { %v647_v37 = vsub.f32 %v367_v2, %v591_v22 }
 0x1a7   :  { %v2304_v61 = vpop.permute.xlu0 %2303 }
 0x1a8   :  { %vm703_vm14 = vcmp.ge.f32.partialorder %v647_v37, %v535_v3 }
 0x1a9   :  { %v6443_v1 = vsel %vm703_vm14, 1.0, %v12791_v5  ;;  %v8058_v59 = vpop.eup %7293 }
 0x1aa   :  { %v8048_v2 = vadd.f32 %v6443_v1, %v647_v37  ;;  %vm2365_vm5 = vweird.f32 %v8058_v59 }
 0x1ab   :  { %vm8117_vm10 = vmor %vm2364_vm9, %vm2365_vm5 }
 0x1ac   :  { %13119 = vst [vmem:[#allocation23_spill] sm:$0xff] %v8048_v2  ;;  %v927_v55 = vmin.f32 %v535_v3, %v8048_v2  ;;  %v983_v28 = vmax.f32 %v535_v3, %v8048_v2 }
 0x1ad   :  { %v8012_v58 = vpop.f32.mrf.mxu0 }
 0x1ae   :  { %v1095_v41 = vadd.f32 1.0, %v927_v55  ;;  %v1039_v18 = vmul.f32 8.0, %v927_v55 }
 0x1b0   :  { %v1151_v22 = vmul.f32 %v1095_v41, %v927_v55  ;;  %v318_v41 = vmul.f32 56.0, %v7986_v25  ;;  %v13121_v25 = vmov 0.0  }
 0x1b2   :  { %v1207_v37 = vmul.f32 0.5, %v1151_v22  ;;  %v8099_v50 = vsub.f32 %v7974_v13, %v318_v41 }
 0x1b4   :  { %v1263_v11 = vsub.f32 %v1039_v18, %v1207_v37 }
 0x1b5   :  { %v8020_v14 = vpop.f32.mrf.mxu0 }
 0x1b6   :  { %v1319_v3 = vadd.f32 %v1263_v11, %v983_v28 }
 0x1b8   :  { %v1375_v37 = vsub.f32 %v1319_v3, %v927_v55 }
 0x1bd   :  { %v8027_v48 = vpop.f32.mrf.mxu0 }
 0x1c5   :  { %v2825_v8 = vpop.f32.mrf.mxu0 }
 0x1c6   :  { %v2989_v38 = vmul.f32 %v6613_v56, %v2825_v8  ;;  %v6444_v56 = vsel %vm704_vm3, 1.0, %v12791_v5  ;;  %v2434_v8 = vmul.f32 %v8056_v57, %v7853_v31  ;;  %v2431_v5 = vmul.f32 %v8022_v16, %v7851_v30 }
 0x1c7   :  { %v8072_v1 = vadd.f32 %v6444_v56, %v648_v44  ;;  %v317_v44 = vmul.f32 56.0, %v7977_v15  ;;  %v484_v56 = vmul.f32 0.14285715, %v428_v49  ;;  %v6499_v49 = vadd.f32 -1.0, %v1375_v37 }
 0x1c8   :  { %v3049_v47 = vsel %vm2536_vm12, %v2989_v38, 0.0  ;;  %v2360_v38 = vmul.f32 %v8058_v59, %v8036_v29  ;;  %v2436_v53 = vsub.f32 %v2434_v8, %v2435_v12 }
 0x1c9   :  { %3050 = vadd.xlane.f32.xlu1 %v3049_v47  ;;  %13120 = vst [vmem:[#allocation24_spill] sm:$0xff] %v8072_v1  ;;  %v8074_v47 = vfloor.f32 %v482_v62  ;;  %v8086_v62 = vmin.f32 %v8029_v0, %v8072_v1  ;;  %vm1658_vm4 = vcmp.eq.f32.partialorder %v7906_v23, %v6499_v49 }
 0x1ca   :  { %v2361_v22 = vsub.f32 1.0, %v2360_v38  ;;  %v2429_v38 = vmul.f32 %v8056_v57, %v7851_v30  ;;  %v2440_v12 = vmul.f32 %v2436_v53, %v7844_v24  ;;  %v6611_v15 = vsel %vm1658_vm4, 1.0, %v13121_v25 }
 0x1cb   :  { %v594_v18 = vmul.f32 7.0, %v8074_v47  ;;  %v1096_v21 = vadd.f32 1.0, %v8086_v62 }
 0x1cc   :  { %v2362_v55 = vmul.f32 %v8058_v59, %v2361_v22  ;;  %v2987_v22 = vmul.f32 %v6611_v15, %v8020_v14 }
 0x1ce   :  { %v2363_v37 = vadd.f32 %v8058_v59, %v2362_v55 }
 0x1d0   :  { %v2367_v14 = vsel %vm8117_vm10, %v8058_v59, %v2363_v37 }
 0x1f4   :  { %v2473_v46 = vpop.permute.xlu1 %2472 }
 0x1f5   :  { %7295 = vrcp.f32 %v2473_v46  ;;  %v2486_v3 = vand.u32 2147483648, %v2473_v46  ;;  %v2484_v53 = vand.u32 2147483647, %v2473_v46  ;;  %vm2480_vm6 = vweird.f32 %v2473_v46 }
 0x1f7   :  { %vm2485_vm8 = vcmp.eq.f32.partialorder %v2484_v53, 8.507059e+37 }
 0x1fb   :  { %v7296_v7 = vpop.eup %7295 }
 0x1fc   :  { %v2476_v8 = vmul.f32 %v7296_v7, %v2473_v46  ;;  %v8089_v28 = vpop.permute.xlu1 %2406  ;;  %vm2481_vm2 = vweird.f32 %v7296_v7 }
 0x1fd   :  { %v2428_v45 = vmul.f32 %v8089_v28, %v7855_v32  ;;  %v2432_v11 = vmul.f32 %v8089_v28, %v7853_v31  ;;  %vm2482_vm7 = vmor %vm2480_vm6, %vm2481_vm2 }
 0x1fe   :  { %v2477_v42 = vsub.f32 1.0, %v2476_v8 }
 0x1ff   :  { %v2430_v34 = vsub.f32 %v2428_v45, %v2429_v38  ;;  %v2433_v26 = vsub.f32 %v2431_v5, %v2432_v11  ;;  %v2487_v38 = vor.u32 1.1754944e-38, %v2486_v3  ;;  %v1152_v45 = vmul.f32 %v1096_v21, %v8086_v62 }
 0x200   :  { %v2478_v24 = vmul.f32 %v7296_v7, %v2477_v42  ;;  %v2306_v42 = vmul.f32 %v2304_v61, %v7999_v36  ;;  %v2368_v21 = vand.u32 2147483647, %v8036_v29  ;;  %v8124_v36 = vsub.f32 %v7962_v4, %v317_v44 }
 0x201   :  { %v2437_v41 = vmul.f32 %v2430_v34, %v7839_v20  ;;  %v2438_v8 = vmul.f32 %v2433_v26, %v7837_v17  ;;  %v2370_v17 = vand.u32 2147483648, %v8036_v29  ;;  %v2315_v20 = vpop.permute.xlu2 %2314  ;;  %v1208_v46 = vmul.f32 0.5, %v1152_v45 }
 0x202   :  { %v2479_v5 = vadd.f32 %v7296_v7, %v2478_v24  ;;  %v650_v3 = vsub.f32 %v8040_v40, %v594_v18  ;;  %v427_v29 = vadd.f32 0.5, %v8081_v52  ;;  %v8134_v24 = vfloor.f32 %v484_v56 }
 0x203   :  { %v2439_v11 = vadd.f32 %v2438_v8, %v2437_v41  ;;  %v2371_v44 = vor.u32 1.1754944e-38, %v2370_v17  ;;  %vm2369_vm11 = vcmp.eq.f32.partialorder %v2368_v21, 8.507059e+37  ;;  %v984_v8 = vmax.f32 %v8029_v0, %v8072_v1 }
 0x204   :  { %v2309_v49 = vpop.permute.xlu1 %2308  ;;  %v2483_v13 = vsel %vm2482_vm7, %v7296_v7, %v2479_v5  ;;  %v2317_v7 = vmul.f32 %v2315_v20, %v8006_v43  ;;  %v430_v43 = vadd.f32 0.5, %v8099_v50  ;;  %v483_v37 = vmul.f32 0.14285715, %v427_v29 }
 0x205   :  { %v2311_v26 = vmul.f32 %v2309_v49, %v7996_v33  ;;  %v2441_v34 = vadd.f32 %v2440_v12, %v2439_v11  ;;  %v2488_v15 = vsel %vm2485_vm8, %v2487_v38, %v2483_v13  ;;  %v3043_v33 = vsel %vm2536_vm12, %v2987_v22, 0.0 }
 0x206   :  { %v1040_v13 = vmul.f32 8.0, %v8086_v62  ;;  %3044 = vadd.xlane.f32.xlu2 %v3043_v33  ;;  %v2372_v59 = vsel %vm2369_vm11, %v2371_v44, %v2367_v14  ;;  %v429_v40 = vadd.f32 0.5, %v8124_v36  ;;  %v486_v18 = vmul.f32 0.14285715, %v430_v43 }
 0x207   :  { %v2312_v12 = vadd.f32 %v2311_v26, %v2306_v42  ;;  %v2489_v55 = vmul.f32 %v2488_v15, %v2441_v34  ;;  %v596_v56 = vmul.f32 7.0, %v8134_v24  ;;  %vm706_vm14 = vcmp.ge.f32.partialorder %v650_v3, %v8074_v47 }
 0x208   :  { %v1264_v22 = vsub.f32 %v1040_v13, %v1208_v46  ;;  %v6446_v11 = vsel %vm706_vm14, 1.0, %v13121_v25  ;;  %v485_v20 = vmul.f32 0.14285715, %v429_v40  ;;  %v8146_v26 = vfloor.f32 %v486_v18 }
 0x209   :  { %v2318_v53 = vadd.f32 %v2317_v7, %v2312_v12  ;;  %v6760_v41 = vclamps-f32 %v2489_v55, 1.0  ;;  %v8144_v17 = vadd.f32 %v6446_v11, %v650_v3  ;;  %v2403_v34 = vmul.f32 %v8056_v57, %v7855_v32  ;;  %v8164_v57 = vpop.f32.mrf.mxu0 }
 0x20a   :  { %v1320_v0 = vadd.f32 %v1264_v22, %v984_v8  ;;  %v8151_v15 = vfloor.f32 %v483_v37  ;;  %v2398_v21 = vmul.f32 %v8022_v16, %v7853_v31  ;;  %v8159_v14 = vfloor.f32 %v485_v20 }
 0x20b   :  { %2604 = vrot.lane.b32.xlu0 %v6760_v41, %s7739_s0  ;;  %v2373_v5 = vmul.f32 %v2372_v59, %v2318_v53  ;;  %13124 = vst [vmem:[#allocation25_spill] sm:$0xff] %v8144_v17  ;;  %v930_v61 = vmin.f32 %v8074_v47, %v8144_v17  ;;  %v2409_v32 = vmul.f32 %v8089_v28, %v7851_v30 }
 0x20c   :  { %v2444_v42 = vpop.permute.xlu1 %2443  ;;  %v1376_v7 = vsub.f32 %v1320_v0, %v8086_v62  ;;  %v2404_v13 = vadd.f32 %v2403_v34, %v2398_v21  ;;  %v986_v44 = vmax.f32 %v8074_v47, %v8144_v17  ;;  %v597_v20 = vmul.f32 7.0, %v8159_v14 }
 0x20d   :  { %v2446_v38 = vmul.f32 %v2444_v42, %v7870_v51  ;;  %v6758_v45 = vclamps-f32 %v2373_v5, 1.0  ;;  %v652_v51 = vsub.f32 %v8061_v10, %v596_v56  ;;  %v1098_v33 = vadd.f32 1.0, %v930_v61 }
 0x20e   :  { %v595_v10 = vmul.f32 7.0, %v8151_v15  ;;  %v1042_v12 = vmul.f32 8.0, %v930_v61  ;;  %v6500_v55 = vadd.f32 -1.0, %v1376_v7  ;;  %v2410_v41 = vadd.f32 %v2409_v32, %v2404_v13 }
 0x20f   :  { %v2447_v49 = vmax.f32 %v2446_v38, 1e-12  ;;  %6767 = vmatmul.msk.f32.vlgmr.msra.gmra.mxu1 %vm2508_vm13, %v6758_v45  ;;  %vm708_vm15 = vcmp.ge.f32.partialorder %v652_v51, %v8134_v24  ;;  %v1154_v31 = vmul.f32 %v1098_v33, %v930_v61 }
 0x210   :  { %7267 = vmatpush.msra.mxu1 %v7895_v19  ;;  %v598_v19 = vmul.f32 7.0, %v8146_v26  ;;  %v6448_v16 = vsel %vm708_vm15, 1.0, %v13121_v25  ;;  %v651_v29 = vsub.f32 %v8081_v52, %v595_v10  ;;  %vm1659_vm4 = vcmp.eq.f32.partialorder %v7906_v23, %v6500_v55 }
 0x211   :  { %7297 = vrcp.f32 %v2447_v49  ;;  %v2457_v46 = vand.u32 2147483647, %v2447_v49  ;;  %v2459_v3 = vand.u32 2147483648, %v2447_v49  ;;  %v8170_v43 = vadd.f32 %v6448_v16, %v652_v51  ;;  %v8196_v11 = vpop.f32.mrf.mxu0 }
 0x212   :  { %v654_v30 = vsub.f32 %v8099_v50, %v598_v19  ;;  %v1210_v53 = vmul.f32 0.5, %v1154_v31  ;;  %vm2453_vm1 = vweird.f32 %v2447_v49  ;;  %vm707_vm3 = vcmp.ge.f32.partialorder %v651_v29, %v8151_v15 }
 0x213   :  { %13125 = vst [vmem:[#allocation26_spill] sm:$0xff] %v8170_v43  ;;  %v8178_v59 = vmin.f32 %v8134_v24, %v8170_v43  ;;  %vm8180_vm2 = vcmp.eq.f32.partialorder %v2457_v46, 8.507059e+37  ;;  %v6447_v50 = vsel %vm707_vm3, 1.0, %v13121_v25  ;;  %v2460_v47 = vor.u32 1.1754944e-38, %v2459_v3 }
 0x214   :  { %v1266_v22 = vsub.f32 %v1042_v12, %v1210_v53  ;;  %v8186_v5 = vadd.f32 %v6447_v50, %v651_v29  ;;  %v988_v42 = vmax.f32 %v8134_v24, %v8170_v43  ;;  %vm710_vm6 = vcmp.ge.f32.partialorder %v654_v30, %v8146_v26  ;;  %v7250_v43 = vld [vmem:[%s12783_s3 + $0x8] sm:$0xff] }
 0x215   :  { %v1100_v37 = vadd.f32 1.0, %v8178_v59  ;;  %v1044_v56 = vmul.f32 8.0, %v8178_v59  ;;  %v8202_v24 = vadd.s32 144, %v7879_v60  ;;  %v6450_v32 = vsel %vm710_vm6, 1.0, %v13121_v25  ;;  %3637 = vmatpush.bf16.msrb.mxu2 %v7250_v43 }
 0x216   :  { %13128 = vst [vmem:[#allocation27_spill] sm:$0xff] %v8186_v5  ;;  %v1322_v18 = vadd.f32 %v1266_v22, %v986_v44  ;;  %v931_v38 = vmin.f32 %v8151_v15, %v8186_v5  ;;  %v987_v45 = vmax.f32 %v8151_v15, %v8186_v5  ;;  %v653_v15 = vsub.f32 %v8124_v36, %v597_v20 }
 0x217   :  { %v7298_v62 = vpop.eup %7297  ;;  %v1156_v0 = vmul.f32 %v1100_v37, %v8178_v59  ;;  %v105_v10 = vcvt.s32.f32 %v8202_v24  ;;  %v8214_v16 = vadd.f32 %v6450_v32, %v654_v30  ;;  %v6612_v30 = vsel %vm1659_vm4, 1.0, %v13121_v25 }
 0x218   :  { %v2449_v28 = vmul.f32 %v7298_v62, %v2447_v49  ;;  %vm2454_vm5 = vweird.f32 %v7298_v62  ;;  %v1378_v51 = vsub.f32 %v1322_v18, %v930_v61  ;;  %v1043_v21 = vmul.f32 8.0, %v931_v38 }
 0x219   :  { %vm2455_vm7 = vmor %vm2453_vm1, %vm2454_vm5  ;;  %v1099_v7 = vadd.f32 1.0, %v931_v38  ;;  %v1212_v19 = vmul.f32 0.5, %v1156_v0  ;;  %vm709_vm8 = vcmp.ge.f32.partialorder %v653_v15, %v8159_v14  ;;  %13129 = vst [vmem:[#allocation28_spill] sm:$0xff] %v8214_v16  ;;  %v934_v53 = vmin.f32 %v8146_v26, %v8214_v16  ;;  %v2834_v37 = vpop.f32.mrf.mxu0 }
 0x21a   :  { %v2450_v8 = vsub.f32 1.0, %v2449_v28  ;;  %v6502_v13 = vadd.f32 -1.0, %v1378_v51  ;;  %v6449_v31 = vsel %vm709_vm8, 1.0, %v13121_v25  ;;  %v161_v50 = vadd.f32 0.5, %v105_v10 }
 0x21b   :  { %v1155_v46 = vmul.f32 %v1099_v7, %v931_v38  ;;  %v1268_v12 = vsub.f32 %v1044_v56, %v1212_v19  ;;  %v8217_v29 = vadd.f32 %v6449_v31, %v653_v15  ;;  %v1102_v22 = vadd.f32 1.0, %v934_v53 }
 0x21c   :  { %v2451_v40 = vmul.f32 %v7298_v62, %v2450_v8  ;;  %vm1661_vm9 = vcmp.eq.f32.partialorder %v7906_v23, %v6502_v13  ;;  %v1046_v18 = vmul.f32 8.0, %v934_v53  ;;  %v217_v56 = vmul.f32 0.017857144, %v161_v50 }
 0x21d   :  { %v6614_v36 = vsel %vm1661_vm9, 1.0, %v13121_v25  ;;  %v1324_v3 = vadd.f32 %v1268_v12, %v988_v42  ;;  %13130 = vst [vmem:[#allocation29_spill] sm:$0xff] %v8217_v29  ;;  %v1158_v42 = vmul.f32 %v1102_v22, %v934_v53  ;;  %v8233_v55 = vadd.s32 152, %v7879_v60 }
 0x21e   :  { %v2452_v34 = vadd.f32 %v7298_v62, %v2451_v40  ;;  %v2990_v44 = vmul.f32 %v6614_v36, %v8164_v57  ;;  %v8236_v0 = vadd.s32 160, %v7879_v60  ;;  %v8242_v7 = vfloor.f32 %v217_v56 }
 0x21f   :  { %v106_v19 = vcvt.s32.f32 %v8233_v55  ;;  %v2988_v12 = vmul.f32 %v6612_v30, %v8027_v48  ;;  %v8335_v24 = vadd.s32 72, %v7879_v60  ;;  %v8574_v43 = vadd.s32 112, %v7879_v60 }
 0x220   :  { %v2456_v33 = vsel %vm2455_vm7, %v7298_v62, %v2452_v34  ;;  %v1211_v62 = vmul.f32 0.5, %v1155_v46  ;;  %v3052_v52 = vsel %vm2536_vm12, %v2990_v44, 0.0  ;;  %13131 = vst [vmem:[#allocation30_spill] sm:$0xff] %v8242_v7  ;;  %v107_v32 = vcvt.s32.f32 %v8236_v0 }
 0x221   :  { %v2461_v61 = vsel %vm8180_vm2, %v2460_v47, %v2456_v33  ;;  %3053 = vadd.xlane.f32.xlu2 %v3052_v52  ;;  %v1380_v47 = vsub.f32 %v1324_v3, %v8178_v59  ;;  %v989_v59 = vmax.f32 %v8159_v14, %v8217_v29  ;;  %vm1508_vm10 = vcmp.eq.f32.partialorder %v7906_v23, %v8242_v7  ;;  %v2837_v22 = vpop.f32.mrf.mxu0 }
 0x222   :  { %v2462_v49 = vmul.f32 %v2461_v61, %v2410_v41  ;;  %v1267_v8 = vsub.f32 %v1043_v21, %v1211_v62  ;;  %v933_v41 = vmin.f32 %v8159_v14, %v8217_v29  ;;  %v990_v21 = vmax.f32 %v8146_v26, %v8214_v16 }
 0x223   :  { %v6504_v33 = vadd.f32 -1.0, %v1380_v47  ;;  %v162_v26 = vadd.f32 0.5, %v106_v19  ;;  %v6573_v46 = vsel %vm1508_vm10, 1.0, %v13121_v25  ;;  %vm2571_vm7 = vcmask 39936  }
 0x224   :  { %v6759_v28 = vclamps-f32 %v2462_v49, 1.0  ;;  %v1323_v57 = vadd.f32 %v1267_v8, %v987_v45  ;;  %v1101_v40 = vadd.f32 1.0, %v933_v41  ;;  %v1045_v34 = vmul.f32 8.0, %v933_v41  ;;  %6797 = vmatmul.msk.f32.vlgmr.msra.gmra.mxu2 %vm2225_vm0, %v6573_v46 }
 0x225   :  { %v1214_v45 = vmul.f32 0.5, %v1158_v42  ;;  %v218_v36 = vmul.f32 0.017857144, %v162_v26  ;;  %vm1663_vm13 = vcmp.eq.f32.partialorder %v7906_v23, %v6504_v33  ;;  %v8294_v26 = vadd.s32 176, %v7879_v60 }
 0x226   :  { %2569 = vrot.lane.b32.xlu1 %v6759_v28, %s7739_s0  ;;  %v1379_v20 = vsub.f32 %v1323_v57, %v931_v38  ;;  %v1157_v51 = vmul.f32 %v1101_v40, %v933_v41  ;;  %v8251_v38 = vadd.s32 168, %v7879_v60  ;;  %v163_v28 = vadd.f32 0.5, %v107_v32 }
 0x227   :  { %v1270_v61 = vsub.f32 %v1046_v18, %v1214_v45  ;;  %v8262_v8 = vfloor.f32 %v218_v36  ;;  %v3046_v57 = vsel %vm2536_vm12, %v2988_v12, 0.0 }
 0x228   :  { %v6503_v15 = vadd.f32 -1.0, %v1379_v20  ;;  %v1213_v13 = vmul.f32 0.5, %v1157_v51  ;;  %v108_v52 = vcvt.s32.f32 %v8251_v38  ;;  %v219_v50 = vmul.f32 0.017857144, %v163_v28 }
 0x229   :  { %v1326_v31 = vadd.f32 %v1270_v61, %v990_v21  ;;  %13132 = vst [vmem:[#allocation31_spill] sm:$0xff] %v8262_v8  ;;  %vm1509_vm14 = vcmp.eq.f32.partialorder %v7906_v23, %v8262_v8  ;;  %v2840_v45 = vpop.f32.mrf.mxu0  ;;  %v329_v28 = vmul.f32 56.0, %v8242_v7 }
 0x22a   :  { %vm1662_vm11 = vcmp.eq.f32.partialorder %v7906_v23, %v6503_v15  ;;  %v1269_v14 = vsub.f32 %v1045_v34, %v1213_v13  ;;  %v8271_v18 = vfloor.f32 %v219_v50  ;;  %v164_v42 = vadd.f32 0.5, %v108_v52 }
 0x22b   :  { %v6615_v49 = vsel %vm1662_vm11, 1.0, %v13121_v25  ;;  %v1382_v44 = vsub.f32 %v1326_v31, %v934_v53  ;;  %v6574_v53 = vsel %vm1509_vm14, 1.0, %v13121_v25  ;;  %v8302_v31 = vadd.s32 184, %v7879_v60 }
 0x22c   :  { %v2991_v62 = vmul.f32 %v6615_v49, %v8196_v11  ;;  %v1325_v3 = vadd.f32 %v1269_v14, %v989_v59  ;;  %v6616_v11 = vsel %vm1663_vm13, 1.0, %v13121_v25  ;;  %13133 = vst [vmem:[#allocation32_spill] sm:$0xff] %v8271_v18  ;;  %6798 = vmatmul.msk.f32.gmra.mxu2 %vm2225_vm0, %v6574_v53  ;;  %vm1510_vm3 = vcmp.eq.f32.partialorder %v7906_v23, %v8271_v18 }
 0x22d   :  { %v6506_v40 = vadd.f32 -1.0, %v1382_v44  ;;  %v220_v34 = vmul.f32 0.017857144, %v164_v42  ;;  %v109_v14 = vcvt.s32.f32 %v8294_v26  ;;  %v110_v36 = vcvt.s32.f32 %v8302_v31 }
 0x22e   :  { %v3055_v48 = vsel %vm2536_vm12, %v2991_v62, 0.0  ;;  %v1381_v30 = vsub.f32 %v1325_v3, %v933_v41  ;;  %v2992_v41 = vmul.f32 %v6616_v11, %v2834_v37  ;;  %v6575_v37 = vsel %vm1510_vm3, 1.0, %v13121_v25 }
 0x22f   :  { %3056 = vadd.xlane.f32.xlu2 %v3055_v48  ;;  %vm1665_vm1 = vcmp.eq.f32.partialorder %v7906_v23, %v6506_v40  ;;  %v8285_v15 = vfloor.f32 %v220_v34  ;;  %v165_v46 = vadd.f32 0.5, %v109_v14  ;;  %v166_v3 = vadd.f32 0.5, %v110_v36 }
 0x230   :  { %v6505_v47 = vadd.f32 -1.0, %v1381_v30  ;;  %v3058_v21 = vsel %vm2536_vm12, %v2992_v41, 0.0  ;;  %v6618_v59 = vsel %vm1665_vm1, 1.0, %v13121_v25  ;;  %v330_v44 = vmul.f32 56.0, %v8262_v8 }
 0x231   :  { %13134 = vst [vmem:[#allocation33_spill] sm:$0xff] %v8285_v15  ;;  %v2994_v33 = vmul.f32 %v6618_v59, %v2840_v45  ;;  %vm1511_vm2 = vcmp.eq.f32.partialorder %v7906_v23, %v8285_v15  ;;  %v221_v12 = vmul.f32 0.017857144, %v165_v46  ;;  %v222_v48 = vmul.f32 0.017857144, %v166_v3 }
 0x232   :  { %vm1664_vm15 = vcmp.eq.f32.partialorder %v7906_v23, %v6505_v47  ;;  %v6576_v61 = vsel %vm1511_vm2, 1.0, %v13121_v25  ;;  %v331_v30 = vmul.f32 56.0, %v8271_v18  ;;  %v8317_v50 = vadd.s32 192, %v7879_v60 }
 0x233   :  { %v6617_v56 = vsel %vm1664_vm15, 1.0, %v13121_v25  ;;  %v3064_v13 = vsel %vm2536_vm12, %v2994_v33, 0.0  ;;  %v8299_v49 = vfloor.f32 %v221_v12  ;;  %v8323_v11 = vsub.f32 %v106_v19, %v330_v44 }
 0x234   :  { %v2993_v20 = vmul.f32 %v6617_v56, %v2837_v22  ;;  %6799 = vmatmul.msk.f32.gmra.mxu2 %vm2225_vm0, %v6575_v37  ;;  %v8314_v22 = vfloor.f32 %v222_v48  ;;  %v8329_v47 = vsub.f32 %v107_v32, %v331_v30  ;;  %v12814_v40 = vcvt.s32.f32 %v8317_v50 }
 0x235   :  { %3047 = vadd.xlane.f32.xlu0 %v3046_v57  ;;  %13135 = vst [vmem:[#allocation34_spill] sm:$0xff] %v8299_v49  ;;  %vm1512_vm4 = vcmp.eq.f32.partialorder %v7906_v23, %v8299_v49  ;;  %v385_v57 = vsub.f32 %v105_v10, %v329_v28  ;;  %v8338_v10 = vadd.s32 64, %v7879_v60  ;;  %v442_v0 = vadd.f32 0.5, %v8323_v11 }
 0x236   :  { %v3061_v51 = vsel %vm2536_vm12, %v2993_v20, 0.0  ;;  %v6577_v62 = vsel %vm1512_vm4, 1.0, %v13121_v25  ;;  %13136 = vst [vmem:[#allocation35_spill] sm:$0xff] %v8314_v22  ;;  %vm1513_vm5 = vcmp.eq.f32.partialorder %v7906_v23, %v8314_v22  ;;  %v167_v55 = vadd.f32 0.5, %v12814_v40 }
 0x237   :  { %3062 = vadd.xlane.f32.xlu2 %v3061_v51  ;;  %v6578_v53 = vsel %vm1513_vm5, 1.0, %v13121_v25  ;;  %v441_v19 = vadd.f32 0.5, %v385_v57  ;;  %v443_v32 = vadd.f32 0.5, %v8329_v47  ;;  %v332_v42 = vmul.f32 56.0, %v8285_v15 }
 0x238   :  { %v223_v41 = vmul.f32 0.017857144, %v167_v55  ;;  %v96_v56 = vcvt.s32.f32 %v8335_v24  ;;  %v12812_v20 = vcvt.s32.f32 %v8338_v10  ;;  %v8350_v51 = vadd.s32 200, %v7879_v60 }
 0x239   :  { %v498_v59 = vmul.f32 0.14285715, %v442_v0  ;;  %v499_v45 = vmul.f32 0.14285715, %v443_v32  ;;  %v8354_v37 = vsub.f32 %v108_v52, %v332_v42  ;;  %v8359_v33 = vadd.s32 80, %v7879_v60 }
 0x23a   :  { %v8347_v34 = vfloor.f32 %v223_v41  ;;  %v12811_v46 = vcvt.s32.f32 %v8350_v51  ;;  %v151_v12 = vadd.f32 0.5, %v12812_v20  ;;  %v333_v48 = vmul.f32 56.0, %v8299_v49 }
 0x23b   :  { %v8370_v52 = vfloor.f32 %v498_v59  ;;  %v8372_v3 = vfloor.f32 %v499_v45  ;;  %v444_v28 = vadd.f32 0.5, %v8354_v37  ;;  %v12813_v44 = vcvt.s32.f32 %v8359_v33 }
 0x23c   :  { %6800 = vmatmul.msk.f32.gmra.mxu2 %vm2225_vm0, %v6576_v61  ;;  %13137 = vst [vmem:[#allocation36_spill] sm:$0xff] %v8347_v34  ;;  %vm1514_vm6 = vcmp.eq.f32.partialorder %v7906_v23, %v8347_v34  ;;  %v168_v38 = vadd.f32 0.5, %v12811_v46  ;;  %v8378_v24 = vadd.s32 208, %v7879_v60  ;;  %v207_v55 = vmul.f32 0.017857144, %v151_v12 }
 0x23d   :  { %3059 = vadd.xlane.f32.xlu0 %v3058_v21  ;;  %v497_v21 = vmul.f32 0.14285715, %v441_v19  ;;  %v6579_v61 = vsel %vm1514_vm6, 1.0, %v13121_v25  ;;  %v8381_v19 = vadd.s32 88, %v7879_v60  ;;  %v334_v32 = vmul.f32 56.0, %v8314_v22 }
 0x23e   :  { %v12815_v41 = vcvt.s32.f32 %v8378_v24  ;;  %v611_v59 = vmul.f32 7.0, %v8372_v3  ;;  %v500_v45 = vmul.f32 0.14285715, %v444_v28  ;;  %v8455_v22 = vadd.s32 232, %v7879_v60 }
 0x23f   :  { %v12816_v46 = vcvt.s32.f32 %v8381_v19  ;;  %v8408_v26 = vsub.f32 %v110_v36, %v334_v32  ;;  %v8425_v36 = vadd.s32 96, %v7879_v60  ;;  %v3051_v32 = vpop.xlane.xlu1 %3050  ;;  %v13150_v16 = vcvt.s32.f32 %v8350_v51 }
 0x240   :  { %v169_v28 = vadd.f32 0.5, %v12815_v41  ;;  %v8421_v41 = vsub.f32 %v8329_v47, %v611_v59  ;;  %v8441_v59 = vadd.s32 216, %v7879_v60  ;;  %v13156_v5 = vcvt.s32.f32 %v8378_v24 }
 0x242   :  { %v13145_v18 = vcvt.s32.f32 %v8441_v59 }
 0x244   :  { %6801 = vmatmul.msk.f32.gmra.mxu2 %vm2225_vm0, %v6577_v62  ;;  %v8366_v62 = vfloor.f32 %v497_v21  ;;  %v610_v21 = vmul.f32 7.0, %v8370_v52  ;;  %v170_v8 = vadd.f32 0.5, %v13145_v18  ;;  %v12830_v18 = vcvt.s32.f32 %v8455_v22 }
 0x245   :  { %3065 = vadd.xlane.f32.xlu0 %v3064_v13  ;;  %v152_v13 = vadd.f32 0.5, %v96_v56 }
 0x246   :  { %v609_v0 = vmul.f32 7.0, %v8366_v62  ;;  %v8418_v40 = vsub.f32 %v8323_v11, %v610_v21  ;;  %v446_v11 = vadd.f32 0.5, %v8408_v26  ;;  %v335_v21 = vmul.f32 56.0, %v8347_v34 }
 0x247   :  { %v208_v30 = vmul.f32 0.017857144, %v152_v13  ;;  %v153_v13 = vadd.f32 0.5, %v12813_v44  ;;  %v225_v44 = vmul.f32 0.017857144, %v169_v28 }
 0x249   :  { %v8396_v12 = vfloor.f32 %v208_v30  ;;  %v8414_v30 = vfloor.f32 %v500_v45 }
 0x24b   :  { %13139 = vst [vmem:[#allocation38_spill] sm:$0xff] %v8396_v12  ;;  %v612_v45 = vmul.f32 7.0, %v8414_v30  ;;  %vm1499_vm11 = vcmp.eq.f32.partialorder %v7906_v23, %v8396_v12 }
 0x24c   :  { %6802 = vmatmul.msk.f32.gmra.mxu2 %vm2225_vm0, %v6578_v53  ;;  %v224_v53 = vmul.f32 0.017857144, %v168_v38  ;;  %v8400_v38 = vfloor.f32 %v207_v55  ;;  %v209_v55 = vmul.f32 0.017857144, %v153_v13 }
 0x24e   :  { %v8385_v42 = vfloor.f32 %v224_v53  ;;  %13140 = vst [vmem:[#allocation39_spill] sm:$0xff] %v8400_v38  ;;  %vm1498_vm9 = vcmp.eq.f32.partialorder %v7906_v23, %v8400_v38 }
 0x24f   :  { %v6563_v28 = vsel %vm1498_vm9, 1.0, %v13121_v25 }
 0x250   :  { %13138 = vst [vmem:[#allocation37_spill] sm:$0xff] %v8385_v42  ;;  %vm1515_vm8 = vcmp.eq.f32.partialorder %v7906_v23, %v8385_v42  ;;  %v336_v34 = vmul.f32 56.0, %v8385_v42 }
 0x251   :  { %v6580_v53 = vsel %vm1515_vm8, 1.0, %v13121_v25  ;;  %vm3546_vm8 = vcmask 261120  }
 0x254   :  { %6803 = vmatmul.msk.f32.gmra.mxu2 %vm2225_vm0, %v6579_v61  ;;  %v8394_v61 = vsub.f32 %v109_v14, %v333_v48  ;;  %v320_v14 = vmul.f32 56.0, %v8396_v12  ;;  %v8412_v48 = vsub.f32 %v385_v57, %v609_v0  ;;  %v8430_v57 = vmul.f32 0.16129032, %v7906_v23 }
 0x255   :  { %v8434_v0 = vfloor.f32 %v225_v44 }
 0x256   :  { %v445_v31 = vadd.f32 0.5, %v8394_v61  ;;  %13141 = vst [vmem:[#allocation40_spill] sm:$0xff] %v8430_v57  ;;  %v8437_v47 = vsub.f32 %v96_v56, %v320_v14  ;;  %v3213_v13 = vsub.f32 %v3051_v32, %v8430_v57  ;;  %v502_v32 = vmul.f32 0.14285715, %v446_v11 }
 0x257   :  { %13142 = vst [vmem:[#allocation41_spill] sm:$0xff] %v8434_v0  ;;  %vm1516_vm10 = vcmp.eq.f32.partialorder %v7906_v23, %v8434_v0  ;;  %v8465_v14 = vsub.f32 %v8354_v37, %v612_v45  ;;  %v13147_v37 = vcvt.s32.f32 %v8359_v33  ;;  %v8496_v33 = vsub.f32 %v13150_v16, %v336_v34 }
 0x258   :  { %v501_v44 = vmul.f32 0.14285715, %v445_v31  ;;  %v6581_v56 = vsel %vm1516_vm10, 1.0, %v13121_v25  ;;  %v432_v49 = vadd.f32 0.5, %v8437_v47  ;;  %v13144_v31 = vcvt.s32.f32 %v8317_v50 }
 0x259   :  { %v13146_v50 = vcvt.s32.f32 %v8425_v36  ;;  %v8491_v7 = vfloor.f32 %v502_v32  ;;  %v172_v16 = vadd.f32 0.5, %v12830_v18  ;;  %vm721_vm10 = vcmp.ge.f32.partialorder %v8412_v48, %v8366_v62 }
 0x25a   :  { %v8461_v15 = vsub.f32 %v13144_v31, %v335_v21  ;;  %v8471_v11 = vfloor.f32 %v501_v44  ;;  %v226_v31 = vmul.f32 0.017857144, %v170_v8  ;;  %v13149_v44 = vcvt.s32.f32 %v8338_v10 }
 0x25b   :  { %v155_v21 = vadd.f32 0.5, %v13146_v50  ;;  %v488_v12 = vmul.f32 0.14285715, %v432_v49  ;;  %v6564_v8 = vsel %vm1499_vm11, 1.0, %v13121_v25  ;;  %v614_v34 = vmul.f32 7.0, %v8491_v7 }
 0x25c   :  { %6804 = vmatmul.msk.f32.gmra.mxu2 %vm2225_vm0, %v6580_v53  ;;  %v8445_v53 = vfloor.f32 %v209_v55  ;;  %v319_v55 = vmul.f32 56.0, %v8400_v38  ;;  %v447_v50 = vadd.f32 0.5, %v8461_v15  ;;  %v613_v49 = vmul.f32 7.0, %v8471_v11 }
 0x25e   :  { %13143 = vst [vmem:[#allocation42_spill] sm:$0xff] %v8445_v53  ;;  %v8489_v42 = vsub.f32 %v13149_v44, %v319_v55  ;;  %v8504_v55 = vadd.s32 224, %v7879_v60  ;;  %v503_v51 = vmul.f32 0.14285715, %v447_v50  ;;  %vm1500_vm14 = vcmp.eq.f32.partialorder %v7906_v23, %v8445_v53 }
 0x25f   :  { %v13152_v44 = vcvt.s32.f32 %v8381_v19  ;;  %v337_v19 = vmul.f32 56.0, %v8434_v0 }
 0x261   :  { %v8562_v63 = vsub.f32 %v13156_v5, %v337_v19 }
 0x264   :  { %6805 = vmatmul.msk.f32.gmra.mxu2 %vm2225_vm0, %v6581_v56  ;;  %v8478_v56 = vadd.s32 104, %v7879_v60 }
 0x266   :  { %v13154_v50 = vcvt.s32.f32 %v8478_v56 }
 0x268   :  { %v156_v29 = vadd.f32 0.5, %v13154_v50 }
 0x27d   :  { %v2605_v20 = vpop.permute.xlu0 %2604 }
 0x27e   :  { %6778 = vmatmul.msk.f32.vlgmr.msrb.gmra.mxu1 %vm2571_vm7, %v2605_v20  ;;  %v154_v20 = vadd.f32 0.5, %v12816_v46  ;;  %v321_v46 = vmul.f32 56.0, %v8445_v53 }
 0x280   :  { %v210_v4 = vmul.f32 0.017857144, %v154_v20  ;;  %v3269_v20 = vmul.f32 -19.22, %v3213_v13  ;;  %v8482_v45 = vsub.f32 %v13147_v37, %v321_v46  ;;  %v8499_v46 = vfloor.f32 %v226_v31 }
 0x281   :  { %v211_v37 = vmul.f32 0.017857144, %v155_v21  ;;  %v448_v31 = vadd.f32 0.5, %v8496_v33 }
 0x282   :  { %v3325_v38 = vmul.f32 %v3269_v20, %v3213_v13  ;;  %13151 = vst [vmem:[#allocation44_spill] sm:$0xff] %v8499_v46  ;;  %v433_v13 = vadd.f32 0.5, %v8482_v45  ;;  %vm1517_vm13 = vcmp.eq.f32.partialorder %v7906_v23, %v8499_v46  ;;  %v8516_v20 = vfloor.f32 %v488_v12 }
 0x283   :  { %v6582_v32 = vsel %vm1517_vm13, 1.0, %v13121_v25  ;;  %v8525_v18 = vfloor.f32 %v211_v37  ;;  %v8531_v12 = vadd.s32 240, %v7879_v60  ;;  %v8541_v37 = vsub.f32 %v8408_v26, %v614_v34 }
 0x284   :  { %v3383_v21 = vmul.f32 1.442695, %v3325_v38  ;;  %6806 = vmatmul.msk.f32.gmra.mxu2 %vm2225_vm0, %v6582_v32  ;;  %v8534_v38 = vadd.f32 0.5, %v8489_v42  ;;  %v8543_v32 = vfloor.f32 %v503_v51  ;;  %v600_v9 = vmul.f32 7.0, %v8516_v20 }
 0x285   :  { %13153 = vst [vmem:[#allocation45_spill] sm:$0xff] %v8525_v18  ;;  %v323_v50 = vmul.f32 56.0, %v8525_v18  ;;  %v13155_v26 = vcvt.s32.f32 %v8504_v55  ;;  %v212_v34 = vmul.f32 0.017857144, %v156_v29  ;;  %v12840_v51 = vcvt.s32.f32 %v8531_v12 }
 0x286   :  { %6787 = vmatmul.msk.f32.vlgmr.msra.gmra.mxu1 %vm2225_vm0, %v6563_v28  ;;  %v8484_v28 = vfloor.f32 %v210_v4  ;;  %7299 = vpow2.f32 %v3383_v21  ;;  %v615_v54 = vmul.f32 7.0, %v8543_v32  ;;  %v13158_v21 = vcvt.s32.f32 %v8425_v36 }
 0x287   :  { %v338_v24 = vmul.f32 56.0, %v8499_v46  ;;  %vm1502_vm2 = vcmp.eq.f32.partialorder %v7906_v23, %v8525_v18 }
 0x288   :  { %13148 = vst [vmem:[#allocation43_spill] sm:$0xff] %v8484_v28  ;;  %v322_v4 = vmul.f32 56.0, %v8484_v28  ;;  %vm1501_vm15 = vcmp.eq.f32.partialorder %v7906_v23, %v8484_v28  ;;  %v8571_v29 = vsub.f32 %v13158_v21, %v323_v50  ;;  %v8586_v50 = vfloor.f32 %v212_v34 }
 0x289   :  { %v8625_v28 = vsub.f32 %v8437_v47, %v600_v9 }
 0x28a   :  { %v8522_v10 = vsub.f32 %v13152_v44, %v322_v4  ;;  %v228_v4 = vmul.f32 0.017857144, %v172_v16  ;;  %v8538_v44 = vsub.f32 %v8394_v61, %v613_v49  ;;  %v171_v49 = vadd.f32 0.5, %v13155_v26  ;;  %13161 = vst [vmem:[#allocation49_spill] sm:$0xff] %v8586_v50 }
 0x28b   :  { %v504_v16 = vmul.f32 0.14285715, %v448_v31  ;;  %v3045_v31 = vpop.xlane.xlu2 %3044  ;;  %v173_v26 = vadd.f32 0.5, %v12840_v51  ;;  %v435_v34 = vadd.f32 0.5, %v8571_v29  ;;  %v324_v51 = vmul.f32 56.0, %v8586_v50 }
 0x28c   :  { %v434_v61 = vadd.f32 0.5, %v8522_v10  ;;  %v8564_v17 = vfloor.f32 %v228_v4  ;;  %v227_v53 = vmul.f32 0.017857144, %v171_v49  ;;  %v7249_v4 = vld [vmem:[%s12783_s3] sm:$0xff]  ;;  %v3211_v21 = vsub.f32 %v3045_v31, %v8430_v57 }
 0x28d   :  { %v8584_v36 = vfloor.f32 %v504_v16  ;;  %3638 = vmatpush.bf16.msrb.mxu2 %v7249_v4  ;;  %v8598_v16 = vpop.eup %7299  ;;  %v6566_v31 = vsel %vm1501_vm15, 1.0, %v13121_v25  ;;  %v13163_v4 = vcvt.s32.f32 %v8441_v59  ;;  %v8628_v59 = vsub.f32 %v8461_v15, %v615_v54 }
 0x28e   :  { %6788 = vmatmul.msk.f32.gmra.mxu1 %vm2225_vm0, %v6564_v8  ;;  %v489_v8 = vmul.f32 0.14285715, %v433_v13  ;;  %v6565_v13 = vsel %vm1500_vm14, 1.0, %v13121_v25  ;;  %13157 = vst [vmem:[#allocation46_spill] sm:$0xff] %v8564_v17  ;;  %v490_v5 = vmul.f32 0.14285715, %v434_v61  ;;  %v8579_v19 = vfloor.f32 %v227_v53 }
 0x28f   :  { %13160 = vst [vmem:[#allocation48_spill] sm:$0xff] %v8584_v36  ;;  %v449_v53 = vadd.f32 0.5, %v8562_v63  ;;  %v8613_v1 = vsub.f32 %v13163_v4, %v338_v24  ;;  %v616_v2 = vmul.f32 7.0, %v8584_v36  ;;  %vm1519_vm3 = vcmp.eq.f32.partialorder %v7906_v23, %v8564_v17 }
 0x290   :  { %v8558_v0 = vfloor.f32 %v489_v8  ;;  %v340_v8 = vmul.f32 56.0, %v8564_v17  ;;  %13159 = vst [vmem:[#allocation47_spill] sm:$0xff] %v8579_v19  ;;  %vm1518_vm1 = vcmp.eq.f32.partialorder %v7906_v23, %v8579_v19  ;;  %v8605_v39 = vfloor.f32 %v490_v5 }
 0x291   :  { %v6583_v46 = vsel %vm1518_vm1, 1.0, %v13121_v25  ;;  %v229_v5 = vmul.f32 0.017857144, %v173_v26  ;;  %13165 = vst [vmem:[#allocation51_spill] sm:$0xff] %v8628_v59  ;;  %v505_v24 = vmul.f32 0.14285715, %v449_v53  ;;  %v13166_v4 = vcvt.s32.f32 %v8478_v56 }
 0x292   :  { %v601_v61 = vmul.f32 7.0, %v8558_v0  ;;  %13162 = vst [vmem:[#allocation50_spill] sm:$0xff] %v8605_v39  ;;  %6807 = vmatmul.msk.f32.gmra.mxu2 %vm2225_vm0, %v6583_v46  ;;  %v491_v46 = vmul.f32 0.14285715, %v435_v34  ;;  %v13167_v26 = vcvt.s32.f32 %v8574_v43  ;;  %v602_v6 = vmul.f32 7.0, %v8605_v39 }
 0x293   :  { %v450_v54 = vadd.f32 0.5, %v8613_v1  ;;  %v6584_v15 = vsel %vm1519_vm3, 1.0, %v13121_v25  ;;  %v8645_v47 = vsub.f32 %v8496_v33, %v616_v2  ;;  %v8649_v56 = vfloor.f32 %v229_v5 }
 0x294   :  { %v157_v17 = vadd.f32 0.5, %v13167_v26  ;;  %v339_v34 = vmul.f32 56.0, %v8579_v19  ;;  %v8664_v5 = vadd.s32 256, %v7879_v60  ;;  %v8667_v26 = vsub.f32 %v8522_v10, %v602_v6 }
 0x295   :  { %13168 = vst [vmem:[#allocation52_spill] sm:$0xff] %v8645_v47  ;;  %vm1520_vm4 = vcmp.eq.f32.partialorder %v7906_v23, %v8649_v56  ;;  %v13174_v6 = vcvt.s32.f32 %v8504_v55  ;;  %vm1503_vm5 = vcmp.eq.f32.partialorder %v7906_v23, %v8586_v50  ;;  %v341_v55 = vmul.f32 56.0, %v8649_v56 }
 0x296   :  { %6789 = vmatmul.msk.f32.gmra.mxu1 %vm2225_vm0, %v6565_v13  ;;  %v8591_v13 = vadd.s32 248, %v7879_v60  ;;  %13169 = vst [vmem:[#allocation53_spill] sm:$0xff] %v8649_v56  ;;  %v213_v33 = vmul.f32 0.017857144, %v157_v17  ;;  %v2533_v17 = vpop.f32.mrf.mxu1  ;;  %v13197_v39 = vcvt.s32.f32 %v8664_v5  ;;  %vm723_vm1 = vcmp.ge.f32.partialorder %v8421_v41, %v8372_v3 }
 0x297   :  { %13173 = vst [vmem:[#allocation56_spill] sm:$0xff] %v8667_v26  ;;  %v8679_v10 = vsub.f32 %v13174_v6, %v339_v34  ;;  %v8698_v34 = vadd.f32 %v8012_v58, %v2533_v17 }
 0x298   :  { %v2570_v49 = vpop.permute.xlu1 %2569 }
 0x299   :  { %6775 = vmatmul.msk.f32.vlgmr.msra.gmra.mxu3 %vm2571_vm7, %v2570_v49  ;;  %v13164_v49 = vcvt.s32.f32 %v8455_v22  ;;  %v3267_v22 = vmul.f32 -19.22, %v3211_v21  ;;  %13178 = vst [vmem:[#allocation60_spill] sm:$0xff] %v8698_v34  ;;  %v451_v36 = vadd.f32 0.5, %v8679_v10 }
 0x29b   :  { %v8617_v35 = vsub.f32 %v13164_v49, %v340_v8  ;;  %v8631_v8 = vsub.f32 %v8482_v45, %v601_v61  ;;  %v8635_v49 = vsub.f32 %v13166_v4, %v324_v51  ;;  %v13170_v45 = vcvt.s32.f32 %v8591_v13 }
 0x29c   :  { %v8653_v61 = vfloor.f32 %v505_v24  ;;  %v3323_v53 = vmul.f32 %v3267_v22, %v3211_v21  ;;  %v8659_v4 = vfloor.f32 %v491_v46  ;;  %v6567_v21 = vsel %vm1502_vm2, 1.0, %v13121_v25 }
 0x29d   :  { %v452_v9 = vadd.f32 0.5, %v8617_v35  ;;  %v174_v51 = vadd.f32 0.5, %v13170_v45  ;;  %v436_v2 = vadd.f32 0.5, %v8635_v49  ;;  %v506_v24 = vmul.f32 0.14285715, %v450_v54 }
 0x29e   :  { %6790 = vmatmul.msk.f32.gmra.mxu1 %vm2225_vm0, %v6566_v31  ;;  %13171 = vst [vmem:[#allocation54_spill] sm:$0xff] %v8653_v61  ;;  %v8657_v31 = vadd.s32 120, %v7879_v60  ;;  %v617_v19 = vmul.f32 7.0, %v8653_v61  ;;  %v3379_v18 = vmul.f32 1.442695, %v3323_v53  ;;  %v6585_v53 = vsel %vm1520_vm4, 1.0, %v13121_v25 }
 0x29f   :  { %13172 = vst [vmem:[#allocation55_spill] sm:$0xff] %v8659_v4  ;;  %v508_v22 = vmul.f32 0.14285715, %v452_v9  ;;  %v230_v46 = vmul.f32 0.017857144, %v174_v51  ;;  %v603_v9 = vmul.f32 7.0, %v8659_v4  ;;  %v8685_v51 = vfloor.f32 %v213_v33 }
 0x2a0   :  { %v492_v27 = vmul.f32 0.14285715, %v436_v2  ;;  %v8688_v45 = vfloor.f32 %v506_v24  ;;  %v3054_v2 = vpop.xlane.xlu2 %3053  ;;  %v13180_v33 = vcvt.s32.f32 %v8664_v5  ;;  %v13182_v61 = vcvt.s32.f32 %v8657_v31 }
 0x2a1   :  { %6808 = vmatmul.msk.f32.vlgmr.msrb.gmra.mxu3 %vm2225_vm0, %v6584_v15  ;;  %v8674_v15 = vadd.s32 128, %v7879_v60  ;;  %13175 = vst [vmem:[#allocation57_spill] sm:$0xff] %v8685_v51  ;;  %v8690_v47 = vfloor.f32 %v508_v22  ;;  %v8700_v6 = vfloor.f32 %v230_v46  ;;  %v8706_v22 = vsub.f32 %v8562_v63, %v617_v19 }
 0x2a2   :  { %13176 = vst [vmem:[#allocation58_spill] sm:$0xff] %v8688_v45  ;;  %v325_v56 = vmul.f32 56.0, %v8685_v51  ;;  %v158_v58 = vadd.f32 0.5, %v13182_v61  ;;  %7301 = vpow2.f32 %v3379_v18  ;;  %v8713_v17 = vfloor.f32 %v492_v27 }
 0x2a3   :  { %13177 = vst [vmem:[#allocation59_spill] sm:$0xff] %v8690_v47  ;;  %v8721_v63 = vsub.f32 %v8571_v29, %v603_v9  ;;  %v618_v19 = vmul.f32 7.0, %v8688_v45  ;;  %v620_v24 = vmul.f32 7.0, %v8690_v47  ;;  %v13185_v18 = vcvt.s32.f32 %v8531_v12 }
 0x2a4   :  { %13179 = vst [vmem:[#allocation61_spill] sm:$0xff] %v8700_v6  ;;  %vm1521_vm6 = vcmp.eq.f32.partialorder %v7906_v23, %v8700_v6  ;;  %v13186_v50 = vcvt.s32.f32 %v8674_v15  ;;  %v13187_v29 = vcvt.s32.f32 %v8574_v43  ;;  %v3214_v45 = vsub.f32 %v3054_v2, %v8430_v57 }
 0x2a5   :  { %13181 = vst [vmem:[#allocation62_spill] sm:$0xff] %v8706_v22  ;;  %v8727_v61 = vsub.f32 %v13185_v18, %v341_v55  ;;  %v214_v47 = vmul.f32 0.017857144, %v158_v58  ;;  %v8739_v12 = vmul.f32 7.0, %v8713_v17  ;;  %vm1504_vm7 = vcmp.eq.f32.partialorder %v7906_v23, %v8685_v51 }
 0x2a6   :  { %6791 = vmatmul.msk.f32.gmra.mxu1 %vm2225_vm0, %v6567_v21  ;;  %v175_v21 = vadd.f32 0.5, %v13180_v33  ;;  %13183 = vst [vmem:[#allocation63_spill] sm:$0xff] %v8713_v17  ;;  %v6568_v33 = vsel %vm1503_vm5, 1.0, %v13121_v25  ;;  %v159_v34 = vadd.f32 0.5, %v13186_v50  ;;  %v8735_v9 = vsub.f32 %v13187_v29, %v325_v56  ;;  %v7256_v56 = vld [vmem:[%s12785_s5 + $0x8] sm:$0xff] }
 0x2a7   :  { %13184 = vst [vmem:[#allocation64_spill] sm:$0xff] %v8721_v63  ;;  %v342_v55 = vmul.f32 56.0, %v8700_v6  ;;  %v453_v43 = vadd.f32 0.5, %v8727_v61  ;;  %v8751_v50 = vadd.s32 264, %v7879_v60  ;;  %v3270_v29 = vmul.f32 -19.22, %v3214_v45  ;;  %4683 = vmatpush.bf16.msrb.mxu1 %v7256_v56 }
 0x2a8   :  { %v3048_v54 = vpop.xlane.xlu0 %3047  ;;  %v7302_v2 = vpop.eup %7301  ;;  %v8764_v6 = vfloor.f32 %v214_v47  ;;  %v13195_v63 = vcvt.s32.f32 %v8657_v31  ;;  %vm722_vm4 = vcmp.ge.f32.partialorder %v8418_v40, %v8370_v52 }
 0x2a9   :  { %v3212_v46 = vsub.f32 %v3048_v54, %v8430_v57  ;;  %6809 = vmatmul.msk.f32.gmra.mxu3 %vm2225_vm0, %v6585_v53  ;;  %v231_v54 = vmul.f32 0.017857144, %v175_v21  ;;  %v507_v53 = vmul.f32 0.14285715, %v451_v36  ;;  %v8745_v21 = vsub.f32 %v8613_v1, %v618_v19 }
 0x2aa   :  { %v6586_v36 = vsel %vm1521_vm6, 1.0, %v13121_v25  ;;  %v215_v19 = vmul.f32 0.017857144, %v159_v34  ;;  %13192 = vst [vmem:[#allocation69_spill] sm:$0xff] %v8764_v6  ;;  %v13193_v34 = vcvt.s32.f32 %v8591_v13  ;;  %v509_v47 = vmul.f32 0.14285715, %v453_v43 }
 0x2ab   :  { %v3268_v27 = vmul.f32 -19.22, %v3212_v46  ;;  %13188 = vst [vmem:[#allocation65_spill] sm:$0xff] %v8745_v21  ;;  %v8759_v1 = vfloor.f32 %v231_v54  ;;  %v8761_v18 = vfloor.f32 %v507_v53  ;;  %v7255_v21 = vld [vmem:[%s12785_s5] sm:$0xff]  ;;  %v12873_v53 = vcvt.s32.f32 %v8751_v50 }
 0x2ac   :  { %v8783_v56 = vfloor.f32 %v215_v19  ;;  %v8789_v13 = vadd.s32 272, %v7879_v60  ;;  %4684 = vmatpush.bf16.msrb.mxu1 %v7255_v21  ;;  %vm1505_vm11 = vcmp.eq.f32.partialorder %v7906_v23, %v8764_v6 }
 0x2ad   :  { %v3324_v22 = vmul.f32 %v3268_v27, %v3212_v46  ;;  %v8757_v46 = vsub.f32 %v8617_v35, %v620_v24  ;;  %13190 = vst [vmem:[#allocation67_spill] sm:$0xff] %v8759_v1  ;;  %v437_v27 = vadd.f32 0.5, %v8735_v9  ;;  %v6569_v35 = vsel %vm1504_vm7, 1.0, %v13121_v25 }
 0x2ae   :  { %6792 = vmatmul.msk.f32.gmra.mxu1 %vm2225_vm0, %v6568_v33  ;;  %v3057_v33 = vpop.xlane.xlu2 %3056  ;;  %13191 = vst [vmem:[#allocation68_spill] sm:$0xff] %v8761_v18  ;;  %v8775_v24 = vsub.f32 %v13193_v34, %v342_v55  ;;  %vm1522_vm9 = vcmp.eq.f32.partialorder %v7906_v23, %v8759_v1  ;;  %v619_v55 = vmul.f32 7.0, %v8761_v18  ;;  %v343_v19 = vmul.f32 56.0, %v8759_v1 }
 0x2af   :  { %v3381_v58 = vmul.f32 1.442695, %v3324_v22  ;;  %13189 = vst [vmem:[#allocation66_spill] sm:$0xff] %v8757_v46  ;;  %v326_v22 = vmul.f32 56.0, %v8764_v6  ;;  %v3215_v54 = vsub.f32 %v3057_v33, %v8430_v57  ;;  %v493_v43 = vmul.f32 0.14285715, %v437_v27 }
 0x2b0   :  { %13194 = vst [vmem:[#allocation70_spill] sm:$0xff] %v8783_v56  ;;  %v3060_v34 = vpop.xlane.xlu0 %3059  ;;  %v176_v33 = vadd.f32 0.5, %v12873_v53  ;;  %v454_v51 = vadd.f32 0.5, %v8775_v24  ;;  %v327_v46 = vmul.f32 56.0, %v8783_v56  ;;  %v12881_v17 = vcvt.s32.f32 %v8789_v13 }
 0x2b1   :  { %7303 = vpow2.f32 %v3381_v58  ;;  %6810 = vmatmul.msk.f32.gmra.mxu3 %vm2225_vm0, %v6586_v36  ;;  %v8786_v58 = vadd.s32 136, %v7879_v60  ;;  %v3326_v36 = vmul.f32 %v3270_v29, %v3214_v45  ;;  %v8801_v18 = vsub.f32 %v13195_v63, %v326_v22 }
 0x2b2   :  { %v6587_v45 = vsel %vm1522_vm9, 1.0, %v13121_v25  ;;  %v3271_v21 = vmul.f32 -19.22, %v3215_v54  ;;  %v232_v27 = vmul.f32 0.017857144, %v176_v33  ;;  %v177_v63 = vadd.f32 0.5, %v12881_v17 }
 0x2b3   :  { %v8815_v22 = vfloor.f32 %v509_v47  ;;  %v3385_v53 = vmul.f32 1.442695, %v3326_v36  ;;  %v8819_v33 = vfloor.f32 %v493_v43  ;;  %v510_v26 = vmul.f32 0.14285715, %v454_v51 }
 0x2b4   :  { %v8817_v4 = vfloor.f32 %v232_v27  ;;  %v8823_v59 = vsub.f32 %v13197_v39, %v343_v19  ;;  %v8832_v47 = vsub.f32 %v8635_v49, %v8739_v12  ;;  %v6570_v39 = vsel %vm1505_vm11, 1.0, %v13121_v25 }
 0x2b5   :  { %v3327_v5 = vmul.f32 %v3271_v21, %v3215_v54  ;;  %v233_v43 = vmul.f32 0.017857144, %v177_v63  ;;  %v8845_v49 = vsub.f32 %v8679_v10, %v619_v55  ;;  %v621_v12 = vmul.f32 7.0, %v8815_v22 }
 0x2b6   :  { %6793 = vmatmul.msk.f32.gmra.mxu1 %vm2225_vm0, %v6569_v35  ;;  %v3216_v35 = vsub.f32 %v3060_v34, %v8430_v57  ;;  %13196 = vst [vmem:[#allocation71_spill] sm:$0xff] %v8817_v4  ;;  %v13198_v34 = vcvt.s32.f32 %v8674_v15  ;;  %vm1523_vm13 = vcmp.eq.f32.partialorder %v7906_v23, %v8817_v4  ;;  %v13199_v15 = vcvt.s32.f32 %v8786_v58  ;;  %v3063_v21 = vpop.xlane.xlu2 %3062 }
 0x2b7   :  { %v7304_v29 = vpop.eup %7303  ;;  %7305 = vpow2.f32 %v3385_v53  ;;  %v605_v36 = vmul.f32 7.0, %v8819_v33  ;;  %v8852_v54 = vfloor.f32 %v510_v26  ;;  %v455_v19 = vadd.f32 0.5, %v8823_v59 }
 0x2b8   :  { %v3491_v1 = vpack.c.bf16 %v7304_v29, %v7302_v2  ;;  %v8828_v31 = vsub.f32 %v13198_v34, %v327_v46  ;;  %v438_v2 = vadd.f32 0.5, %v8801_v18  ;;  %v3272_v51 = vmul.f32 -19.22, %v3216_v35 }
 0x2b9   :  { %6811 = vmatmul.msk.f32.gmra.mxu3 %vm2225_vm0, %v6587_v45  ;;  %v160_v46 = vadd.f32 0.5, %v13199_v15  ;;  %13200 = vst [vmem:[#allocation72_spill] sm:$0xff] %v8852_v54  ;;  %vm1506_vm14 = vcmp.eq.f32.partialorder %v7906_v23, %v8783_v56  ;;  %v3387_v10 = vmul.f32 1.442695, %v3327_v5  ;;  %v6588_v53 = vsel %vm1523_vm13, 1.0, %v13121_v25 }
 0x2ba   :  { %6843 = vmatmul.msk.bf16.vlgmr.msrb.gmra.mxu2 %vm3546_vm8, %v3491_v1  ;;  %v8849_v1 = vadd.s32 280, %v7879_v60  ;;  %v439_v45 = vadd.f32 0.5, %v8828_v31  ;;  %v494_v27 = vmul.f32 0.14285715, %v438_v2  ;;  %v3328_v55 = vmul.f32 %v3272_v51, %v3216_v35 }
 0x2bb   :  { %v216_v26 = vmul.f32 0.017857144, %v160_v46  ;;  %v8863_v29 = vfloor.f32 %v233_v43  ;;  %v8867_v34 = vsub.f32 %v8727_v61, %v621_v12  ;;  %v344_v2 = vmul.f32 56.0, %v8817_v4 }
 0x2bc   :  { %v12883_v63 = vcvt.s32.f32 %v8849_v1  ;;  %v8872_v5 = vadd.s32 288, %v7879_v60  ;;  %v622_v15 = vmul.f32 7.0, %v8852_v54  ;;  %v511_v17 = vmul.f32 0.14285715, %v455_v19 }
 0x2bd   :  { %13201 = vst [vmem:[#allocation73_spill] sm:$0xff] %v8863_v29  ;;  %v495_v6 = vmul.f32 0.14285715, %v439_v45  ;;  %v7306_v51 = vpop.eup %7305  ;;  %v8878_v46 = vfloor.f32 %v494_v27  ;;  %v6571_v61 = vsel %vm1506_vm14, 1.0, %v13121_v25  ;;  %7307 = vpow2.f32 %v3387_v10  ;;  %v3066_v45 = vpop.xlane.xlu0 %3065 }
 0x2be   :  { %6794 = vmatmul.msk.f32.gmra.mxu1 %vm2225_vm0, %v6570_v39  ;;  %13202 = vst [vmem:[#allocation74_spill] sm:$0xff] %v8867_v34  ;;  %v3217_v39 = vsub.f32 %v3063_v21, %v8430_v57  ;;  %v178_v35 = vadd.f32 0.5, %v12883_v63  ;;  %v6461_v43 = vsel %vm721_vm10, 1.0, %v13121_v25  ;;  %v3389_v12 = vmul.f32 1.442695, %v3328_v55 }
 0x2bf   :  { %v8888_v19 = vfloor.f32 %v216_v26  ;;  %vm1524_vm15 = vcmp.eq.f32.partialorder %v7906_v23, %v8863_v29  ;;  %v12890_v21 = vcvt.s32.f32 %v8872_v5  ;;  %v13204_v27 = vcvt.s32.f32 %v8751_v50 }
 0x2c0   :  { %v3273_v63 = vmul.f32 -19.22, %v3217_v39  ;;  %v234_v10 = vmul.f32 0.017857144, %v178_v35  ;;  %v8898_v4 = vadd.f32 %v6461_v43, %v8412_v48  ;;  %v8900_v56 = vfloor.f32 %v511_v17 }
 0x2c1   :  { %6812 = vmatmul.msk.f32.gmra.mxu3 %vm2225_vm0, %v6588_v53  ;;  %13203 = vst [vmem:[#allocation75_spill] sm:$0xff] %v8888_v19  ;;  %v8895_v53 = vsub.f32 %v13204_v27, %v344_v2  ;;  %v8902_v55 = vfloor.f32 %v495_v6  ;;  %v3492_v26 = vpack.c.bf16 %v7306_v51, %v8598_v16  ;;  %v328_v54 = vmul.f32 56.0, %v8888_v19 }
 0x2c2   :  { %13205 = vst [vmem:[#allocation76_spill] sm:$0xff] %v8898_v4  ;;  %v606_v34 = vmul.f32 7.0, %v8878_v46  ;;  %v6589_v50 = vsel %vm1524_vm15, 1.0, %v13121_v25  ;;  %v3218_v2 = vsub.f32 %v3066_v45, %v8430_v57  ;;  %v8911_v35 = vadd.s32 296, %v7879_v60 }
 0x2c3   :  { %13206 = vst [vmem:[#allocation77_spill] sm:$0xff] %v8900_v56  ;;  %vm1507_vm3 = vcmp.eq.f32.partialorder %v7906_v23, %v8888_v19  ;;  %v345_v48 = vmul.f32 56.0, %v8863_v29  ;;  %v8918_v16 = vfloor.f32 %v234_v10  ;;  %v179_v6 = vadd.f32 0.5, %v12890_v21  ;;  %v8922_v17 = vpop.eup %7307 }
 0x2c4   :  { %13207 = vst [vmem:[#allocation78_spill] sm:$0xff] %v8902_v55  ;;  %7309 = vpow2.f32 %v3389_v12  ;;  %v456_v51 = vadd.f32 0.5, %v8895_v53  ;;  %v8927_v43 = vmin.f32 %v8366_v62, %v8898_v4  ;;  %v8930_v45 = vsub.f32 %v8735_v9, %v605_v36 }
 0x2c5   :  { %13208 = vst [vmem:[#allocation79_spill] sm:$0xff] %v8918_v16  ;;  %v623_v27 = vmul.f32 7.0, %v8900_v56  ;;  %v607_v10 = vmul.f32 7.0, %v8902_v55  ;;  %v13209_v29 = vcvt.s32.f32 %v8786_v58  ;;  %v8946_v9 = vsub.f32 %v8775_v24, %v622_v15  ;;  %v9003_v55 = vpop.f32.mrf.mxu2 }
 0x2c6   :  { %6795 = vmatmul.msk.f32.gmra.mxu1 %vm2225_vm0, %v6571_v61  ;;  %v3329_v61 = vmul.f32 %v3273_v63, %v3217_v39  ;;  %v4627_v63 = vld [vmem:[%s12781_s1] sm:$0xff]  ;;  %v4628_v39 = vld [vmem:[%s12781_s1 + $0x8] sm:$0xff]  ;;  %v8949_v36 = vsub.f32 %v8801_v18, %v606_v34  ;;  %v6572_v58 = vsel %vm1507_vm3, 1.0, %v13121_v25  ;;  %vm1525_vm2 = vcmp.eq.f32.partialorder %v7906_v23, %v8918_v16 }
 0x2c7   :  { %v8936_v21 = vsub.f32 %v13209_v29, %v328_v54  ;;  %13210 = vst [vmem:[#allocation80_spill] sm:$0xff] %v8946_v9  ;;  %v12895_v54 = vcvt.s32.f32 %v8911_v35  ;;  %v13211_v29 = vcvt.s32.f32 %v8789_v13  ;;  %v235_v24 = vmul.f32 0.017857144, %v179_v6 }
 0x2c8   :  { %v512_v18 = vmul.f32 0.14285715, %v456_v51  ;;  %v4649_v34 = vpack.c.bf16 %v4628_v39, %v4627_v63  ;;  %v3391_v15 = vmul.f32 1.442695, %v3329_v61  ;;  %v8965_v57 = vsub.f32 %v8823_v59, %v623_v27  ;;  %v8978_v51 = vld [vmem:[%s12781_s1 + $0x10] sm:$0xff]  ;;  %v8983_v59 = vld [vmem:[%s12781_s1 + $0x18] sm:$0xff] }
 0x2c9   :  { %6813 = vmatmul.msk.f32.gmra.mxu3 %vm2225_vm0, %v6589_v50  ;;  %v8959_v12 = vsub.f32 %v13211_v29, %v345_v48  ;;  %v3274_v50 = vmul.f32 -19.22, %v3218_v2  ;;  %v8968_v19 = vsub.f32 %v8828_v31, %v607_v10  ;;  %v440_v13 = vadd.f32 0.5, %v8936_v21 }
 0x2ca   :  { %6844 = vmatmul.msk.bf16.gmra.mxu2 %vm3546_vm8, %v3492_v26  ;;  %v1113_v26 = vadd.f32 1.0, %v8927_v43  ;;  %13212 = vst [vmem:[#allocation81_spill] sm:$0xff] %v8965_v57  ;;  %v7310_v48 = vpop.eup %7309  ;;  %v6590_v6 = vsel %vm1525_vm2, 1.0, %v13121_v25  ;;  %v180_v31 = vadd.f32 0.5, %v12895_v54  ;;  %v6462_v61 = vsel %vm722_vm4, 1.0, %v13121_v25 }
 0x2cb   :  { %13213 = vst [vmem:[#allocation82_spill] sm:$0xff] %v8968_v19  ;;  %v8989_v27 = vadd.s32 304, %v7879_v60  ;;  %v457_v10 = vadd.f32 0.5, %v8959_v12  ;;  %v3330_v63 = vmul.f32 %v3274_v50, %v3218_v2  ;;  %v8992_v39 = vfloor.f32 %v235_v24 }
 0x2cc   :  { %v8997_v29 = vfloor.f32 %v512_v18  ;;  %7311 = vpow2.f32 %v3391_v15  ;;  %v346_v57 = vmul.f32 56.0, %v8918_v16  ;;  %v1169_v54 = vmul.f32 %v1113_v26, %v8927_v43 }
 0x2cd   :  { %13214 = vst [vmem:[#allocation83_spill] sm:$0xff] %v8992_v39  ;;  %v496_v56 = vmul.f32 0.14285715, %v440_v13  ;;  %v3493_v19 = vpack.c.bf16 %v7310_v48, %v8922_v17  ;;  %v347_v50 = vmul.f32 56.0, %v8992_v39  ;;  %v236_v24 = vmul.f32 0.017857144, %v180_v31 }
 0x2ce   :  { %6796 = vmatmul.msk.f32.gmra.mxu1 %vm2225_vm0, %v6572_v58  ;;  %v8995_v58 = vadd.f32 %v6462_v61, %v8418_v40  ;;  %13216 = vst [vmem:[#allocation85_spill] sm:$0xff] %v8997_v29  ;;  %v6463_v17 = vsel %vm723_vm1, 1.0, %v13121_v25  ;;  %v513_v15 = vmul.f32 0.14285715, %v457_v10  ;;  %v3393_v26 = vmul.f32 1.442695, %v3330_v63 }
 0x2cf   :  { %vm1526_vm5 = vcmp.eq.f32.partialorder %v7906_v23, %v8992_v39  ;;  %v624_v48 = vmul.f32 7.0, %v8997_v29  ;;  %v1057_v31 = vmul.f32 8.0, %v8927_v43  ;;  %v1225_v2 = vmul.f32 0.5, %v1169_v54 }
 0x2d0   :  { %13215 = vst [vmem:[#allocation84_spill] sm:$0xff] %v8995_v58  ;;  %v946_v40 = vmin.f32 %v8370_v52, %v8995_v58  ;;  %v9023_v18 = vfloor.f32 %v496_v56  ;;  %v9026_v10 = vadd.f32 %v6463_v17, %v8421_v41  ;;  %v13219_v39 = vcvt.s32.f32 %v8872_v5 }
 0x2d1   :  { %6814 = vmatmul.msk.f32.gmra.mxu3 %vm2225_vm0, %v6590_v6  ;;  %v13217_v6 = vcvt.s32.f32 %v8849_v1  ;;  %v9036_v1 = vfloor.f32 %v236_v24  ;;  %v13221_v56 = vcvt.s32.f32 %v8989_v27  ;;  %7313 = vpow2.f32 %v3393_v26 }
 0x2d2   :  { %v1114_v13 = vadd.f32 1.0, %v946_v40  ;;  %v1058_v16 = vmul.f32 8.0, %v946_v40  ;;  %13218 = vst [vmem:[#allocation86_spill] sm:$0xff] %v9026_v10  ;;  %v9028_v63 = vpop.eup %7311  ;;  %v9033_v29 = vsub.f32 %v13219_v39, %v347_v50  ;;  %v1002_v41 = vmax.f32 %v8370_v52, %v8995_v58 }
 0x2d3   :  { %v9020_v61 = vsub.f32 %v13217_v6, %v346_v57  ;;  %v6591_v57 = vsel %vm1526_vm5, 1.0, %v13121_v25  ;;  %13220 = vst [vmem:[#allocation87_spill] sm:$0xff] %v9036_v1  ;;  %v181_v54 = vadd.f32 0.5, %v13221_v56  ;;  %v9040_v6 = vfloor.f32 %v513_v15 }
 0x2d4   :  { %v1170_v9 = vmul.f32 %v1114_v13, %v946_v40  ;;  %v1001_v5 = vmax.f32 %v8366_v62, %v8898_v4  ;;  %v1281_v39 = vsub.f32 %v1057_v31, %v1225_v2  ;;  %v9048_v50 = vadd.s32 312, %v7879_v60  ;;  %v2876_v13 = vpop.f32.mrf.mxu2 }
 0x2d5   :  { %13222 = vst [vmem:[#allocation88_spill] sm:$0xff] %v9040_v6  ;;  %v9051_v24 = vsub.f32 %v8895_v53, %v624_v48  ;;  %v9056_v26 = vmin.f32 %v8372_v3, %v9026_v10  ;;  %v487_v52 = vmul.f32 0.14285715, %v8534_v38  ;;  %v459_v62 = vadd.f32 0.5, %v9033_v29 }
 0x2d6   :  { %6979 = vmatmul.msk.bf16.vlgmr.msrb.gmra.mxu1 %vm3546_vm8, %v4649_v34  ;;  %v1226_v17 = vmul.f32 0.5, %v1170_v9  ;;  %v458_v34 = vadd.f32 0.5, %v9020_v61  ;;  %v608_v9 = vmul.f32 7.0, %v9023_v18  ;;  %vm1527_vm6 = vcmp.eq.f32.partialorder %v7906_v23, %v9036_v1 }
 0x2d7   :  { %13223 = vst [vmem:[#allocation89_spill] sm:$0xff] %v9051_v24  ;;  %v237_v53 = vmul.f32 0.017857144, %v181_v54  ;;  %vm724_vm7 = vcmp.ge.f32.partialorder %v8465_v14, %v8414_v30  ;;  %v9067_v48 = vfloor.f32 %v487_v52  ;;  %v625_v38 = vmul.f32 7.0, %v9040_v6  ;;  %v9071_v56 = vpop.eup %7313 }
 0x2d8   :  { %v1282_v15 = vsub.f32 %v1058_v16, %v1226_v17  ;;  %v514_v31 = vmul.f32 0.14285715, %v458_v34  ;;  %v1115_v54 = vadd.f32 1.0, %v9056_v26  ;;  %v515_v16 = vmul.f32 0.14285715, %v459_v62 }
 0x2d9   :  { %6815 = vmatmul.msk.f32.gmra.mxu3 %vm2225_vm0, %v6591_v57  ;;  %v1337_v57 = vadd.f32 %v1281_v39, %v1001_v5  ;;  %v348_v52 = vmul.f32 56.0, %v9036_v1  ;;  %v6592_v34 = vsel %vm1527_vm6, 1.0, %v13121_v25  ;;  %v9083_v5 = vfloor.f32 %v237_v53 }
 0x2da   :  { %6845 = vmatmul.msk.bf16.gmra.mxu2 %vm3546_vm8, %v3493_v19  ;;  %v1338_v2 = vadd.f32 %v1282_v15, %v1002_v41  ;;  %v6464_v19 = vsel %vm724_vm7, 1.0, %v13121_v25  ;;  %v599_v15 = vmul.f32 7.0, %v9067_v48  ;;  %vm725_vm9 = vcmp.ge.f32.partialorder %v8538_v44, %v8471_v11 }
 0x2db   :  { %v9075_v41 = vadd.f32 %v6464_v19, %v8465_v14  ;;  %13225 = vst [vmem:[#allocation91_spill] sm:$0xff] %v9083_v5  ;;  %v13227_v39 = vcvt.s32.f32 %v9048_v50  ;;  %v9096_v19 = vfloor.f32 %v514_v31  ;;  %v3494_v53 = vpack.c.bf16 %v9071_v56, %v9028_v63 }
 0x2dc   :  { %v1394_v17 = vsub.f32 %v1338_v2, %v946_v40  ;;  %v9088_v40 = vsub.f32 %v8936_v21, %v608_v9  ;;  %v655_v1 = vsub.f32 %v8489_v42, %v599_v15  ;;  %v9102_v58 = vadd.s32 320, %v7879_v60 }
 0x2dd   :  { %13224 = vst [vmem:[#allocation90_spill] sm:$0xff] %v9075_v41  ;;  %v182_v2 = vadd.f32 0.5, %v13227_v39  ;;  %v9094_v62 = vmin.f32 %v8414_v30, %v9075_v41  ;;  %vm712_vm10 = vcmp.ge.f32.partialorder %v8625_v28, %v8516_v20  ;;  %v1393_v21 = vsub.f32 %v1337_v57, %v8927_v43  ;;  %v9138_v39 = vld [vmem:[%s12781_s1 + $0x28] sm:$0xff] }
 0x2de   :  { %13226 = vst [vmem:[#allocation92_spill] sm:$0xff] %v9088_v40  ;;  %v6518_v14 = vadd.f32 -1.0, %v1394_v17  ;;  %v1171_v9 = vmul.f32 %v1115_v54, %v9056_v26  ;;  %v9111_v17 = vfloor.f32 %v515_v16  ;;  %v13230_v42 = vcvt.s32.f32 %v8911_v35 }
 0x2df   :  { %13228 = vst [vmem:[#allocation93_spill] sm:$0xff] %v9096_v19  ;;  %v1116_v31 = vadd.f32 1.0, %v9094_v62  ;;  %vm1528_vm13 = vcmp.eq.f32.partialorder %v7906_v23, %v9083_v5  ;;  %v238_v57 = vmul.f32 0.017857144, %v182_v2  ;;  %v1060_v15 = vmul.f32 8.0, %v9094_v62 }
 0x2e0   :  { %vm1677_vm11 = vcmp.eq.f32.partialorder %v7906_v23, %v6518_v14  ;;  %13229 = vst [vmem:[#allocation94_spill] sm:$0xff] %v9111_v17  ;;  %v9115_v63 = vsub.f32 %v13230_v42, %v348_v52  ;;  %v1059_v16 = vmul.f32 8.0, %v9056_v26  ;;  %vm711_vm14 = vcmp.ge.f32.partialorder %v655_v1, %v9067_v48  ;;  %v9128_v14 = vpop.f32.mrf.mxu2 }
 0x2e1   :  { %6816 = vmatmul.msk.f32.gmra.mxu3 %vm2225_vm0, %v6592_v34  ;;  %v6630_v56 = vsel %vm1677_vm11, 1.0, %v13121_v25  ;;  %v1172_v54 = vmul.f32 %v1116_v31, %v9094_v62  ;;  %v349_v34 = vmul.f32 56.0, %v9083_v5  ;;  %v1227_v52 = vmul.f32 0.5, %v1171_v9 }
 0x2e2   :  { %v9120_v43 = vmul.f32 %v6630_v56, %v2876_v13  ;;  %v9133_v13 = vld [vmem:[%s12781_s1 + $0x20] sm:$0xff]  ;;  %v1004_v2 = vmax.f32 %v8414_v30, %v9075_v41  ;;  %v6451_v42 = vsel %vm711_vm14, 1.0, %v13121_v25  ;;  %v6517_v56 = vadd.f32 -1.0, %v1393_v21 }
 0x2e3   :  { %v1228_v31 = vmul.f32 0.5, %v1172_v54  ;;  %v13232_v9 = vpack.c.bf16 %v8983_v59, %v8978_v51  ;;  %v460_v35 = vadd.f32 0.5, %v9115_v63  ;;  %v6593_v4 = vsel %vm1528_vm13, 1.0, %v13121_v25 }
 0x2e4   :  { %13231 = vst [vmem:[#allocation95_spill] sm:$0xff] %v9120_v43  ;;  %v9152_v43 = vadd.f32 %v6451_v42, %v655_v1  ;;  %v9155_v30 = vsub.f32 %v8959_v12, %v625_v38  ;;  %v9157_v54 = vfloor.f32 %v238_v57  ;;  %v13236_v41 = vcvt.s32.f32 %v9102_v58 }
 0x2e5   :  { %v1284_v21 = vsub.f32 %v1060_v15, %v1228_v31  ;;  %v9162_v59 = vmul.f32 7.0, %v9096_v19  ;;  %v4651_v5 = vpack.c.bf16 %v9138_v39, %v9133_v13  ;;  %vm713_vm15 = vcmp.ge.f32.partialorder %v8631_v8, %v8558_v0 }
 0x2e6   :  { %6980 = vmatmul.msk.bf16.gmra.mxu1 %vm3546_vm8, %v13232_v9  ;;  %13233 = vst [vmem:[#allocation96_spill] sm:$0xff] %v9152_v43  ;;  %v183_v51 = vadd.f32 0.5, %v13236_v41  ;;  %v9165_v9 = vmul.f32 7.0, %v9111_v17  ;;  %v9171_v1 = vmin.f32 %v9067_v48, %v9152_v43  ;;  %v13237_v12 = vcvt.s32.f32 %v8989_v27 }
 0x2e7   :  { %13234 = vst [vmem:[#allocation97_spill] sm:$0xff] %v9155_v30  ;;  %v1003_v41 = vmax.f32 %v8372_v3, %v9026_v10  ;;  %v1283_v57 = vsub.f32 %v1059_v16, %v1227_v52  ;;  %v1340_v15 = vadd.f32 %v1284_v21, %v1004_v2  ;;  %vm1676_vm1 = vcmp.eq.f32.partialorder %v7906_v23, %v6517_v56 }
 0x2e8   :  { %13235 = vst [vmem:[#allocation98_spill] sm:$0xff] %v9157_v54  ;;  %v9177_v38 = vsub.f32 %v13237_v12, %v349_v34  ;;  %v516_v13 = vmul.f32 0.14285715, %v460_v35  ;;  %v1103_v39 = vadd.f32 1.0, %v9171_v1  ;;  %v6465_v27 = vsel %vm725_vm9, 1.0, %v13121_v25 }
 0x2e9   :  { %6817 = vmatmul.msk.f32.gmra.mxu3 %vm2225_vm0, %v6593_v4  ;;  %v350_v34 = vmul.f32 56.0, %v9157_v54  ;;  %vm1529_vm3 = vcmp.eq.f32.partialorder %v7906_v23, %v9157_v54  ;;  %v1396_v3 = vsub.f32 %v1340_v15, %v9094_v62  ;;  %v239_v4 = vmul.f32 0.017857144, %v183_v51 }
 0x2ea   :  { %6846 = vmatmul.msk.bf16.gmra.mxu2 %vm3546_vm8, %v3494_v53  ;;  %v1047_v16 = vmul.f32 8.0, %v9171_v1  ;;  %v1159_v53 = vmul.f32 %v1103_v39, %v9171_v1  ;;  %v6452_v35 = vsel %vm712_vm10, 1.0, %v13121_v25  ;;  %v9200_v52 = vadd.s32 328, %v7879_v60 }
 0x2eb   :  { %v461_v2 = vadd.f32 0.5, %v9177_v38  ;;  %v1339_v31 = vadd.f32 %v1283_v57, %v1003_v41  ;;  %v6520_v42 = vadd.f32 -1.0, %v1396_v3  ;;  %v9204_v21 = vadd.f32 %v6465_v27, %v8538_v44  ;;  %v2882_v41 = vpop.f32.mrf.mxu2 }
 0x2ec   :  { %v6594_v62 = vsel %vm1529_vm3, 1.0, %v13121_v25  ;;  %v991_v51 = vmax.f32 %v9067_v48, %v9152_v43  ;;  %v1215_v12 = vmul.f32 0.5, %v1159_v53  ;;  %v9210_v15 = vadd.f32 %v6452_v35, %v8625_v28 }
 0x2ed   :  { %13238 = vst [vmem:[#allocation99_spill] sm:$0xff] %v9204_v21  ;;  %v13240_v39 = vcvt.s32.f32 %v9048_v50  ;;  %vm1679_vm2 = vcmp.eq.f32.partialorder %v7906_v23, %v6520_v42  ;;  %v9217_v57 = vfloor.f32 %v239_v4  ;;  %v12912_v44 = vcvt.s32.f32 %v9200_v52 }
 0x2ee   :  { %13239 = vst [vmem:[#allocation100_spill] sm:$0xff] %v9210_v15  ;;  %v6629_v27 = vsel %vm1676_vm1, 1.0, %v13121_v25  ;;  %v6632_v48 = vsel %vm1679_vm2, 1.0, %v13121_v25  ;;  %v1271_v3 = vsub.f32 %v1047_v16, %v1215_v12  ;;  %v9226_v28 = vmin.f32 %v8516_v20, %v9210_v15  ;;  %v13244_v12 = vld [vmem:[#allocation51_spill] sm:$0xff] }
 0x2ef   :  { %v9214_v54 = vsub.f32 %v13240_v39, %v350_v34  ;;  %13241 = vst [vmem:[#allocation101_spill] sm:$0xff] %v9217_v57  ;;  %v517_v50 = vmul.f32 0.14285715, %v461_v2  ;;  %v1395_v34 = vsub.f32 %v1339_v31, %v9056_v26  ;;  %v9230_v4 = vmul.f32 %v6632_v48, %v2882_v41  ;;  %v13245_v39 = vld [vmem:[#allocation50_spill] sm:$0xff]  ;;  %v13246_v41 = vld [vmem:[#allocation56_spill] sm:$0xff] }
 0x2f0   :  { %v9234_v53 = vmin.f32 %v8471_v11, %v9204_v21  ;;  %v9236_v56 = vfloor.f32 %v516_v13  ;;  %v1327_v35 = vadd.f32 %v1271_v3, %v991_v51  ;;  %v1104_v16 = vadd.f32 1.0, %v9226_v28 }
 0x2f1   :  { %6818 = vmatmul.msk.f32.gmra.mxu3 %vm2225_vm0, %v6594_v62  ;;  %13242 = vst [vmem:[#allocation102_spill] sm:$0xff] %v9230_v4  ;;  %v184_v42 = vadd.f32 0.5, %v12912_v44  ;;  %v462_v2 = vadd.f32 0.5, %v9214_v54  ;;  %vm1530_vm4 = vcmp.eq.f32.partialorder %v7906_v23, %v9217_v57  ;;  %v1048_v26 = vmul.f32 8.0, %v9226_v28 }
 0x2f2   :  { %13243 = vst [vmem:[#allocation103_spill] sm:$0xff] %v9236_v56  ;;  %vm726_vm5 = vcmp.ge.f32.partialorder %v8541_v37, %v8491_v7  ;;  %v1160_v31 = vmul.f32 %v1104_v16, %v9226_v28  ;;  %v6453_v51 = vsel %vm713_vm15, 1.0, %v13121_v25  ;;  %vm727_vm6 = vcmp.ge.f32.partialorder %v13244_v12, %v8543_v32 }
 0x2f3   :  { %v240_v13 = vmul.f32 0.017857144, %v184_v42  ;;  %v6466_v62 = vsel %vm726_vm5, 1.0, %v13121_v25  ;;  %vm714_vm7 = vcmp.ge.f32.partialorder %v13246_v41, %v13245_v39  ;;  %v9257_v48 = vfloor.f32 %v517_v50 }
 0x2f4   :  { %v9259_v3 = vadd.f32 -1.0, %v1395_v34  ;;  %v1117_v16 = vadd.f32 1.0, %v9234_v53  ;;  %v9263_v42 = vadd.f32 %v6466_v62, %v8541_v37  ;;  %v1383_v44 = vsub.f32 %v1327_v35, %v9171_v1 }
 0x2f5   :  { %13247 = vst [vmem:[#allocation51_spill] sm:$0xff] %v9257_v48  ;;  %v6595_v10 = vsel %vm1530_vm4, 1.0, %v13121_v25  ;;  %v992_v43 = vmax.f32 %v8516_v20, %v9210_v15  ;;  %v1216_v4 = vmul.f32 0.5, %v1160_v31  ;;  %v9272_v50 = vsub.f32 %v9020_v61, %v9162_v59 }
 0x2f6   :  { %13248 = vst [vmem:[#allocation50_spill] sm:$0xff] %v9263_v42  ;;  %6981 = vmatmul.msk.bf16.gmra.mxu1 %vm3546_vm8, %v4651_v5  ;;  %v9274_v34 = vfloor.f32 %v240_v13  ;;  %v9278_v37 = vmin.f32 %v8491_v7, %v9263_v42  ;;  %v9281_v5 = vadd.f32 %v6453_v51, %v8631_v8  ;;  %v518_v1 = vmul.f32 0.14285715, %v462_v2  ;;  %v9299_v2 = vpop.f32.mrf.mxu2 }
 0x2f7   :  { %13249 = vst [vmem:[#allocation56_spill] sm:$0xff] %v9272_v50  ;;  %v351_v35 = vmul.f32 56.0, %v9217_v57  ;;  %v1272_v62 = vsub.f32 %v1048_v26, %v1216_v4  ;;  %v9285_v20 = vadd.s32 336, %v7879_v60  ;;  %v9289_v61 = vsub.f32 %v9033_v29, %v9165_v9 }
 0x2f8   :  { %13250 = vst [vmem:[#allocation104_spill] sm:$0xff] %v9274_v34  ;;  %v9292_v59 = vmul.f32 %v6629_v27, %v9003_v55  ;;  %v9295_v31 = vmul.f32 7.0, %v9236_v56  ;;  %v1173_v8 = vmul.f32 %v1117_v16, %v9234_v53  ;;  %v9302_v4 = vmul.f32 7.0, %v9257_v48 }
 0x2f9   :  { %13251 = vst [vmem:[#allocation105_spill] sm:$0xff] %v9281_v5  ;;  %6819 = vmatmul.msk.f32.gmra.mxu3 %vm2225_vm0, %v6595_v10  ;;  %vm1678_vm9 = vcmp.eq.f32.partialorder %v7906_v23, %v9259_v3  ;;  %v6507_v29 = vadd.f32 -1.0, %v1383_v44  ;;  %v1328_v9 = vadd.f32 %v1272_v62, %v992_v43  ;;  %v1005_v55 = vmax.f32 %v8471_v11, %v9204_v21 }
 0x2fa   :  { %13252 = vst [vmem:[#allocation106_spill] sm:$0xff] %v9289_v61  ;;  %vm1531_vm10 = vcmp.eq.f32.partialorder %v7906_v23, %v9274_v34  ;;  %v1118_v10 = vadd.f32 1.0, %v9278_v37  ;;  %v9315_v27 = vmin.f32 %v8558_v0, %v9281_v5  ;;  %v9317_v13 = vfloor.f32 %v518_v1  ;;  %v13256_v61 = vld [vmem:[#allocation64_spill] sm:$0xff] }
 0x2fb   :  { %13253 = vst [vmem:[#allocation107_spill] sm:$0xff] %v9292_v59  ;;  %v9306_v26 = vpop.f32.mrf.mxu1  ;;  %v13254_v51 = vcvt.s32.f32 %v9102_v58  ;;  %v1061_v43 = vmul.f32 8.0, %v9234_v53  ;;  %v12918_v16 = vcvt.s32.f32 %v9285_v20  ;;  %v1229_v11 = vmul.f32 0.5, %v1173_v8  ;;  %v4634_v8 = vld [vmem:[%s12781_s1 + $0x38] sm:$0xff] }
 0x2fc   :  { %v1062_v62 = vmul.f32 8.0, %v9278_v37  ;;  %v1174_v57 = vmul.f32 %v1118_v10, %v9278_v37  ;;  %v1105_v21 = vadd.f32 1.0, %v9315_v27  ;;  %vm1666_vm11 = vcmp.eq.f32.partialorder %v7906_v23, %v6507_v29 }
 0x2fd   :  { %v9321_v44 = vsub.f32 %v13254_v51, %v351_v35  ;;  %v1384_v1 = vsub.f32 %v1328_v9, %v9226_v28  ;;  %v6596_v15 = vsel %vm1531_vm10, 1.0, %v13121_v25  ;;  %v185_v58 = vadd.f32 0.5, %v12918_v16  ;;  %v4633_v35 = vld [vmem:[%s12781_s1 + $0x30] sm:$0xff] }
 0x2fe   :  { %v1006_v10 = vmax.f32 %v8491_v7, %v9263_v42  ;;  %v1230_v51 = vmul.f32 0.5, %v1174_v57  ;;  %v1049_v29 = vmul.f32 8.0, %v9315_v27  ;;  %v1161_v28 = vmul.f32 %v1105_v21, %v9315_v27  ;;  %v13255_v42 = vld [vmem:[#allocation55_spill] sm:$0xff]  ;;  %v2888_v24 = vpop.f32.mrf.mxu2 }
 0x2ff   :  { %v241_v9 = vmul.f32 0.017857144, %v185_v58  ;;  %v6467_v16 = vsel %vm727_vm6, 1.0, %v13121_v25  ;;  %v6454_v48 = vsel %vm714_vm7, 1.0, %v13121_v25  ;;  %v9352_v56 = vadd.s32 344, %v7879_v60 }
 0x300   :  { %v6619_v7 = vsel %vm1666_vm11, 1.0, %v13121_v25  ;;  %v1286_v57 = vsub.f32 %v1062_v62, %v1230_v51  ;;  %v993_v21 = vmax.f32 %v8558_v0, %v9281_v5  ;;  %v1217_v58 = vmul.f32 0.5, %v1161_v28  ;;  %v13261_v28 = vld [vmem:[#allocation54_spill] sm:$0xff] }
 0x301   :  { %6820 = vmatmul.msk.f32.gmra.mxu3 %vm2225_vm0, %v6596_v15  ;;  %vm715_vm13 = vcmp.ge.f32.partialorder %v13256_v61, %v13255_v42  ;;  %v463_v17 = vadd.f32 0.5, %v9321_v44  ;;  %v4652_v59 = vpack.c.bf16 %v4634_v8, %v4633_v35  ;;  %v6508_v50 = vadd.f32 -1.0, %v1384_v1 }
 0x302   :  { %v9361_v19 = vfloor.f32 %v241_v9  ;;  %v1342_v6 = vadd.f32 %v1286_v57, %v1006_v10  ;;  %v1273_v40 = vsub.f32 %v1049_v29, %v1217_v58  ;;  %v9364_v15 = vadd.f32 %v6467_v16, %v13244_v12  ;;  %v13262_v9 = vld [vmem:[#allocation62_spill] sm:$0xff] }
 0x303   :  { %v2843_v30 = vpop.f32.mrf.mxu1  ;;  %v9367_v62 = vadd.f32 %v6454_v48, %v13246_v41  ;;  %v1285_v51 = vsub.f32 %v1061_v43, %v1229_v11  ;;  %v12935_v35 = vcvt.s32.f32 %v9352_v56  ;;  %v6631_v1 = vsel %vm1678_vm9, 1.0, %v13121_v25 }
 0x304   :  { %13257 = vst [vmem:[#allocation55_spill] sm:$0xff] %v9361_v19  ;;  %v2995_v0 = vmul.f32 %v6619_v7, %v2843_v30  ;;  %vm1532_vm14 = vcmp.eq.f32.partialorder %v7906_v23, %v9361_v19  ;;  %v352_v8 = vmul.f32 56.0, %v9274_v34  ;;  %v1398_v12 = vsub.f32 %v1342_v6, %v9278_v37 }
 0x305   :  { %13258 = vst [vmem:[#allocation64_spill] sm:$0xff] %v9364_v15  ;;  %v1329_v16 = vadd.f32 %v1273_v40, %v993_v21  ;;  %vm1667_vm15 = vcmp.eq.f32.partialorder %v7906_v23, %v6508_v50  ;;  %v6597_v41 = vsel %vm1532_vm14, 1.0, %v13121_v25  ;;  %v9384_v48 = vmin.f32 %v13245_v39, %v9367_v62 }
 0x306   :  { %13259 = vst [vmem:[#allocation108_spill] sm:$0xff] %v9367_v62  ;;  %6982 = vmatmul.msk.bf16.gmra.mxu1 %vm3546_vm8, %v4652_v59  ;;  %v3067_v30 = vsel %vm2536_vm12, %v2995_v0, 0.0  ;;  %v519_v43 = vmul.f32 0.14285715, %v463_v17  ;;  %v6522_v3 = vadd.f32 -1.0, %v1398_v12  ;;  %v9389_v6 = vmin.f32 %v8543_v32, %v9364_v15  ;;  %v13265_v12 = vld [vmem:[#allocation52_spill] sm:$0xff] }
 0x307   :  { %3068 = vadd.xlane.f32.xlu2 %v3067_v30  ;;  %v1385_v11 = vsub.f32 %v1329_v16, %v9315_v27  ;;  %v630_v40 = vmul.f32 7.0, %v9317_v13  ;;  %v1341_v37 = vadd.f32 %v1285_v51, %v1005_v55  ;;  %v1106_v50 = vadd.f32 1.0, %v9384_v48 }
 0x308   :  { %v186_v59 = vadd.f32 0.5, %v12935_v35  ;;  %v6620_v10 = vsel %vm1667_vm15, 1.0, %v13121_v25  ;;  %v13260_v17 = vcvt.s32.f32 %v9200_v52  ;;  %vm1681_vm1 = vcmp.eq.f32.partialorder %v7906_v23, %v6522_v3 }
 0x309   :  { %6821 = vmatmul.msk.f32.gmra.mxu3 %vm2225_vm0, %v6597_v41  ;;  %v1050_v27 = vmul.f32 8.0, %v9384_v48  ;;  %vm729_vm3 = vcmp.ge.f32.partialorder %v13262_v9, %v13261_v28  ;;  %v6634_v55 = vsel %vm1681_vm1, 1.0, %v13121_v25  ;;  %v6509_v7 = vadd.f32 -1.0, %v1385_v11  ;;  %v13266_v11 = vld [vmem:[#allocation63_spill] sm:$0xff] }
 0x30a   :  { %v9398_v29 = vsub.f32 %v13260_v17, %v352_v8  ;;  %v1162_v57 = vmul.f32 %v1106_v50, %v9384_v48  ;;  %v242_v21 = vmul.f32 0.017857144, %v186_v59  ;;  %v9407_v58 = vfloor.f32 %v519_v43  ;;  %v13264_v8 = vld [vmem:[#allocation48_spill] sm:$0xff]  ;;  %v9420_v50 = vpop.f32.mrf.mxu2 }
 0x30b   :  { %v2846_v52 = vpop.f32.mrf.mxu1  ;;  %v9409_v0 = vmul.f32 %v6634_v55, %v2888_v24  ;;  %v1119_v51 = vadd.f32 1.0, %v9389_v6  ;;  %vm728_vm2 = vcmp.ge.f32.partialorder %v13265_v12, %v13264_v8  ;;  %v1397_v16 = vsub.f32 %v1341_v37, %v9234_v53 }
 0x30c   :  { %13263 = vst [vmem:[#allocation54_spill] sm:$0xff] %v9407_v58  ;;  %v2996_v30 = vmul.f32 %v6620_v10, %v2846_v52  ;;  %v994_v41 = vmax.f32 %v13245_v39, %v9367_v62  ;;  %v1218_v3 = vmul.f32 0.5, %v1162_v57  ;;  %vm716_vm4 = vcmp.ge.f32.partialorder %v8832_v47, %v13266_v11 }
 0x30d   :  { %v464_v43 = vadd.f32 0.5, %v9398_v29  ;;  %v9422_v24 = vfloor.f32 %v242_v21  ;;  %v6468_v59 = vsel %vm728_vm2, 1.0, %v13121_v25  ;;  %v6455_v53 = vsel %vm715_vm13, 1.0, %v13121_v25 }
 0x30e   :  { %v3070_v37 = vsel %vm2536_vm12, %v2996_v30, 0.0  ;;  %vm1668_vm5 = vcmp.eq.f32.partialorder %v7906_v23, %v6509_v7  ;;  %v1274_v39 = vsub.f32 %v1050_v27, %v1218_v3  ;;  %v9432_v10 = vadd.f32 %v6468_v59, %v13265_v12 }
 0x30f   :  { %13267 = vst [vmem:[#allocation62_spill] sm:$0xff] %v9422_v24  ;;  %v9436_v17 = vsub.f32 %v9115_v63, %v9295_v31  ;;  %3071 = vadd.xlane.f32.xlu0 %v3070_v37  ;;  %v1175_v55 = vmul.f32 %v1119_v51, %v9389_v6  ;;  %vm1533_vm6 = vcmp.eq.f32.partialorder %v7906_v23, %v9422_v24  ;;  %v9468_v51 = vadd.f32 -1.0, %v1397_v16 }
 0x310   :  { %13268 = vst [vmem:[#allocation48_spill] sm:$0xff] %v9432_v10  ;;  %v9442_v57 = vadd.f32 %v6455_v53, %v13256_v61  ;;  %v9446_v7 = vsub.f32 %v9177_v38, %v9302_v4  ;;  %v1330_v27 = vadd.f32 %v1274_v39, %v994_v41  ;;  %v6598_v21 = vsel %vm1533_vm6, 1.0, %v13121_v25 }
 0x311   :  { %v9451_v63 = vmin.f32 %v13264_v8, %v9432_v10  ;;  %v9454_v31 = vmul.f32 %v6631_v1, %v9128_v14  ;;  %v9457_v52 = vsub.f32 %v9214_v54, %v630_v40  ;;  %v6621_v61 = vsel %vm1668_vm5, 1.0, %v13121_v25  ;;  %6822 = vmatmul.msk.f32.gmra.mxu3 %vm2225_vm0, %v6598_v21 }
 0x312   :  { %13269 = vst [vmem:[#allocation52_spill] sm:$0xff] %v9442_v57  ;;  %v9463_v38 = vmin.f32 %v13255_v42, %v9442_v57  ;;  %v9466_v4 = vmul.f32 7.0, %v9407_v58  ;;  %v520_v12 = vmul.f32 0.14285715, %v464_v43  ;;  %v1386_v14 = vsub.f32 %v1330_v27, %v9384_v48 }
 0x313   :  { %v2849_v1 = vpop.f32.mrf.mxu1  ;;  %v1007_v54 = vmax.f32 %v8543_v32, %v9364_v15  ;;  %v1063_v40 = vmul.f32 8.0, %v9389_v6  ;;  %v1231_v30 = vmul.f32 0.5, %v1175_v55  ;;  %v1120_v41 = vadd.f32 1.0, %v9451_v63 }
 0x314   :  { %v2997_v3 = vmul.f32 %v6621_v61, %v2849_v1  ;;  %v353_v59 = vmul.f32 56.0, %v9361_v19  ;;  %v6510_v53 = vadd.f32 -1.0, %v1386_v14  ;;  %v1107_v37 = vadd.f32 1.0, %v9463_v38  ;;  %v2894_v1 = vpop.f32.mrf.mxu2 }
 0x315   :  { %v1064_v16 = vmul.f32 8.0, %v9451_v63  ;;  %v1176_v43 = vmul.f32 %v1120_v41, %v9451_v63  ;;  %v9480_v48 = vadd.s32 352, %v7879_v60  ;;  %v6469_v32 = vsel %vm729_vm3, 1.0, %v13121_v25 }
 0x316   :  { %v3073_v39 = vsel %vm2536_vm12, %v2997_v3, 0.0  ;;  %vm1669_vm7 = vcmp.eq.f32.partialorder %v7906_v23, %v6510_v53  ;;  %v1051_v55 = vmul.f32 8.0, %v9463_v38  ;;  %v1163_v27 = vmul.f32 %v1107_v37, %v9463_v38 }
 0x317   :  { %v1287_v21 = vsub.f32 %v1063_v40, %v1231_v30  ;;  %3074 = vadd.xlane.f32.xlu2 %v3073_v39  ;;  %v1008_v61 = vmax.f32 %v13264_v8, %v9432_v10  ;;  %v1232_v14 = vmul.f32 0.5, %v1176_v43  ;;  %v12937_v41 = vcvt.s32.f32 %v9480_v48 }
 0x318   :  { %v995_v35 = vmax.f32 %v13255_v42, %v9442_v57  ;;  %v1219_v19 = vmul.f32 0.5, %v1163_v27  ;;  %v9496_v3 = vadd.f32 %v6469_v32, %v13262_v9  ;;  %v6456_v40 = vsel %vm716_vm4, 1.0, %v13121_v25 }
 0x319   :  { %v6622_v30 = vsel %vm1669_vm7, 1.0, %v13121_v25  ;;  %v1288_v53 = vsub.f32 %v1064_v16, %v1232_v14  ;;  %v187_v8 = vadd.f32 0.5, %v12937_v41  ;;  %v9506_v37 = vadd.f32 %v6456_v40, %v8832_v47 }
 0x31a   :  { %13270 = vst [vmem:[#allocation63_spill] sm:$0xff] %v9496_v3  ;;  %vm1680_vm9 = vcmp.eq.f32.partialorder %v7906_v23, %v9468_v51  ;;  %v9510_v42 = vfloor.f32 %v520_v12  ;;  %v13273_v9 = vcvt.s32.f32 %v9285_v20  ;;  %v1275_v32 = vsub.f32 %v1051_v55, %v1219_v19  ;;  %v13274_v12 = vld [vmem:[#allocation60_spill] sm:$0xff] }
 0x31b   :  { %13271 = vst [vmem:[#allocation109_spill] sm:$0xff] %v9506_v37  ;;  %v9516_v39 = vadd.f32 %v1287_v21, %v1007_v54  ;;  %v2852_v27 = vpop.f32.mrf.mxu1  ;;  %v354_v16 = vmul.f32 56.0, %v9422_v24  ;;  %v1344_v14 = vadd.f32 %v1288_v53, %v1008_v61  ;;  %v243_v41 = vmul.f32 0.017857144, %v187_v8  ;;  %v13285_v24 = vld [vmem:[#allocation74_spill] sm:$0xff] }
 0x31c   :  { %13272 = vst [vmem:[#allocation110_spill] sm:$0xff] %v9510_v42  ;;  %v9514_v43 = vsub.f32 %v13273_v9, %v353_v59  ;;  %v2998_v34 = vmul.f32 %v6622_v30, %v2852_v27  ;;  %v2595_v47 = vpop.f32.mrf.mxu3  ;;  %v1331_v40 = vadd.f32 %v1275_v32, %v995_v35  ;;  %v9521_v10 = vmin.f32 %v13261_v28, %v9496_v3 }
 0x31d   :  { %v9525_v20 = vmin.f32 %v13266_v11, %v9506_v37  ;;  %v2598_v19 = vadd.f32 %v2595_v47, %v13274_v12  ;;  %v1400_v54 = vsub.f32 %v1344_v14, %v9451_v63  ;;  %v9529_v59 = vfloor.f32 %v243_v41 }
 0x31e   :  { %v9532_v55 = vadd.s32 360, %v7879_v60  ;;  %vm717_vm10 = vcmp.ge.f32.partialorder %v8930_v45, %v8819_v33  ;;  %v465_v35 = vadd.f32 0.5, %v9514_v43  ;;  %vm2632_vm11 = vcmask 359424  }
 0x31f   :  { %13275 = vst [vmem:[#allocation60_spill] sm:$0xff] %v9529_v59  ;;  %v3076_v21 = vsel %vm2536_vm12, %v2998_v34, 0.0  ;;  %v1387_v61 = vsub.f32 %v1331_v40, %v9463_v38  ;;  %v13276_v30 = vcvt.s32.f32 %v9352_v56  ;;  %v2631_v63 = vadd.f32 %v9306_v26, %v2598_v19  ;;  %v9556_v26 = vpop.f32.mrf.mxu2 }
 0x320   :  { %v6524_v41 = vadd.f32 -1.0, %v1400_v54  ;;  %3077 = vadd.xlane.f32.xlu0 %v3076_v21  ;;  %vm1534_vm13 = vcmp.eq.f32.partialorder %v7906_v23, %v9529_v59  ;;  %v1399_v8 = vsub.f32 %v9516_v39, %v9389_v6  ;;  %v1108_v34 = vadd.f32 1.0, %v9525_v20  ;;  %v13277_v6 = vld [vmem:[#allocation58_spill] sm:$0xff]  ;;  %v13278_v39 = vld [vmem:[#allocation65_spill] sm:$0xff] }
 0x321   :  { %v9541_v53 = vsub.f32 %v13276_v30, %v354_v16  ;;  %v6511_v9 = vadd.f32 -1.0, %v1387_v61  ;;  %v6599_v32 = vsel %vm1534_vm13, 1.0, %v13121_v25  ;;  %2633 = vst.msk [vmem:[%s12787_s7] sm:$0xff] %vm2632_vm11, %v2631_v63  ;;  %v1121_v56 = vadd.f32 1.0, %v9521_v10 }
 0x322   :  { %vm1683_vm14 = vcmp.eq.f32.partialorder %v7906_v23, %v6524_v41  ;;  %6823 = vmatmul.msk.f32.gmra.mxu3 %vm2225_vm0, %v6599_v32  ;;  %v12940_v38 = vcvt.s32.f32 %v9532_v55  ;;  %vm730_vm15 = vcmp.ge.f32.partialorder %v13278_v39, %v13277_v6  ;;  %v1052_v16 = vmul.f32 8.0, %v9525_v20  ;;  %v13281_v32 = vld [vmem:[#allocation59_spill] sm:$0xff] }
 0x323   :  { %v6636_v27 = vsel %vm1683_vm14, 1.0, %v13121_v25  ;;  %vm1670_vm1 = vcmp.eq.f32.partialorder %v7906_v23, %v6511_v9  ;;  %v1164_v14 = vmul.f32 %v1108_v34, %v9525_v20  ;;  %v466_v47 = vadd.f32 0.5, %v9541_v53  ;;  %v2855_v19 = vpop.f32.mrf.mxu1  ;;  %v13282_v34 = vld [vmem:[#allocation66_spill] sm:$0xff] }
 0x324   :  { %v9566_v40 = vmul.f32 %v6636_v27, %v2894_v1  ;;  %v6623_v12 = vsel %vm1670_vm1, 1.0, %v13121_v25  ;;  %v188_v54 = vadd.f32 0.5, %v12940_v38  ;;  %v996_v61 = vmax.f32 %v13266_v11, %v9506_v37  ;;  %v13283_v27 = vld [vmem:[#allocation68_spill] sm:$0xff] }
 0x325   :  { %v2999_v21 = vmul.f32 %v6623_v12, %v2855_v19  ;;  %v1220_v30 = vmul.f32 0.5, %v1164_v14  ;;  %v6470_v63 = vsel %vm730_vm15, 1.0, %v13121_v25  ;;  %v6633_v41 = vsel %vm1680_vm9, 1.0, %v13121_v25 }
 0x326   :  { %13279 = vst [vmem:[#allocation58_spill] sm:$0xff] %v9566_v40  ;;  %v244_v1 = vmul.f32 0.017857144, %v188_v54  ;;  %v9579_v9 = vadd.f32 %v6470_v63, %v13278_v39  ;;  %vm732_vm3 = vcmp.ge.f32.partialorder %v13282_v34, %v13281_v32  ;;  %vm731_vm2 = vcmp.ge.f32.partialorder %v8845_v49, %v13283_v27  ;;  %v9595_v63 = vpop.f32.mrf.mxu3 }
 0x327   :  { %v1177_v11 = vmul.f32 %v1121_v56, %v9521_v10  ;;  %v3079_v14 = vsel %vm2536_vm12, %v2999_v21, 0.0  ;;  %v1276_v12 = vsub.f32 %v1052_v16, %v1220_v30  ;;  %v6472_v19 = vsel %vm732_vm3, 1.0, %v13121_v25 }
 0x328   :  { %13280 = vst [vmem:[#allocation65_spill] sm:$0xff] %v9579_v9  ;;  %v632_v51 = vmul.f32 7.0, %v9510_v42  ;;  %v521_v38 = vmul.f32 0.14285715, %v465_v35  ;;  %3080 = vadd.xlane.f32.xlu1 %v3079_v14  ;;  %v9589_v54 = vfloor.f32 %v244_v1  ;;  %v9593_v39 = vmin.f32 %v13277_v6, %v9579_v9 }
 0x329   :  { %vm733_vm4 = vcmp.ge.f32.partialorder %v13285_v24, %v8815_v22  ;;  %v9599_v56 = vadd.f32 -1.0, %v1399_v8  ;;  %v522_v16 = vmul.f32 0.14285715, %v466_v47  ;;  %v1332_v21 = vadd.f32 %v1276_v12, %v996_v61  ;;  %v9627_v12 = vpop.f32.mrf.mxu2 }
 0x32a   :  { %13284 = vst [vmem:[#allocation59_spill] sm:$0xff] %v9589_v54  ;;  %v9602_v30 = vadd.f32 %v6472_v19, %v13282_v34  ;;  %v9606_v35 = vsub.f32 %v9321_v44, %v9466_v4  ;;  %v9609_v1 = vmul.f32 %v6633_v41, %v9299_v2  ;;  %vm1535_vm5 = vcmp.eq.f32.partialorder %v7906_v23, %v9589_v54 }
 0x32b   :  { %v6457_v8 = vsel %vm717_vm10, 1.0, %v13121_v25  ;;  %v1065_v47 = vmul.f32 8.0, %v9521_v10  ;;  %v1233_v61 = vmul.f32 0.5, %v1177_v11  ;;  %v1388_v34 = vsub.f32 %v1332_v21, %v9525_v20  ;;  %v2858_v4 = vpop.f32.mrf.mxu1 }
 0x32c   :  { %13286 = vst [vmem:[#allocation66_spill] sm:$0xff] %v9602_v30  ;;  %v6600_v14 = vsel %vm1535_vm5, 1.0, %v13121_v25  ;;  %v9621_v44 = vsub.f32 %v9398_v29, %v632_v51  ;;  %v9623_v2 = vfloor.f32 %v521_v38  ;;  %v1122_v41 = vadd.f32 1.0, %v9593_v39 }
 0x32d   :  { %13287 = vst [vmem:[#allocation68_spill] sm:$0xff] %v9606_v35  ;;  %6824 = vmatmul.msk.f32.gmra.mxu3 %vm2225_vm0, %v6600_v14  ;;  %v9631_v19 = vmin.f32 %v13281_v32, %v9602_v30  ;;  %vm1682_vm6 = vcmp.eq.f32.partialorder %v7906_v23, %v9599_v56  ;;  %v9635_v20 = vfloor.f32 %v522_v16  ;;  %v6512_v29 = vadd.f32 -1.0, %v1388_v34 }
 0x32e   :  { %13288 = vst [vmem:[#allocation74_spill] sm:$0xff] %v9609_v1  ;;  %v9638_v38 = vadd.f32 %v6457_v8, %v8930_v45  ;;  %v9641_v11 = vadd.s32 368, %v7879_v60  ;;  %v355_v51 = vmul.f32 56.0, %v9529_v59  ;;  %v1009_v21 = vmax.f32 %v13261_v28, %v9496_v3 }
 0x32f   :  { %13289 = vst [vmem:[#allocation111_spill] sm:$0xff] %v9621_v44  ;;  %v1066_v14 = vmul.f32 8.0, %v9593_v39  ;;  %v1178_v15 = vmul.f32 %v1122_v41, %v9593_v39  ;;  %v1289_v37 = vsub.f32 %v1065_v47, %v1233_v61  ;;  %vm1671_vm7 = vcmp.eq.f32.partialorder %v7906_v23, %v6512_v29 }
 0x330   :  { %13290 = vst [vmem:[#allocation112_spill] sm:$0xff] %v9623_v2  ;;  %v1124_v16 = vadd.f32 1.0, %v9631_v19  ;;  %v9652_v45 = vmin.f32 %v8819_v33, %v9638_v38  ;;  %v6624_v8 = vsel %vm1671_vm7, 1.0, %v13121_v25  ;;  %v1010_v34 = vmax.f32 %v13277_v6, %v9579_v9  ;;  %v9670_v6 = vpop.f32.mrf.mxu3 }
 0x331   :  { %13291 = vst [vmem:[#allocation113_spill] sm:$0xff] %v9635_v20  ;;  %v1234_v59 = vmul.f32 0.5, %v1178_v15  ;;  %v12949_v28 = vcvt.s32.f32 %v9641_v11  ;;  %v3000_v3 = vmul.f32 %v6624_v8, %v2858_v4  ;;  %v1068_v41 = vmul.f32 8.0, %v9631_v19 }
 0x332   :  { %13292 = vst [vmem:[#allocation114_spill] sm:$0xff] %v9638_v38  ;;  %v1180_v47 = vmul.f32 %v1124_v16, %v9631_v19  ;;  %v1109_v61 = vadd.f32 1.0, %v9652_v45  ;;  %vm718_vm9 = vcmp.ge.f32.partialorder %v8949_v36, %v8878_v46  ;;  %v1053_v57 = vmul.f32 8.0, %v9652_v45 }
 0x333   :  { %v1290_v29 = vsub.f32 %v1066_v14, %v1234_v59  ;;  %v189_v62 = vadd.f32 0.5, %v12949_v28  ;;  %v6471_v15 = vsel %vm731_vm2, 1.0, %v13121_v25  ;;  %v3082_v16 = vsel %vm2536_vm12, %v3000_v3, 0.0  ;;  %v2861_v5 = vpop.f32.mrf.mxu1 }
 0x334   :  { %v1236_v4 = vmul.f32 0.5, %v1180_v47  ;;  %v1165_v8 = vmul.f32 %v1109_v61, %v9652_v45  ;;  %v9675_v9 = vadd.f32 %v6471_v15, %v8845_v49  ;;  %v13294_v59 = vcvt.s32.f32 %v9480_v48  ;;  %3083 = vadd.xlane.f32.xlu2 %v3082_v16  ;;  %v9697_v15 = vpop.f32.mrf.mxu2 }
 0x335   :  { %v1346_v28 = vadd.f32 %v1290_v29, %v1010_v34  ;;  %v245_v40 = vmul.f32 0.017857144, %v189_v62  ;;  %v6473_v47 = vsel %vm733_vm4, 1.0, %v13121_v25  ;;  %v356_v3 = vmul.f32 56.0, %v9589_v54 }
 0x336   :  { %13293 = vst [vmem:[#allocation115_spill] sm:$0xff] %v9675_v9  ;;  %v9679_v14 = vsub.f32 %v13294_v59, %v355_v51  ;;  %v997_v61 = vmax.f32 %v8819_v33, %v9638_v38  ;;  %v1221_v49 = vmul.f32 0.5, %v1165_v8  ;;  %v9690_v48 = vmin.f32 %v13283_v27, %v9675_v9 }
 0x337   :  { %v1402_v51 = vsub.f32 %v1346_v28, %v9593_v39  ;;  %v1012_v62 = vmax.f32 %v13281_v32, %v9602_v30  ;;  %v1292_v34 = vsub.f32 %v1068_v41, %v1236_v4  ;;  %v9695_v29 = vfloor.f32 %v245_v40  ;;  %v13297_v32 = vld [vmem:[#allocation72_spill] sm:$0xff] }
 0x338   :  { %v633_v16 = vmul.f32 7.0, %v9623_v2  ;;  %v1345_v59 = vadd.f32 %v1289_v37, %v1009_v21  ;;  %v1277_v54 = vsub.f32 %v1053_v57, %v1221_v49  ;;  %v9701_v33 = vadd.f32 %v6473_v47, %v13285_v24  ;;  %v13298_v41 = vld [vmem:[#allocation80_spill] sm:$0xff] }
 0x339   :  { %13295 = vst [vmem:[#allocation116_spill] sm:$0xff] %v9695_v29  ;;  %v6635_v39 = vsel %vm1682_vm6, 1.0, %v13121_v25  ;;  %v6526_v28 = vadd.f32 -1.0, %v1402_v51  ;;  %vm1536_vm10 = vcmp.eq.f32.partialorder %v7906_v23, %v9695_v29  ;;  %v1123_v40 = vadd.f32 1.0, %v9690_v48 }
 0x33a   :  { %13296 = vst [vmem:[#allocation117_spill] sm:$0xff] %v9701_v33  ;;  %vm734_vm11 = vcmp.ge.f32.partialorder %v13298_v41, %v13297_v32  ;;  %v467_v37 = vadd.f32 0.5, %v9679_v14  ;;  %v13299_v57 = vcvt.s32.f32 %v9532_v55  ;;  %v1333_v21 = vadd.f32 %v1277_v54, %v997_v61 }
 0x33b   :  { %v6601_v4 = vsel %vm1536_vm10, 1.0, %v13121_v25  ;;  %v634_v56 = vmul.f32 7.0, %v9635_v20  ;;  %vm1685_vm13 = vcmp.eq.f32.partialorder %v7906_v23, %v6526_v28  ;;  %v1348_v8 = vadd.f32 %v1292_v34, %v1012_v62 }
 0x33c   :  { %v9715_v24 = vsub.f32 %v13299_v57, %v356_v3  ;;  %v357_v47 = vmul.f32 56.0, %v9695_v29  ;;  %6825 = vmatmul.msk.f32.gmra.mxu3 %vm2225_vm0, %v6601_v4  ;;  %v1401_v49 = vsub.f32 %v1345_v59, %v9521_v10  ;;  %v6638_v51 = vsel %vm1685_vm13, 1.0, %v13121_v25  ;;  %v9739_v10 = vpop.f32.mrf.mxu1  ;;  %v9741_v59 = vpop.f32.mrf.mxu3 }
 0x33d   :  { %v1389_v55 = vsub.f32 %v1333_v21, %v9652_v45  ;;  %v9727_v54 = vmin.f32 %v8815_v22, %v9701_v33  ;;  %v9730_v3 = vsub.f32 %v9514_v43, %v633_v16  ;;  %v9733_v61 = vmul.f32 %v6635_v39, %v9420_v50  ;;  %v13303_v50 = vld [vmem:[#allocation78_spill] sm:$0xff] }
 0x33e   :  { %v9736_v62 = vmul.f32 %v6638_v51, %v9627_v12  ;;  %v1179_v34 = vmul.f32 %v1123_v40, %v9690_v48  ;;  %v523_v45 = vmul.f32 0.14285715, %v467_v37  ;;  %v468_v28 = vadd.f32 0.5, %v9715_v24  ;;  %v13304_v16 = vld [vmem:[#allocation82_spill] sm:$0xff] }
 0x33f   :  { %13300 = vst [vmem:[#allocation72_spill] sm:$0xff] %v9730_v3  ;;  %v6513_v57 = vadd.f32 -1.0, %v1389_v55  ;;  %v6458_v43 = vsel %vm718_vm9, 1.0, %v13121_v25  ;;  %vm719_vm14 = vcmp.ge.f32.partialorder %v13304_v16, %v13303_v50  ;;  %v9751_v12 = vsub.f32 %v9541_v53, %v634_v56  ;;  %v9769_v53 = vld [vmem:[%s12784_s4] ss:$0 sm:$0xff] }
 0x340   :  { %13301 = vst [vmem:[#allocation80_spill] sm:$0xff] %v9733_v61  ;;  %v1404_v39 = vsub.f32 %v1348_v8, %v9631_v19  ;;  %v13306_v40 = vcvt.s32.f32 %v9641_v11  ;;  %v9759_v37 = vadd.f32 %v6458_v43, %v8949_v36  ;;  %v6525_v4 = vadd.f32 -1.0, %v1401_v49  ;;  %v3640_v8 = vpop.f32.mrf.mxu2 }
 0x341   :  { %13302 = vst [vmem:[#allocation118_spill] sm:$0xff] %v9736_v62  ;;  %vm1672_vm15 = vcmp.eq.f32.partialorder %v7906_v23, %v6513_v57  ;;  %v1125_v51 = vadd.f32 1.0, %v9727_v54  ;;  %v9764_v55 = vadd.s32 376, %v7879_v60  ;;  %v1067_v11 = vmul.f32 8.0, %v9690_v48 }
 0x342   :  { %13305 = vst [vmem:[#allocation78_spill] sm:$0xff] %v9751_v12  ;;  %v9756_v21 = vsub.f32 %v13306_v40, %v357_v47  ;;  %v6625_v19 = vsel %vm1672_vm15, 1.0, %v13121_v25  ;;  %v1235_v56 = vmul.f32 0.5, %v1179_v34  ;;  %v942_v36 = vmin.f32 %v8878_v46, %v9759_v37 }
 0x343   :  { %13307 = vst [vmem:[#allocation82_spill] sm:$0xff] %v9759_v37  ;;  %v9775_v47 = vfloor.f32 %v523_v45  ;;  %v524_v49 = vmul.f32 0.14285715, %v468_v28  ;;  %v3001_v57 = vmul.f32 %v6625_v19, %v2861_v5  ;;  %v134_v43 = vcvt.s32.f32 %v9764_v55  ;;  %v13310_v19 = vld [vmem:[#allocation81_spill] sm:$0xff] }
 0x344   :  { %v6528_v40 = vadd.f32 -1.0, %v1404_v39  ;;  %v469_v29 = vadd.f32 0.5, %v9756_v21  ;;  %v1011_v30 = vmax.f32 %v13283_v27, %v9675_v9  ;;  %v1110_v38 = vadd.f32 1.0, %v942_v36  ;;  %v9790_v55 = vpop.f32.mrf.mxu1  ;;  %v13309_v27 = vld [vmem:[#allocation77_spill] sm:$0xff]  ;;  %v9804_v9 = vpop.f32.mrf.mxu3 }
 0x345   :  { %13308 = vst [vmem:[#allocation119_spill] sm:$0xff] %v9775_v47  ;;  %v1181_v62 = vmul.f32 %v1125_v51, %v9727_v54  ;;  %v3085_v34 = vsel %vm2536_vm12, %v3001_v57, 0.0  ;;  %v190_v12 = vadd.f32 0.5, %v134_v43  ;;  %v9784_v20 = vadd.f32 %v9769_v53, %v3640_v8 }
 0x346   :  { %v1291_v45 = vsub.f32 %v1067_v11, %v1235_v56  ;;  %3086 = vadd.xlane.f32.xlu0 %v3085_v34  ;;  %v1054_v5 = vmul.f32 8.0, %v942_v36  ;;  %v1166_v28 = vmul.f32 %v1110_v38, %v942_v36  ;;  %v6474_v39 = vsel %vm734_vm11, 1.0, %v13121_v25 }
 0x347   :  { %vm735_vm1 = vcmp.ge.f32.partialorder %v13310_v19, %v13309_v27  ;;  %v9795_v51 = vmul.f32 7.0, %v9775_v47  ;;  %vm1684_vm3 = vcmp.eq.f32.partialorder %v7906_v23, %v6525_v4  ;;  %v246_v8 = vmul.f32 0.017857144, %v190_v12 }
 0x348   :  { %v3836_v11 = vand.u32 2147483647, %v9784_v20  ;;  %v9799_v56 = vfloor.f32 %v524_v49  ;;  %v1069_v38 = vmul.f32 8.0, %v9727_v54  ;;  %v998_v57 = vmax.f32 %v8878_v46, %v9759_v37  ;;  %v13314_v37 = vld [vmem:[#allocation92_spill] sm:$0xff] }
 0x349   :  { %v1222_v34 = vmul.f32 0.5, %v1166_v28  ;;  %v1237_v3 = vmul.f32 0.5, %v1181_v62  ;;  %v9806_v2 = vfloor.f32 %v246_v8  ;;  %v9809_v44 = vadd.f32 %v6474_v39, %v13298_v41  ;;  %v3642_v28 = vpop.f32.mrf.mxu2 }
 0x34a   :  { %13311 = vst [vmem:[#allocation77_spill] sm:$0xff] %v9799_v56  ;;  %v3892_v47 = vsub.f32 0.0, %v3836_v11  ;;  %vm1687_vm2 = vcmp.eq.f32.partialorder %v7906_v23, %v6528_v40  ;;  %v525_v12 = vmul.f32 0.14285715, %v469_v29  ;;  %v1347_v49 = vadd.f32 %v1291_v45, %v1011_v30 }
 0x34b   :  { %13312 = vst [vmem:[#allocation81_spill] sm:$0xff] %v9806_v2  ;;  %v1278_v42 = vsub.f32 %v1054_v5, %v1222_v34  ;;  %vm1537_vm4 = vcmp.eq.f32.partialorder %v7906_v23, %v9806_v2  ;;  %v9816_v46 = vmin.f32 %v13297_v32, %v9809_v44  ;;  %v6459_v62 = vsel %vm719_vm14, 1.0, %v13121_v25 }
 0x34c   :  { %13313 = vst [vmem:[#allocation120_spill] sm:$0xff] %v9809_v44  ;;  %v9823_v41 = vadd.s32 384, %v7879_v60  ;;  %v6637_v30 = vsel %vm1684_vm3, 1.0, %v13121_v25  ;;  %v6602_v45 = vsel %vm1537_vm4, 1.0, %v13121_v25  ;;  %v3948_v5 = vmul.f32 1.442695, %v3892_v47 }
 0x34d   :  { %v1334_v29 = vadd.f32 %v1278_v42, %v998_v57  ;;  %v636_v39 = vmul.f32 7.0, %v9799_v56  ;;  %v1013_v8 = vmax.f32 %v8815_v22, %v9701_v33  ;;  %v1293_v11 = vsub.f32 %v1069_v38, %v1237_v3  ;;  %6826 = vmatmul.msk.f32.gmra.mxu3 %vm2225_vm0, %v6602_v45  ;;  %v9850_v45 = vpop.f32.mrf.mxu1 }
 0x34e   :  { %v358_v34 = vmul.f32 56.0, %v9806_v2  ;;  %vm720_vm5 = vcmp.ge.f32.partialorder %v13314_v37, %v9023_v18  ;;  %v6640_v42 = vsel %vm1687_vm2, 1.0, %v13121_v25  ;;  %v1126_v47 = vadd.f32 1.0, %v9816_v46 }
 0x34f   :  { %v1390_v4 = vsub.f32 %v1334_v29, %v942_v36  ;;  %v9841_v57 = vadd.f32 %v6459_v62, %v13304_v16  ;;  %v9843_v56 = vfloor.f32 %v525_v12  ;;  %v1403_v22 = vsub.f32 %v1347_v49, %v9690_v48 }
 0x350   :  { %v12971_v3 = vcvt.s32.f32 %v9823_v41  ;;  %v9848_v38 = vadd.f32 %v9769_v53, %v3642_v28  ;;  %7315 = vpow2.f32 %v3948_v5  ;;  %v1182_v36 = vmul.f32 %v1126_v47, %v9816_v46  ;;  %v9869_v28 = vpop.f32.mrf.mxu3 }
 0x351   :  { %13315 = vst [vmem:[#allocation92_spill] sm:$0xff] %v9841_v57  ;;  %v6514_v2 = vadd.f32 -1.0, %v1390_v4  ;;  %v9855_v40 = vmin.f32 %v13303_v50, %v9841_v57  ;;  %v1349_v16 = vadd.f32 %v1293_v11, %v1013_v8  ;;  %v9857_v12 = vsub.f32 %v134_v43, %v358_v34 }
 0x352   :  { %13316 = vst [vmem:[#allocation121_spill] sm:$0xff] %v9843_v56  ;;  %v191_v48 = vadd.f32 0.5, %v12971_v3  ;;  %v3837_v49 = vand.u32 2147483647, %v9848_v38  ;;  %v1070_v62 = vmul.f32 8.0, %v9816_v46  ;;  %v6475_v5 = vsel %vm735_vm1, 1.0, %v13121_v25 }
 0x353   :  { %vm1673_vm6 = vcmp.eq.f32.partialorder %v7906_v23, %v6514_v2  ;;  %v1111_v29 = vadd.f32 1.0, %v9855_v40  ;;  %v1238_v8 = vmul.f32 0.5, %v1182_v36  ;;  %v637_v4 = vmul.f32 7.0, %v9843_v56 }
 0x354   :  { %v6626_v43 = vsel %vm1673_vm6, 1.0, %v13121_v25  ;;  %v247_v11 = vmul.f32 0.017857144, %v191_v48  ;;  %v3893_v34 = vsub.f32 0.0, %v3837_v49  ;;  %v1055_v47 = vmul.f32 8.0, %v9855_v40 }
 0x355   :  { %v3002_v2 = vmul.f32 %v6626_v43, %v9739_v10  ;;  %v1167_v3 = vmul.f32 %v1111_v29, %v9855_v40  ;;  %v9876_v33 = vadd.f32 -1.0, %v1403_v22  ;;  %v9881_v58 = vadd.f32 %v6475_v5, %v13310_v19  ;;  %v13319_v19 = vld [vmem:[#allocation85_spill] sm:$0xff] }
 0x356   :  { %v9878_v61 = vfloor.f32 %v247_v11  ;;  %v3950_v35 = vmul.f32 1.442695, %v3893_v34  ;;  %v7316_v1 = vpop.eup %7315  ;;  %v1405_v36 = vsub.f32 %v1349_v16, %v9727_v54  ;;  %v999_v10 = vmax.f32 %v13303_v50, %v9841_v57  ;;  %v13320_v5 = vld [vmem:[#allocation89_spill] sm:$0xff]  ;;  %v7254_v11 = vld [vmem:[%s12783_s3 + $0x28] sm:$0xff] }
 0x357   :  { %13318 = vst [vmem:[#allocation123_spill] sm:$0xff] %v9881_v58  ;;  %v3088_v48 = vsel %vm2536_vm12, %v3002_v2, 0.0  ;;  %v1223_v49 = vmul.f32 0.5, %v1167_v3  ;;  %v470_v43 = vadd.f32 0.5, %v9857_v12  ;;  %v1014_v22 = vmax.f32 %v13297_v32, %v9809_v44  ;;  %4482 = vmatpush.bf16.msrb.mxu0 %v7254_v11  ;;  %v13325_v11 = vld [vmem:[#allocation88_spill] sm:$0xff] }
 0x358   :  { %13317 = vst [vmem:[#allocation122_spill] sm:$0xff] %v9878_v61  ;;  %v1294_v29 = vsub.f32 %v1070_v62, %v1238_v8  ;;  %3089 = vadd.xlane.f32.xlu2 %v3088_v48  ;;  %vm1538_vm7 = vcmp.eq.f32.partialorder %v7906_v23, %v9878_v61  ;;  %vm736_vm9 = vcmp.ge.f32.partialorder %v13320_v5, %v13319_v19  ;;  %7317 = vpow2.f32 %v3950_v35  ;;  %v9911_v35 = vpop.f32.mrf.mxu1 }
 0x359   :  { %v1279_v54 = vsub.f32 %v1055_v47, %v1223_v49  ;;  %v6603_v16 = vsel %vm1538_vm7, 1.0, %v13121_v25  ;;  %v9897_v50 = vmin.f32 %v13309_v27, %v9881_v58  ;;  %v9901_v3 = vsub.f32 %v9679_v14, %v9795_v51 }
 0x35a   :  { %v9904_v32 = vmul.f32 %v6637_v30, %v9556_v26  ;;  %v4060_v62 = vadd.f32 1.0, %v7316_v1  ;;  %6827 = vmatmul.msk.f32.gmra.mxu3 %vm2225_vm0, %v6603_v16  ;;  %v6460_v8 = vsel %vm720_vm5, 1.0, %v13121_v25  ;;  %v9917_v14 = vsub.f32 %v9715_v24, %v636_v39  ;;  %v9935_v39 = vpop.f32.mrf.mxu3  ;;  %v7253_v16 = vld [vmem:[%s12783_s3 + $0x20] sm:$0xff] }
 0x35b   :  { %v9920_v26 = vmul.f32 %v6640_v42, %v9595_v63  ;;  %v1335_v1 = vadd.f32 %v1279_v54, %v999_v10  ;;  %v1127_v51 = vadd.f32 1.0, %v9897_v50  ;;  %v9923_v30 = vadd.f32 -1.0, %v1405_v36  ;;  %4483 = vmatpush.bf16.msrb.mxu0 %v7253_v16 }
 0x35c   :  { %v526_v34 = vmul.f32 0.14285715, %v470_v43  ;;  %v1350_v2 = vadd.f32 %v1294_v29, %v1014_v22  ;;  %v9926_v47 = vadd.f32 %v6460_v8, %v13314_v37  ;;  %v9929_v48 = vsub.f32 %v9756_v21, %v637_v4  ;;  %v3645_v43 = vpop.f32.mrf.mxu2 }
 0x35d   :  { %13321 = vst [vmem:[#allocation85_spill] sm:$0xff] %v9920_v26  ;;  %vm1686_vm10 = vcmp.eq.f32.partialorder %v7906_v23, %v9876_v33  ;;  %v1391_v63 = vsub.f32 %v1335_v1, %v9855_v40  ;;  %v1183_v24 = vmul.f32 %v1127_v51, %v9897_v50  ;;  %7319 = vlog2.f32 %v4060_v62  ;;  %v13326_v1 = vld [vmem:[#allocation97_spill] sm:$0xff] }
 0x35e   :  { %13322 = vst [vmem:[#allocation89_spill] sm:$0xff] %v9926_v47  ;;  %v1071_v42 = vmul.f32 8.0, %v9897_v50  ;;  %v9940_v37 = vmin.f32 %v9023_v18, %v9926_v47  ;;  %v9943_v36 = vadd.s32 392, %v7879_v60  ;;  %v7318_v21 = vpop.eup %7317  ;;  %v3780_v4 = vmax.f32 %v9784_v20, 0.0 }
 0x35f   :  { %13323 = vst [vmem:[#allocation124_spill] sm:$0xff] %v9929_v48  ;;  %v6515_v10 = vadd.f32 -1.0, %v1391_v63  ;;  %v359_v40 = vmul.f32 56.0, %v9878_v61  ;;  %v1239_v49 = vmul.f32 0.5, %v1183_v24  ;;  %vm1688_vm11 = vcmp.eq.f32.partialorder %v7906_v23, %v9923_v30 }
 0x360   :  { %v9949_v22 = vfloor.f32 %v526_v34  ;;  %v1406_v29 = vsub.f32 %v1350_v2, %v9816_v46  ;;  %v9953_v54 = vadd.f32 %v9769_v53, %v3645_v43  ;;  %v1015_v20 = vmax.f32 %v13309_v27, %v9881_v58 }
 0x361   :  { %vm1674_vm13 = vcmp.eq.f32.partialorder %v7906_v23, %v6515_v10  ;;  %v1112_v62 = vadd.f32 1.0, %v9940_v37  ;;  %v9963_v8 = vadd.s32 400, %v7879_v60  ;;  %vm737_vm14 = vcmp.ge.f32.partialorder %v13326_v1, %v13325_v11 }
 0x362   :  { %13324 = vst [vmem:[#allocation125_spill] sm:$0xff] %v9949_v22  ;;  %v6627_v46 = vsel %vm1674_vm13, 1.0, %v13121_v25  ;;  %v4061_v51 = vadd.f32 1.0, %v7318_v21  ;;  %v1295_v34 = vsub.f32 %v1071_v42, %v1239_v49  ;;  %v12978_v2 = vcvt.s32.f32 %v9943_v36 }
 0x363   :  { %v3003_v63 = vmul.f32 %v6627_v46, %v9790_v55  ;;  %v13327_v24 = vcvt.s32.f32 %v9823_v41  ;;  %v1056_v10 = vmul.f32 8.0, %v9940_v37  ;;  %v1168_v43 = vmul.f32 %v1112_v62, %v9940_v37  ;;  %v7320_v61 = vpop.eup %7319  ;;  %v9985_v41 = vpop.f32.mrf.mxu1 }
 0x364   :  { %v9976_v58 = vadd.f32 -1.0, %v1406_v29  ;;  %v192_v21 = vadd.f32 0.5, %v12978_v2  ;;  %v3838_v42 = vand.u32 2147483647, %v9953_v54  ;;  %v6476_v55 = vsel %vm736_vm9, 1.0, %v13121_v25 }
 0x365   :  { %v9972_v27 = vsub.f32 %v13327_v24, %v359_v40  ;;  %v7252_v40 = vld [vmem:[%s12783_s3 + $0x18] sm:$0xff]  ;;  %v3091_v49 = vsel %vm2536_vm12, %v3003_v63, 0.0  ;;  %v1000_v29 = vmax.f32 %v9023_v18, %v9926_v47  ;;  %v1224_v16 = vmul.f32 0.5, %v1168_v43  ;;  %v10002_v18 = vpop.f32.mrf.mxu3 }
 0x366   :  { %v9994_v62 = vadd.f32 %v6476_v55, %v13320_v5  ;;  %7321 = vlog2.f32 %v4061_v51  ;;  %v1351_v46 = vadd.f32 %v1295_v34, %v1015_v20  ;;  %3092 = vadd.xlane.f32.xlu0 %v3091_v49  ;;  %v248_v24 = vmul.f32 0.017857144, %v192_v21  ;;  %4484 = vmatpush.bf16.msrb.mxu0 %v7252_v40  ;;  %v3647_v55 = vpop.f32.mrf.mxu2 }
 0x367   :  { %v137_v2 = vcvt.s32.f32 %v9963_v8  ;;  %v4117_v44 = vmul.f32 0.6931472, %v7320_v61  ;;  %v471_v57 = vadd.f32 0.5, %v9972_v27  ;;  %v1280_v26 = vsub.f32 %v1056_v10, %v1224_v16  ;;  %v7251_v61 = vld [vmem:[%s12783_s3 + $0x10] sm:$0xff]  ;;  %v13331_v16 = vld [vmem:[#allocation56_spill] sm:$0xff] }
 0x368   :  { %13328 = vst [vmem:[#allocation88_spill] sm:$0xff] %v9994_v62  ;;  %v10000_v63 = vmin.f32 %v13319_v19, %v9994_v62  ;;  %v6639_v5 = vsel %vm1686_vm10, 1.0, %v13121_v25  ;;  %v10008_v20 = vfloor.f32 %v248_v24  ;;  %v3894_v51 = vsub.f32 0.0, %v3838_v42 }
 0x369   :  { %v193_v8 = vadd.f32 0.5, %v137_v2  ;;  %v6641_v34 = vsel %vm1688_vm11, 1.0, %v13121_v25  ;;  %v3781_v10 = vmax.f32 %v9848_v38, 0.0  ;;  %v1336_v43 = vadd.f32 %v1280_v26, %v1000_v29  ;;  %v13330_v29 = vld [vmem:[#allocation93_spill] sm:$0xff] }
 0x36a   :  { %13329 = vst [vmem:[#allocation97_spill] sm:$0xff] %v10008_v20  ;;  %v1128_v21 = vadd.f32 1.0, %v10000_v63  ;;  %v638_v33 = vmul.f32 7.0, %v9949_v22  ;;  %vm1689_vm15 = vcmp.eq.f32.partialorder %v7906_v23, %v9976_v58  ;;  %v1407_v42 = vsub.f32 %v1351_v46, %v9897_v50  ;;  %4485 = vmatpush.bf16.msrb.mxu0 %v7251_v61  ;;  %v13332_v61 = vld [vmem:[#allocation107_spill] sm:$0xff]  ;;  %v13340_v58 = vld [vmem:[#allocation94_spill] sm:$0xff] }
 0x36b   :  { %vm1539_vm1 = vcmp.eq.f32.partialorder %v7906_v23, %v10008_v20  ;;  %v4228_v40 = vadd.f32 %v4117_v44, %v3780_v4  ;;  %v527_v30 = vmul.f32 0.14285715, %v471_v57  ;;  %v1392_v49 = vsub.f32 %v1336_v43, %v9940_v37 }
 0x36c   :  { %v6604_v38 = vsel %vm1539_vm1, 1.0, %v13121_v25  ;;  %v7322_v26 = vpop.eup %7321  ;;  %vm738_vm3 = vcmp.ge.f32.partialorder %v13331_v16, %v13330_v29  ;;  %v360_v24 = vmul.f32 56.0, %v10008_v20  ;;  %v3952_v50 = vmul.f32 1.442695, %v3894_v51 }
 0x36d   :  { %6828 = vmatmul.msk.f32.gmra.mxu3 %vm2225_vm0, %v6604_v38  ;;  %v1184_v46 = vmul.f32 %v1128_v21, %v10000_v63  ;;  %v249_v47 = vmul.f32 0.017857144, %v193_v8  ;;  %v6516_v22 = vadd.f32 -1.0, %v1392_v49  ;;  %v3097_v44 = vsel %vm2536_vm12, %v13332_v61, 0.0  ;;  %v10044_v8 = vpop.f32.mrf.mxu1 }
 0x36e   :  { %v10035_v57 = vadd.f32 %v9769_v53, %v3647_v55  ;;  %v6477_v37 = vsel %vm737_vm14, 1.0, %v13121_v25  ;;  %v6531_v4 = vadd.f32 -1.0, %v1407_v42  ;;  %v1072_v43 = vmul.f32 8.0, %v10000_v63  ;;  %3098 = vadd.xlane.f32.xlu0 %v3097_v44 }
 0x36f   :  { %v1240_v38 = vmul.f32 0.5, %v1184_v46  ;;  %v10042_v51 = vfloor.f32 %v249_v47  ;;  %v4119_v21 = vmul.f32 0.6931472, %v7322_v26  ;;  %vm1675_vm2 = vcmp.eq.f32.partialorder %v7906_v23, %v6516_v22 }
 0x370   :  { %v3839_v55 = vand.u32 2147483647, %v10035_v57  ;;  %v10049_v49 = vadd.f32 %v6477_v37, %v13326_v1  ;;  %v6628_v61 = vsel %vm1675_vm2, 1.0, %v13121_v25  ;;  %v13335_v42 = vcvt.s32.f32 %v9943_v36  ;;  %v10064_v1 = vpop.f32.mrf.mxu3 }
 0x371   :  { %13333 = vst [vmem:[#allocation93_spill] sm:$0xff] %v10042_v51  ;;  %7323 = vpow2.f32 %v3952_v50  ;;  %v361_v47 = vmul.f32 56.0, %v10042_v51  ;;  %v3004_v46 = vmul.f32 %v6628_v61, %v9850_v45  ;;  %vm1540_vm4 = vcmp.eq.f32.partialorder %v7906_v23, %v10042_v51 }
 0x372   :  { %13334 = vst [vmem:[#allocation56_spill] sm:$0xff] %v10049_v49  ;;  %v10054_v20 = vsub.f32 %v13335_v42, %v360_v24  ;;  %v3895_v22 = vsub.f32 0.0, %v3839_v55  ;;  %v10062_v26 = vmin.f32 %v13325_v11, %v10049_v49  ;;  %v10067_v44 = vmul.f32 %v6639_v5, %v9697_v15 }
 0x373   :  { %v10069_v36 = vfloor.f32 %v527_v30  ;;  %v1016_v24 = vmax.f32 %v13319_v19, %v9994_v62  ;;  %v1296_v50 = vsub.f32 %v1072_v43, %v1240_v38  ;;  %v3094_v45 = vsel %vm2536_vm12, %v3004_v46, 0.0  ;;  %v13341_v43 = vld [vmem:[#allocation106_spill] sm:$0xff] }
 0x374   :  { %13336 = vst [vmem:[#allocation107_spill] sm:$0xff] %v10067_v44  ;;  %v10074_v37 = vsub.f32 %v137_v2, %v361_v47  ;;  %v6605_v55 = vsel %vm1540_vm4, 1.0, %v13121_v25  ;;  %v3954_v61 = vmul.f32 1.442695, %v3895_v22  ;;  %v10078_v42 = vmul.f32 %v6641_v34, %v9670_v6  ;;  %3095 = vadd.xlane.f32.xlu2 %v3094_v45  ;;  %v3650_v34 = vpop.f32.mrf.mxu2 }
 0x375   :  { %13337 = vst [vmem:[#allocation126_spill] sm:$0xff] %v10069_v36  ;;  %v10081_v51 = vsub.f32 %v9857_v12, %v638_v33  ;;  %v10083_v15 = vadd.f32 -0.6931472, %v4228_v40  ;;  %v6642_v19 = vsel %vm1689_vm15, 1.0, %v13121_v25  ;;  %6829 = vmatmul.msk.f32.gmra.mxu3 %vm2225_vm0, %v6605_v55  ;;  %v4229_v2 = vadd.f32 %v4119_v21, %v3781_v10 }
 0x376   :  { %13338 = vst [vmem:[#allocation127_spill] sm:$0xff] %v10078_v42  ;;  %vm1690_vm5 = vcmp.eq.f32.partialorder %v7906_v23, %v6531_v4  ;;  %v472_v5 = vadd.f32 0.5, %v10054_v20  ;;  %v1129_v6 = vadd.f32 1.0, %v10062_v26  ;;  %v639_v33 = vmul.f32 7.0, %v10069_v36 }
 0x377   :  { %13339 = vst [vmem:[#allocation128_spill] sm:$0xff] %v10081_v51  ;;  %v7324_v12 = vpop.eup %7323  ;;  %v1352_v40 = vadd.f32 %v1296_v50, %v1016_v24  ;;  %7325 = vpow2.f32 %v3954_v61  ;;  %v10095_v30 = vadd.s32 408, %v7879_v60  ;;  %vm739_vm6 = vcmp.ge.f32.partialorder %v13341_v43, %v13340_v58  ;;  %v10114_v50 = vpop.f32.mrf.mxu1 }
 0x378   :  { %v473_v10 = vadd.f32 0.5, %v10074_v37  ;;  %v1185_v4 = vmul.f32 %v1129_v6, %v10062_v26  ;;  %v10102_v38 = vadd.f32 %v9769_v53, %v3650_v34  ;;  %v6478_v21 = vsel %vm738_vm3, 1.0, %v13121_v25  ;;  %v13342_v6 = vld [vmem:[#allocation95_spill] sm:$0xff] }
 0x379   :  { %v6643_v47 = vsel %vm1690_vm5, 1.0, %v13121_v25  ;;  %v1073_v46 = vmul.f32 8.0, %v10062_v26  ;;  %v12991_v22 = vcvt.s32.f32 %v10095_v30  ;;  %v10112_v24 = vadd.s32 416, %v7879_v60 }
 0x37a   :  { %v6872_v45 = vadd.f32 -0.6931472, %v4229_v2  ;;  %v528_v55 = vmul.f32 0.14285715, %v472_v5  ;;  %v1241_v61 = vmul.f32 0.5, %v1185_v4  ;;  %v3100_v34 = vsel %vm2536_vm12, %v13342_v6, 0.0  ;;  %v10130_v4 = vpop.f32.mrf.mxu3 }
 0x37b   :  { %v4062_v62 = vadd.f32 1.0, %v7324_v12  ;;  %v194_v42 = vadd.f32 0.5, %v12991_v22  ;;  %v3840_v36 = vand.u32 2147483647, %v10102_v38  ;;  %v10122_v44 = vadd.f32 %v6478_v21, %v13331_v16 }
 0x37c   :  { %v10125_v51 = vmul.f32 %v6642_v19, %v9741_v59  ;;  %v1408_v48 = vsub.f32 %v1352_v40, %v10000_v63  ;;  %v529_v2 = vmul.f32 0.14285715, %v473_v10  ;;  %v1017_v5 = vmax.f32 %v13325_v11, %v10049_v49  ;;  %3101 = vadd.xlane.f32.xlu2 %v3100_v34 }
 0x37d   :  { %13343 = vst [vmem:[#allocation94_spill] sm:$0xff] %v10122_v44  ;;  %v7326_v12 = vpop.eup %7325  ;;  %v1297_v6 = vsub.f32 %v1073_v46, %v1241_v61  ;;  %v250_v22 = vmul.f32 0.017857144, %v194_v42  ;;  %v10134_v56 = vmin.f32 %v13330_v29, %v10122_v44  ;;  %v12994_v16 = vcvt.s32.f32 %v10112_v24 }
 0x37e   :  { %13344 = vst [vmem:[#allocation106_spill] sm:$0xff] %v10125_v51  ;;  %v10138_v59 = vsub.f32 %v9972_v27, %v639_v33  ;;  %v4340_v63 = vpack.c.bf16 %v6872_v45, %v10083_v15  ;;  %v10142_v19 = vmul.f32 %v6643_v47, %v9804_v9  ;;  %v10145_v40 = vfloor.f32 %v528_v55  ;;  %v3652_v33 = vpop.f32.mrf.mxu2  ;;  %v13349_v45 = vld [vmem:[#allocation103_spill] sm:$0xff] }
 0x37f   :  { %7327 = vlog2.f32 %v4062_v62  ;;  %v10147_v42 = vfloor.f32 %v250_v22  ;;  %v3896_v10 = vsub.f32 0.0, %v3840_v36  ;;  %v6532_v21 = vadd.f32 -1.0, %v1408_v48  ;;  %v13348_v48 = vld [vmem:[#allocation102_spill] sm:$0xff] }
 0x380   :  { %13345 = vst [vmem:[#allocation95_spill] sm:$0xff] %v10142_v19  ;;  %v10149_v46 = vfloor.f32 %v529_v2  ;;  %v4063_v61 = vadd.f32 1.0, %v7326_v12  ;;  %v1130_v27 = vadd.f32 1.0, %v10134_v56  ;;  %v1353_v34 = vadd.f32 %v1297_v6, %v1017_v5  ;;  %v10173_v6 = vpop.f32.mrf.mxu1 }
 0x381   :  { %13346 = vst [vmem:[#allocation129_spill] sm:$0xff] %v10147_v42  ;;  %vm1541_vm7 = vcmp.eq.f32.partialorder %v7906_v23, %v10147_v42  ;;  %v1074_v9 = vmul.f32 8.0, %v10134_v56  ;;  %v195_v15 = vadd.f32 0.5, %v12994_v16  ;;  %v3106_v47 = vsel %vm2536_vm12, %v13348_v48, 0.0 }
 0x382   :  { %13347 = vst [vmem:[#allocation130_spill] sm:$0xff] %v10149_v46  ;;  %v6606_v62 = vsel %vm1541_vm7, 1.0, %v13121_v25  ;;  %v1186_v36 = vmul.f32 %v1130_v27, %v10134_v56  ;;  %v3103_v22 = vsel %vm2536_vm12, %v9454_v31, 0.0  ;;  %vm740_vm9 = vcmp.ge.f32.partialorder %v9436_v17, %v13349_v45  ;;  %v10188_v16 = vpop.f32.mrf.mxu3 }
 0x383   :  { %6830 = vmatmul.msk.f32.gmra.mxu3 %vm2225_vm0, %v6606_v62  ;;  %v3956_v55 = vmul.f32 1.442695, %v3896_v10  ;;  %v251_v2 = vmul.f32 0.017857144, %v195_v15  ;;  %3104 = vadd.xlane.f32.xlu0 %v3103_v22  ;;  %v10167_v5 = vadd.f32 %v9769_v53, %v3652_v33  ;;  %v6479_v12 = vsel %vm739_vm6, 1.0, %v13121_v25 }
 0x384   :  { %v640_v31 = vmul.f32 7.0, %v10145_v40  ;;  %v362_v27 = vmul.f32 56.0, %v10147_v42  ;;  %v1242_v48 = vmul.f32 0.5, %v1186_v36  ;;  %vm4393_vm10 = vcmask 523264   ;;  %3107 = vadd.xlane.f32.xlu2 %v3106_v47 }
 0x385   :  { %v7328_v62 = vpop.eup %7327  ;;  %vm1691_vm11 = vcmp.eq.f32.partialorder %v7906_v23, %v6532_v21  ;;  %v1018_v10 = vmax.f32 %v13330_v29, %v10122_v44  ;;  %v10180_v33 = vfloor.f32 %v251_v2  ;;  %v10183_v15 = vadd.f32 %v6479_v12, %v13341_v43  ;;  %6943 = vmatmul.msk.bf16.vlgmr.msrb.gmra.mxu0 %vm4393_vm10, %v4340_v63 }
 0x386   :  { %7329 = vlog2.f32 %v4063_v61  ;;  %v1298_v11 = vsub.f32 %v1074_v9, %v1242_v48  ;;  %v3841_v36 = vand.u32 2147483647, %v10167_v5  ;;  %v641_v21 = vmul.f32 7.0, %v10149_v46 }
 0x387   :  { %13350 = vst [vmem:[#allocation102_spill] sm:$0xff] %v10180_v33  ;;  %v1409_v29 = vsub.f32 %v1353_v34, %v10062_v26  ;;  %7331 = vpow2.f32 %v3956_v55  ;;  %vm1542_vm13 = vcmp.eq.f32.partialorder %v7906_v23, %v10180_v33  ;;  %v6644_v43 = vsel %vm1691_vm11, 1.0, %v13121_v25 }
 0x388   :  { %13351 = vst [vmem:[#allocation103_spill] sm:$0xff] %v10183_v15  ;;  %v13352_v63 = vcvt.s32.f32 %v10095_v30  ;;  %v6607_v61 = vsel %vm1542_vm13, 1.0, %v13121_v25  ;;  %v3897_v9 = vsub.f32 0.0, %v3841_v36  ;;  %v10201_v2 = vsub.f32 %v10054_v20, %v640_v31 }
 0x389   :  { %v1354_v12 = vadd.f32 %v1298_v11, %v1018_v10  ;;  %v363_v48 = vmul.f32 56.0, %v10180_v33  ;;  %v10206_v26 = vmin.f32 %v13340_v58, %v10183_v15  ;;  %v4121_v34 = vmul.f32 0.6931472, %v7328_v62  ;;  %v13355_v62 = vld [vmem:[#allocation51_spill] sm:$0xff]  ;;  %v10234_v33 = vpop.f32.mrf.mxu1 }
 0x38a   :  { %v10197_v47 = vsub.f32 %v13352_v63, %v362_v27  ;;  %v3958_v22 = vmul.f32 1.442695, %v3897_v9  ;;  %v10210_v30 = vadd.s32 424, %v7879_v60  ;;  %v3655_v27 = vpop.f32.mrf.mxu2  ;;  %v10213_v36 = vmul.f32 %v6644_v43, %v9869_v28 }
 0x38b   :  { %v10216_v20 = vsub.f32 %v10074_v37, %v641_v21  ;;  %v6533_v11 = vadd.f32 -1.0, %v1409_v29  ;;  %6831 = vmatmul.msk.f32.gmra.mxu3 %vm2225_vm0, %v6607_v61  ;;  %v1131_v31 = vadd.f32 1.0, %v10206_v26  ;;  %vm741_vm14 = vcmp.ge.f32.partialorder %v9446_v7, %v13355_v62 }
 0x38c   :  { %13353 = vst [vmem:[#allocation131_spill] sm:$0xff] %v10213_v36  ;;  %v7330_v10 = vpop.eup %7329  ;;  %v474_v63 = vadd.f32 0.5, %v10197_v47  ;;  %7333 = vpow2.f32 %v3958_v22  ;;  %v12998_v9 = vcvt.s32.f32 %v10210_v30  ;;  %v10225_v28 = vadd.f32 %v9769_v53, %v3655_v27 }
 0x38d   :  { %13354 = vst [vmem:[#allocation132_spill] sm:$0xff] %v10216_v20  ;;  %v7332_v43 = vpop.eup %7331  ;;  %v1410_v37 = vsub.f32 %v1354_v12, %v10134_v56  ;;  %v13356_v21 = vcvt.s32.f32 %v10112_v24  ;;  %v1075_v61 = vmul.f32 8.0, %v10206_v26  ;;  %v1187_v55 = vmul.f32 %v1131_v31, %v10206_v26 }
 0x38e   :  { %v13357_v22 = vmax.f32 %v9953_v54, 0.0  ;;  %v196_v27 = vadd.f32 0.5, %v12998_v9  ;;  %v3842_v44 = vand.u32 2147483647, %v10225_v28  ;;  %v6480_v56 = vsel %vm740_vm9, 1.0, %v13121_v25 }
 0x38f   :  { %v10230_v29 = vsub.f32 %v13356_v21, %v363_v48  ;;  %v4123_v24 = vmul.f32 0.6931472, %v7330_v10  ;;  %vm1692_vm15 = vcmp.eq.f32.partialorder %v7906_v23, %v6533_v11  ;;  %v1019_v12 = vmax.f32 %v13340_v58, %v10183_v15 }
 0x390   :  { %v4230_v42 = vadd.f32 %v4121_v34, %v13357_v22  ;;  %v1243_v48 = vmul.f32 0.5, %v1187_v55  ;;  %v530_v31 = vmul.f32 0.14285715, %v474_v63  ;;  %v4064_v54 = vadd.f32 1.0, %v7332_v43  ;;  %v10248_v22 = vpop.f32.mrf.mxu3 }
 0x391   :  { %v252_v34 = vmul.f32 0.017857144, %v196_v27  ;;  %v3898_v21 = vsub.f32 0.0, %v3842_v44  ;;  %v6534_v9 = vadd.f32 -1.0, %v1410_v37  ;;  %v475_v49 = vadd.f32 0.5, %v10230_v29 }
 0x392   :  { %v1299_v20 = vsub.f32 %v1075_v61, %v1243_v48  ;;  %v10252_v46 = vadd.f32 %v6480_v56, %v9436_v17  ;;  %v7334_v10 = vpop.eup %7333  ;;  %v10257_v58 = vadd.s32 432, %v7879_v60  ;;  %v3112_v55 = vsel %vm2536_vm12, %v9409_v0, 0.0  ;;  %v3657_v0 = vpop.f32.mrf.mxu2 }
 0x393   :  { %v10254_v36 = vfloor.f32 %v252_v34  ;;  %v3960_v19 = vmul.f32 1.442695, %v3898_v21  ;;  %v10261_v44 = vadd.f32 -0.6931472, %v4230_v42  ;;  %v6645_v63 = vsel %vm1692_vm15, 1.0, %v13121_v25  ;;  %3113 = vadd.xlane.f32.xlu1 %v3112_v55  ;;  %v4701_v56 = vpop.f32.mrf.mxu1 }
 0x394   :  { %13358 = vst [vmem:[#allocation51_spill] sm:$0xff] %v10252_v46  ;;  %v1355_v43 = vadd.f32 %v1299_v20, %v1019_v12  ;;  %v10268_v17 = vmin.f32 %v13349_v45, %v10252_v46  ;;  %v13360_v37 = vmax.f32 %v10035_v57, 0.0  ;;  %v10272_v27 = vfloor.f32 %v530_v31  ;;  %v13362_v31 = vld [vmem:[#allocation74_spill] sm:$0xff] }
 0x395   :  { %13359 = vst [vmem:[#allocation133_spill] sm:$0xff] %v10254_v36  ;;  %7335 = vlog2.f32 %v4064_v54  ;;  %vm1543_vm1 = vcmp.eq.f32.partialorder %v7906_v23, %v10254_v36  ;;  %vm1693_vm3 = vcmp.eq.f32.partialorder %v7906_v23, %v6534_v9  ;;  %v531_v42 = vmul.f32 0.14285715, %v475_v49 }
 0x396   :  { %v4231_v61 = vadd.f32 %v4123_v24, %v13360_v37  ;;  %13361 = vst [vmem:[#allocation134_spill] sm:$0xff] %v10272_v27  ;;  %v4065_v11 = vadd.f32 1.0, %v7334_v10  ;;  %v6608_v20 = vsel %vm1543_vm1, 1.0, %v13121_v25  ;;  %vm742_vm2 = vcmp.ge.f32.partialorder %v9457_v52, %v9317_v13 }
 0x397   :  { %v364_v57 = vmul.f32 56.0, %v10254_v36  ;;  %6832 = vmatmul.msk.f32.gmra.mxu3 %vm2225_vm0, %v6608_v20  ;;  %7337 = vpow2.f32 %v3960_v19  ;;  %v1132_v24 = vadd.f32 1.0, %v10268_v17  ;;  %v13003_v12 = vcvt.s32.f32 %v10257_v58 }
 0x398   :  { %v1411_v48 = vsub.f32 %v1355_v43, %v10206_v26  ;;  %v3109_v49 = vsel %vm2536_vm12, %v13362_v31, 0.0  ;;  %v10288_v54 = vadd.f32 %v9769_v53, %v3657_v0  ;;  %v6481_v34 = vsel %vm741_vm14, 1.0, %v13121_v25  ;;  %v10301_v55 = vpop.f32.mrf.mxu3 }
 0x399   :  { %v1076_v21 = vmul.f32 8.0, %v10268_v17  ;;  %v1188_v19 = vmul.f32 %v1132_v24, %v10268_v17  ;;  %v197_v10 = vadd.f32 0.5, %v13003_v12  ;;  %3110 = vadd.xlane.f32.xlu0 %v3109_v49  ;;  %v10299_v26 = vadd.f32 %v6481_v34, %v9446_v7 }
 0x39a   :  { %v642_v53 = vmul.f32 7.0, %v10272_v27  ;;  %v6646_v43 = vsel %vm1693_vm3, 1.0, %v13121_v25  ;;  %v3843_v0 = vand.u32 2147483647, %v10288_v54  ;;  %v10309_v24 = vfloor.f32 %v531_v42 }
 0x39b   :  { %13363 = vst [vmem:[#allocation74_spill] sm:$0xff] %v10299_v26  ;;  %v7336_v20 = vpop.eup %7335  ;;  %v13364_v31 = vcvt.s32.f32 %v10210_v30  ;;  %v1244_v7 = vmul.f32 0.5, %v1188_v19  ;;  %v253_v34 = vmul.f32 0.017857144, %v197_v10  ;;  %7339 = vlog2.f32 %v4065_v11  ;;  %v4703_v10 = vpop.f32.mrf.mxu1 }
 0x39c   :  { %v3899_v12 = vsub.f32 0.0, %v3843_v0  ;;  %v10317_v36 = vmin.f32 %v13355_v62, %v10299_v26  ;;  %v6874_v9 = vadd.f32 -0.6931472, %v4231_v61  ;;  %v6535_v37 = vadd.f32 -1.0, %v1411_v48  ;;  %4882 = vmatpush.msra.mxu1 %v4703_v10 }
 0x39d   :  { %v10313_v49 = vsub.f32 %v13364_v31, %v364_v57  ;;  %v7338_v15 = vpop.eup %7337  ;;  %v1020_v27 = vmax.f32 %v13349_v45, %v10252_v46  ;;  %v1300_v42 = vsub.f32 %v1076_v21, %v1244_v7  ;;  %v10321_v51 = vfloor.f32 %v253_v34  ;;  %v3069_v21 = vpop.xlane.xlu2 %3068  ;;  %v13366_v31 = vld [vmem:[#allocation54_spill] sm:$0xff]  ;;  %v13368_v7 = vld [vmem:[#allocation40_spill] sm:$0xff] }
 0x39e   :  { %v10324_v30 = vmul.f32 %v6645_v63, %v9935_v39  ;;  %v10327_v57 = vsub.f32 %v10197_v47, %v642_v53  ;;  %v3962_v19 = vmul.f32 1.442695, %v3899_v12  ;;  %v4125_v0 = vmul.f32 0.6931472, %v7336_v20  ;;  %v13367_v39 = vld [vmem:[#allocation68_spill] sm:$0xff]  ;;  %4883 = vmatpush.msra.mxu1 %v4701_v56 }
 0x39f   :  { %13365 = vst [vmem:[#allocation135_spill] sm:$0xff] %v10321_v51  ;;  %v10331_v61 = vmul.f32 %v6646_v43, %v10002_v18  ;;  %v643_v48 = vmul.f32 7.0, %v10309_v24  ;;  %v476_v45 = vadd.f32 0.5, %v10313_v49  ;;  %vm743_vm4 = vcmp.ge.f32.partialorder %v13367_v39, %v13366_v31 }
 0x3a0   :  { %vm1544_vm5 = vcmp.eq.f32.partialorder %v7906_v23, %v10321_v51  ;;  %7341 = vpow2.f32 %v3962_v19  ;;  %v1133_v47 = vadd.f32 1.0, %v10317_v36  ;;  %v4341_v63 = vpack.c.bf16 %v6874_v9, %v10261_v44  ;;  %v10361_v10 = vpop.f32.mrf.mxu3  ;;  %4884 = vmatpush.msra.mxu1 %v10234_v33 }
 0x3a1   :  { %vm1694_vm6 = vcmp.eq.f32.partialorder %v7906_v23, %v6535_v37  ;;  %v4066_v18 = vadd.f32 1.0, %v7338_v15  ;;  %v1356_v12 = vadd.f32 %v1300_v42, %v1020_v27  ;;  %v6609_v53 = vsel %vm1544_vm5, 1.0, %v13121_v25  ;;  %v7340_v43 = vpop.eup %7339 }
 0x3a2   :  { %6833 = vmatmul.msk.f32.gmra.mxu3 %vm2225_vm0, %v6609_v53  ;;  %v1189_v20 = vmul.f32 %v1133_v47, %v10317_v36  ;;  %6944 = vmatmul.msk.bf16.gmra.mxu0 %vm4393_vm10, %v4341_v63  ;;  %v3219_v34 = vsub.f32 %v3069_v21, %v13368_v7  ;;  %v10348_v19 = vadd.s32 440, %v7879_v60  ;;  %v6482_v15 = vsel %vm742_vm2, 1.0, %v13121_v25  ;;  %v3072_v63 = vpop.xlane.xlu0 %3071  ;;  %v13371_v53 = vld [vmem:[#allocation80_spill] sm:$0xff] }
 0x3a3   :  { %v13369_v44 = vmax.f32 %v10102_v38, 0.0  ;;  %v365_v56 = vmul.f32 56.0, %v10321_v51  ;;  %v1077_v9 = vmul.f32 8.0, %v10317_v36  ;;  %v10359_v42 = vadd.f32 %v6482_v15, %v9457_v52  ;;  %4885 = vmatpush.msra.mxu1 %v10173_v6 }
 0x3a4   :  { %v1245_v60 = vmul.f32 0.5, %v1189_v20  ;;  %v3275_v21 = vmul.f32 -19.22, %v3219_v34  ;;  %v13008_v47 = vcvt.s32.f32 %v10348_v19  ;;  %v3115_v38 = vsel %vm2536_vm12, %v13371_v53, 0.0 }
 0x3a5   :  { %v4232_v27 = vadd.f32 %v4125_v0, %v13369_v44  ;;  %13370 = vst [vmem:[#allocation54_spill] sm:$0xff] %v10359_v42  ;;  %v10368_v0 = vsub.f32 %v10230_v29, %v643_v48  ;;  %v4127_v44 = vmul.f32 0.6931472, %v7340_v43  ;;  %v6647_v52 = vsel %vm1694_vm6, 1.0, %v13121_v25  ;;  %3116 = vadd.xlane.f32.xlu2 %v3115_v38  ;;  %4886 = vmatpush.msra.mxu1 %v10114_v50  ;;  %v13376_v50 = vld [vmem:[#allocation112_spill] sm:$0xff] }
 0x3a6   :  { %v532_v15 = vmul.f32 0.14285715, %v476_v45  ;;  %v7342_v33 = vpop.eup %7341  ;;  %7343 = vlog2.f32 %v4066_v18  ;;  %v1412_v20 = vsub.f32 %v1356_v12, %v10268_v17  ;;  %v198_v11 = vadd.f32 0.5, %v13008_v47  ;;  %v13373_v18 = vld [vmem:[#allocation110_spill] sm:$0xff]  ;;  %v13374_v17 = vld [vmem:[#allocation111_spill] sm:$0xff] }
 0x3a7   :  { %v10379_v29 = vmin.f32 %v9317_v13, %v10359_v42  ;;  %v10381_v48 = vadd.f32 -0.6931472, %v4232_v27  ;;  %v13372_v37 = vcvt.s32.f32 %v10257_v58  ;;  %v4067_v45 = vadd.f32 1.0, %v7342_v33  ;;  %4887 = vmatpush.msra.mxu1 %v10044_v8 }
 0x3a8   :  { %v3220_v6 = vsub.f32 %v3072_v63, %v13368_v7  ;;  %vm744_vm7 = vcmp.ge.f32.partialorder %v13374_v17, %v13373_v18  ;;  %v1021_v12 = vmax.f32 %v13355_v62, %v10299_v26  ;;  %v1301_v53 = vsub.f32 %v1077_v9, %v1245_v60  ;;  %v13377_v63 = vld [vmem:[#allocation72_spill] sm:$0xff]  ;;  %v13379_v9 = vld [vmem:[#allocation58_spill] sm:$0xff] }
 0x3a9   :  { %v10385_v43 = vsub.f32 %v13372_v37, %v365_v56  ;;  %v3331_v38 = vmul.f32 %v3275_v21, %v3219_v34  ;;  %v254_v47 = vmul.f32 0.017857144, %v198_v11  ;;  %v13375_v27 = vmax.f32 %v10167_v5, 0.0  ;;  %4888 = vmatpush.msra.mxu1 %v9985_v41  ;;  %v13382_v56 = vld [vmem:[#allocation78_spill] sm:$0xff] }
 0x3aa   :  { %v10396_v58 = vmul.f32 %v6647_v52, %v10064_v1  ;;  %7345 = vlog2.f32 %v4067_v45  ;;  %vm745_vm9 = vcmp.ge.f32.partialorder %v13377_v63, %v13376_v50  ;;  %v10402_v33 = vfloor.f32 %v532_v15 }
 0x3ab   :  { %v4233_v51 = vadd.f32 %v4127_v44, %v13375_v27  ;;  %v10404_v62 = vadd.f32 -1.0, %v1412_v20  ;;  %v10406_v34 = vfloor.f32 %v254_v47  ;;  %v1134_v5 = vadd.f32 1.0, %v10379_v29  ;;  %v3075_v27 = vpop.xlane.xlu2 %3074  ;;  %4889 = vmatpush.msra.mxu1 %v9911_v35 }
 0x3ac   :  { %v477_v11 = vadd.f32 0.5, %v10385_v43  ;;  %v3276_v1 = vmul.f32 -19.22, %v3220_v6  ;;  %v3118_v60 = vsel %vm2536_vm12, %v13379_v9, 0.0  ;;  %v6483_v8 = vsel %vm743_vm4, 1.0, %v13121_v25  ;;  %v7344_v21 = vpop.eup %7343  ;;  %v10424_v9 = vpop.f32.mrf.mxu3 }
 0x3ad   :  { %13378 = vst [vmem:[#allocation68_spill] sm:$0xff] %v10406_v34  ;;  %v1357_v44 = vadd.f32 %v1301_v53, %v1021_v12  ;;  %v3395_v52 = vmul.f32 1.442695, %v3331_v38  ;;  %vm1545_vm11 = vcmp.eq.f32.partialorder %v7906_v23, %v10406_v34  ;;  %v1190_v47 = vmul.f32 %v1134_v5, %v10379_v29  ;;  %3119 = vadd.xlane.f32.xlu0 %v3118_v60 }
 0x3ae   :  { %v6610_v15 = vsel %vm1545_vm11, 1.0, %v13121_v25  ;;  %v3332_v20 = vmul.f32 %v3276_v1, %v3220_v6  ;;  %v10422_v37 = vadd.f32 %v6483_v8, %v13367_v39  ;;  %v6876_v45 = vadd.f32 -0.6931472, %v4233_v51  ;;  %v3078_v8 = vpop.xlane.xlu0 %3077 }
 0x3af   :  { %v644_v41 = vmul.f32 7.0, %v10402_v33  ;;  %v366_v12 = vmul.f32 56.0, %v10406_v34  ;;  %6834 = vmatmul.msk.f32.gmra.mxu3 %vm2225_vm0, %v6610_v15  ;;  %v1078_v53 = vmul.f32 8.0, %v10379_v29  ;;  %v1246_v38 = vmul.f32 0.5, %v1190_v47 }
 0x3b0   :  { %13380 = vst [vmem:[#allocation40_spill] sm:$0xff] %v10422_v37  ;;  %v7346_v5 = vpop.eup %7345  ;;  %v4129_v6 = vmul.f32 0.6931472, %v7344_v21  ;;  %vm1695_vm13 = vcmp.eq.f32.partialorder %v7906_v23, %v10404_v62  ;;  %v3397_v51 = vmul.f32 1.442695, %v3332_v20  ;;  %v10435_v39 = vmin.f32 %v13366_v31, %v10422_v37  ;;  %v13381_v20 = vld [vmem:[#allocation113_spill] sm:$0xff] }
 0x3b1   :  { %v533_v35 = vmul.f32 0.14285715, %v477_v11  ;;  %7347 = vpow2.f32 %v3395_v52  ;;  %v1022_v1 = vmax.f32 %v9317_v13, %v10359_v42  ;;  %v3221_v60 = vsub.f32 %v3075_v27, %v13368_v7 }
 0x3b2   :  { %v1413_v47 = vsub.f32 %v1357_v44, %v10317_v36  ;;  %7349 = vpow2.f32 %v3397_v51  ;;  %v1135_v21 = vadd.f32 1.0, %v10435_v39  ;;  %v4342_v15 = vpack.c.bf16 %v6876_v45, %v10381_v48 }
 0x3b3   :  { %vm746_vm0 = vcmp.ge.f32.partialorder %v13382_v56, %v13381_v20  ;;  %v4131_v34 = vmul.f32 0.6931472, %v7346_v5  ;;  %v13383_v11 = vcvt.s32.f32 %v10348_v19  ;;  %v1302_v26 = vsub.f32 %v1078_v53, %v1246_v38 }
 0x3b4   :  { %v1079_v13 = vmul.f32 8.0, %v10435_v39  ;;  %v1191_v27 = vmul.f32 %v1135_v21, %v10435_v39  ;;  %6945 = vmatmul.msk.bf16.gmra.mxu0 %vm4393_vm10, %v4342_v15  ;;  %v6484_v36 = vsel %vm744_vm7, 1.0, %v13121_v25  ;;  %v3222_v48 = vsub.f32 %v3078_v8, %v13368_v7  ;;  %v13386_v21 = vld [vmem:[#allocation118_spill] sm:$0xff] }
 0x3b5   :  { %v10447_v52 = vsub.f32 %v13383_v11, %v366_v12  ;;  %v3121_v44 = vsel %vm2536_vm12, %v9904_v32, 0.0  ;;  %v13384_v19 = vmax.f32 %v10225_v28, 0.0  ;;  %v1023_v12 = vmax.f32 %v13366_v31, %v10422_v37  ;;  %v10484_v37 = vpop.f32.mrf.mxu3 }
 0x3b6   :  { %v3277_v53 = vmul.f32 -19.22, %v3221_v60  ;;  %v10464_v38 = vadd.f32 %v6484_v36, %v13374_v17  ;;  %3122 = vadd.xlane.f32.xlu1 %v3121_v44  ;;  %v1247_v5 = vmul.f32 0.5, %v1191_v27  ;;  %v3278_v51 = vmul.f32 -19.22, %v3222_v48 }
 0x3b7   :  { %v4234_v45 = vadd.f32 %v4129_v6, %v13384_v19  ;;  %v3124_v15 = vsel %vm2536_vm12, %v13386_v21, 0.0  ;;  %v6485_v32 = vsel %vm745_vm9, 1.0, %v13121_v25  ;;  %v7348_v28 = vpop.eup %7347  ;;  %v13387_v6 = vmax.f32 %v10288_v54, 0.0 }
 0x3b8   :  { %13385 = vst [vmem:[#allocation80_spill] sm:$0xff] %v10464_v38  ;;  %v10474_v31 = vadd.f32 -1.0, %v1413_v47  ;;  %v478_v17 = vadd.f32 0.5, %v10447_v52  ;;  %v10479_v11 = vmin.f32 %v13373_v18, %v10464_v38  ;;  %3125 = vadd.xlane.f32.xlu2 %v3124_v15  ;;  %v7350_v27 = vpop.eup %7349  ;;  %v1358_v36 = vadd.f32 %v1302_v26, %v1022_v1 }
 0x3b9   :  { %v4235_v8 = vadd.f32 %v4131_v34, %v13387_v6  ;;  %v1303_v44 = vsub.f32 %v1079_v13, %v1247_v5  ;;  %v3334_v19 = vmul.f32 %v3278_v51, %v3222_v48  ;;  %v10482_v21 = vadd.f32 %v6485_v32, %v13377_v63  ;;  %v13389_v63 = vld [vmem:[#allocation119_spill] sm:$0xff]  ;;  %v13390_v32 = vld [vmem:[#allocation8_spill] sm:$0xff] }
 0x3ba   :  { %v10487_v54 = vsub.f32 %v10313_v49, %v644_v41  ;;  %v6648_v34 = vsel %vm1695_vm13, 1.0, %v13121_v25  ;;  %v10493_v47 = vfloor.f32 %v533_v35  ;;  %v3333_v15 = vmul.f32 %v3277_v53, %v3221_v60 }
 0x3bb   :  { %13388 = vst [vmem:[#allocation110_spill] sm:$0xff] %v10482_v21  ;;  %v6877_v6 = vadd.f32 -0.6931472, %v4234_v45  ;;  %v1359_v26 = vadd.f32 %v1303_v44, %v1023_v12  ;;  %v1136_v1 = vadd.f32 1.0, %v10479_v11  ;;  %v3401_v13 = vmul.f32 1.442695, %v3334_v19  ;;  %v3081_v12 = vpop.xlane.xlu1 %3080 }
 0x3bc   :  { %vm747_vm14 = vcmp.ge.f32.partialorder %v9901_v3, %v13389_v63  ;;  %vm1696_vm15 = vcmp.eq.f32.partialorder %v7906_v23, %v10474_v31  ;;  %v534_v49 = vmul.f32 0.14285715, %v478_v17  ;;  %v3495_v41 = vpack.c.bf16 %v7350_v27, %v7348_v28  ;;  %v3084_v17 = vpop.xlane.xlu2 %3083  ;;  %v13391_v44 = vld [vmem:[#allocation23_spill] sm:$0xff] }
 0x3bd   :  { %v10502_v62 = vmin.f32 %v13376_v50, %v10482_v21  ;;  %v1414_v35 = vsub.f32 %v1358_v36, %v10379_v29  ;;  %v1080_v60 = vmul.f32 8.0, %v10479_v11  ;;  %v1192_v48 = vmul.f32 %v1136_v1, %v10479_v11 }
 0x3be   :  { %v6878_v45 = vadd.f32 -0.6931472, %v4235_v8  ;;  %v3399_v53 = vmul.f32 1.442695, %v3333_v15  ;;  %v1024_v5 = vmax.f32 %v13373_v18, %v10464_v38  ;;  %6847 = vmatmul.msk.bf16.gmra.mxu2 %vm3546_vm8, %v3495_v41  ;;  %v1826_v28 = vmul.f32 8.0, %v13390_v32 }
 0x3bf   :  { %v1137_v51 = vadd.f32 1.0, %v10502_v62  ;;  %v1415_v27 = vsub.f32 %v1359_v26, %v10435_v39  ;;  %v1248_v29 = vmul.f32 0.5, %v1192_v48  ;;  %7351 = vpow2.f32 %v3401_v13  ;;  %v13392_v26 = vld [vmem:[#allocation10_spill] sm:$0xff] }
 0x3c0   :  { %v6486_v8 = vsel %vm746_vm0, 1.0, %v13121_v25  ;;  %v3223_v18 = vsub.f32 %v3081_v12, %v13368_v7  ;;  %v1882_v19 = vadd.f32 %v1826_v28, %v13391_v44  ;;  %v4343_v41 = vpack.c.bf16 %v6878_v45, %v6877_v6  ;;  %v10537_v6 = vpop.f32.mrf.mxu3 }
 0x3c1   :  { %v1193_v36 = vmul.f32 %v1137_v51, %v10502_v62  ;;  %v10521_v15 = vadd.f32 %v6486_v8, %v13382_v56  ;;  %v1304_v1 = vsub.f32 %v1080_v60, %v1248_v29  ;;  %v3224_v39 = vsub.f32 %v3084_v17, %v13368_v7  ;;  %v13394_v60 = vld [vmem:[#allocation77_spill] sm:$0xff] }
 0x3c2   :  { %v1827_v13 = vmul.f32 8.0, %v13392_v26  ;;  %v6538_v48 = vadd.f32 -1.0, %v1414_v35  ;;  %v1081_v32 = vmul.f32 8.0, %v10502_v62  ;;  %vm1938_vm1 = vcmp.eq.f32.partialorder %v7906_v23, %v1882_v19  ;;  %v13398_v26 = vld [vmem:[#allocation124_spill] sm:$0xff] }
 0x3c3   :  { %v1249_v38 = vmul.f32 0.5, %v1193_v36  ;;  %v10528_v51 = vmul.f32 %v6648_v34, %v10130_v4  ;;  %7353 = vpow2.f32 %v3399_v53  ;;  %v10531_v12 = vsel %vm1938_vm1, 1.0, %v13121_v25 }
 0x3c4   :  { %13393 = vst [vmem:[#allocation111_spill] sm:$0xff] %v10531_v12  ;;  %v10535_v56 = vmin.f32 %v13381_v20, %v10521_v15  ;;  %vm748_vm3 = vcmp.ge.f32.partialorder %v9917_v14, %v13394_v60  ;;  %v6539_v35 = vadd.f32 -1.0, %v1415_v27  ;;  %v1360_v45 = vadd.f32 %v1304_v1, %v1024_v5  ;;  %6983 = vmatmul.msk.f32.vlgmr.msra.gmra.mxu1 %vm4393_vm10, %v10531_v12  ;;  %v13395_v27 = vld [vmem:[#allocation24_spill] sm:$0xff] }
 0x3c5   :  { %v3279_v28 = vmul.f32 -19.22, %v3223_v18  ;;  %v3280_v4 = vmul.f32 -19.22, %v3224_v39  ;;  %v7352_v34 = vpop.eup %7351  ;;  %v10544_v53 = vmul.f32 7.0, %v10493_v47  ;;  %v6649_v17 = vsel %vm1696_vm15, 1.0, %v13121_v25  ;;  %6946 = vmatmul.msk.bf16.gmra.mxu0 %vm4393_vm10, %v4343_v41 }
 0x3c6   :  { %v1138_v29 = vadd.f32 1.0, %v10535_v56  ;;  %v1883_v5 = vadd.f32 %v1827_v13, %v13395_v27  ;;  %v10553_v8 = vfloor.f32 %v534_v49  ;;  %vm1697_vm2 = vcmp.eq.f32.partialorder %v7906_v23, %v6538_v48  ;;  %v13397_v41 = vld [vmem:[#allocation121_spill] sm:$0xff] }
 0x3c7   :  { %v1025_v36 = vmax.f32 %v13376_v50, %v10482_v21  ;;  %v1305_v44 = vsub.f32 %v1081_v32, %v1249_v38  ;;  %v3336_v1 = vmul.f32 %v3280_v4, %v3224_v39  ;;  %v6487_v31 = vsel %vm747_vm14, 1.0, %v13121_v25  ;;  %v13403_v21 = vld [vmem:[#allocation22_spill] sm:$0xff] }
 0x3c8   :  { %13396 = vst [vmem:[#allocation112_spill] sm:$0xff] %v10553_v8  ;;  %v1194_v19 = vmul.f32 %v1138_v29, %v10535_v56  ;;  %vm1939_vm4 = vcmp.eq.f32.partialorder %v7906_v23, %v1883_v5  ;;  %vm749_vm5 = vcmp.ge.f32.partialorder %v13398_v26, %v13397_v41  ;;  %vm1698_vm6 = vcmp.eq.f32.partialorder %v7906_v23, %v6539_v35  ;;  %v13400_v29 = vld [vmem:[#allocation11_spill] sm:$0xff]  ;;  %v13404_v35 = vld [vmem:[#allocation85_spill] sm:$0xff] }
 0x3c9   :  { %v1416_v49 = vsub.f32 %v1360_v45, %v10479_v11  ;;  %v3335_v13 = vmul.f32 %v3279_v28, %v3223_v18  ;;  %v10569_v50 = vadd.f32 %v6487_v31, %v9901_v3  ;;  %v7354_v38 = vpop.eup %7353  ;;  %v1082_v39 = vmul.f32 8.0, %v10535_v56  ;;  %v3087_v18 = vpop.xlane.xlu0 %3086  ;;  %v13401_v45 = vld [vmem:[#allocation125_spill] sm:$0xff]  ;;  %v13402_v28 = vld [vmem:[#allocation128_spill] sm:$0xff] }
 0x3ca   :  { %v1250_v32 = vmul.f32 0.5, %v1194_v19  ;;  %v10573_v4 = vsel %vm1939_vm4, 1.0, %v13121_v25  ;;  %v1828_v27 = vmul.f32 8.0, %v13400_v29  ;;  %v10577_v5 = vmul.f32 %v6649_v17, %v10188_v16 }
 0x3cb   :  { %13399 = vst [vmem:[#allocation72_spill] sm:$0xff] %v10573_v4  ;;  %v10580_v12 = vmul.f32 7.0, %v10553_v8  ;;  %v3496_v11 = vpack.c.bf16 %v7352_v34, %v7354_v38  ;;  %v10584_v3 = vmin.f32 %v13389_v63, %v10569_v50  ;;  %vm750_vm7 = vcmp.ge.f32.partialorder %v13402_v28, %v13401_v45 }
 0x3cc   :  { %v6650_v19 = vsel %vm1697_vm2, 1.0, %v13121_v25  ;;  %v6651_v16 = vsel %vm1698_vm6, 1.0, %v13121_v25  ;;  %v1361_v17 = vadd.f32 %v1305_v44, %v1025_v36  ;;  %v3405_v31 = vmul.f32 1.442695, %v3336_v1  ;;  %6984 = vmatmul.msk.f32.gmra.mxu1 %vm4393_vm10, %v10573_v4  ;;  %v10605_v44 = vpop.f32.mrf.mxu3 }
 0x3cd   :  { %v3403_v29 = vmul.f32 1.442695, %v3335_v13  ;;  %v1026_v34 = vmax.f32 %v13381_v20, %v10521_v15  ;;  %v1139_v38 = vadd.f32 1.0, %v10584_v3  ;;  %v1884_v42 = vadd.f32 %v1828_v27, %v13403_v21  ;;  %v13405_v21 = vld [vmem:[#allocation107_spill] sm:$0xff]  ;;  %v13406_v13 = vld [vmem:[#allocation126_spill] sm:$0xff] }
 0x3ce   :  { %v10600_v46 = vadd.f32 -1.0, %v1416_v49  ;;  %v1306_v48 = vsub.f32 %v1082_v39, %v1250_v32  ;;  %v3225_v8 = vsub.f32 %v3087_v18, %v13368_v7  ;;  %v3130_v36 = vsel %vm2536_vm12, %v13404_v35, 0.0  ;;  %6848 = vmatmul.msk.bf16.gmra.mxu2 %vm3546_vm8, %v3496_v11  ;;  %v3090_v11 = vpop.xlane.xlu2 %3089 }
 0x3cf   :  { %v1083_v20 = vmul.f32 8.0, %v10584_v3  ;;  %v1195_v1 = vmul.f32 %v1139_v38, %v10584_v3  ;;  %vm1940_vm9 = vcmp.eq.f32.partialorder %v7906_v23, %v1884_v42  ;;  %3131 = vadd.xlane.f32.xlu1 %v3130_v36  ;;  %v3127_v49 = vsel %vm2536_vm12, %v13405_v21, 0.0  ;;  %v13408_v36 = vld [vmem:[#allocation15_spill] sm:$0xff] }
 0x3d0   :  { %vm751_vm11 = vcmp.ge.f32.partialorder %v10138_v59, %v13406_v13  ;;  %v1417_v39 = vsub.f32 %v1361_v17, %v10502_v62  ;;  %7355 = vpow2.f32 %v3405_v31  ;;  %v1027_v32 = vmax.f32 %v13389_v63, %v10569_v50  ;;  %3128 = vadd.xlane.f32.xlu0 %v3127_v49  ;;  %v13410_v31 = vld [vmem:[#allocation127_spill] sm:$0xff] }
 0x3d1   :  { %v6488_v27 = vsel %vm748_vm3, 1.0, %v13121_v25  ;;  %v1251_v18 = vmul.f32 0.5, %v1195_v1  ;;  %v3226_v35 = vsub.f32 %v3090_v11, %v13368_v7  ;;  %v1829_v21 = vmul.f32 8.0, %v13408_v36 }
 0x3d2   :  { %v10623_v38 = vadd.f32 %v6488_v27, %v9917_v14  ;;  %v1362_v62 = vadd.f32 %v1306_v48, %v1026_v34  ;;  %v3281_v17 = vmul.f32 -19.22, %v3225_v8  ;;  %v10630_v63 = vsel %vm1940_vm9, 1.0, %v13121_v25  ;;  %v13411_v27 = vld [vmem:[#allocation25_spill] sm:$0xff] }
 0x3d3   :  { %13409 = vst [vmem:[#allocation113_spill] sm:$0xff] %v10630_v63  ;;  %v3133_v49 = vsel %vm2536_vm12, %v13410_v31, 0.0  ;;  %vm752_vm13 = vcmp.ge.f32.partialorder %v10201_v2, %v10145_v40  ;;  %v10637_v14 = vmul.f32 %v6650_v19, %v10248_v22  ;;  %7357 = vpow2.f32 %v3403_v29 }
 0x3d4   :  { %13407 = vst [vmem:[#allocation58_spill] sm:$0xff] %v10623_v38  ;;  %v1307_v1 = vsub.f32 %v1083_v20, %v1251_v18  ;;  %v10641_v34 = vmin.f32 %v13394_v60, %v10623_v38  ;;  %3134 = vadd.xlane.f32.xlu2 %v3133_v49  ;;  %v10643_v48 = vadd.f32 -1.0, %v1417_v39  ;;  %v3282_v42 = vmul.f32 -19.22, %v3226_v35  ;;  %6985 = vmatmul.msk.f32.gmra.mxu1 %vm4393_vm10, %v10630_v63  ;;  %v13412_v20 = vld [vmem:[#allocation106_spill] sm:$0xff] }
 0x3d5   :  { %v1885_v11 = vadd.f32 %v1829_v21, %v13411_v27  ;;  %v6489_v36 = vsel %vm749_vm5, 1.0, %v13121_v25  ;;  %v10651_v22 = vmul.f32 %v6651_v16, %v10301_v55  ;;  %v3136_v39 = vsel %vm2536_vm12, %v13412_v20, 0.0  ;;  %v13414_v20 = vld [vmem:[#allocation131_spill] sm:$0xff] }
 0x3d6   :  { %v1363_v19 = vadd.f32 %v1307_v1, %v1027_v32  ;;  %v1140_v29 = vadd.f32 1.0, %v10641_v34  ;;  %v7356_v18 = vpop.eup %7355  ;;  %vm1699_vm0 = vcmp.eq.f32.partialorder %v7906_v23, %v10600_v46  ;;  %v1418_v21 = vsub.f32 %v1362_v62, %v10535_v56  ;;  %v10679_v62 = vpop.f32.mrf.mxu3 }
 0x3d7   :  { %v3337_v31 = vmul.f32 %v3281_v17, %v3225_v8  ;;  %v10662_v49 = vadd.f32 %v6489_v36, %v13398_v26  ;;  %v1084_v55 = vmul.f32 8.0, %v10641_v34  ;;  %vm1941_vm14 = vcmp.eq.f32.partialorder %v7906_v23, %v1885_v11  ;;  %v13413_v36 = vld [vmem:[#allocation95_spill] sm:$0xff] }
 0x3d8   :  { %v1196_v16 = vmul.f32 %v1140_v29, %v10641_v34  ;;  %v6490_v32 = vsel %vm750_vm7, 1.0, %v13121_v25  ;;  %vm1700_vm15 = vcmp.eq.f32.partialorder %v7906_v23, %v10643_v48  ;;  %v1028_v56 = vmax.f32 %v13394_v60, %v10623_v38  ;;  %3137 = vadd.xlane.f32.xlu0 %v3136_v39 }
 0x3d9   :  { %v3338_v8 = vmul.f32 %v3282_v42, %v3226_v35  ;;  %v10677_v26 = vmin.f32 %v13397_v41, %v10662_v49  ;;  %v10682_v17 = vadd.f32 %v6490_v32, %v13402_v28  ;;  %v7358_v1 = vpop.eup %7357  ;;  %v1419_v27 = vsub.f32 %v1363_v19, %v10584_v3 }
 0x3da   :  { %v1252_v11 = vmul.f32 0.5, %v1196_v16  ;;  %v3139_v29 = vsel %vm2536_vm12, %v13413_v36, 0.0  ;;  %v3142_v60 = vsel %vm2536_vm12, %v13414_v20, 0.0  ;;  %v3407_v35 = vmul.f32 1.442695, %v3337_v31  ;;  %v13416_v31 = vld [vmem:[#allocation130_spill] sm:$0xff] }
 0x3db   :  { %v10690_v42 = vsel %vm1941_vm14, 1.0, %v13121_v25  ;;  %v1141_v39 = vadd.f32 1.0, %v10677_v26  ;;  %v10695_v28 = vmin.f32 %v13401_v45, %v10682_v17  ;;  %3140 = vadd.xlane.f32.xlu1 %v3139_v29  ;;  %v6542_v32 = vadd.f32 -1.0, %v1418_v21  ;;  %v13417_v36 = vld [vmem:[#allocation132_spill] sm:$0xff] }
 0x3dc   :  { %13415 = vst [vmem:[#allocation78_spill] sm:$0xff] %v10690_v42  ;;  %v1308_v3 = vsub.f32 %v1084_v55, %v1252_v11  ;;  %v3497_v19 = vpack.c.bf16 %v7356_v18, %v7358_v1  ;;  %3143 = vadd.xlane.f32.xlu2 %v3142_v60  ;;  %v6491_v16 = vsel %vm751_vm11, 1.0, %v13121_v25  ;;  %vm753_vm1 = vcmp.ge.f32.partialorder %v13417_v36, %v13416_v31  ;;  %v3093_v11 = vpop.xlane.xlu0 %3092 }
 0x3dd   :  { %v3409_v20 = vmul.f32 1.442695, %v3338_v8  ;;  %v1085_v63 = vmul.f32 8.0, %v10677_v26  ;;  %v1197_v4 = vmul.f32 %v1141_v39, %v10677_v26  ;;  %v1142_v38 = vadd.f32 1.0, %v10695_v28  ;;  %6986 = vmatmul.msk.f32.gmra.mxu1 %vm4393_vm10, %v10690_v42 }
 0x3de   :  { %v6543_v29 = vadd.f32 -1.0, %v1419_v27  ;;  %v1364_v21 = vadd.f32 %v1308_v3, %v1028_v56  ;;  %v10709_v18 = vadd.f32 %v6491_v16, %v10138_v59  ;;  %v3145_v55 = vsel %vm2536_vm12, %v10324_v30, 0.0  ;;  %6849 = vmatmul.msk.bf16.gmra.mxu2 %vm3546_vm8, %v3497_v19  ;;  %v10739_v16 = vpop.f32.mrf.mxu3 }
 0x3df   :  { %v1029_v8 = vmax.f32 %v13397_v41, %v10662_v49  ;;  %v1253_v1 = vmul.f32 0.5, %v1197_v4  ;;  %v1198_v60 = vmul.f32 %v1142_v38, %v10695_v28  ;;  %v6492_v56 = vsel %vm752_vm13, 1.0, %v13121_v25 }
 0x3e0   :  { %v1420_v27 = vsub.f32 %v1364_v21, %v10641_v34  ;;  %v3227_v59 = vsub.f32 %v3093_v11, %v13368_v7  ;;  %v1086_v30 = vmul.f32 8.0, %v10695_v28  ;;  %v10726_v41 = vmin.f32 %v13406_v13, %v10709_v18  ;;  %3146 = vadd.xlane.f32.xlu0 %v3145_v55 }
 0x3e1   :  { %v1309_v4 = vsub.f32 %v1085_v63, %v1253_v1  ;;  %v1254_v39 = vmul.f32 0.5, %v1198_v60  ;;  %v3151_v38 = vsel %vm2536_vm12, %v10396_v58, 0.0  ;;  %v10731_v3 = vadd.f32 %v6492_v56, %v10201_v2  ;;  %v13418_v58 = vld [vmem:[#allocation134_spill] sm:$0xff] }
 0x3e2   :  { %v6652_v34 = vsel %vm1699_vm0, 1.0, %v13121_v25  ;;  %vm1701_vm3 = vcmp.eq.f32.partialorder %v7906_v23, %v6542_v32  ;;  %vm1702_vm2 = vcmp.eq.f32.partialorder %v7906_v23, %v6543_v29  ;;  %7359 = vpow2.f32 %v3409_v20 }
 0x3e3   :  { %v6544_v19 = vadd.f32 -1.0, %v1420_v27  ;;  %v3283_v63 = vmul.f32 -19.22, %v3227_v59  ;;  %v1143_v21 = vadd.f32 1.0, %v10726_v41  ;;  %v10744_v2 = vmin.f32 %v10145_v40, %v10731_v3 }
 0x3e4   :  { %vm754_vm4 = vcmp.ge.f32.partialorder %v10327_v57, %v13418_v58  ;;  %v6653_v46 = vsel %vm1700_vm15, 1.0, %v13121_v25  ;;  %7361 = vpow2.f32 %v3407_v35  ;;  %v1365_v20 = vadd.f32 %v1309_v4, %v1029_v8  ;;  %3152 = vadd.xlane.f32.xlu2 %v3151_v38 }
 0x3e5   :  { %v3148_v55 = vsel %vm2536_vm12, %v10331_v61, 0.0  ;;  %v1030_v1 = vmax.f32 %v13401_v45, %v10682_v17  ;;  %v1310_v11 = vsub.f32 %v1086_v30, %v1254_v39  ;;  %v1087_v60 = vmul.f32 8.0, %v10726_v41 }
 0x3e6   :  { %v1199_v56 = vmul.f32 %v1143_v21, %v10726_v41  ;;  %3149 = vadd.xlane.f32.xlu1 %v3148_v55  ;;  %v6654_v48 = vsel %vm1701_vm3, 1.0, %v13121_v25  ;;  %v6655_v35 = vsel %vm1702_vm2, 1.0, %v13121_v25  ;;  %v1144_v8 = vadd.f32 1.0, %v10744_v2 }
 0x3e7   :  { %v3154_v61 = vsel %vm2536_vm12, %v10528_v51, 0.0  ;;  %vm1703_vm5 = vcmp.eq.f32.partialorder %v7906_v23, %v6544_v19  ;;  %v3339_v45 = vmul.f32 %v3283_v63, %v3227_v59  ;;  %v1031_v27 = vmax.f32 %v13406_v13, %v10709_v18 }
 0x3e8   :  { %v1255_v30 = vmul.f32 0.5, %v1199_v56  ;;  %v7360_v4 = vpop.eup %7359  ;;  %v1421_v32 = vsub.f32 %v1365_v20, %v10677_v26  ;;  %v1088_v39 = vmul.f32 8.0, %v10744_v2  ;;  %v1200_v29 = vmul.f32 %v1144_v8, %v10744_v2  ;;  %3155 = vadd.xlane.f32.xlu0 %v3154_v61 }
 0x3e9   :  { %v6493_v38 = vsel %vm753_vm1, 1.0, %v13121_v25  ;;  %v1366_v51 = vadd.f32 %v1310_v11, %v1030_v1  ;;  %v3160_v59 = vsel %vm2536_vm12, %v10637_v14, 0.0  ;;  %v3028_v26 = vmul.f32 %v6652_v34, %v10361_v10  ;;  %v3099_v11 = vpop.xlane.xlu0 %3098 }
 0x3ea   :  { %v1311_v21 = vsub.f32 %v1087_v60, %v1255_v30  ;;  %v10780_v13 = vadd.f32 %v6493_v38, %v13417_v36  ;;  %v7362_v63 = vpop.eup %7361  ;;  %v3029_v20 = vmul.f32 %v6653_v46, %v10424_v9  ;;  %v3030_v55 = vmul.f32 %v6654_v48, %v10484_v37  ;;  %v3096_v46 = vpop.xlane.xlu2 %3095 }
 0x3eb   :  { %v1256_v56 = vmul.f32 0.5, %v1200_v29  ;;  %v10786_v8 = vmul.f32 %v6655_v35, %v10537_v6  ;;  %v1032_v60 = vmax.f32 %v10145_v40, %v10731_v3  ;;  %v6656_v10 = vsel %vm1703_vm5, 1.0, %v13121_v25  ;;  %v10799_v35 = vpop.f32.mrf.mxu3 }
 0x3ec   :  { %13419 = vst [vmem:[#allocation118_spill] sm:$0xff] %v10780_v13  ;;  %v1367_v1 = vadd.f32 %v1311_v21, %v1031_v27  ;;  %v10792_v14 = vmin.f32 %v13416_v31, %v10780_v13  ;;  %v6545_v9 = vadd.f32 -1.0, %v1421_v32  ;;  %v3498_v36 = vpack.c.bf16 %v7360_v4, %v7362_v63  ;;  %3161 = vadd.xlane.f32.xlu2 %v3160_v59 }
 0x3ed   :  { %v1312_v37 = vsub.f32 %v1088_v39, %v1256_v56  ;;  %v3411_v34 = vmul.f32 1.442695, %v3339_v45  ;;  %v1422_v6 = vsub.f32 %v1366_v51, %v10695_v28  ;;  %v3228_v61 = vsub.f32 %v3096_v46, %v13368_v7 }
 0x3ee   :  { %v1423_v48 = vsub.f32 %v1367_v1, %v10726_v41  ;;  %v1145_v40 = vadd.f32 1.0, %v10792_v14  ;;  %v3229_v27 = vsub.f32 %v3099_v11, %v13368_v7  ;;  %v3163_v19 = vsel %vm2536_vm12, %v10651_v22, 0.0  ;;  %6850 = vmatmul.msk.bf16.gmra.mxu2 %vm3546_vm8, %v3498_v36 }
 0x3ef   :  { %v3157_v30 = vsel %vm2536_vm12, %v10577_v5, 0.0  ;;  %v1368_v45 = vadd.f32 %v1312_v37, %v1032_v60  ;;  %v1089_v28 = vmul.f32 8.0, %v10792_v14  ;;  %v6494_v41 = vsel %vm754_vm4, 1.0, %v13121_v25 }
 0x3f0   :  { %v1201_v4 = vmul.f32 %v1145_v40, %v10792_v14  ;;  %3158 = vadd.xlane.f32.xlu1 %v3157_v30  ;;  %vm1704_vm6 = vcmp.eq.f32.partialorder %v7906_v23, %v6545_v9  ;;  %v3284_v32 = vmul.f32 -19.22, %v3228_v61  ;;  %v6547_v22 = vadd.f32 -1.0, %v1423_v48  ;;  %3164 = vadd.xlane.f32.xlu0 %v3163_v19 }
 0x3f1   :  { %v10817_v39 = vadd.f32 %v6494_v41, %v10327_v57  ;;  %v6546_v5 = vadd.f32 -1.0, %v1422_v6  ;;  %v1033_v29 = vmax.f32 %v13416_v31, %v10780_v13  ;;  %v3169_v51 = vsel %vm2536_vm12, %v3029_v20, 0.0 }
 0x3f2   :  { %v1257_v38 = vmul.f32 0.5, %v1201_v4  ;;  %v3032_v21 = vmul.f32 %v6656_v10, %v10605_v44  ;;  %7363 = vpow2.f32 %v3411_v34  ;;  %v3340_v59 = vmul.f32 %v3284_v32, %v3228_v61  ;;  %v3102_v20 = vpop.xlane.xlu2 %3101 }
 0x3f3   :  { %13420 = vst [vmem:[#allocation119_spill] sm:$0xff] %v10817_v39  ;;  %v10825_v63 = vmin.f32 %v13418_v58, %v10817_v39  ;;  %v6657_v56 = vsel %vm1704_vm6, 1.0, %v13121_v25  ;;  %v3285_v57 = vmul.f32 -19.22, %v3229_v27  ;;  %v1424_v1 = vsub.f32 %v1368_v45, %v10744_v2 }
 0x3f4   :  { %v1313_v11 = vsub.f32 %v1089_v28, %v1257_v38  ;;  %v3413_v60 = vmul.f32 1.442695, %v3340_v59  ;;  %vm1706_vm7 = vcmp.eq.f32.partialorder %v7906_v23, %v6547_v22  ;;  %3170 = vadd.xlane.f32.xlu2 %v3169_v51  ;;  %v3166_v44 = vsel %vm2536_vm12, %v3028_v26, 0.0  ;;  %v2966_v26 = vpop.f32.mrf.mxu3 }
 0x3f5   :  { %v1146_v31 = vadd.f32 1.0, %v10825_v63  ;;  %vm1705_vm9 = vcmp.eq.f32.partialorder %v7906_v23, %v6546_v5  ;;  %v3172_v9 = vsel %vm2536_vm12, %v3030_v55, 0.0  ;;  %vm755_vm11 = vcmp.ge.f32.partialorder %v10368_v0, %v10309_v24 }
 0x3f6   :  { %v1369_v10 = vadd.f32 %v1313_v11, %v1033_v29  ;;  %7365 = vpow2.f32 %v3413_v60  ;;  %v3230_v2 = vsub.f32 %v3102_v20, %v13368_v7  ;;  %v1090_v36 = vmul.f32 8.0, %v10825_v63 }
 0x3f7   :  { %v1202_v37 = vmul.f32 %v1146_v31, %v10825_v63  ;;  %v6659_v34 = vsel %vm1706_vm7, 1.0, %v13121_v25  ;;  %v6548_v6 = vadd.f32 -1.0, %v1424_v1  ;;  %v1034_v46 = vmax.f32 %v13418_v58, %v10817_v39  ;;  %v3105_v31 = vpop.xlane.xlu0 %3104 }
 0x3f8   :  { %3167 = vadd.xlane.f32.xlu1 %v3166_v44  ;;  %v6495_v55 = vsel %vm755_vm11, 1.0, %v13121_v25  ;;  %v7364_v48 = vpop.eup %7363  ;;  %v3286_v40 = vmul.f32 -19.22, %v3230_v2  ;;  %v1425_v61 = vsub.f32 %v1369_v10, %v10792_v14  ;;  %v701_v45 = vsub.f32 %v10385_v43, %v10544_v53  ;;  %3173 = vadd.xlane.f32.xlu0 %v3172_v9 }
 0x3f9   :  { %v1258_v19 = vmul.f32 0.5, %v1202_v37  ;;  %v10845_v30 = vadd.f32 %v6495_v55, %v10368_v0  ;;  %v10851_v28 = vsub.f32 %v10447_v52, %v10580_v12  ;;  %v3178_v58 = vsel %vm2536_vm12, %v3032_v21, 0.0  ;;  %v13424_v37 = vld [vmem:[#allocation27_spill] sm:$0xff] }
 0x3fa   :  { %v3033_v4 = vmul.f32 %v6657_v56, %v10679_v62  ;;  %v3341_v41 = vmul.f32 %v3285_v57, %v3229_v27  ;;  %v6658_v0 = vsel %vm1705_vm9, 1.0, %v13121_v25  ;;  %v3035_v43 = vmul.f32 %v6659_v34, %v10799_v35  ;;  %v13423_v57 = vld [vmem:[#allocation16_spill] sm:$0xff]  ;;  %v3108_v10 = vpop.xlane.xlu2 %3107 }
 0x3fb   :  { %13421 = vst [vmem:[#allocation8_spill] sm:$0xff] %v10845_v30  ;;  %v1314_v32 = vsub.f32 %v1090_v36, %v1258_v19  ;;  %v10857_v14 = vmin.f32 %v10309_v24, %v10845_v30  ;;  %vm1707_vm13 = vcmp.eq.f32.partialorder %v7906_v23, %v6548_v6  ;;  %vm756_vm0 = vcmp.ge.f32.partialorder %v10487_v54, %v10402_v33 }
 0x3fc   :  { %v7366_v52 = vpop.eup %7365  ;;  %v3342_v12 = vmul.f32 %v3286_v40, %v3230_v2  ;;  %v6549_v53 = vadd.f32 -1.0, %v1425_v61  ;;  %3179 = vadd.xlane.f32.xlu2 %v3178_v58  ;;  %v3175_v27 = vsel %vm2536_vm12, %v10786_v8, 0.0  ;;  %v6496_v5 = vsel %vm756_vm0, 1.0, %v13121_v25 }
 0x3fd   :  { %v1370_v62 = vadd.f32 %v1314_v32, %v1034_v46  ;;  %v3499_v22 = vpack.c.bf16 %v7366_v52, %v7364_v48  ;;  %v1147_v29 = vadd.f32 1.0, %v10857_v14  ;;  %vm757_vm14 = vcmp.ge.f32.partialorder %v701_v45, %v10493_v47  ;;  %v13427_v52 = vld [vmem:[#allocation112_spill] sm:$0xff] }
 0x3fe   :  { %v3415_v35 = vmul.f32 1.442695, %v3341_v41  ;;  %v6660_v38 = vsel %vm1707_vm13, 1.0, %v13121_v25  ;;  %v1091_v51 = vmul.f32 8.0, %v10857_v14  ;;  %v3181_v21 = vsel %vm2536_vm12, %v3033_v4, 0.0 }
 0x3ff   :  { %v1426_v59 = vsub.f32 %v1370_v62, %v10825_v63  ;;  %v1203_v56 = vmul.f32 %v1147_v29, %v10857_v14  ;;  %v10877_v8 = vadd.f32 %v6496_v5, %v10487_v54  ;;  %v1830_v1 = vmul.f32 8.0, %v13423_v57  ;;  %6851 = vmatmul.msk.bf16.gmra.mxu2 %vm3546_vm8, %v3499_v22  ;;  %v2969_v63 = vpop.f32.mrf.mxu3 }
 0x400   :  { %3176 = vadd.xlane.f32.xlu1 %v3175_v27  ;;  %v3034_v11 = vmul.f32 %v6658_v0, %v10739_v16  ;;  %v3417_v60 = vmul.f32 1.442695, %v3342_v12  ;;  %v3187_v44 = vsel %vm2536_vm12, %v3035_v43, 0.0  ;;  %v6497_v20 = vsel %vm757_vm14, 1.0, %v13121_v25  ;;  %3182 = vadd.xlane.f32.xlu0 %v3181_v21 }
 0x401   :  { %13422 = vst [vmem:[#allocation23_spill] sm:$0xff] %v10877_v8  ;;  %vm1708_vm15 = vcmp.eq.f32.partialorder %v7906_v23, %v6549_v53  ;;  %v1035_v54 = vmax.f32 %v10309_v24, %v10845_v30  ;;  %v1259_v9 = vmul.f32 0.5, %v1203_v56  ;;  %v10889_v16 = vmin.f32 %v10402_v33, %v10877_v8 }
 0x402   :  { %v3036_v2 = vmul.f32 %v6660_v38, %v2966_v26  ;;  %v6550_v36 = vadd.f32 -1.0, %v1426_v59  ;;  %v1886_v34 = vadd.f32 %v1830_v1, %v13424_v37  ;;  %v10892_v6 = vadd.f32 %v6497_v20, %v701_v45  ;;  %v13428_v59 = vld [vmem:[#allocation18_spill] sm:$0xff] }
 0x403   :  { %7367 = vpow2.f32 %v3415_v35  ;;  %v3231_v46 = vsub.f32 %v3105_v31, %v13368_v7  ;;  %v1315_v55 = vsub.f32 %v1091_v51, %v1259_v9  ;;  %v1148_v48 = vadd.f32 1.0, %v10889_v16  ;;  %v10932_v9 = vpop.f32.mrf.mxu0 }
 0x404   :  { %13425 = vst [vmem:[#allocation10_spill] sm:$0xff] %v10892_v6  ;;  %7369 = vpow2.f32 %v3417_v60  ;;  %v6661_v24 = vsel %vm1708_vm15, 1.0, %v13121_v25  ;;  %v3232_v40 = vsub.f32 %v3108_v10, %v13368_v7  ;;  %3188 = vadd.xlane.f32.xlu2 %v3187_v44  ;;  %vm1942_vm1 = vcmp.eq.f32.partialorder %v7906_v23, %v1886_v34  ;;  %v13430_v44 = vld [vmem:[#allocation26_spill] sm:$0xff] }
 0x405   :  { %v1371_v26 = vadd.f32 %v1315_v55, %v1035_v54  ;;  %v1092_v61 = vmul.f32 8.0, %v10889_v16  ;;  %v1204_v19 = vmul.f32 %v1148_v48, %v10889_v16  ;;  %v10904_v45 = vsel %vm1942_vm1, 1.0, %v13121_v25 }
 0x406   :  { %13426 = vst [vmem:[#allocation77_spill] sm:$0xff] %v10904_v45  ;;  %vm1709_vm3 = vcmp.eq.f32.partialorder %v7906_v23, %v6550_v36  ;;  %6987 = vmatmul.msk.f32.gmra.mxu1 %vm4393_vm10, %v10904_v45  ;;  %v3190_v58 = vsel %vm2536_vm12, %v3036_v2, 0.0  ;;  %v3184_v4 = vsel %vm2536_vm12, %v3034_v11, 0.0  ;;  %v10913_v41 = vmin.f32 %v10493_v47, %v10892_v6  ;;  %v3114_v55 = vpop.xlane.xlu1 %3113 }
 0x407   :  { %v3287_v32 = vmul.f32 -19.22, %v3231_v46  ;;  %v1427_v0 = vsub.f32 %v1371_v26, %v10857_v14  ;;  %v1260_v43 = vmul.f32 0.5, %v1204_v19  ;;  %vm758_vm2 = vcmp.ge.f32.partialorder %v10851_v28, %v13427_v52  ;;  %v2972_v21 = vpop.f32.mrf.mxu3 }
 0x408   :  { %3185 = vadd.xlane.f32.xlu1 %v3184_v4  ;;  %v3037_v12 = vmul.f32 %v6661_v24, %v2969_v63  ;;  %v3288_v53 = vmul.f32 -19.22, %v3232_v40  ;;  %v1149_v62 = vadd.f32 1.0, %v10913_v41  ;;  %v6662_v22 = vsel %vm1709_vm3, 1.0, %v13121_v25  ;;  %3191 = vadd.xlane.f32.xlu0 %v3190_v58 }
 0x409   :  { %v7368_v27 = vpop.eup %7367  ;;  %v1036_v29 = vmax.f32 %v10402_v33, %v10877_v8  ;;  %v1316_v5 = vsub.f32 %v1092_v61, %v1260_v43  ;;  %v6498_v35 = vsel %vm758_vm2, 1.0, %v13121_v25  ;;  %v6551_v38 = vadd.f32 -1.0, %v1427_v0  ;;  %v13432_v61 = vld [vmem:[#allocation20_spill] sm:$0xff] }
 0x40a   :  { %v7370_v14 = vpop.eup %7369  ;;  %v3343_v51 = vmul.f32 %v3287_v32, %v3231_v46  ;;  %v1831_v56 = vmul.f32 8.0, %v13428_v59  ;;  %v3038_v57 = vmul.f32 %v6662_v22, %v2972_v21  ;;  %v1205_v1 = vmul.f32 %v1149_v62, %v10913_v41 }
 0x40b   :  { %v10926_v11 = vadd.f32 %v6498_v35, %v10851_v28  ;;  %v3344_v60 = vmul.f32 %v3288_v53, %v3232_v40  ;;  %v1372_v31 = vadd.f32 %v1316_v5, %v1036_v29  ;;  %v3193_v20 = vsel %vm2536_vm12, %v3037_v12, 0.0  ;;  %v13433_v12 = vld [vmem:[#allocation29_spill] sm:$0xff] }
 0x40c   :  { %v1887_v33 = vadd.f32 %v1831_v56, %v13430_v44  ;;  %v3500_v63 = vpack.c.bf16 %v7370_v14, %v7368_v27  ;;  %vm1710_vm4 = vcmp.eq.f32.partialorder %v7906_v23, %v6551_v38  ;;  %v3196_v10 = vsel %vm2536_vm12, %v3038_v57, 0.0  ;;  %v3111_v24 = vpop.xlane.xlu0 %3110  ;;  %v10961_v14 = vpop.f32.mrf.mxu0  ;;  %v13435_v38 = vld [vmem:[#allocation21_spill] sm:$0xff]  ;;  %v13436_v56 = vld [vmem:[#allocation28_spill] sm:$0xff] }
 0x40d   :  { %13429 = vst [vmem:[#allocation24_spill] sm:$0xff] %v10926_v11  ;;  %v3419_v54 = vmul.f32 1.442695, %v3343_v51  ;;  %3197 = vadd.xlane.f32.xlu2 %v3196_v10  ;;  %v1093_v28 = vmul.f32 8.0, %v10913_v41  ;;  %v1261_v2 = vmul.f32 0.5, %v1205_v1  ;;  %v10942_v37 = vmin.f32 %v13427_v52, %v10926_v11 }
 0x40e   :  { %vm1943_vm5 = vcmp.eq.f32.partialorder %v7906_v23, %v1887_v33  ;;  %v3421_v34 = vmul.f32 1.442695, %v3344_v60  ;;  %v6663_v46 = vsel %vm1710_vm4, 1.0, %v13121_v25  ;;  %v1428_v48 = vsub.f32 %v1372_v31, %v10889_v16 }
 0x40f   :  { %6852 = vmatmul.msk.bf16.gmra.mxu2 %vm3546_vm8, %v3500_v63  ;;  %v10938_v36 = vsel %vm1943_vm5, 1.0, %v13121_v25  ;;  %7371 = vpow2.f32 %v3419_v54  ;;  %v2975_v40 = vpop.f32.mrf.mxu3  ;;  %v1037_v26 = vmax.f32 %v10493_v47, %v10892_v6  ;;  %v1832_v19 = vmul.f32 8.0, %v13432_v61 }
 0x410   :  { %3194 = vadd.xlane.f32.xlu1 %v3193_v20  ;;  %13431 = vst [vmem:[#allocation121_spill] sm:$0xff] %v10938_v36  ;;  %6988 = vmatmul.msk.f32.gmra.mxu1 %vm4393_vm10, %v10938_v36  ;;  %v3039_v58 = vmul.f32 %v6663_v46, %v2975_v40  ;;  %v3234_v4 = vsub.f32 %v3114_v55, %v13368_v7  ;;  %v1150_v0 = vadd.f32 1.0, %v10942_v37  ;;  %7373 = vpow2.f32 %v3421_v34 }
 0x411   :  { %v1317_v32 = vsub.f32 %v1093_v28, %v1261_v2  ;;  %v3233_v16 = vsub.f32 %v3111_v24, %v13368_v7  ;;  %v6552_v43 = vadd.f32 -1.0, %v1428_v48  ;;  %v1888_v53 = vadd.f32 %v1832_v19, %v13433_v12 }
 0x412   :  { %v3199_v62 = vsel %vm2536_vm12, %v3039_v58, 0.0  ;;  %v3290_v47 = vmul.f32 -19.22, %v3234_v4  ;;  %v1206_v22 = vmul.f32 %v1150_v0, %v10942_v37  ;;  %v1833_v51 = vmul.f32 8.0, %v13435_v38 }
 0x413   :  { %3200 = vadd.xlane.f32.xlu0 %v3199_v62  ;;  %vm1944_vm6 = vcmp.eq.f32.partialorder %v7906_v23, %v1888_v53  ;;  %v1373_v27 = vadd.f32 %v1317_v32, %v1037_v26  ;;  %v3289_v35 = vmul.f32 -19.22, %v3233_v16  ;;  %vm1711_vm7 = vcmp.eq.f32.partialorder %v7906_v23, %v6552_v43 }
 0x414   :  { %v10959_v29 = vsel %vm1944_vm6, 1.0, %v13121_v25  ;;  %v1094_v59 = vmul.f32 8.0, %v10942_v37  ;;  %v1889_v57 = vadd.f32 %v1833_v51, %v13436_v56  ;;  %v3346_v1 = vmul.f32 %v3290_v47, %v3234_v4 }
 0x415   :  { %13434 = vst [vmem:[#allocation124_spill] sm:$0xff] %v10959_v29  ;;  %v7372_v5 = vpop.eup %7371  ;;  %v6664_v60 = vsel %vm1711_vm7, 1.0, %v13121_v25  ;;  %v1429_v31 = vsub.f32 %v1373_v27, %v10913_v41  ;;  %v1262_v44 = vmul.f32 0.5, %v1206_v22  ;;  %v3345_v33 = vmul.f32 %v3289_v35, %v3233_v16 }
 0x416   :  { %v7374_v21 = vpop.eup %7373  ;;  %vm1945_vm9 = vcmp.eq.f32.partialorder %v7906_v23, %v1889_v57  ;;  %v3425_v28 = vmul.f32 1.442695, %v3346_v1  ;;  %v1038_v34 = vmax.f32 %v13427_v52, %v10926_v11 }
 0x417   :  { %v3501_v63 = vpack.c.bf16 %v7374_v21, %v7372_v5  ;;  %v10973_v10 = vsel %vm1945_vm9, 1.0, %v13121_v25  ;;  %v6553_v2 = vadd.f32 -1.0, %v1429_v31  ;;  %v1318_v46 = vsub.f32 %v1094_v59, %v1262_v44 }
 0x418   :  { %6989 = vmatmul.msk.f32.gmra.mxu1 %vm4393_vm10, %v10959_v29  ;;  %13437 = vst [vmem:[#allocation11_spill] sm:$0xff] %v10973_v10  ;;  %v3423_v55 = vmul.f32 1.442695, %v3345_v33  ;;  %v3117_v41 = vpop.xlane.xlu2 %3116  ;;  %7375 = vpow2.f32 %v3425_v28 }
 0x419   :  { %vm1712_vm11 = vcmp.eq.f32.partialorder %v7906_v23, %v6553_v2  ;;  %v3235_v26 = vsub.f32 %v3117_v41, %v13368_v7  ;;  %v1374_v61 = vadd.f32 %v1318_v46, %v1038_v34 }
 0x41a   :  { %v2978_v20 = vpop.f32.mrf.mxu3  ;;  %7377 = vpow2.f32 %v3423_v55  ;;  %v6665_v19 = vsel %vm1712_vm11, 1.0, %v13121_v25 }
 0x41b   :  { %v3040_v54 = vmul.f32 %v6664_v60, %v2978_v20  ;;  %v3291_v58 = vmul.f32 -19.22, %v3235_v26  ;;  %v1430_v4 = vsub.f32 %v1374_v61, %v10942_v37 }
 0x41d   :  { %v3202_v48 = vsel %vm2536_vm12, %v3040_v54, 0.0  ;;  %v3347_v62 = vmul.f32 %v3291_v58, %v3235_v26  ;;  %v6554_v27 = vadd.f32 -1.0, %v1430_v4  ;;  %v10998_v54 = vld [vmem:[%s12784_s4 + $0x1] ss:$0 sm:$0xff] }
 0x41e   :  { %3203 = vadd.xlane.f32.xlu1 %v3202_v48  ;;  %v7376_v16 = vpop.eup %7375 }
 0x41f   :  { %6853 = vmatmul.msk.bf16.gmra.mxu2 %vm3546_vm8, %v3501_v63  ;;  %v4492_v24 = vpop.f32.mrf.mxu0  ;;  %v3427_v35 = vmul.f32 1.442695, %v3347_v62  ;;  %vm1713_vm13 = vcmp.eq.f32.partialorder %v7906_v23, %v6554_v27 }
 0x420   :  { %6990 = vmatmul.msk.f32.gmra.mxu1 %vm4393_vm10, %v10973_v10  ;;  %v3120_v40 = vpop.xlane.xlu0 %3119  ;;  %v7378_v12 = vpop.eup %7377  ;;  %v6666_v21 = vsel %vm1713_vm13, 1.0, %v13121_v25 }
 0x421   :  { %v3236_v52 = vsub.f32 %v3120_v40, %v13368_v7  ;;  %v3502_v5 = vpack.c.bf16 %v7376_v16, %v7378_v12  ;;  %7379 = vpow2.f32 %v3427_v35  ;;  %v11007_v40 = vadd.f32 %v10998_v54, %v4492_v24 }
 0x423   :  { %v3292_v0 = vmul.f32 -19.22, %v3236_v52 }
 0x425   :  { %v2981_v32 = vpop.f32.mrf.mxu3  ;;  %v3348_v22 = vmul.f32 %v3292_v0, %v3236_v52  ;;  %v11012_v52 = vld [vmem:[%s12784_s4] ss:$0 sm:$0xff] }
 0x426   :  { %v3041_v43 = vmul.f32 %v6665_v19, %v2981_v32 }
 0x427   :  { %v10986_v53 = vpop.f32.mrf.mxu0  ;;  %v3429_v37 = vmul.f32 1.442695, %v3348_v22  ;;  %v7380_v20 = vpop.eup %7379 }
 0x428   :  { %v3205_v47 = vsel %vm2536_vm12, %v3041_v43, 0.0 }
 0x429   :  { %3206 = vadd.xlane.f32.xlu2 %v3205_v47  ;;  %v3123_v38 = vpop.xlane.xlu1 %3122  ;;  %7381 = vpow2.f32 %v3429_v37 }
 0x42a   :  { %v3237_v56 = vsub.f32 %v3123_v38, %v13368_v7 }
 0x42b   :  { %v3126_v51 = vpop.xlane.xlu2 %3125 }
 0x42c   :  { %v3238_v1 = vsub.f32 %v3126_v51, %v13368_v7  ;;  %v3293_v44 = vmul.f32 -19.22, %v3237_v56 }
 0x42e   :  { %v3294_v33 = vmul.f32 -19.22, %v3238_v1  ;;  %v3349_v28 = vmul.f32 %v3293_v44, %v3237_v56  ;;  %v11039_v44 = vadd.f32 %v10998_v54, %v10986_v53 }
 0x42f   :  { %6854 = vmatmul.msk.bf16.gmra.mxu2 %vm3546_vm8, %v3502_v5  ;;  %v7382_v63 = vpop.eup %7381 }
 0x430   :  { %v3350_v34 = vmul.f32 %v3294_v33, %v3238_v1  ;;  %v3503_v55 = vpack.c.bf16 %v7382_v63, %v7380_v20  ;;  %v3431_v41 = vmul.f32 1.442695, %v3349_v28 }
 0x431   :  { %v4497_v59 = vpop.f32.mrf.mxu0 }
 0x432   :  { %v2984_v57 = vpop.f32.mrf.mxu3  ;;  %v3433_v48 = vmul.f32 1.442695, %v3350_v34  ;;  %7383 = vpow2.f32 %v3431_v41  ;;  %v11042_v63 = vadd.f32 %v10998_v54, %v4497_v59 }
 0x433   :  { %v3042_v60 = vmul.f32 %v6666_v21, %v2984_v57 }
 0x434   :  { %7385 = vpow2.f32 %v3433_v48  ;;  %v13438_v48 = vld [vmem:[#allocation39_spill] sm:$0xff] }
 0x435   :  { %v3208_v31 = vsel %vm2536_vm12, %v3042_v60, 0.0 }
 0x436   :  { %3209 = vadd.xlane.f32.xlu0 %v3208_v31 }
 0x438   :  { %v7384_v47 = vpop.eup %7383 }
 0x439   :  { %v4499_v2 = vpop.f32.mrf.mxu0 }
 0x43a   :  { %v11001_v46 = vadd.f32 %v10998_v54, %v4499_v2  ;;  %v7386_v22 = vpop.eup %7385 }
 0x43b   :  { %v3504_v57 = vpack.c.bf16 %v7386_v22, %v7384_v47  ;;  %v11064_v22 = vadd.f32 %v10998_v54, %v10932_v9 }
 0x43c   :  { %5831 = vrot.lane.b32.xlu1 %v11001_v46, %s7743_s26 }
 0x43f   :  { %6855 = vmatmul.msk.bf16.gmra.mxu2 %vm3546_vm8, %v3503_v55 }
 0x441   :  { %v3660_v26 = vpop.f32.mrf.mxu2 }
 0x442   :  { %v4502_v61 = vpop.f32.mrf.mxu0  ;;  %v11015_v19 = vadd.f32 %v11012_v52, %v3660_v26  ;;  %v3132_v58 = vpop.xlane.xlu1 %3131  ;;  %v1834_v26 = vmul.f32 8.0, %v13438_v48 }
 0x443   :  { %v3240_v4 = vsub.f32 %v3132_v58, %v13368_v7  ;;  %v3129_v32 = vpop.xlane.xlu0 %3128  ;;  %v11023_v12 = vadd.f32 %v10998_v54, %v4502_v61  ;;  %v13439_v58 = vld [vmem:[#allocation96_spill] sm:$0xff] }
 0x444   :  { %v3844_v0 = vand.u32 2147483647, %v11015_v19  ;;  %v3239_v24 = vsub.f32 %v3129_v32, %v13368_v7  ;;  %5825 = vrot.lane.b32.xlu1 %v11007_v40, %s7743_s26 }
 0x445   :  { %v3296_v16 = vmul.f32 -19.22, %v3240_v4 }
 0x446   :  { %v3900_v43 = vsub.f32 0.0, %v3844_v0  ;;  %v3295_v62 = vmul.f32 -19.22, %v3239_v24 }
 0x447   :  { %v3352_v35 = vmul.f32 %v3296_v16, %v3240_v4  ;;  %v3135_v31 = vpop.xlane.xlu2 %3134  ;;  %v1890_v4 = vadd.f32 %v1834_v26, %v13439_v58  ;;  %v3788_v26 = vmax.f32 %v11015_v19, 0.0 }
 0x448   :  { %v3964_v27 = vmul.f32 1.442695, %v3900_v43  ;;  %v3351_v21 = vmul.f32 %v3295_v62, %v3239_v24  ;;  %v3241_v41 = vsub.f32 %v3135_v31, %v13368_v7  ;;  %v13442_v31 = vld [vmem:[#allocation100_spill] sm:$0xff] }
 0x449   :  { %v3662_v5 = vpop.f32.mrf.mxu2  ;;  %v3437_v1 = vmul.f32 1.442695, %v3352_v35  ;;  %vm1946_vm12 = vcmp.eq.f32.partialorder %v7906_v23, %v1890_v4 }
 0x44a   :  { %7387 = vpow2.f32 %v3964_v27  ;;  %v4504_v37 = vpop.f32.mrf.mxu0  ;;  %v11026_v38 = vadd.f32 %v11012_v52, %v3662_v5  ;;  %5833 = vrot.lane.b32.xlu0 %v11023_v12, %s7743_s26  ;;  %v3435_v33 = vmul.f32 1.442695, %v3351_v21  ;;  %v3297_v32 = vmul.f32 -19.22, %v3241_v41  ;;  %v13441_v21 = vld [vmem:[#allocation38_spill] sm:$0xff] }
 0x44b   :  { %v11031_v51 = vadd.f32 %v10998_v54, %v4504_v37  ;;  %v3138_v2 = vpop.xlane.xlu0 %3137  ;;  %7389 = vpow2.f32 %v3437_v1  ;;  %v11058_v43 = vsel %vm1946_vm12, 1.0, %v13121_v25 }
 0x44c   :  { %v3845_v56 = vand.u32 2147483647, %v11026_v38  ;;  %v3242_v53 = vsub.f32 %v3138_v2, %v13368_v7  ;;  %13440 = vst [vmem:[#allocation125_spill] sm:$0xff] %v11058_v43  ;;  %6991 = vmatmul.msk.f32.gmra.mxu1 %vm4393_vm10, %v11058_v43  ;;  %v3353_v35 = vmul.f32 %v3297_v32, %v3241_v41  ;;  %v3789_v32 = vmax.f32 %v11026_v38, 0.0 }
 0x44d   :  { %5835 = vrot.lane.b32.xlu2 %v11031_v51, %s7743_s26 }
 0x44e   :  { %v3901_v60 = vsub.f32 0.0, %v3845_v56  ;;  %v3298_v16 = vmul.f32 -19.22, %v3242_v53  ;;  %v1835_v56 = vmul.f32 8.0, %v13441_v21  ;;  %v3439_v2 = vmul.f32 1.442695, %v3353_v35 }
 0x44f   :  { %6856 = vmatmul.msk.bf16.gmra.mxu2 %vm3546_vm8, %v3504_v57  ;;  %v3144_v58 = vpop.xlane.xlu2 %3143  ;;  %v13445_v35 = vld [vmem:[#allocation105_spill] sm:$0xff] }
 0x450   :  { %v7388_v20 = vpop.eup %7387  ;;  %v3966_v28 = vmul.f32 1.442695, %v3901_v60  ;;  %v11072_v60 = vadd.f32 %v10998_v54, %v10961_v14  ;;  %v3354_v9 = vmul.f32 %v3298_v16, %v3242_v53  ;;  %v13444_v16 = vld [vmem:[#allocation42_spill] sm:$0xff] }
 0x451   :  { %v4068_v34 = vadd.f32 1.0, %v7388_v20  ;;  %v3665_v55 = vpop.f32.mrf.mxu2  ;;  %v7390_v24 = vpop.eup %7389 }
 0x452   :  { %7391 = vpow2.f32 %v3966_v28  ;;  %v11047_v61 = vadd.f32 %v11012_v52, %v3665_v55  ;;  %5827 = vrot.lane.b32.xlu0 %v11039_v44, %s7743_s26  ;;  %v3441_v41 = vmul.f32 1.442695, %v3354_v9 }
 0x453   :  { %7393 = vpow2.f32 %v3435_v33  ;;  %v1891_v33 = vadd.f32 %v1835_v56, %v13442_v31 }
 0x454   :  { %v3846_v59 = vand.u32 2147483647, %v11047_v61  ;;  %7395 = vlog2.f32 %v4068_v34  ;;  %v3141_v34 = vpop.xlane.xlu1 %3140 }
 0x455   :  { %5829 = vrot.lane.b32.xlu2 %v11042_v63, %s7743_s26  ;;  %vm1947_vm0 = vcmp.eq.f32.partialorder %v7906_v23, %v1891_v33 }
 0x456   :  { %v3902_v0 = vsub.f32 0.0, %v3846_v59  ;;  %v11083_v54 = vsel %vm1947_vm0, 1.0, %v13121_v25  ;;  %v3243_v59 = vsub.f32 %v3141_v34, %v13368_v7 }
 0x457   :  { %13443 = vst [vmem:[#allocation128_spill] sm:$0xff] %v11083_v54  ;;  %6992 = vmatmul.msk.f32.gmra.mxu1 %vm4393_vm10, %v11083_v54 }
 0x458   :  { %v7392_v62 = vpop.eup %7391  ;;  %v3968_v47 = vmul.f32 1.442695, %v3902_v0  ;;  %v3299_v38 = vmul.f32 -19.22, %v3243_v59 }
 0x459   :  { %v7394_v27 = vpop.eup %7393  ;;  %v4069_v5 = vadd.f32 1.0, %v7392_v62  ;;  %v3667_v37 = vpop.f32.mrf.mxu2  ;;  %v1836_v62 = vmul.f32 8.0, %v13444_v16 }
 0x45a   :  { %7397 = vpow2.f32 %v3968_v47  ;;  %v11068_v57 = vadd.f32 %v11012_v52, %v3667_v37  ;;  %v7396_v1 = vpop.eup %7395  ;;  %5821 = vrot.lane.b32.xlu0 %v11064_v22, %s7743_s26  ;;  %v3505_v28 = vpack.c.bf16 %v7390_v24, %v7394_v27 }
 0x45b   :  { %7399 = vlog2.f32 %v4069_v5  ;;  %v4133_v55 = vmul.f32 0.6931472, %v7396_v1  ;;  %v3244_v5 = vsub.f32 %v3144_v58, %v13368_v7  ;;  %v1892_v37 = vadd.f32 %v1836_v62, %v13445_v35 }
 0x45c   :  { %v3847_v20 = vand.u32 2147483647, %v11068_v57  ;;  %7401 = vpow2.f32 %v3439_v2 }
 0x45d   :  { %5823 = vrot.lane.b32.xlu2 %v11072_v60, %s7743_s26  ;;  %v4236_v47 = vadd.f32 %v4133_v55, %v3788_v26  ;;  %vm1948_vm14 = vcmp.eq.f32.partialorder %v7906_v23, %v1892_v37  ;;  %v3355_v55 = vmul.f32 %v3299_v38, %v3243_v59  ;;  %v3150_v37 = vpop.xlane.xlu1 %3149 }
 0x45e   :  { %v3903_v14 = vsub.f32 0.0, %v3847_v20  ;;  %v3300_v20 = vmul.f32 -19.22, %v3244_v5 }
 0x45f   :  { %6857 = vmatmul.msk.bf16.gmra.mxu2 %vm3546_vm8, %v3505_v28  ;;  %v6879_v1 = vadd.f32 -0.6931472, %v4236_v47  ;;  %v11099_v28 = vsel %vm1948_vm14, 1.0, %v13121_v25  ;;  %v3443_v16 = vmul.f32 1.442695, %v3355_v55  ;;  %v13450_v55 = vld [vmem:[#allocation45_spill] sm:$0xff] }
 0x460   :  { %v7398_v48 = vpop.eup %7397  ;;  %v3970_v53 = vmul.f32 1.442695, %v3903_v14  ;;  %13446 = vst [vmem:[#allocation22_spill] sm:$0xff] %v11099_v28  ;;  %6993 = vmatmul.msk.f32.gmra.mxu1 %vm4393_vm10, %v11099_v28 }
 0x461   :  { %v7400_v4 = vpop.eup %7399  ;;  %v4070_v0 = vadd.f32 1.0, %v7398_v48  ;;  %v3670_v24 = vpop.f32.mrf.mxu2 }
 0x462   :  { %v4135_v27 = vmul.f32 0.6931472, %v7400_v4  ;;  %7403 = vpow2.f32 %v3970_v53  ;;  %v11092_v19 = vadd.f32 %v11012_v52, %v3670_v24  ;;  %v7402_v33 = vpop.eup %7401  ;;  %v13447_v53 = vld [vmem:[#allocation43_spill] sm:$0xff]  ;;  %v13448_v24 = vld [vmem:[#allocation108_spill] sm:$0xff] }
 0x463   :  { %7405 = vpow2.f32 %v3441_v41  ;;  %v1837_v58 = vmul.f32 8.0, %v13447_v53  ;;  %v13451_v53 = vld [vmem:[#allocation52_spill] sm:$0xff] }
 0x464   :  { %v4237_v21 = vadd.f32 %v4135_v27, %v3789_v32  ;;  %v3848_v56 = vand.u32 2147483647, %v11092_v19  ;;  %7407 = vlog2.f32 %v4070_v0  ;;  %v3356_v0 = vmul.f32 %v3300_v20, %v3244_v5 }
 0x465   :  { %v1893_v59 = vadd.f32 %v1837_v58, %v13448_v24  ;;  %v3790_v5 = vmax.f32 %v11047_v61, 0.0 }
 0x466   :  { %v3904_v9 = vsub.f32 0.0, %v3848_v56  ;;  %v6880_v31 = vadd.f32 -0.6931472, %v4237_v21  ;;  %v3445_v21 = vmul.f32 1.442695, %v3356_v0 }
 0x467   :  { %vm1949_vm15 = vcmp.eq.f32.partialorder %v7906_v23, %v1893_v59 }
 0x468   :  { %v7404_v2 = vpop.eup %7403  ;;  %v3972_v34 = vmul.f32 1.442695, %v3904_v9  ;;  %v4344_v14 = vpack.c.bf16 %v6880_v31, %v6879_v1  ;;  %v11113_v56 = vsel %vm1949_vm15, 1.0, %v13121_v25  ;;  %v3147_v9 = vpop.xlane.xlu0 %3146 }
 0x469   :  { %v7406_v41 = vpop.eup %7405  ;;  %v4071_v48 = vadd.f32 1.0, %v7404_v2  ;;  %v3672_v26 = vpop.f32.mrf.mxu2  ;;  %13449 = vst [vmem:[#allocation85_spill] sm:$0xff] %v11113_v56  ;;  %6994 = vmatmul.msk.f32.gmra.mxu1 %vm4393_vm10, %v11113_v56 }
 0x46a   :  { %7409 = vpow2.f32 %v3972_v34  ;;  %v11105_v4 = vadd.f32 %v11012_v52, %v3672_v26  ;;  %6947 = vmatmul.msk.bf16.gmra.mxu0 %vm4393_vm10, %v4344_v14  ;;  %v7408_v32 = vpop.eup %7407  ;;  %v3506_v47 = vpack.c.bf16 %v7406_v41, %v7402_v33  ;;  %v3791_v33 = vmax.f32 %v11068_v57, 0.0 }
 0x46b   :  { %7411 = vlog2.f32 %v4071_v48  ;;  %v4137_v27 = vmul.f32 0.6931472, %v7408_v32  ;;  %v3246_v34 = vsub.f32 %v3150_v37, %v13368_v7  ;;  %v1838_v14 = vmul.f32 8.0, %v13450_v55 }
 0x46c   :  { %v3849_v62 = vand.u32 2147483647, %v11105_v4  ;;  %7413 = vpow2.f32 %v3443_v16  ;;  %v3245_v26 = vsub.f32 %v3147_v9, %v13368_v7 }
 0x46d   :  { %v4238_v41 = vadd.f32 %v4137_v27, %v3790_v5  ;;  %v1894_v58 = vadd.f32 %v1838_v14, %v13451_v53  ;;  %v3302_v0 = vmul.f32 -19.22, %v3246_v34  ;;  %v13454_v14 = vld [vmem:[#allocation109_spill] sm:$0xff] }
 0x46e   :  { %v3905_v35 = vsub.f32 0.0, %v3849_v62 }
 0x46f   :  { %6858 = vmatmul.msk.bf16.gmra.mxu2 %vm3546_vm8, %v3506_v47  ;;  %vm1950_vm1 = vcmp.eq.f32.partialorder %v7906_v23, %v1894_v58  ;;  %v6881_v59 = vadd.f32 -0.6931472, %v4238_v41  ;;  %v3301_v47 = vmul.f32 -19.22, %v3245_v26 }
 0x470   :  { %v7410_v38 = vpop.eup %7409  ;;  %v3974_v1 = vmul.f32 1.442695, %v3905_v35  ;;  %v11129_v27 = vsel %vm1950_vm1, 1.0, %v13121_v25 }
 0x471   :  { %v7412_v31 = vpop.eup %7411  ;;  %v4072_v20 = vadd.f32 1.0, %v7410_v38  ;;  %v3675_v2 = vpop.f32.mrf.mxu2  ;;  %13452 = vst [vmem:[#allocation107_spill] sm:$0xff] %v11129_v27  ;;  %6995 = vmatmul.msk.f32.gmra.mxu1 %vm4393_vm10, %v11129_v27  ;;  %v3357_v55 = vmul.f32 %v3301_v47, %v3245_v26  ;;  %v3792_v26 = vmax.f32 %v11092_v19, 0.0 }
 0x472   :  { %v4139_v48 = vmul.f32 0.6931472, %v7412_v31  ;;  %7415 = vpow2.f32 %v3974_v1  ;;  %v11122_v61 = vadd.f32 %v11012_v52, %v3675_v2  ;;  %v7414_v24 = vpop.eup %7413  ;;  %v3358_v1 = vmul.f32 %v3302_v0, %v3246_v34  ;;  %v13453_v31 = vld [vmem:[#allocation49_spill] sm:$0xff] }
 0x473   :  { %7417 = vpow2.f32 %v3445_v21  ;;  %v3447_v0 = vmul.f32 1.442695, %v3357_v55 }
 0x474   :  { %v4239_v32 = vadd.f32 %v4139_v48, %v3791_v33  ;;  %v3850_v57 = vand.u32 2147483647, %v11122_v61  ;;  %7419 = vlog2.f32 %v4072_v20  ;;  %v1839_v33 = vmul.f32 8.0, %v13453_v31  ;;  %v3156_v31 = vpop.xlane.xlu0 %3155 }
 0x475   :  { %v3449_v58 = vmul.f32 1.442695, %v3358_v1 }
 0x476   :  { %v3906_v16 = vsub.f32 0.0, %v3850_v57  ;;  %v6882_v62 = vadd.f32 -0.6931472, %v4239_v32  ;;  %v1895_v41 = vadd.f32 %v1839_v33, %v13454_v14  ;;  %v3153_v57 = vpop.xlane.xlu2 %3152  ;;  %v3248_v33 = vsub.f32 %v3156_v31, %v13368_v7 }
 0x478   :  { %v7416_v35 = vpop.eup %7415  ;;  %v3976_v37 = vmul.f32 1.442695, %v3906_v16  ;;  %v4345_v21 = vpack.c.bf16 %v6882_v62, %v6881_v59  ;;  %vm1951_vm3 = vcmp.eq.f32.partialorder %v7906_v23, %v1895_v41  ;;  %v3247_v62 = vsub.f32 %v3153_v57, %v13368_v7 }
 0x479   :  { %v7418_v38 = vpop.eup %7417  ;;  %v4073_v5 = vadd.f32 1.0, %v7416_v35  ;;  %v3677_v9 = vpop.f32.mrf.mxu2  ;;  %v11143_v59 = vsel %vm1951_vm3, 1.0, %v13121_v25  ;;  %v3793_v35 = vmax.f32 %v11105_v4, 0.0 }
 0x47a   :  { %7421 = vpow2.f32 %v3976_v37  ;;  %v11135_v20 = vadd.f32 %v11012_v52, %v3677_v9  ;;  %6948 = vmatmul.msk.bf16.gmra.mxu0 %vm4393_vm10, %v4345_v21  ;;  %v7420_v2 = vpop.eup %7419  ;;  %v3507_v53 = vpack.c.bf16 %v7418_v38, %v7414_v24  ;;  %13455 = vst [vmem:[#allocation126_spill] sm:$0xff] %v11143_v59  ;;  %6996 = vmatmul.msk.f32.gmra.mxu1 %vm4393_vm10, %v11143_v59  ;;  %v13456_v38 = vld [vmem:[#allocation57_spill] sm:$0xff]  ;;  %v3303_v41 = vmul.f32 -19.22, %v3247_v62 }
 0x47b   :  { %7423 = vlog2.f32 %v4073_v5  ;;  %v4141_v34 = vmul.f32 0.6931472, %v7420_v2  ;;  %v1840_v5 = vmul.f32 8.0, %v13456_v38  ;;  %v13457_v2 = vld [vmem:[#allocation114_spill] sm:$0xff]  ;;  %v13459_v38 = vld [vmem:[#allocation69_spill] sm:$0xff] }
 0x47c   :  { %v3851_v48 = vand.u32 2147483647, %v11135_v20  ;;  %7425 = vpow2.f32 %v3449_v58 }
 0x47d   :  { %v4240_v1 = vadd.f32 %v4141_v34, %v3792_v26  ;;  %v1896_v55 = vadd.f32 %v1840_v5, %v13457_v2  ;;  %v1841_v5 = vmul.f32 8.0, %v13459_v38  ;;  %v13460_v2 = vld [vmem:[#allocation82_spill] sm:$0xff] }
 0x47e   :  { %v3907_v32 = vsub.f32 0.0, %v3851_v48 }
 0x47f   :  { %6859 = vmatmul.msk.bf16.gmra.mxu2 %vm3546_vm8, %v3507_v53  ;;  %vm1952_vm2 = vcmp.eq.f32.partialorder %v7906_v23, %v1896_v55  ;;  %v6883_v48 = vadd.f32 -0.6931472, %v4240_v1  ;;  %v1897_v55 = vadd.f32 %v1841_v5, %v13460_v2 }
 0x480   :  { %v7422_v16 = vpop.eup %7421  ;;  %v3978_v47 = vmul.f32 1.442695, %v3907_v32  ;;  %v3304_v32 = vmul.f32 -19.22, %v3248_v33  ;;  %v11159_v57 = vsel %vm1952_vm2, 1.0, %v13121_v25 }
 0x481   :  { %v7424_v24 = vpop.eup %7423  ;;  %v4074_v37 = vadd.f32 1.0, %v7422_v16  ;;  %13458 = vst [vmem:[#allocation15_spill] sm:$0xff] %v11159_v57  ;;  %vm1953_vm4 = vcmp.eq.f32.partialorder %v7906_v23, %v1897_v55 }
 0x482   :  { %v3680_v21 = vpop.f32.mrf.mxu2  ;;  %v4143_v9 = vmul.f32 0.6931472, %v7424_v24  ;;  %7427 = vpow2.f32 %v3978_v47  ;;  %v7426_v34 = vpop.eup %7425  ;;  %6997 = vmatmul.msk.f32.gmra.mxu1 %vm4393_vm10, %v11159_v57  ;;  %v3360_v31 = vmul.f32 %v3304_v32, %v3248_v33  ;;  %v11177_v32 = vsel %vm1953_vm4, 1.0, %v13121_v25 }
 0x483   :  { %v11152_v19 = vadd.f32 %v11012_v52, %v3680_v21  ;;  %7429 = vpow2.f32 %v3447_v0  ;;  %v11163_v24 = vpop.f32.mrf.mxu1  ;;  %13461 = vst [vmem:[#allocation127_spill] sm:$0xff] %v11177_v32 }
 0x484   :  { %v4241_v14 = vadd.f32 %v4143_v9, %v3793_v35  ;;  %7431 = vlog2.f32 %v4074_v37  ;;  %v3359_v35 = vmul.f32 %v3303_v41, %v3247_v62 }
 0x485   :  { %v3852_v4 = vand.u32 2147483647, %v11152_v19 }
 0x486   :  { %v6884_v53 = vadd.f32 -0.6931472, %v4241_v14 }
 0x487   :  { %v3908_v58 = vsub.f32 0.0, %v3852_v4 }
 0x488   :  { %v7428_v0 = vpop.eup %7427  ;;  %v4346_v26 = vpack.c.bf16 %v6884_v53, %v6883_v48  ;;  %v3451_v48 = vmul.f32 1.442695, %v3359_v35  ;;  %v3162_v53 = vpop.xlane.xlu2 %3161 }
 0x489   :  { %v3980_v16 = vmul.f32 1.442695, %v3908_v58  ;;  %v7430_v47 = vpop.eup %7429  ;;  %v4075_v37 = vadd.f32 1.0, %v7428_v0  ;;  %v3453_v58 = vmul.f32 1.442695, %v3360_v31 }
 0x48a   :  { %v3682_v21 = vpop.f32.mrf.mxu2  ;;  %6949 = vmatmul.msk.bf16.gmra.mxu0 %vm4393_vm10, %v4346_v26  ;;  %v7432_v9 = vpop.eup %7431  ;;  %v3508_v4 = vpack.c.bf16 %v7426_v34, %v7430_v47  ;;  %v3250_v26 = vsub.f32 %v3162_v53, %v13368_v7  ;;  %v3795_v34 = vmax.f32 %v11135_v20, 0.0  ;;  %6998 = vmatmul.msk.f32.gmra.mxu1 %vm4393_vm10, %v11177_v32  ;;  %v13463_v20 = vld [vmem:[#allocation92_spill] sm:$0xff] }
 0x48b   :  { %7433 = vpow2.f32 %v3980_v16  ;;  %v11167_v1 = vadd.f32 %v11012_v52, %v3682_v21  ;;  %v4145_v62 = vmul.f32 0.6931472, %v7432_v9  ;;  %v3794_v16 = vmax.f32 %v11122_v61, 0.0  ;;  %v13462_v21 = vld [vmem:[#allocation70_spill] sm:$0xff]  ;;  %v3159_v61 = vpop.xlane.xlu1 %3158  ;;  %v11186_v2 = vpop.f32.mrf.mxu1 }
 0x48c   :  { %7435 = vlog2.f32 %v4075_v37  ;;  %v1842_v38 = vmul.f32 8.0, %v13462_v21  ;;  %v3249_v55 = vsub.f32 %v3159_v61, %v13368_v7 }
 0x48d   :  { %v3853_v14 = vand.u32 2147483647, %v11167_v1  ;;  %7437 = vpow2.f32 %v3451_v48  ;;  %v4242_v5 = vadd.f32 %v4145_v62, %v3794_v16 }
 0x48f   :  { %v3909_v41 = vsub.f32 0.0, %v3853_v14  ;;  %6860 = vmatmul.msk.bf16.gmra.mxu2 %vm3546_vm8, %v3508_v4  ;;  %v1898_v14 = vadd.f32 %v1842_v38, %v13463_v20  ;;  %v3306_v4 = vmul.f32 -19.22, %v3250_v26  ;;  %v6885_v62 = vadd.f32 -0.6931472, %v4242_v5 }
 0x491   :  { %v7434_v0 = vpop.eup %7433  ;;  %v3982_v33 = vmul.f32 1.442695, %v3909_v41  ;;  %vm1954_vm5 = vcmp.eq.f32.partialorder %v7906_v23, %v1898_v14 }
 0x492   :  { %v7436_v37 = vpop.eup %7435  ;;  %v4076_v47 = vadd.f32 1.0, %v7434_v0  ;;  %v3685_v35 = vpop.f32.mrf.mxu2 }
 0x493   :  { %v4147_v9 = vmul.f32 0.6931472, %v7436_v37  ;;  %7439 = vpow2.f32 %v3982_v33  ;;  %v11184_v31 = vadd.f32 %v11012_v52, %v3685_v35  ;;  %v7438_v16 = vpop.eup %7437  ;;  %v3305_v33 = vmul.f32 -19.22, %v3249_v55 }
 0x494   :  { %7441 = vpow2.f32 %v3453_v58  ;;  %v11193_v37 = vsel %vm1954_vm5, 1.0, %v13121_v25  ;;  %v3362_v35 = vmul.f32 %v3306_v4, %v3250_v26  ;;  %v13466_v26 = vld [vmem:[#allocation89_spill] sm:$0xff] }
 0x495   :  { %v4243_v48 = vadd.f32 %v4147_v9, %v3795_v34  ;;  %v3854_v41 = vand.u32 2147483647, %v11184_v31  ;;  %7443 = vlog2.f32 %v4076_v47  ;;  %13464 = vst [vmem:[#allocation25_spill] sm:$0xff] %v11193_v37  ;;  %6999 = vmatmul.msk.f32.gmra.mxu1 %vm4393_vm10, %v11193_v37  ;;  %v13465_v47 = vld [vmem:[#allocation75_spill] sm:$0xff] }
 0x496   :  { %v1843_v9 = vmul.f32 8.0, %v13465_v47 }
 0x497   :  { %v6886_v53 = vadd.f32 -0.6931472, %v4243_v48  ;;  %v3910_v0 = vsub.f32 0.0, %v3854_v41  ;;  %v3361_v48 = vmul.f32 %v3305_v33, %v3249_v55  ;;  %v3457_v41 = vmul.f32 1.442695, %v3362_v35  ;;  %v3165_v35 = vpop.xlane.xlu0 %3164 }
 0x498   :  { %v1899_v4 = vadd.f32 %v1843_v9, %v13466_v26  ;;  %v3796_v33 = vmax.f32 %v11152_v19, 0.0 }
 0x499   :  { %v7440_v58 = vpop.eup %7439  ;;  %v3984_v21 = vmul.f32 1.442695, %v3910_v0  ;;  %v4347_v61 = vpack.c.bf16 %v6886_v53, %v6885_v62  ;;  %v11204_v0 = vpop.f32.mrf.mxu1 }
 0x49a   :  { %v7442_v38 = vpop.eup %7441  ;;  %v4077_v20 = vadd.f32 1.0, %v7440_v58  ;;  %v3687_v34 = vpop.f32.mrf.mxu2  ;;  %vm1955_vm6 = vcmp.eq.f32.partialorder %v7906_v23, %v1899_v4 }
 0x49b   :  { %7445 = vpow2.f32 %v3984_v21  ;;  %v11199_v5 = vadd.f32 %v11012_v52, %v3687_v34  ;;  %6950 = vmatmul.msk.bf16.gmra.mxu0 %vm4393_vm10, %v4347_v61  ;;  %v7444_v14 = vpop.eup %7443  ;;  %v3509_v53 = vpack.c.bf16 %v7442_v38, %v7438_v16  ;;  %v3455_v34 = vmul.f32 1.442695, %v3361_v48  ;;  %v13468_v48 = vld [vmem:[#allocation30_spill] sm:$0xff] }
 0x49c   :  { %7447 = vlog2.f32 %v4077_v20  ;;  %v4149_v58 = vmul.f32 0.6931472, %v7444_v14  ;;  %v11209_v61 = vsel %vm1955_vm6, 1.0, %v13121_v25  ;;  %v3251_v16 = vsub.f32 %v3165_v35, %v13368_v7 }
 0x49d   :  { %v3855_v62 = vand.u32 2147483647, %v11199_v5  ;;  %13467 = vst [vmem:[#allocation106_spill] sm:$0xff] %v11209_v61  ;;  %7449 = vpow2.f32 %v3457_v41  ;;  %v3797_v38 = vmax.f32 %v11167_v1, 0.0  ;;  %7000 = vmatmul.msk.f32.gmra.mxu1 %vm4393_vm10, %v11209_v61  ;;  %v1844_v26 = vmul.f32 8.0, %v13468_v48 }
 0x49e   :  { %v4244_v4 = vadd.f32 %v4149_v58, %v3796_v33  ;;  %v3307_v37 = vmul.f32 -19.22, %v3251_v16 }
 0x49f   :  { %v3911_v21 = vsub.f32 0.0, %v3855_v62  ;;  %6861 = vmatmul.msk.bf16.gmra.mxu2 %vm3546_vm8, %v3509_v53  ;;  %v3168_v53 = vpop.xlane.xlu1 %3167 }
 0x4a0   :  { %v3252_v41 = vsub.f32 %v3168_v53, %v13368_v7  ;;  %v6887_v58 = vadd.f32 -0.6931472, %v4244_v4 }
 0x4a1   :  { %v7446_v55 = vpop.eup %7445  ;;  %v3986_v20 = vmul.f32 1.442695, %v3911_v21  ;;  %v13469_v21 = vld [vmem:[#allocation76_spill] sm:$0xff] }
 0x4a2   :  { %v7448_v47 = vpop.eup %7447  ;;  %v4078_v9 = vadd.f32 1.0, %v7446_v55  ;;  %v3690_v14 = vpop.f32.mrf.mxu2  ;;  %v1900_v35 = vadd.f32 %v1844_v26, %v13469_v21 }
 0x4a3   :  { %v4151_v62 = vmul.f32 0.6931472, %v7448_v47  ;;  %7451 = vpow2.f32 %v3986_v20  ;;  %v11218_v19 = vadd.f32 %v11012_v52, %v3690_v14  ;;  %v7450_v48 = vpop.eup %7449  ;;  %v11224_v20 = vpop.f32.mrf.mxu1  ;;  %v3308_v14 = vmul.f32 -19.22, %v3252_v41 }
 0x4a4   :  { %7453 = vpow2.f32 %v3455_v34  ;;  %vm1956_vm7 = vcmp.eq.f32.partialorder %v7906_v23, %v1900_v35 }
 0x4a5   :  { %v4245_v1 = vadd.f32 %v4151_v62, %v3797_v38  ;;  %v3856_v55 = vand.u32 2147483647, %v11218_v19  ;;  %7455 = vlog2.f32 %v4078_v9  ;;  %v11227_v34 = vsel %vm1956_vm7, 1.0, %v13121_v25  ;;  %v13471_v9 = vld [vmem:[#allocation31_spill] sm:$0xff] }
 0x4a6   :  { %13470 = vst [vmem:[#allocation95_spill] sm:$0xff] %v11227_v34  ;;  %v3363_v62 = vmul.f32 %v3307_v37, %v3251_v16  ;;  %7001 = vmatmul.msk.f32.gmra.mxu1 %vm4393_vm10, %v11227_v34  ;;  %v1845_v4 = vmul.f32 8.0, %v13471_v9 }
 0x4a7   :  { %v6888_v33 = vadd.f32 -0.6931472, %v4245_v1  ;;  %v3912_v47 = vsub.f32 0.0, %v3856_v55  ;;  %v3364_v55 = vmul.f32 %v3308_v14, %v3252_v41 }
 0x4a9   :  { %v7452_v53 = vpop.eup %7451  ;;  %v3988_v61 = vmul.f32 1.442695, %v3912_v47  ;;  %v4348_v26 = vpack.c.bf16 %v6888_v33, %v6887_v58  ;;  %v13472_v47 = vld [vmem:[#allocation84_spill] sm:$0xff]  ;;  %v3459_v33 = vmul.f32 1.442695, %v3363_v62  ;;  %v3799_v62 = vmax.f32 %v11199_v5, 0.0 }
 0x4aa   :  { %v7454_v38 = vpop.eup %7453  ;;  %v4079_v21 = vadd.f32 1.0, %v7452_v53  ;;  %v3692_v32 = vpop.f32.mrf.mxu2  ;;  %v1901_v58 = vadd.f32 %v1845_v4, %v13472_v47  ;;  %v13474_v47 = vld [vmem:[#allocation32_spill] sm:$0xff] }
 0x4ab   :  { %7457 = vpow2.f32 %v3988_v61  ;;  %v11233_v35 = vadd.f32 %v11012_v52, %v3692_v32  ;;  %6951 = vmatmul.msk.bf16.gmra.mxu0 %vm4393_vm10, %v4348_v26  ;;  %v7456_v1 = vpop.eup %7455  ;;  %v3510_v16 = vpack.c.bf16 %v7450_v48, %v7454_v38  ;;  %v3171_v61 = vpop.xlane.xlu2 %3170  ;;  %v3461_v26 = vmul.f32 1.442695, %v3364_v55 }
 0x4ac   :  { %7459 = vlog2.f32 %v4079_v21  ;;  %vm1957_vm9 = vcmp.eq.f32.partialorder %v7906_v23, %v1901_v58  ;;  %v4153_v53 = vmul.f32 0.6931472, %v7456_v1  ;;  %v11243_v9 = vpop.f32.mrf.mxu1  ;;  %v3253_v14 = vsub.f32 %v3171_v61, %v13368_v7  ;;  %v3174_v55 = vpop.xlane.xlu0 %3173 }
 0x4ad   :  { %v3857_v37 = vand.u32 2147483647, %v11233_v35  ;;  %v11241_v32 = vsel %vm1957_vm9, 1.0, %v13121_v25  ;;  %v3798_v21 = vmax.f32 %v11184_v31, 0.0  ;;  %7461 = vpow2.f32 %v3459_v33 }
 0x4ae   :  { %13473 = vst [vmem:[#allocation131_spill] sm:$0xff] %v11241_v32  ;;  %7002 = vmatmul.msk.f32.gmra.mxu1 %vm4393_vm10, %v11241_v32  ;;  %v1846_v58 = vmul.f32 8.0, %v13474_v47  ;;  %v3254_v31 = vsub.f32 %v3174_v55, %v13368_v7  ;;  %v3309_v57 = vmul.f32 -19.22, %v3253_v14 }
 0x4af   :  { %v3913_v34 = vsub.f32 0.0, %v3857_v37  ;;  %6862 = vmatmul.msk.bf16.gmra.mxu2 %vm3546_vm8, %v3510_v16  ;;  %v4246_v37 = vadd.f32 %v4153_v53, %v3798_v21 }
 0x4b1   :  { %v7458_v41 = vpop.eup %7457  ;;  %v3990_v48 = vmul.f32 1.442695, %v3913_v34  ;;  %v13475_v34 = vld [vmem:[#allocation86_spill] sm:$0xff]  ;;  %v6889_v47 = vadd.f32 -0.6931472, %v4246_v37 }
 0x4b2   :  { %v7460_v38 = vpop.eup %7459  ;;  %v4080_v4 = vadd.f32 1.0, %v7458_v41  ;;  %v3695_v1 = vpop.f32.mrf.mxu2  ;;  %v1902_v33 = vadd.f32 %v1846_v58, %v13475_v34  ;;  %v3365_v58 = vmul.f32 %v3309_v57, %v3253_v14 }
 0x4b3   :  { %v4155_v16 = vmul.f32 0.6931472, %v7460_v38  ;;  %7463 = vpow2.f32 %v3990_v48  ;;  %v11252_v61 = vadd.f32 %v11012_v52, %v3695_v1  ;;  %v7462_v48 = vpop.eup %7461  ;;  %v3310_v38 = vmul.f32 -19.22, %v3254_v31 }
 0x4b4   :  { %7465 = vpow2.f32 %v3461_v26  ;;  %vm1958_vm11 = vcmp.eq.f32.partialorder %v7906_v23, %v1902_v33 }
 0x4b5   :  { %v4247_v5 = vadd.f32 %v4155_v16, %v3799_v62  ;;  %v3858_v41 = vand.u32 2147483647, %v11252_v61  ;;  %7467 = vlog2.f32 %v4080_v4  ;;  %v11259_v21 = vsel %vm1958_vm11, 1.0, %v13121_v25  ;;  %v11261_v62 = vpop.f32.mrf.mxu1  ;;  %v13477_v4 = vld [vmem:[#allocation33_spill] sm:$0xff] }
 0x4b6   :  { %13476 = vst [vmem:[#allocation130_spill] sm:$0xff] %v11259_v21  ;;  %7003 = vmatmul.msk.f32.gmra.mxu1 %vm4393_vm10, %v11259_v21  ;;  %v1847_v37 = vmul.f32 8.0, %v13477_v4 }
 0x4b7   :  { %v6890_v32 = vadd.f32 -0.6931472, %v4247_v5  ;;  %v3914_v53 = vsub.f32 0.0, %v3858_v41  ;;  %v3366_v41 = vmul.f32 %v3310_v38, %v3254_v31  ;;  %v3800_v38 = vmax.f32 %v11218_v19, 0.0 }
 0x4b9   :  { %v7464_v1 = vpop.eup %7463  ;;  %v3992_v55 = vmul.f32 1.442695, %v3914_v53  ;;  %v4349_v26 = vpack.c.bf16 %v6890_v32, %v6889_v47  ;;  %v13478_v32 = vld [vmem:[#allocation90_spill] sm:$0xff]  ;;  %v3463_v53 = vmul.f32 1.442695, %v3365_v58 }
 0x4ba   :  { %v7466_v59 = vpop.eup %7465  ;;  %v4081_v16 = vadd.f32 1.0, %v7464_v1  ;;  %v3697_v34 = vpop.f32.mrf.mxu2  ;;  %v1903_v57 = vadd.f32 %v1847_v37, %v13478_v32 }
 0x4bb   :  { %7469 = vpow2.f32 %v3992_v55  ;;  %v11267_v33 = vadd.f32 %v11012_v52, %v3697_v34  ;;  %6952 = vmatmul.msk.bf16.gmra.mxu0 %vm4393_vm10, %v4349_v26  ;;  %v7468_v5 = vpop.eup %7467  ;;  %v3511_v47 = vpack.c.bf16 %v7466_v59, %v7462_v48  ;;  %v3180_v34 = vpop.xlane.xlu2 %3179  ;;  %v3465_v26 = vmul.f32 1.442695, %v3366_v41 }
 0x4bc   :  { %7471 = vlog2.f32 %v4081_v16  ;;  %vm1959_vm13 = vcmp.eq.f32.partialorder %v7906_v23, %v1903_v57  ;;  %v4157_v1 = vmul.f32 0.6931472, %v7468_v5  ;;  %v3256_v31 = vsub.f32 %v3180_v34, %v13368_v7  ;;  %v13480_v5 = vld [vmem:[#allocation34_spill] sm:$0xff]  ;;  %v3177_v57 = vpop.xlane.xlu1 %3176 }
 0x4bd   :  { %v3859_v14 = vand.u32 2147483647, %v11267_v33  ;;  %v11275_v55 = vsel %vm1959_vm13, 1.0, %v13121_v25  ;;  %7473 = vpow2.f32 %v3463_v53  ;;  %v3801_v59 = vmax.f32 %v11233_v35, 0.0  ;;  %v13481_v35 = vld [vmem:[#allocation99_spill] sm:$0xff] }
 0x4be   :  { %13479 = vst [vmem:[#allocation132_spill] sm:$0xff] %v11275_v55  ;;  %7004 = vmatmul.msk.f32.gmra.mxu1 %vm4393_vm10, %v11275_v55  ;;  %v1848_v32 = vmul.f32 8.0, %v13480_v5  ;;  %v3255_v19 = vsub.f32 %v3177_v57, %v13368_v7  ;;  %v3312_v34 = vmul.f32 -19.22, %v3256_v31 }
 0x4bf   :  { %v3915_v21 = vsub.f32 0.0, %v3859_v14  ;;  %6863 = vmatmul.msk.bf16.gmra.mxu2 %vm3546_vm8, %v3511_v47  ;;  %v4248_v14 = vadd.f32 %v4157_v1, %v3800_v38 }
 0x4c0   :  { %v1904_v53 = vadd.f32 %v1848_v32, %v13481_v35  ;;  %v3368_v57 = vmul.f32 %v3312_v34, %v3256_v31  ;;  %v13484_v31 = vld [vmem:[#allocation50_spill] sm:$0xff] }
 0x4c1   :  { %v7470_v4 = vpop.eup %7469  ;;  %v3994_v16 = vmul.f32 1.442695, %v3915_v21  ;;  %v11287_v21 = vpop.f32.mrf.mxu1  ;;  %v6891_v1 = vadd.f32 -0.6931472, %v4248_v14 }
 0x4c2   :  { %v7472_v37 = vpop.eup %7471  ;;  %v4082_v48 = vadd.f32 1.0, %v7470_v4  ;;  %v3700_v58 = vpop.f32.mrf.mxu2  ;;  %vm1960_vm12 = vcmp.eq.f32.partialorder %v7906_v23, %v1904_v53 }
 0x4c3   :  { %v4159_v41 = vmul.f32 0.6931472, %v7472_v37  ;;  %7475 = vpow2.f32 %v3994_v16  ;;  %v11284_v47 = vadd.f32 %v11012_v52, %v3700_v58  ;;  %v11293_v37 = vsel %vm1960_vm12, 1.0, %v13121_v25 }
 0x4c4   :  { %7477 = vpow2.f32 %v3465_v26  ;;  %13482 = vst [vmem:[#allocation134_spill] sm:$0xff] %v11293_v37  ;;  %v7474_v26 = vpop.eup %7473  ;;  %v3311_v58 = vmul.f32 -19.22, %v3255_v19 }
 0x4c5   :  { %v4249_v4 = vadd.f32 %v4159_v41, %v3801_v59  ;;  %v3860_v55 = vand.u32 2147483647, %v11284_v47  ;;  %7479 = vlog2.f32 %v4082_v48  ;;  %v13483_v48 = vld [vmem:[#allocation35_spill] sm:$0xff] }
 0x4c6   :  { %7005 = vmatmul.msk.f32.gmra.mxu1 %vm4393_vm10, %v11293_v37  ;;  %v1849_v41 = vmul.f32 8.0, %v13483_v48  ;;  %v3367_v53 = vmul.f32 %v3311_v58, %v3255_v19  ;;  %v3183_v58 = vpop.xlane.xlu0 %3182 }
 0x4c7   :  { %v6892_v38 = vadd.f32 -0.6931472, %v4249_v4  ;;  %v3916_v16 = vsub.f32 0.0, %v3860_v55  ;;  %v3469_v4 = vmul.f32 1.442695, %v3368_v57  ;;  %v3802_v57 = vmax.f32 %v11252_v61, 0.0 }
 0x4c8   :  { %v1905_v34 = vadd.f32 %v1849_v41, %v13484_v31  ;;  %v13486_v31 = vld [vmem:[#allocation36_spill] sm:$0xff] }
 0x4c9   :  { %v7476_v5 = vpop.eup %7475  ;;  %v3996_v27 = vmul.f32 1.442695, %v3916_v16  ;;  %v4350_v56 = vpack.c.bf16 %v6892_v38, %v6891_v1  ;;  %v11304_v16 = vpop.f32.mrf.mxu1 }
 0x4ca   :  { %v7478_v32 = vpop.eup %7477  ;;  %v4083_v35 = vadd.f32 1.0, %v7476_v5  ;;  %v3702_v59 = vpop.f32.mrf.mxu2  ;;  %vm1961_vm0 = vcmp.eq.f32.partialorder %v7906_v23, %v1905_v34  ;;  %v1850_v34 = vmul.f32 8.0, %v13486_v31 }
 0x4cb   :  { %7481 = vpow2.f32 %v3996_v27  ;;  %v11299_v55 = vadd.f32 %v11012_v52, %v3702_v59  ;;  %6953 = vmatmul.msk.bf16.gmra.mxu0 %vm4393_vm10, %v4350_v56  ;;  %v7480_v14 = vpop.eup %7479  ;;  %v3512_v38 = vpack.c.bf16 %v7478_v32, %v7474_v26  ;;  %v11309_v59 = vsel %vm1961_vm0, 1.0, %v13121_v25 }
 0x4cc   :  { %7483 = vlog2.f32 %v4083_v35  ;;  %v4161_v5 = vmul.f32 0.6931472, %v7480_v14  ;;  %13485 = vst [vmem:[#allocation16_spill] sm:$0xff] %v11309_v59  ;;  %v3467_v56 = vmul.f32 1.442695, %v3367_v53  ;;  %v3257_v26 = vsub.f32 %v3183_v58, %v13368_v7 }
 0x4cd   :  { %v3861_v1 = vand.u32 2147483647, %v11299_v55  ;;  %7485 = vpow2.f32 %v3469_v4  ;;  %v3803_v32 = vmax.f32 %v11267_v33, 0.0 }
 0x4ce   :  { %7006 = vmatmul.msk.f32.gmra.mxu1 %vm4393_vm10, %v11309_v59  ;;  %v4250_v53 = vadd.f32 %v4161_v5, %v3802_v57  ;;  %v3313_v37 = vmul.f32 -19.22, %v3257_v26 }
 0x4cf   :  { %v3917_v27 = vsub.f32 0.0, %v3861_v1  ;;  %6864 = vmatmul.msk.bf16.gmra.mxu2 %vm3546_vm8, %v3512_v38  ;;  %v3186_v1 = vpop.xlane.xlu1 %3185 }
 0x4d0   :  { %v3258_v61 = vsub.f32 %v3186_v1, %v13368_v7  ;;  %v6893_v57 = vadd.f32 -0.6931472, %v4250_v53  ;;  %v3369_v1 = vmul.f32 %v3313_v37, %v3257_v26  ;;  %v11335_v53 = vld [vmem:[%s12784_s4] ss:$0 sm:$0xff]  ;;  %v13490_v26 = vld [vmem:[#allocation48_spill] sm:$0xff] }
 0x4d1   :  { %v7482_v19 = vpop.eup %7481  ;;  %v3998_v35 = vmul.f32 1.442695, %v3917_v27  ;;  %v13487_v27 = vld [vmem:[#allocation64_spill] sm:$0xff]  ;;  %v11323_v59 = vpop.f32.mrf.mxu1 }
 0x4d2   :  { %v7484_v48 = vpop.eup %7483  ;;  %v4084_v41 = vadd.f32 1.0, %v7482_v19  ;;  %v3705_v14 = vpop.f32.mrf.mxu2  ;;  %v1906_v58 = vadd.f32 %v1850_v34, %v13487_v27 }
 0x4d3   :  { %v4163_v38 = vmul.f32 0.6931472, %v7484_v48  ;;  %7487 = vpow2.f32 %v3998_v35  ;;  %v11318_v4 = vadd.f32 %v11012_v52, %v3705_v14  ;;  %v7486_v5 = vpop.eup %7485 }
 0x4d4   :  { %7489 = vpow2.f32 %v3467_v56  ;;  %vm1962_vm14 = vcmp.eq.f32.partialorder %v7906_v23, %v1906_v58  ;;  %v3314_v56 = vmul.f32 -19.22, %v3258_v61 }
 0x4d5   :  { %v4251_v33 = vadd.f32 %v4163_v38, %v3803_v32  ;;  %v3862_v19 = vand.u32 2147483647, %v11318_v4  ;;  %7491 = vlog2.f32 %v4084_v41  ;;  %v11327_v52 = vsel %vm1962_vm14, 1.0, %v13121_v25  ;;  %v13489_v41 = vld [vmem:[#allocation37_spill] sm:$0xff] }
 0x4d6   :  { %13488 = vst [vmem:[#allocation27_spill] sm:$0xff] %v11327_v52  ;;  %7007 = vmatmul.msk.f32.gmra.mxu1 %vm4393_vm10, %v11327_v52  ;;  %v1851_v58 = vmul.f32 8.0, %v13489_v41  ;;  %v3370_v37 = vmul.f32 %v3314_v56, %v3258_v61 }
 0x4d7   :  { %v6894_v35 = vadd.f32 -0.6931472, %v4251_v33  ;;  %v3918_v48 = vsub.f32 0.0, %v3862_v19 }
 0x4d8   :  { %v3473_v61 = vmul.f32 1.442695, %v3370_v37 }
 0x4d9   :  { %v7488_v14 = vpop.eup %7487  ;;  %v4000_v31 = vmul.f32 1.442695, %v3918_v48  ;;  %v4351_v34 = vpack.c.bf16 %v6894_v35, %v6893_v57  ;;  %v1907_v57 = vadd.f32 %v1851_v58, %v13490_v26  ;;  %v3804_v58 = vmax.f32 %v11284_v47, 0.0 }
 0x4da   :  { %v7490_v32 = vpop.eup %7489  ;;  %v4085_v38 = vadd.f32 1.0, %v7488_v14  ;;  %v3707_v27 = vpop.f32.mrf.mxu2  ;;  %v3471_v14 = vmul.f32 1.442695, %v3369_v1  ;;  %v3805_v1 = vmax.f32 %v11299_v55, 0.0 }
 0x4db   :  { %7493 = vpow2.f32 %v4000_v31  ;;  %v11338_v33 = vadd.f32 %v11335_v53, %v3707_v27  ;;  %6954 = vmatmul.msk.bf16.gmra.mxu0 %vm4393_vm10, %v4351_v34  ;;  %v7492_v19 = vpop.eup %7491  ;;  %v3513_v48 = vpack.c.bf16 %v7486_v5, %v7490_v32  ;;  %v11343_v31 = vpop.f32.mrf.mxu1  ;;  %vm1963_vm15 = vcmp.eq.f32.partialorder %v7906_v23, %v1907_v57  ;;  %v13492_v57 = vld [vmem:[#allocation41_spill] sm:$0xff] }
 0x4dc   :  { %7495 = vlog2.f32 %v4085_v38  ;;  %v4165_v41 = vmul.f32 0.6931472, %v7492_v19  ;;  %v11348_v27 = vsel %vm1963_vm15, 1.0, %v13121_v25  ;;  %v3189_v34 = vpop.xlane.xlu2 %3188 }
 0x4dd   :  { %v3863_v35 = vand.u32 2147483647, %v11338_v33  ;;  %13491 = vst [vmem:[#allocation112_spill] sm:$0xff] %v11348_v27  ;;  %v3259_v38 = vsub.f32 %v3189_v34, %v13368_v7  ;;  %7497 = vpow2.f32 %v3471_v14 }
 0x4de   :  { %7008 = vmatmul.msk.f32.gmra.mxu1 %vm4393_vm10, %v11348_v27  ;;  %v4252_v28 = vadd.f32 %v4165_v41, %v3804_v58 }
 0x4df   :  { %v3919_v52 = vsub.f32 0.0, %v3863_v35  ;;  %6865 = vmatmul.msk.bf16.gmra.mxu2 %vm3546_vm8, %v3513_v48  ;;  %v1852_v35 = vmul.f32 8.0, %v13492_v57  ;;  %v3192_v48 = vpop.xlane.xlu0 %3191  ;;  %v3315_v54 = vmul.f32 -19.22, %v3259_v38 }
 0x4e0   :  { %v3260_v47 = vsub.f32 %v3192_v48, %v13368_v7  ;;  %v6895_v41 = vadd.f32 -0.6931472, %v4252_v28 }
 0x4e1   :  { %v7494_v56 = vpop.eup %7493  ;;  %v4002_v5 = vmul.f32 1.442695, %v3919_v52  ;;  %v13493_v52 = vld [vmem:[#allocation63_spill] sm:$0xff]  ;;  %v3371_v28 = vmul.f32 %v3315_v54, %v3259_v38  ;;  %v13496_v38 = vld [vmem:[#allocation65_spill] sm:$0xff] }
 0x4e2   :  { %v7496_v32 = vpop.eup %7495  ;;  %v4086_v26 = vadd.f32 1.0, %v7494_v56  ;;  %v3710_v19 = vpop.f32.mrf.mxu2  ;;  %v1908_v14 = vadd.f32 %v1852_v35, %v13493_v52  ;;  %v3316_v57 = vmul.f32 -19.22, %v3260_v47 }
 0x4e3   :  { %v4167_v37 = vmul.f32 0.6931472, %v7496_v32  ;;  %7499 = vpow2.f32 %v4002_v5  ;;  %v11357_v34 = vadd.f32 %v11335_v53, %v3710_v19  ;;  %v11362_v27 = vpop.f32.mrf.mxu1  ;;  %v7498_v19 = vpop.eup %7497 }
 0x4e4   :  { %7501 = vpow2.f32 %v3473_v61  ;;  %vm1964_vm1 = vcmp.eq.f32.partialorder %v7906_v23, %v1908_v14  ;;  %v3372_v54 = vmul.f32 %v3316_v57, %v3260_v47 }
 0x4e5   :  { %v4253_v55 = vadd.f32 %v4167_v37, %v3805_v1  ;;  %v3864_v56 = vand.u32 2147483647, %v11357_v34  ;;  %7503 = vlog2.f32 %v4086_v26  ;;  %v11366_v32 = vsel %vm1964_vm1, 1.0, %v13121_v25  ;;  %v11371_v1 = vld [vmem:[%s12784_s4 + $0x1] ss:$0 sm:$0xff] }
 0x4e6   :  { %13494 = vst [vmem:[#allocation18_spill] sm:$0xff] %v11366_v32  ;;  %7009 = vmatmul.msk.f32.gmra.mxu1 %vm4393_vm10, %v11366_v32  ;;  %v3477_v47 = vmul.f32 1.442695, %v3372_v54  ;;  %v13498_v54 = vld [vmem:[#allocation47_spill] sm:$0xff]  ;;  %v3195_v32 = vpop.xlane.xlu1 %3194 }
 0x4e7   :  { %v6896_v58 = vadd.f32 -0.6931472, %v4253_v55  ;;  %v3920_v5 = vsub.f32 0.0, %v3864_v56  ;;  %v4507_v61 = vpop.f32.mrf.mxu0  ;;  %v13495_v56 = vld [vmem:[#allocation44_spill] sm:$0xff] }
 0x4e8   :  { %v4508_v26 = vadd.f32 %v11371_v1, %v4507_v61  ;;  %v1853_v43 = vmul.f32 8.0, %v13495_v56  ;;  %v3475_v56 = vmul.f32 1.442695, %v3371_v28 }
 0x4e9   :  { %v7500_v48 = vpop.eup %7499  ;;  %v4004_v35 = vmul.f32 1.442695, %v3920_v5  ;;  %v4352_v37 = vpack.c.bf16 %v6896_v58, %v6895_v41 }
 0x4ea   :  { %v7502_v52 = vpop.eup %7501  ;;  %v4087_v14 = vadd.f32 1.0, %v7500_v48  ;;  %v3712_v55 = vpop.f32.mrf.mxu2  ;;  %v11381_v10 = vmul.f32 %v11323_v59, %v4508_v26  ;;  %5837 = vrot.lane.b32.xlu1 %v4508_v26, %s7743_s26  ;;  %v1909_v58 = vadd.f32 %v1853_v43, %v13496_v38 }
 0x4eb   :  { %7505 = vpow2.f32 %v4004_v35  ;;  %v11378_v5 = vadd.f32 %v11335_v53, %v3712_v55  ;;  %6955 = vmatmul.msk.bf16.gmra.mxu0 %vm4393_vm10, %v4352_v37  ;;  %v7504_v41 = vpop.eup %7503  ;;  %v3514_v48 = vpack.c.bf16 %v7502_v52, %v7498_v19  ;;  %v11387_v35 = vpop.f32.mrf.mxu1  ;;  %v3806_v19 = vmax.f32 %v11318_v4, 0.0 }
 0x4ec   :  { %7507 = vlog2.f32 %v4087_v14  ;;  %vm1965_vm3 = vcmp.eq.f32.partialorder %v7906_v23, %v1909_v58  ;;  %v4169_v55 = vmul.f32 0.6931472, %v7504_v41  ;;  %v3198_v37 = vpop.xlane.xlu2 %3197  ;;  %v3807_v41 = vmax.f32 %v11338_v33, 0.0 }
 0x4ed   :  { %v3865_v61 = vand.u32 2147483647, %v11378_v5  ;;  %v11392_v26 = vsel %vm1965_vm3, 1.0, %v13121_v25  ;;  %v3262_v43 = vsub.f32 %v3198_v37, %v13368_v7  ;;  %7509 = vpow2.f32 %v3475_v56  ;;  %v13499_v56 = vld [vmem:[#allocation115_spill] sm:$0xff] }
 0x4ee   :  { %13497 = vst [vmem:[#allocation26_spill] sm:$0xff] %v11392_v26  ;;  %7010 = vmatmul.msk.f32.gmra.mxu1 %vm4393_vm10, %v11392_v26  ;;  %v4254_v29 = vadd.f32 %v4169_v55, %v3806_v19  ;;  %v3261_v33 = vsub.f32 %v3195_v32, %v13368_v7 }
 0x4ef   :  { %v3921_v59 = vsub.f32 0.0, %v3865_v61  ;;  %6866 = vmatmul.msk.bf16.gmra.mxu2 %vm3546_vm8, %v3514_v48  ;;  %v4509_v57 = vpop.f32.mrf.mxu0  ;;  %v1854_v48 = vmul.f32 8.0, %v13498_v54 }
 0x4f0   :  { %v11397_v28 = vadd.f32 %v11371_v1, %v4509_v57  ;;  %v3318_v57 = vmul.f32 -19.22, %v3262_v43  ;;  %v6897_v55 = vadd.f32 -0.6931472, %v4254_v29  ;;  %v13501_v29 = vld [vmem:[#allocation46_spill] sm:$0xff] }
 0x4f1   :  { %v7506_v14 = vpop.eup %7505  ;;  %v4006_v52 = vmul.f32 1.442695, %v3921_v59  ;;  %v1910_v59 = vadd.f32 %v1854_v48, %v13499_v56 }
 0x4f2   :  { %v7508_v38 = vpop.eup %7507  ;;  %v4088_v58 = vadd.f32 1.0, %v7506_v14  ;;  %v3715_v61 = vpop.f32.mrf.mxu2  ;;  %5839 = vrot.lane.b32.xlu0 %v11397_v28, %s7743_s26  ;;  %v3374_v48 = vmul.f32 %v3318_v57, %v3262_v43 }
 0x4f3   :  { %v4171_v37 = vmul.f32 0.6931472, %v7508_v38  ;;  %7511 = vpow2.f32 %v4006_v52  ;;  %v11404_v4 = vadd.f32 %v11335_v53, %v3715_v61  ;;  %v11411_v54 = vpop.f32.mrf.mxu1  ;;  %vm1966_vm2 = vcmp.eq.f32.partialorder %v7906_v23, %v1910_v59 }
 0x4f4   :  { %7513 = vpow2.f32 %v3477_v47  ;;  %v11415_v38 = vsel %vm1966_vm2, 1.0, %v13121_v25  ;;  %v7510_v47 = vpop.eup %7509  ;;  %v3317_v61 = vmul.f32 -19.22, %v3261_v33 }
 0x4f5   :  { %v4255_v14 = vadd.f32 %v4171_v37, %v3807_v41  ;;  %v3866_v26 = vand.u32 2147483647, %v11404_v4  ;;  %7515 = vlog2.f32 %v4088_v58  ;;  %13500 = vst [vmem:[#allocation20_spill] sm:$0xff] %v11415_v38 }
 0x4f6   :  { %7011 = vmatmul.msk.f32.gmra.mxu1 %vm4393_vm10, %v11415_v38  ;;  %v3373_v57 = vmul.f32 %v3317_v61, %v3261_v33  ;;  %v3201_v61 = vpop.xlane.xlu0 %3200 }
 0x4f7   :  { %v6898_v19 = vadd.f32 -0.6931472, %v4255_v14  ;;  %v3922_v52 = vsub.f32 0.0, %v3866_v26  ;;  %v4512_v32 = vpop.f32.mrf.mxu0  ;;  %v1855_v26 = vmul.f32 8.0, %v13501_v29  ;;  %v13502_v14 = vld [vmem:[#allocation66_spill] sm:$0xff] }
 0x4f8   :  { %v11418_v41 = vadd.f32 %v11371_v1, %v4512_v32 }
 0x4f9   :  { %v7512_v36 = vpop.eup %7511  ;;  %v4008_v56 = vmul.f32 1.442695, %v3922_v52  ;;  %v4353_v58 = vpack.c.bf16 %v6898_v19, %v6897_v55  ;;  %v3481_v55 = vmul.f32 1.442695, %v3374_v48  ;;  %v3808_v48 = vmax.f32 %v11357_v34, 0.0 }
 0x4fa   :  { %v7514_v37 = vpop.eup %7513  ;;  %v4089_v45 = vadd.f32 1.0, %v7512_v36  ;;  %v3717_v42 = vpop.f32.mrf.mxu2  ;;  %5841 = vrot.lane.b32.xlu2 %v11418_v41, %s7743_s26  ;;  %v1911_v36 = vadd.f32 %v1855_v26, %v13502_v14  ;;  %v3809_v14 = vmax.f32 %v11378_v5, 0.0 }
 0x4fb   :  { %7517 = vpow2.f32 %v4008_v56  ;;  %v11424_v59 = vadd.f32 %v11335_v53, %v3717_v42  ;;  %6956 = vmatmul.msk.bf16.gmra.mxu0 %vm4393_vm10, %v4353_v58  ;;  %v7516_v43 = vpop.eup %7515  ;;  %v3515_v52 = vpack.c.bf16 %v7514_v37, %v7510_v47  ;;  %v11431_v32 = vpop.f32.mrf.mxu1  ;;  %v3479_v58 = vmul.f32 1.442695, %v3373_v57  ;;  %v13504_v57 = vld [vmem:[#allocation53_spill] sm:$0xff] }
 0x4fc   :  { %7519 = vlog2.f32 %v4089_v45  ;;  %vm1967_vm4 = vcmp.eq.f32.partialorder %v7906_v23, %v1911_v36  ;;  %v4173_v42 = vmul.f32 0.6931472, %v7516_v43  ;;  %v3263_v43 = vsub.f32 %v3201_v61, %v13368_v7 }
 0x4fd   :  { %v3867_v19 = vand.u32 2147483647, %v11424_v59  ;;  %v11436_v29 = vsel %vm1967_vm4, 1.0, %v13121_v25  ;;  %7521 = vpow2.f32 %v3481_v55  ;;  %v3204_v55 = vpop.xlane.xlu1 %3203 }
 0x4fe   :  { %13503 = vst [vmem:[#allocation29_spill] sm:$0xff] %v11436_v29  ;;  %7012 = vmatmul.msk.f32.gmra.mxu1 %vm4393_vm10, %v11436_v29  ;;  %v4256_v38 = vadd.f32 %v4173_v42, %v3808_v48  ;;  %v3264_v5 = vsub.f32 %v3204_v55, %v13368_v7  ;;  %v3319_v29 = vmul.f32 -19.22, %v3263_v43 }
 0x4ff   :  { %v3923_v56 = vsub.f32 0.0, %v3867_v19  ;;  %6867 = vmatmul.msk.bf16.gmra.mxu2 %vm3546_vm8, %v3515_v52  ;;  %v4514_v33 = vpop.f32.mrf.mxu0  ;;  %v1856_v52 = vmul.f32 8.0, %v13504_v57 }
 0x500   :  { %v11440_v47 = vadd.f32 %v11371_v1, %v4514_v33  ;;  %v6899_v48 = vadd.f32 -0.6931472, %v4256_v38  ;;  %v13507_v38 = vld [vmem:[#allocation61_spill] sm:$0xff] }
 0x501   :  { %v7518_v45 = vpop.eup %7517  ;;  %v4010_v26 = vmul.f32 1.442695, %v3923_v56  ;;  %v13505_v56 = vld [vmem:[#allocation117_spill] sm:$0xff] }
 0x502   :  { %v7520_v37 = vpop.eup %7519  ;;  %v4090_v36 = vadd.f32 1.0, %v7518_v45  ;;  %v3720_v19 = vpop.f32.mrf.mxu2  ;;  %5843 = vrot.lane.b32.xlu1 %v11440_v47, %s7743_s26  ;;  %v1912_v33 = vadd.f32 %v1856_v52, %v13505_v56  ;;  %v3375_v56 = vmul.f32 %v3319_v29, %v3263_v43  ;;  %v13508_v29 = vld [vmem:[#allocation120_spill] sm:$0xff] }
 0x503   :  { %v4175_v11 = vmul.f32 0.6931472, %v7520_v37  ;;  %7523 = vpow2.f32 %v4010_v26  ;;  %v11448_v34 = vadd.f32 %v11335_v53, %v3720_v19  ;;  %v11455_v57 = vpop.f32.mrf.mxu1  ;;  %v7522_v42 = vpop.eup %7521 }
 0x504   :  { %7525 = vpow2.f32 %v3479_v58  ;;  %vm1968_vm5 = vcmp.eq.f32.partialorder %v7906_v23, %v1912_v33  ;;  %v3320_v58 = vmul.f32 -19.22, %v3264_v5  ;;  %v1857_v33 = vmul.f32 8.0, %v13507_v38 }
 0x505   :  { %v4257_v45 = vadd.f32 %v4175_v11, %v3809_v14  ;;  %v3868_v61 = vand.u32 2147483647, %v11448_v34  ;;  %7527 = vlog2.f32 %v4090_v36  ;;  %v11459_v19 = vsel %vm1968_vm5, 1.0, %v13121_v25 }
 0x506   :  { %13506 = vst [vmem:[#allocation21_spill] sm:$0xff] %v11459_v19  ;;  %7013 = vmatmul.msk.f32.gmra.mxu1 %vm4393_vm10, %v11459_v19  ;;  %v3210_v19 = vpop.xlane.xlu0 %3209 }
 0x507   :  { %v6900_v26 = vadd.f32 -0.6931472, %v4257_v45  ;;  %v3924_v37 = vsub.f32 0.0, %v3868_v61  ;;  %v4517_v55 = vpop.f32.mrf.mxu0 }
 0x508   :  { %v11462_v11 = vadd.f32 %v11371_v1, %v4517_v55 }
 0x509   :  { %v7524_v6 = vpop.eup %7523  ;;  %v4012_v52 = vmul.f32 1.442695, %v3924_v37  ;;  %v4354_v14 = vpack.c.bf16 %v6900_v26, %v6899_v48  ;;  %v3376_v48 = vmul.f32 %v3320_v58, %v3264_v5  ;;  %v3483_v37 = vmul.f32 1.442695, %v3375_v56 }
 0x50a   :  { %v7526_v36 = vpop.eup %7525  ;;  %v4091_v8 = vadd.f32 1.0, %v7524_v6  ;;  %v3722_v30 = vpop.f32.mrf.mxu2  ;;  %5845 = vrot.lane.b32.xlu0 %v11462_v11, %s7743_s26  ;;  %v1913_v6 = vadd.f32 %v1857_v33, %v13508_v29  ;;  %v3811_v29 = vmax.f32 %v11424_v59, 0.0  ;;  %v13511_v59 = vld [vmem:[#allocation123_spill] sm:$0xff] }
 0x50b   :  { %7529 = vpow2.f32 %v4012_v52  ;;  %v11468_v45 = vadd.f32 %v11335_v53, %v3722_v30  ;;  %6957 = vmatmul.msk.bf16.gmra.mxu0 %vm4393_vm10, %v4354_v14  ;;  %v7528_v61 = vpop.eup %7527  ;;  %v3516_v26 = vpack.c.bf16 %v7522_v42, %v7526_v36  ;;  %v11477_v30 = vpop.f32.mrf.mxu1  ;;  %v3485_v5 = vmul.f32 1.442695, %v3376_v48  ;;  %v13510_v48 = vld [vmem:[#allocation67_spill] sm:$0xff] }
 0x50c   :  { %7531 = vlog2.f32 %v4091_v8  ;;  %vm1969_vm6 = vcmp.eq.f32.partialorder %v7906_v23, %v1913_v6  ;;  %v4177_v55 = vmul.f32 0.6931472, %v7528_v61  ;;  %v3207_v14 = vpop.xlane.xlu2 %3206  ;;  %v3810_v42 = vmax.f32 %v11404_v4, 0.0 }
 0x50d   :  { %v3869_v43 = vand.u32 2147483647, %v11468_v45  ;;  %v11480_v38 = vsel %vm1969_vm6, 1.0, %v13121_v25  ;;  %v3265_v33 = vsub.f32 %v3207_v14, %v13368_v7  ;;  %7533 = vpow2.f32 %v3483_v37 }
 0x50e   :  { %13509 = vst [vmem:[#allocation28_spill] sm:$0xff] %v11480_v38  ;;  %7014 = vmatmul.msk.f32.gmra.mxu1 %vm4393_vm10, %v11480_v38  ;;  %v4258_v39 = vadd.f32 %v4177_v55, %v3810_v42  ;;  %v3266_v37 = vsub.f32 %v3210_v19, %v13368_v7 }
 0x50f   :  { %v3925_v52 = vsub.f32 0.0, %v3869_v43  ;;  %6868 = vmatmul.msk.bf16.gmra.mxu2 %vm3546_vm8, %v3516_v26  ;;  %v4519_v8 = vpop.f32.mrf.mxu0  ;;  %v1858_v26 = vmul.f32 8.0, %v13510_v48 }
 0x510   :  { %v11485_v56 = vadd.f32 %v11371_v1, %v4519_v8  ;;  %v3321_v8 = vmul.f32 -19.22, %v3265_v33  ;;  %v6901_v55 = vadd.f32 -0.6931472, %v4258_v39  ;;  %v3322_v7 = vmul.f32 -19.22, %v3266_v37 }
 0x511   :  { %v7530_v58 = vpop.eup %7529  ;;  %v4014_v36 = vmul.f32 1.442695, %v3925_v52  ;;  %v1914_v52 = vadd.f32 %v1858_v26, %v13511_v59  ;;  %v13513_v39 = vld [vmem:[#allocation71_spill] sm:$0xff] }
 0x512   :  { %v7532_v61 = vpop.eup %7531  ;;  %v4092_v6 = vadd.f32 1.0, %v7530_v58  ;;  %v3725_v43 = vpop.f32.mrf.mxu2  ;;  %5847 = vrot.lane.b32.xlu0 %v11485_v56, %s7743_s26  ;;  %v3377_v26 = vmul.f32 %v3321_v8, %v3265_v33  ;;  %v3378_v33 = vmul.f32 %v3322_v7, %v3266_v37  ;;  %v13514_v8 = vld [vmem:[#allocation88_spill] sm:$0xff] }
 0x513   :  { %v4179_v14 = vmul.f32 0.6931472, %v7532_v61  ;;  %7535 = vpow2.f32 %v4014_v36  ;;  %v11492_v4 = vadd.f32 %v11335_v53, %v3725_v43  ;;  %vm1970_vm7 = vcmp.eq.f32.partialorder %v7906_v23, %v1914_v52  ;;  %v11500_v61 = vpop.f32.mrf.mxu1  ;;  %v7534_v38 = vpop.eup %7533 }
 0x514   :  { %7537 = vpow2.f32 %v3485_v5  ;;  %13512 = vst [vmem:[#allocation39_spill] sm:$0xff] %v11500_v61  ;;  %v11503_v43 = vsel %vm1970_vm7, 1.0, %v13121_v25 }
 0x515   :  { %v4259_v58 = vadd.f32 %v4179_v14, %v3811_v29  ;;  %7539 = vlog2.f32 %v4092_v6  ;;  %v3870_v48 = vand.u32 2147483647, %v11492_v4 }
 0x516   :  { %7015 = vmatmul.msk.f32.gmra.mxu1 %vm4393_vm10, %v11503_v43 }
 0x517   :  { %v6902_v42 = vadd.f32 -0.6931472, %v4259_v58  ;;  %v3926_v36 = vsub.f32 0.0, %v3870_v48  ;;  %v1859_v58 = vmul.f32 8.0, %v13513_v39 }
 0x518   :  { %v4522_v19 = vpop.f32.mrf.mxu0 }
 0x519   :  { %v7536_v5 = vpop.eup %7535  ;;  %v4016_v59 = vmul.f32 1.442695, %v3926_v36  ;;  %v4523_v29 = vadd.f32 %v11371_v1, %v4522_v19  ;;  %v4355_v6 = vpack.c.bf16 %v6902_v42, %v6901_v55  ;;  %v1915_v55 = vadd.f32 %v1859_v58, %v13514_v8 }
 0x51a   :  { %v7538_v14 = vpop.eup %7537  ;;  %v4093_v13 = vadd.f32 1.0, %v7536_v5  ;;  %v3727_v52 = vpop.f32.mrf.mxu2  ;;  %v3487_v42 = vmul.f32 1.442695, %v3377_v26 }
 0x51b   :  { %v7540_v48 = vpop.eup %7539  ;;  %7541 = vpow2.f32 %v4016_v59  ;;  %v11510_v61 = vadd.f32 %v11335_v53, %v3727_v52  ;;  %5849 = vrot.lane.b32.xlu2 %v4523_v29, %s7743_s26  ;;  %6958 = vmatmul.msk.bf16.gmra.mxu0 %vm4393_vm10, %v4355_v6  ;;  %v3517_v19 = vpack.c.bf16 %v7538_v14, %v7534_v38  ;;  %vm1971_vm9 = vcmp.eq.f32.partialorder %v7906_v23, %v1915_v55  ;;  %v11518_v59 = vpop.f32.mrf.mxu1 }
 0x51c   :  { %7543 = vlog2.f32 %v4093_v13  ;;  %v4181_v5 = vmul.f32 0.6931472, %v7540_v48  ;;  %v11521_v52 = vsel %vm1971_vm9, 1.0, %v13121_v25  ;;  %v3489_v6 = vmul.f32 1.442695, %v3378_v33 }
 0x51d   :  { %v3871_v36 = vand.u32 2147483647, %v11510_v61  ;;  %v3812_v13 = vmax.f32 %v11448_v34, 0.0  ;;  %7545 = vpow2.f32 %v3487_v42  ;;  %v3813_v48 = vmax.f32 %v11468_v45, 0.0 }
 0x51e   :  { %7016 = vmatmul.msk.f32.gmra.mxu1 %vm4393_vm10, %v11521_v52 }
 0x51f   :  { %v3927_v39 = vsub.f32 0.0, %v3871_v36  ;;  %6869 = vmatmul.msk.bf16.gmra.mxu2 %vm3546_vm8, %v3517_v19  ;;  %v4260_v58 = vadd.f32 %v4181_v5, %v3812_v13  ;;  %v13515_v36 = vld [vmem:[#allocation73_spill] sm:$0xff]  ;;  %v13516_v5 = vld [vmem:[#allocation56_spill] sm:$0xff]  ;;  %v5073_v13 = vmul.f32 %v11455_v57, %v4523_v29 }
 0x520   :  { %v4524_v37 = vpop.f32.mrf.mxu0  ;;  %v1860_v19 = vmul.f32 8.0, %v13515_v36 }
 0x521   :  { %v7542_v7 = vpop.eup %7541  ;;  %v4018_v26 = vmul.f32 1.442695, %v3927_v39  ;;  %v4525_v38 = vadd.f32 %v11371_v1, %v4524_v37 }
 0x522   :  { %v7544_v14 = vpop.eup %7543  ;;  %v4094_v8 = vadd.f32 1.0, %v7542_v7  ;;  %v3730_v55 = vpop.f32.mrf.mxu2  ;;  %v1916_v39 = vadd.f32 %v1860_v19, %v13516_v5  ;;  %v5072_v7 = vmul.f32 %v11431_v32, %v11485_v56  ;;  %v13517_v19 = vld [vmem:[#allocation79_spill] sm:$0xff] }
 0x523   :  { %v4183_v33 = vmul.f32 0.6931472, %v7544_v14  ;;  %7547 = vpow2.f32 %v4018_v26  ;;  %v11530_v34 = vadd.f32 %v11335_v53, %v3730_v55  ;;  %v5074_v42 = vmul.f32 %v11477_v30, %v4525_v38  ;;  %5851 = vrot.lane.b32.xlu1 %v4525_v38, %s7743_s26  ;;  %v7546_v26 = vpop.eup %7545 }
 0x524   :  { %7549 = vpow2.f32 %v3489_v6  ;;  %vm1972_vm11 = vcmp.eq.f32.partialorder %v7906_v23, %v1916_v39  ;;  %v6903_v14 = vadd.f32 -0.6931472, %v4260_v58  ;;  %v11540_v6 = vpop.f32.mrf.mxu1 }
 0x525   :  { %v4261_v45 = vadd.f32 %v4183_v33, %v3813_v48  ;;  %v3872_v37 = vand.u32 2147483647, %v11530_v34  ;;  %5139 = vmatpush.msra.mxu3 %v5074_v42  ;;  %7551 = vlog2.f32 %v4094_v8  ;;  %v11543_v38 = vsel %vm1972_vm11, 1.0, %v13121_v25 }
 0x526   :  { %v5071_v48 = vmul.f32 %v11411_v54, %v11462_v11  ;;  %7017 = vmatmul.msk.f32.gmra.mxu1 %vm4393_vm10, %v11543_v38  ;;  %v1861_v33 = vmul.f32 8.0, %v13517_v19  ;;  %v5070_v42 = vmul.f32 %v11387_v35, %v11440_v47  ;;  %v13518_v11 = vld [vmem:[#allocation94_spill] sm:$0xff]  ;;  %v5068_v35 = vmul.f32 %v11343_v31, %v11397_v28  ;;  %v13520_v19 = vld [vmem:[#allocation103_spill] sm:$0xff] }
 0x527   :  { %v6904_v30 = vadd.f32 -0.6931472, %v4261_v45  ;;  %v3928_v55 = vsub.f32 0.0, %v3872_v37  ;;  %5140 = vmatpush.msra.mxu3 %v5073_v13  ;;  %v5069_v45 = vmul.f32 %v11362_v27, %v11418_v41  ;;  %v5066_v31 = vmul.f32 %v11304_v16, %v11031_v51 }
 0x528   :  { %v11545_v57 = vpop.f32.mrf.mxu0  ;;  %v1917_v39 = vadd.f32 %v1861_v33, %v13518_v11  ;;  %v3815_v28 = vmax.f32 %v11510_v61, 0.0  ;;  %v5065_v51 = vmul.f32 %v11287_v21, %v11023_v12 }
 0x529   :  { %v7548_v29 = vpop.eup %7547  ;;  %v4020_v8 = vmul.f32 1.442695, %v3928_v55  ;;  %5141 = vmatpush.msra.mxu3 %v5072_v7  ;;  %v4356_v32 = vpack.c.bf16 %v6904_v30, %v6903_v14 }
 0x52a   :  { %v7550_v56 = vpop.eup %7549  ;;  %v4095_v36 = vadd.f32 1.0, %v7548_v29  ;;  %v3732_v58 = vpop.f32.mrf.mxu2  ;;  %vm1973_vm13 = vcmp.eq.f32.partialorder %v7906_v23, %v1917_v39 }
 0x52b   :  { %7553 = vpow2.f32 %v4020_v8  ;;  %v11555_v5 = vadd.f32 %v11335_v53, %v3732_v58  ;;  %6959 = vmatmul.msk.bf16.gmra.mxu0 %vm4393_vm10, %v4356_v32  ;;  %5142 = vmatpush.msra.mxu3 %v5071_v48  ;;  %v7552_v54 = vpop.eup %7551  ;;  %v3518_v37 = vpack.c.bf16 %v7550_v56, %v7546_v26  ;;  %v11569_v30 = vsel %vm1973_vm13, 1.0, %v13121_v25  ;;  %v13519_v32 = vld [vmem:[#allocation83_spill] sm:$0xff] }
 0x52c   :  { %7555 = vlog2.f32 %v4095_v36  ;;  %v4185_v47 = vmul.f32 0.6931472, %v7552_v54  ;;  %v11566_v14 = vpop.f32.mrf.mxu1  ;;  %v3814_v26 = vmax.f32 %v11492_v4, 0.0  ;;  %v1862_v56 = vmul.f32 8.0, %v13519_v32 }
 0x52d   :  { %v3873_v13 = vand.u32 2147483647, %v11555_v5  ;;  %5143 = vmatpush.msra.mxu3 %v5070_v42  ;;  %v5064_v42 = vmul.f32 %v11261_v62, %v11001_v46 }
 0x52e   :  { %7018 = vmatmul.msk.f32.gmra.mxu1 %vm4393_vm10, %v11569_v30  ;;  %v4262_v36 = vadd.f32 %v4185_v47, %v3814_v26  ;;  %v1918_v33 = vadd.f32 %v1862_v56, %v13520_v19  ;;  %v13521_v47 = vld [vmem:[#allocation87_spill] sm:$0xff] }
 0x52f   :  { %v3929_v7 = vsub.f32 0.0, %v3873_v13  ;;  %6870 = vmatmul.msk.bf16.gmra.mxu2 %vm3546_vm8, %v3518_v37  ;;  %5144 = vmatpush.msra.mxu3 %v5069_v45  ;;  %v5063_v13 = vmul.f32 %v11243_v9, %v11042_v63  ;;  %v13522_v9 = vld [vmem:[#allocation51_spill] sm:$0xff] }
 0x530   :  { %v11571_v27 = vpop.f32.mrf.mxu0  ;;  %vm1974_vm12 = vcmp.eq.f32.partialorder %v7906_v23, %v1918_v33  ;;  %v6905_v54 = vadd.f32 -0.6931472, %v4262_v36  ;;  %v13523_v33 = vld [vmem:[#allocation91_spill] sm:$0xff] }
 0x531   :  { %v7554_v41 = vpop.eup %7553  ;;  %v4022_v55 = vmul.f32 1.442695, %v3929_v7  ;;  %5145 = vmatpush.msra.mxu3 %v5068_v35  ;;  %v11594_v45 = vsel %vm1974_vm12, 1.0, %v13121_v25  ;;  %v1863_v7 = vmul.f32 8.0, %v13521_v47 }
 0x532   :  { %v7556_v29 = vpop.eup %7555  ;;  %v4096_v48 = vadd.f32 1.0, %v7554_v41  ;;  %v3735_v8 = vpop.f32.mrf.mxu2  ;;  %v5062_v41 = vmul.f32 %v11224_v20, %v11039_v44  ;;  %v5060_v44 = vmul.f32 %v11186_v2, %v11072_v60  ;;  %v3817_v60 = vmax.f32 %v11555_v5, 0.0 }
 0x533   :  { %v4187_v58 = vmul.f32 0.6931472, %v7556_v29  ;;  %7557 = vpow2.f32 %v4022_v55  ;;  %v11581_v4 = vadd.f32 %v11335_v53, %v3735_v8  ;;  %5146 = vmatpush.msra.mxu3 %v11381_v10  ;;  %v1919_v55 = vadd.f32 %v1863_v7, %v13522_v9 }
 0x534   :  { %7559 = vlog2.f32 %v4096_v48  ;;  %v11591_v10 = vpop.f32.mrf.mxu1  ;;  %v5061_v29 = vmul.f32 %v11204_v0, %v11007_v40  ;;  %v5059_v40 = vmul.f32 %v11163_v24, %v11064_v22  ;;  %v3816_v0 = vmax.f32 %v11530_v34, 0.0  ;;  %v13524_v22 = vld [vmem:[#allocation74_spill] sm:$0xff] }
 0x535   :  { %v4263_v16 = vadd.f32 %v4187_v58, %v3815_v28  ;;  %v3874_v61 = vand.u32 2147483647, %v11581_v4  ;;  %5147 = vmatpush.msra.mxu3 %v5066_v31  ;;  %vm1975_vm0 = vcmp.eq.f32.partialorder %v7906_v23, %v1919_v55 }
 0x536   :  { %7019 = vmatmul.msk.f32.gmra.mxu1 %vm4393_vm10, %v11594_v45  ;;  %v11619_v8 = vsel %vm1975_vm0, 1.0, %v13121_v25 }
 0x537   :  { %v6906_v11 = vadd.f32 -0.6931472, %v4263_v16  ;;  %v3930_v39 = vsub.f32 0.0, %v3874_v61  ;;  %5148 = vmatpush.msra.mxu3 %v5065_v51  ;;  %v1864_v51 = vmul.f32 8.0, %v13523_v33 }
 0x538   :  { %v11596_v12 = vpop.f32.mrf.mxu0 }
 0x539   :  { %v7558_v21 = vpop.eup %7557  ;;  %v4024_v37 = vmul.f32 1.442695, %v3930_v39  ;;  %5149 = vmatpush.msra.mxu3 %v5064_v42  ;;  %v4357_v46 = vpack.c.bf16 %v6906_v11, %v6905_v54  ;;  %v1920_v24 = vadd.f32 %v1864_v51, %v13524_v22 }
 0x53a   :  { %v4097_v62 = vadd.f32 1.0, %v7558_v21  ;;  %v3737_v35 = vpop.f32.mrf.mxu2  ;;  %v7560_v63 = vpop.eup %7559 }
 0x53b   :  { %7561 = vpow2.f32 %v4024_v37  ;;  %v11606_v26 = vadd.f32 %v11335_v53, %v3737_v35  ;;  %6960 = vmatmul.msk.bf16.gmra.mxu0 %vm4393_vm10, %v4357_v46  ;;  %5150 = vmatpush.msra.mxu3 %v5063_v13  ;;  %v4189_v20 = vmul.f32 0.6931472, %v7560_v63  ;;  %vm1976_vm14 = vcmp.eq.f32.partialorder %v7906_v23, %v1920_v24  ;;  %v13525_v63 = vld [vmem:[#allocation98_spill] sm:$0xff]  ;;  %v13527_v24 = vld [vmem:[#allocation101_spill] sm:$0xff] }
 0x53c   :  { %7563 = vlog2.f32 %v4097_v62  ;;  %v11616_v48 = vpop.f32.mrf.mxu1  ;;  %v11639_v13 = vsel %vm1976_vm14, 1.0, %v13121_v25  ;;  %v1865_v9 = vmul.f32 8.0, %v13525_v63 }
 0x53d   :  { %v3875_v31 = vand.u32 2147483647, %v11606_v26  ;;  %5151 = vmatpush.msra.mxu3 %v5062_v41  ;;  %v4264_v16 = vadd.f32 %v4189_v20, %v3816_v0 }
 0x53e   :  { %7020 = vmatmul.msk.f32.gmra.mxu1 %vm4393_vm10, %v11619_v8 }
 0x53f   :  { %v3931_v28 = vsub.f32 0.0, %v3875_v31  ;;  %5152 = vmatpush.msra.mxu3 %v5061_v29  ;;  %v6907_v54 = vadd.f32 -0.6931472, %v4264_v16  ;;  %v3819_v16 = vmax.f32 %v11606_v26, 0.0 }
 0x540   :  { %v11621_v32 = vpop.f32.mrf.mxu0 }
 0x541   :  { %v7562_v56 = vpop.eup %7561  ;;  %v4026_v36 = vmul.f32 1.442695, %v3931_v28  ;;  %5153 = vmatpush.msra.mxu3 %v5060_v44  ;;  %v13526_v44 = vld [vmem:[#allocation54_spill] sm:$0xff] }
 0x542   :  { %v7564_v58 = vpop.eup %7563  ;;  %v4098_v2 = vadd.f32 1.0, %v7562_v56  ;;  %v3740_v19 = vpop.f32.mrf.mxu2  ;;  %v1921_v20 = vadd.f32 %v1865_v9, %v13526_v44 }
 0x543   :  { %v4191_v61 = vmul.f32 0.6931472, %v7564_v58  ;;  %7565 = vpow2.f32 %v4026_v36  ;;  %v11631_v42 = vadd.f32 %v11335_v53, %v3740_v19  ;;  %5154 = vmatpush.msra.mxu3 %v5059_v40 }
 0x544   :  { %7567 = vlog2.f32 %v4098_v2  ;;  %v11636_v21 = vpop.f32.mrf.mxu1  ;;  %vm1977_vm15 = vcmp.eq.f32.partialorder %v7906_v23, %v1921_v20 }
 0x545   :  { %v4265_v34 = vadd.f32 %v4191_v61, %v3817_v60  ;;  %v3876_v5 = vand.u32 2147483647, %v11631_v42  ;;  %v11659_v36 = vsel %vm1977_vm15, 1.0, %v13121_v25 }
 0x546   :  { %7021 = vmatmul.msk.f32.gmra.mxu1 %vm4393_vm10, %v11639_v13 }
 0x547   :  { %v6908_v11 = vadd.f32 -0.6931472, %v4265_v34  ;;  %v3932_v39 = vsub.f32 0.0, %v3876_v5  ;;  %v1866_v34 = vmul.f32 8.0, %v13527_v24 }
 0x548   :  { %v4537_v37 = vpop.f32.mrf.mxu0 }
 0x549   :  { %v7566_v46 = vpop.eup %7565  ;;  %v4028_v62 = vmul.f32 1.442695, %v3932_v39  ;;  %v4538_v35 = vadd.f32 %v11371_v1, %v4537_v37  ;;  %v4358_v47 = vpack.c.bf16 %v6908_v11, %v6907_v54  ;;  %v13528_v11 = vld [vmem:[#allocation40_spill] sm:$0xff] }
 0x54a   :  { %v4099_v7 = vadd.f32 1.0, %v7566_v46  ;;  %v3742_v41 = vpop.f32.mrf.mxu2  ;;  %v7568_v55 = vpop.eup %7567  ;;  %v1922_v39 = vadd.f32 %v1866_v34, %v13528_v11 }
 0x54b   :  { %7569 = vpow2.f32 %v4028_v62  ;;  %v11646_v29 = vadd.f32 %v11335_v53, %v3742_v41  ;;  %v11649_v31 = vmul.f32 %v11591_v10, %v4538_v35  ;;  %5861 = vrot.lane.b32.xlu2 %v4538_v35, %s7743_s26  ;;  %6961 = vmatmul.msk.bf16.gmra.mxu0 %vm4393_vm10, %v4358_v47  ;;  %v4193_v56 = vmul.f32 0.6931472, %v7568_v55 }
 0x54c   :  { %7571 = vlog2.f32 %v4099_v7  ;;  %v11656_v0 = vpop.f32.mrf.mxu1  ;;  %v3818_v10 = vmax.f32 %v11581_v4, 0.0  ;;  %vm1978_vm1 = vcmp.eq.f32.partialorder %v7906_v23, %v1922_v39 }
 0x54d   :  { %v3877_v28 = vand.u32 2147483647, %v11646_v29  ;;  %v11680_v7 = vsel %vm1978_vm1, 1.0, %v13121_v25 }
 0x54e   :  { %v4266_v51 = vadd.f32 %v4193_v56, %v3818_v10  ;;  %7022 = vmatmul.msk.f32.gmra.mxu1 %vm4393_vm10, %v11659_v36 }
 0x54f   :  { %v3933_v40 = vsub.f32 0.0, %v3877_v28  ;;  %v13529_v28 = vld [vmem:[#allocation104_spill] sm:$0xff] }
 0x550   :  { %v4539_v58 = vpop.f32.mrf.mxu0  ;;  %v6909_v46 = vadd.f32 -0.6931472, %v4266_v51  ;;  %v1867_v56 = vmul.f32 8.0, %v13529_v28 }
 0x551   :  { %v7570_v60 = vpop.eup %7569  ;;  %v4030_v2 = vmul.f32 1.442695, %v3933_v40  ;;  %v4540_v19 = vadd.f32 %v11371_v1, %v4539_v58 }
 0x552   :  { %v7572_v33 = vpop.eup %7571  ;;  %v4100_v61 = vadd.f32 1.0, %v7570_v60  ;;  %v3745_v22 = vpop.f32.mrf.mxu2  ;;  %v13530_v60 = vld [vmem:[#allocation80_spill] sm:$0xff] }
 0x553   :  { %v4195_v5 = vmul.f32 0.6931472, %v7572_v33  ;;  %7573 = vpow2.f32 %v4030_v2  ;;  %v11668_v4 = vadd.f32 %v11335_v53, %v3745_v22  ;;  %v11671_v54 = vmul.f32 %v11616_v48, %v4540_v19  ;;  %5863 = vrot.lane.b32.xlu2 %v4540_v19, %s7743_s26 }
 0x554   :  { %7575 = vlog2.f32 %v4100_v61  ;;  %v11677_v47 = vpop.f32.mrf.mxu1  ;;  %v1923_v2 = vadd.f32 %v1867_v56, %v13530_v60 }
 0x555   :  { %v4267_v26 = vadd.f32 %v4195_v5, %v3819_v16  ;;  %v3878_v37 = vand.u32 2147483647, %v11668_v4 }
 0x556   :  { %7023 = vmatmul.msk.f32.gmra.mxu1 %vm4393_vm10, %v11680_v7  ;;  %vm1979_vm3 = vcmp.eq.f32.partialorder %v7906_v23, %v1923_v2 }
 0x557   :  { %v6910_v62 = vadd.f32 -0.6931472, %v4267_v26  ;;  %v3934_v35 = vsub.f32 0.0, %v3878_v37  ;;  %v11700_v61 = vsel %vm1979_vm3, 1.0, %v13121_v25  ;;  %v3821_v26 = vmax.f32 %v11646_v29, 0.0 }
 0x558   :  { %v4542_v48 = vpop.f32.mrf.mxu0 }
 0x559   :  { %v7574_v41 = vpop.eup %7573  ;;  %v4032_v63 = vmul.f32 1.442695, %v3934_v35  ;;  %v4543_v9 = vadd.f32 %v11371_v1, %v4542_v48  ;;  %v4359_v55 = vpack.c.bf16 %v6910_v62, %v6909_v46  ;;  %v13531_v62 = vld [vmem:[#allocation55_spill] sm:$0xff] }
 0x55a   :  { %v4101_v44 = vadd.f32 1.0, %v7574_v41  ;;  %v3747_v20 = vpop.f32.mrf.mxu2  ;;  %v7576_v40 = vpop.eup %7575  ;;  %v1868_v35 = vmul.f32 8.0, %v13531_v62 }
 0x55b   :  { %7577 = vpow2.f32 %v4032_v63  ;;  %v11687_v10 = vadd.f32 %v11335_v53, %v3747_v20  ;;  %v11690_v58 = vmul.f32 %v11636_v21, %v4543_v9  ;;  %5865 = vrot.lane.b32.xlu2 %v4543_v9, %s7743_s26  ;;  %6962 = vmatmul.msk.bf16.gmra.mxu0 %vm4393_vm10, %v4359_v55  ;;  %v4197_v33 = vmul.f32 0.6931472, %v7576_v40  ;;  %v13532_v63 = vld [vmem:[#allocation110_spill] sm:$0xff] }
 0x55c   :  { %7579 = vlog2.f32 %v4101_v44  ;;  %v11697_v16 = vpop.f32.mrf.mxu1  ;;  %v3820_v21 = vmax.f32 %v11631_v42, 0.0  ;;  %v1924_v9 = vadd.f32 %v1868_v35, %v13532_v63  ;;  %v3822_v63 = vmax.f32 %v11668_v4, 0.0 }
 0x55d   :  { %v3879_v19 = vand.u32 2147483647, %v11687_v10 }
 0x55e   :  { %v4268_v39 = vadd.f32 %v4197_v33, %v3820_v21  ;;  %7024 = vmatmul.msk.f32.gmra.mxu1 %vm4393_vm10, %v11700_v61  ;;  %vm1980_vm2 = vcmp.eq.f32.partialorder %v7906_v23, %v1924_v9  ;;  %v13533_v21 = vld [vmem:[#allocation62_spill] sm:$0xff] }
 0x55f   :  { %v3935_v51 = vsub.f32 0.0, %v3879_v19 }
 0x560   :  { %v4544_v22 = vpop.f32.mrf.mxu0  ;;  %v6911_v44 = vadd.f32 -0.6931472, %v4268_v39 }
 0x561   :  { %v7578_v24 = vpop.eup %7577  ;;  %v4034_v34 = vmul.f32 1.442695, %v3935_v51  ;;  %v4545_v5 = vadd.f32 %v11371_v1, %v4544_v22  ;;  %v1869_v22 = vmul.f32 8.0, %v13533_v21 }
 0x562   :  { %v7580_v11 = vpop.eup %7579  ;;  %v4102_v37 = vadd.f32 1.0, %v7578_v24  ;;  %v3750_v46 = vpop.f32.mrf.mxu2  ;;  %v11730_v24 = vld [vmem:[%s12784_s4] ss:$0 sm:$0xff] }
 0x563   :  { %v4199_v48 = vmul.f32 0.6931472, %v7580_v11  ;;  %7581 = vpow2.f32 %v4034_v34  ;;  %v11709_v42 = vadd.f32 %v11335_v53, %v3750_v46  ;;  %v11712_v41 = vmul.f32 %v11656_v0, %v4545_v5  ;;  %5867 = vrot.lane.b32.xlu2 %v4545_v5, %s7743_s26 }
 0x564   :  { %7583 = vlog2.f32 %v4102_v37  ;;  %v11718_v56 = vpop.f32.mrf.mxu1  ;;  %v11721_v53 = vsel %vm1980_vm2, 1.0, %v13121_v25  ;;  %v1925_v39 = vadd.f32 %v1869_v22, %v10521_v15 }
 0x565   :  { %v4269_v29 = vadd.f32 %v4199_v48, %v3821_v26  ;;  %v3880_v55 = vand.u32 2147483647, %v11709_v42 }
 0x566   :  { %7025 = vmatmul.msk.f32.gmra.mxu1 %vm4393_vm10, %v11721_v53  ;;  %vm1981_vm4 = vcmp.eq.f32.partialorder %v7906_v23, %v1925_v39 }
 0x567   :  { %v6912_v20 = vadd.f32 -0.6931472, %v4269_v29  ;;  %v3936_v28 = vsub.f32 0.0, %v3880_v55  ;;  %v11746_v35 = vsel %vm1981_vm4, 1.0, %v13121_v25  ;;  %v3823_v55 = vmax.f32 %v11687_v10, 0.0 }
 0x568   :  { %v4547_v0 = vpop.f32.mrf.mxu0 }
 0x569   :  { %v7582_v40 = vpop.eup %7581  ;;  %v4036_v60 = vmul.f32 1.442695, %v3936_v28  ;;  %v4548_v2 = vadd.f32 %v11371_v1, %v4547_v0  ;;  %v4360_v19 = vpack.c.bf16 %v6912_v20, %v6911_v44  ;;  %v13534_v28 = vld [vmem:[#allocation60_spill] sm:$0xff] }
 0x56a   :  { %v4103_v33 = vadd.f32 1.0, %v7582_v40  ;;  %v3752_v51 = vpop.f32.mrf.mxu2  ;;  %v7584_v11 = vpop.eup %7583  ;;  %v1870_v0 = vmul.f32 8.0, %v13534_v28 }
 0x56b   :  { %7585 = vpow2.f32 %v4036_v60  ;;  %v11733_v34 = vadd.f32 %v11730_v24, %v3752_v51  ;;  %v11736_v5 = vmul.f32 %v11677_v47, %v4548_v2  ;;  %5869 = vrot.lane.b32.xlu2 %v4548_v2, %s7743_s26  ;;  %6963 = vmatmul.msk.bf16.gmra.mxu0 %vm4393_vm10, %v4360_v19  ;;  %v4201_v37 = vmul.f32 0.6931472, %v7584_v11 }
 0x56c   :  { %7587 = vlog2.f32 %v4103_v33  ;;  %v11743_v62 = vpop.f32.mrf.mxu1 }
 0x56d   :  { %v3881_v26 = vand.u32 2147483647, %v11733_v34  ;;  %v4270_v40 = vadd.f32 %v4201_v37, %v3822_v63  ;;  %v13535_v63 = vld [vmem:[#allocation59_spill] sm:$0xff] }
 0x56e   :  { %7026 = vmatmul.msk.f32.gmra.mxu1 %vm4393_vm10, %v11746_v35 }
 0x56f   :  { %v3937_v46 = vsub.f32 0.0, %v3881_v26  ;;  %v6913_v19 = vadd.f32 -0.6931472, %v4270_v40 }
 0x570   :  { %v4549_v47 = vpop.f32.mrf.mxu0 }
 0x571   :  { %v7586_v48 = vpop.eup %7585  ;;  %v4038_v9 = vmul.f32 1.442695, %v3937_v46  ;;  %v11750_v29 = vadd.f32 %v11371_v1, %v4549_v47  ;;  %v1926_v1 = vadd.f32 %v1870_v0, %v10569_v50  ;;  %v11772_v50 = vld [vmem:[%s12784_s4 + $0x1] ss:$0 sm:$0xff] }
 0x572   :  { %v7588_v15 = vpop.eup %7587  ;;  %v4104_v44 = vadd.f32 1.0, %v7586_v48  ;;  %v3755_v20 = vpop.f32.mrf.mxu2 }
 0x573   :  { %v4203_v60 = vmul.f32 0.6931472, %v7588_v15  ;;  %7589 = vpow2.f32 %v4038_v9  ;;  %v11757_v2 = vadd.f32 %v11730_v24, %v3755_v20  ;;  %5871 = vrot.lane.b32.xlu0 %v11750_v29, %s7743_s26  ;;  %vm1982_vm5 = vcmp.eq.f32.partialorder %v7906_v23, %v1926_v1 }
 0x574   :  { %7591 = vlog2.f32 %v4104_v44  ;;  %v11764_v21 = vpop.f32.mrf.mxu1  ;;  %v11767_v22 = vsel %vm1982_vm5, 1.0, %v13121_v25  ;;  %v1871_v9 = vmul.f32 8.0, %v13535_v63  ;;  %v13536_v44 = vld [vmem:[#allocation58_spill] sm:$0xff] }
 0x575   :  { %v4271_v4 = vadd.f32 %v4203_v60, %v3823_v55  ;;  %v3882_v10 = vand.u32 2147483647, %v11757_v2 }
 0x576   :  { %7027 = vmatmul.msk.f32.gmra.mxu1 %vm4393_vm10, %v11767_v22  ;;  %v1927_v20 = vadd.f32 %v1871_v9, %v13536_v44 }
 0x577   :  { %v6914_v33 = vadd.f32 -0.6931472, %v4271_v4  ;;  %v3938_v51 = vsub.f32 0.0, %v3882_v10 }
 0x578   :  { %v4552_v11 = vpop.f32.mrf.mxu0  ;;  %vm1983_vm6 = vcmp.eq.f32.partialorder %v7906_v23, %v1927_v20 }
 0x579   :  { %v7590_v39 = vpop.eup %7589  ;;  %v4040_v26 = vmul.f32 1.442695, %v3938_v51  ;;  %v11775_v37 = vadd.f32 %v11772_v50, %v4552_v11  ;;  %v4361_v46 = vpack.c.bf16 %v6914_v33, %v6913_v19  ;;  %v11792_v1 = vsel %vm1983_vm6, 1.0, %v13121_v25 }
 0x57a   :  { %v4105_v47 = vadd.f32 1.0, %v7590_v39  ;;  %v3757_v48 = vpop.f32.mrf.mxu2  ;;  %v7592_v55 = vpop.eup %7591  ;;  %13537 = vst [vmem:[#allocation96_spill] sm:$0xff] %v11792_v1  ;;  %v3824_v19 = vmax.f32 %v11709_v42, 0.0  ;;  %v3825_v39 = vmax.f32 %v11733_v34, 0.0 }
 0x57b   :  { %7593 = vpow2.f32 %v4040_v26  ;;  %v11781_v15 = vadd.f32 %v11730_v24, %v3757_v48  ;;  %5873 = vrot.lane.b32.xlu1 %v11775_v37, %s7743_s26  ;;  %6964 = vmatmul.msk.bf16.gmra.mxu0 %vm4393_vm10, %v4361_v46  ;;  %v4205_v0 = vmul.f32 0.6931472, %v7592_v55 }
 0x57c   :  { %7595 = vlog2.f32 %v4105_v47  ;;  %v11789_v60 = vpop.f32.mrf.mxu1  ;;  %v13538_v47 = vld [vmem:[#allocation116_spill] sm:$0xff] }
 0x57d   :  { %v3883_v28 = vand.u32 2147483647, %v11781_v15  ;;  %v1872_v48 = vmul.f32 8.0, %v13538_v47  ;;  %v4272_v63 = vadd.f32 %v4205_v0, %v3824_v19 }
 0x57e   :  { %7028 = vmatmul.msk.f32.gmra.mxu1 %vm4393_vm10, %v11792_v1 }
 0x57f   :  { %v3939_v40 = vsub.f32 0.0, %v3883_v28  ;;  %v1928_v42 = vadd.f32 %v1872_v48, %v10662_v49  ;;  %v6915_v20 = vadd.f32 -0.6931472, %v4272_v63 }
 0x580   :  { %v4554_v4 = vpop.f32.mrf.mxu0 }
 0x581   :  { %v7594_v10 = vpop.eup %7593  ;;  %v4042_v33 = vmul.f32 1.442695, %v3939_v40  ;;  %v11796_v51 = vadd.f32 %v11772_v50, %v4554_v4  ;;  %vm1984_vm7 = vcmp.eq.f32.partialorder %v7906_v23, %v1928_v42 }
 0x582   :  { %v7596_v11 = vpop.eup %7595  ;;  %v4106_v26 = vadd.f32 1.0, %v7594_v10  ;;  %v3760_v46 = vpop.f32.mrf.mxu2  ;;  %v11813_v4 = vsel %vm1984_vm7, 1.0, %v13121_v25 }
 0x583   :  { %v4207_v9 = vmul.f32 0.6931472, %v7596_v11  ;;  %7597 = vpow2.f32 %v4042_v33  ;;  %v11803_v55 = vadd.f32 %v11730_v24, %v3760_v46  ;;  %5875 = vrot.lane.b32.xlu2 %v11796_v51, %s7743_s26  ;;  %13539 = vst [vmem:[#allocation38_spill] sm:$0xff] %v11813_v4 }
 0x584   :  { %7599 = vlog2.f32 %v4106_v26  ;;  %v11810_v0 = vpop.f32.mrf.mxu1  ;;  %v13540_v26 = vld [vmem:[#allocation81_spill] sm:$0xff] }
 0x585   :  { %v4273_v44 = vadd.f32 %v4207_v9, %v3825_v39  ;;  %v3884_v34 = vand.u32 2147483647, %v11803_v55  ;;  %v1873_v47 = vmul.f32 8.0, %v13540_v26 }
 0x586   :  { %7029 = vmatmul.msk.f32.gmra.mxu1 %vm4393_vm10, %v11813_v4 }
 0x587   :  { %v6916_v28 = vadd.f32 -0.6931472, %v4273_v44  ;;  %v3940_v40 = vsub.f32 0.0, %v3884_v34  ;;  %v1929_v9 = vadd.f32 %v1873_v47, %v10682_v17  ;;  %v13542_v47 = vld [vmem:[#allocation122_spill] sm:$0xff] }
 0x588   :  { %v4557_v10 = vpop.f32.mrf.mxu0 }
 0x589   :  { %v7598_v19 = vpop.eup %7597  ;;  %v4044_v33 = vmul.f32 1.442695, %v3940_v40  ;;  %v11816_v11 = vadd.f32 %v11772_v50, %v4557_v10  ;;  %v4362_v49 = vpack.c.bf16 %v6916_v28, %v6915_v20  ;;  %vm1985_vm9 = vcmp.eq.f32.partialorder %v7906_v23, %v1929_v9 }
 0x58a   :  { %v4107_v39 = vadd.f32 1.0, %v7598_v19  ;;  %v3762_v46 = vpop.f32.mrf.mxu2  ;;  %v7600_v63 = vpop.eup %7599  ;;  %v11833_v28 = vsel %vm1985_vm9, 1.0, %v13121_v25  ;;  %v3826_v19 = vmax.f32 %v11757_v2, 0.0 }
 0x58b   :  { %7601 = vpow2.f32 %v4044_v33  ;;  %v11822_v48 = vadd.f32 %v11730_v24, %v3762_v46  ;;  %5877 = vrot.lane.b32.xlu0 %v11816_v11, %s7743_s26  ;;  %6965 = vmatmul.msk.bf16.gmra.mxu0 %vm4393_vm10, %v4362_v49  ;;  %v4209_v44 = vmul.f32 0.6931472, %v7600_v63  ;;  %13541 = vst [vmem:[#allocation100_spill] sm:$0xff] %v11833_v28  ;;  %v1874_v63 = vmul.f32 8.0, %v13542_v47 }
 0x58c   :  { %7603 = vlog2.f32 %v4107_v39  ;;  %v11830_v20 = vpop.f32.mrf.mxu1  ;;  %v3827_v39 = vmax.f32 %v11781_v15, 0.0 }
 0x58d   :  { %v3885_v42 = vand.u32 2147483647, %v11822_v48  ;;  %v4274_v9 = vadd.f32 %v4209_v44, %v3826_v19  ;;  %v1930_v2 = vadd.f32 %v1874_v63, %v10709_v18  ;;  %v13544_v63 = vld [vmem:[#allocation97_spill] sm:$0xff] }
 0x58e   :  { %7030 = vmatmul.msk.f32.gmra.mxu1 %vm4393_vm10, %v11833_v28 }
 0x58f   :  { %v3941_v34 = vsub.f32 0.0, %v3885_v42  ;;  %vm1986_vm11 = vcmp.eq.f32.partialorder %v7906_v23, %v1930_v2 }
 0x590   :  { %v4559_v40 = vpop.f32.mrf.mxu0  ;;  %v11854_v19 = vsel %vm1986_vm11, 1.0, %v13121_v25 }
 0x591   :  { %v7602_v10 = vpop.eup %7601  ;;  %v4046_v33 = vmul.f32 1.442695, %v3941_v34  ;;  %v11837_v49 = vadd.f32 %v11772_v50, %v4559_v40  ;;  %v6917_v40 = vadd.f32 -0.6931472, %v4274_v9  ;;  %13543 = vst [vmem:[#allocation42_spill] sm:$0xff] %v11854_v19  ;;  %v1875_v9 = vmul.f32 8.0, %v13544_v63 }
 0x592   :  { %v7604_v17 = vpop.eup %7603  ;;  %v4108_v46 = vadd.f32 1.0, %v7602_v10  ;;  %v3765_v26 = vpop.f32.mrf.mxu2 }
 0x593   :  { %v4211_v42 = vmul.f32 0.6931472, %v7604_v17  ;;  %7605 = vpow2.f32 %v4046_v33  ;;  %v11844_v4 = vadd.f32 %v11730_v24, %v3765_v26  ;;  %5879 = vrot.lane.b32.xlu1 %v11837_v49, %s7743_s26 }
 0x594   :  { %7607 = vlog2.f32 %v4108_v46  ;;  %v11851_v44 = vpop.f32.mrf.mxu1 }
 0x595   :  { %v4275_v34 = vadd.f32 %v4211_v42, %v3827_v39  ;;  %v3886_v15 = vand.u32 2147483647, %v11844_v4 }
 0x596   :  { %7031 = vmatmul.msk.f32.gmra.mxu1 %vm4393_vm10, %v11854_v19 }
 0x597   :  { %v6918_v10 = vadd.f32 -0.6931472, %v4275_v34  ;;  %v3942_v47 = vsub.f32 0.0, %v3886_v15  ;;  %v1931_v34 = vadd.f32 %v1875_v9, %v10731_v3  ;;  %v3829_v9 = vmax.f32 %v11822_v48, 0.0 }
 0x598   :  { %v4562_v33 = vpop.f32.mrf.mxu0 }
 0x599   :  { %v7606_v17 = vpop.eup %7605  ;;  %v4048_v26 = vmul.f32 1.442695, %v3942_v47  ;;  %v4563_v28 = vadd.f32 %v11772_v50, %v4562_v33  ;;  %v4363_v18 = vpack.c.bf16 %v6918_v10, %v6917_v40  ;;  %vm1987_vm13 = vcmp.eq.f32.partialorder %v7906_v23, %v1931_v34  ;;  %v13545_v34 = vld [vmem:[#allocation93_spill] sm:$0xff] }
 0x59a   :  { %v4109_v39 = vadd.f32 1.0, %v7606_v17  ;;  %v3767_v46 = vpop.f32.mrf.mxu2  ;;  %v7608_v42 = vpop.eup %7607  ;;  %v11871_v33 = vsel %vm1987_vm13, 1.0, %v13121_v25  ;;  %v3828_v17 = vmax.f32 %v11803_v55, 0.0 }
 0x59b   :  { %7609 = vpow2.f32 %v4048_v26  ;;  %v11861_v2 = vadd.f32 %v11730_v24, %v3767_v46  ;;  %5881 = vrot.lane.b32.xlu2 %v4563_v28, %s7743_s26  ;;  %6966 = vmatmul.msk.bf16.gmra.mxu0 %vm4393_vm10, %v4363_v18  ;;  %v4213_v40 = vmul.f32 0.6931472, %v7608_v42  ;;  %v5089_v48 = vmul.f32 %v11810_v0, %v4563_v28 }
 0x59c   :  { %7611 = vlog2.f32 %v4109_v39  ;;  %v11868_v47 = vpop.f32.mrf.mxu1  ;;  %v5087_v28 = vmul.f32 %v11764_v21, %v11816_v11  ;;  %v13549_v21 = vld [vmem:[#allocation119_spill] sm:$0xff] }
 0x59d   :  { %v3887_v15 = vand.u32 2147483647, %v11861_v2  ;;  %v4276_v3 = vadd.f32 %v4213_v40, %v3828_v17 }
 0x59e   :  { %7032 = vmatmul.msk.f32.gmra.mxu1 %vm4393_vm10, %v11871_v33 }
 0x59f   :  { %v3943_v10 = vsub.f32 0.0, %v3887_v15  ;;  %v1876_v15 = vmul.f32 8.0, %v13545_v34 }
 0x5a0   :  { %v4564_v26 = vpop.f32.mrf.mxu0 }
 0x5a1   :  { %v7610_v46 = vpop.eup %7609  ;;  %v4050_v63 = vmul.f32 1.442695, %v3943_v10  ;;  %v4565_v18 = vadd.f32 %v11772_v50, %v4564_v26  ;;  %v13546_v26 = vld [vmem:[#allocation118_spill] sm:$0xff] }
 0x5a2   :  { %v7612_v39 = vpop.eup %7611  ;;  %v4110_v42 = vadd.f32 1.0, %v7610_v46  ;;  %v3770_v19 = vpop.f32.mrf.mxu2  ;;  %v1932_v40 = vadd.f32 %v1876_v15, %v13546_v26  ;;  %v5086_v26 = vmul.f32 %v11743_v62, %v11796_v51  ;;  %v5084_v62 = vmul.f32 %v11697_v16, %v11750_v29  ;;  %v13551_v16 = vld [vmem:[#allocation102_spill] sm:$0xff] }
 0x5a3   :  { %v4215_v1 = vmul.f32 0.6931472, %v7612_v39  ;;  %7613 = vpow2.f32 %v4050_v63  ;;  %v11880_v55 = vadd.f32 %v11730_v24, %v3770_v19  ;;  %v5090_v10 = vmul.f32 %v11830_v20, %v4565_v18  ;;  %5883 = vrot.lane.b32.xlu1 %v4565_v18, %s7743_s26 }
 0x5a4   :  { %7615 = vlog2.f32 %v4110_v42  ;;  %v5088_v39 = vmul.f32 %v11789_v60, %v11837_v49  ;;  %vm1988_vm12 = vcmp.eq.f32.partialorder %v7906_v23, %v1932_v40  ;;  %v6919_v19 = vadd.f32 -0.6931472, %v4276_v3  ;;  %v11890_v20 = vpop.f32.mrf.mxu1  ;;  %v13548_v3 = vld [vmem:[#allocation129_spill] sm:$0xff] }
 0x5a5   :  { %v4277_v17 = vadd.f32 %v4215_v1, %v3829_v9  ;;  %v3888_v46 = vand.u32 2147483647, %v11880_v55  ;;  %5180 = vmatpush.msra.mxu2 %v5090_v10  ;;  %v11893_v18 = vsel %vm1988_vm12, 1.0, %v13121_v25  ;;  %v1877_v15 = vmul.f32 8.0, %v13548_v3  ;;  %v13552_v3 = vld [vmem:[#allocation8_spill] sm:$0xff] }
 0x5a6   :  { %13547 = vst [vmem:[#allocation105_spill] sm:$0xff] %v11893_v18  ;;  %7033 = vmatmul.msk.f32.gmra.mxu1 %vm4393_vm10, %v11893_v18  ;;  %v1878_v29 = vmul.f32 8.0, %v13551_v16  ;;  %v13556_v16 = vld [vmem:[#allocation135_spill] sm:$0xff] }
 0x5a7   :  { %v6920_v63 = vadd.f32 -0.6931472, %v4277_v17  ;;  %v3944_v34 = vsub.f32 0.0, %v3888_v46  ;;  %5181 = vmatpush.msra.mxu2 %v5089_v48  ;;  %v1933_v11 = vadd.f32 %v1877_v15, %v13549_v21  ;;  %v5085_v17 = vmul.f32 %v11718_v56, %v11775_v37 }
 0x5a8   :  { %v11895_v1 = vpop.f32.mrf.mxu0  ;;  %v1934_v15 = vadd.f32 %v1878_v29, %v13552_v3  ;;  %v11936_v21 = vadd.f32 %v11772_v50, %v11621_v32  ;;  %v11950_v32 = vadd.f32 %v11772_v50, %v11596_v12  ;;  %v1880_v29 = vmul.f32 8.0, %v13556_v16 }
 0x5a9   :  { %v7614_v0 = vpop.eup %7613  ;;  %v4052_v9 = vmul.f32 1.442695, %v3944_v34  ;;  %5182 = vmatpush.msra.mxu2 %v5088_v39  ;;  %v4364_v60 = vpack.c.bf16 %v6920_v63, %v6919_v19  ;;  %vm1989_vm0 = vcmp.eq.f32.partialorder %v7906_v23, %v1933_v11  ;;  %v3830_v63 = vmax.f32 %v11844_v4, 0.0 }
 0x5aa   :  { %v4111_v49 = vadd.f32 1.0, %v7614_v0  ;;  %v3772_v42 = vpop.f32.mrf.mxu2  ;;  %v7616_v10 = vpop.eup %7615  ;;  %v11918_v19 = vsel %vm1989_vm0, 1.0, %v13121_v25  ;;  %vm1990_vm14 = vcmp.eq.f32.partialorder %v7906_v23, %v1934_v15 }
 0x5ab   :  { %7617 = vpow2.f32 %v4052_v9  ;;  %v11905_v40 = vadd.f32 %v11730_v24, %v3772_v42  ;;  %6967 = vmatmul.msk.bf16.gmra.mxu0 %vm4393_vm10, %v4364_v60  ;;  %5183 = vmatpush.msra.mxu2 %v5087_v28  ;;  %v4217_v46 = vmul.f32 0.6931472, %v7616_v10  ;;  %13550 = vst [vmem:[#allocation43_spill] sm:$0xff] %v11918_v19 }
 0x5ac   :  { %7619 = vlog2.f32 %v4111_v49  ;;  %v11915_v39 = vpop.f32.mrf.mxu1  ;;  %v3831_v49 = vmax.f32 %v11861_v2, 0.0 }
 0x5ad   :  { %v3889_v48 = vand.u32 2147483647, %v11905_v40  ;;  %5184 = vmatpush.msra.mxu2 %v5086_v26  ;;  %v4278_v28 = vadd.f32 %v4217_v46, %v3830_v63  ;;  %v13554_v46 = vld [vmem:[#allocation133_spill] sm:$0xff] }
 0x5ae   :  { %7034 = vmatmul.msk.f32.gmra.mxu1 %vm4393_vm10, %v11918_v19  ;;  %v13566_v19 = vmov 1.0  }
 0x5af   :  { %v3945_v51 = vsub.f32 0.0, %v3889_v48  ;;  %5185 = vmatpush.msra.mxu2 %v5085_v17  ;;  %v6921_v11 = vadd.f32 -0.6931472, %v4278_v28  ;;  %v11943_v48 = vsel %vm1990_vm14, 1.0, %v13121_v25 }
 0x5b0   :  { %v11921_v34 = vpop.f32.mrf.mxu0  ;;  %13553 = vst [vmem:[#allocation108_spill] sm:$0xff] %v11943_v48 }
 0x5b1   :  { %v7618_v56 = vpop.eup %7617  ;;  %v4054_v37 = vmul.f32 1.442695, %v3945_v51  ;;  %5186 = vmatpush.msra.mxu2 %v5084_v62  ;;  %v1879_v62 = vmul.f32 8.0, %v13554_v46 }
 0x5b2   :  { %v7620_v0 = vpop.eup %7619  ;;  %v4112_v9 = vadd.f32 1.0, %v7618_v56  ;;  %v3775_v60 = vpop.f32.mrf.mxu2 }
 0x5b3   :  { %v4219_v42 = vmul.f32 0.6931472, %v7620_v0  ;;  %7621 = vpow2.f32 %v4054_v37  ;;  %v11928_v4 = vadd.f32 %v11730_v24, %v3775_v60  ;;  %5187 = vmatpush.msra.mxu2 %v11736_v5  ;;  %v13555_v37 = vld [vmem:[#allocation23_spill] sm:$0xff]  ;;  %v5078_v60 = vmul.f32 %v11566_v14, %v11936_v21 }
 0x5b4   :  { %7623 = vlog2.f32 %v4112_v9  ;;  %v11940_v5 = vpop.f32.mrf.mxu1  ;;  %v11958_v9 = vadd.f32 %v11772_v50, %v11571_v27  ;;  %v11971_v27 = vadd.f32 %v11772_v50, %v11545_v57  ;;  %v5077_v14 = vmul.f32 %v11540_v6, %v11950_v32  ;;  %v13558_v57 = vld [vmem:[#allocation10_spill] sm:$0xff]  ;;  %v13559_v6 = vld [vmem:[#allocation39_spill] sm:$0xff] }
 0x5b5   :  { %v4279_v10 = vadd.f32 %v4219_v42, %v3831_v49  ;;  %v3890_v26 = vand.u32 2147483647, %v11928_v4  ;;  %5188 = vmatpush.msra.mxu2 %v11712_v41 }
 0x5b6   :  { %7035 = vmatmul.msk.f32.gmra.mxu1 %vm4393_vm10, %v11943_v48  ;;  %v5076_v49 = vmul.f32 %v11518_v59, %v11958_v9  ;;  %v13565_v48 = vld [vmem:[#allocation6_spill] sm:$0xff] }
 0x5b7   :  { %v6922_v2 = vadd.f32 -0.6931472, %v4279_v10  ;;  %v3946_v17 = vsub.f32 0.0, %v3890_v26  ;;  %5189 = vmatpush.msra.mxu2 %v11690_v58  ;;  %v1935_v58 = vadd.f32 %v1879_v62, %v13555_v37  ;;  %v1936_v26 = vadd.f32 %v1880_v29, %v13558_v57  ;;  %v13560_v37 = vld [vmem:[#allocation68_spill] sm:$0xff] }
 0x5b8   :  { %v11946_v41 = vpop.f32.mrf.mxu0  ;;  %v13562_v29 = vld [vmem:[#allocation24_spill] sm:$0xff] }
 0x5b9   :  { %v7622_v51 = vpop.eup %7621  ;;  %v4056_v63 = vmul.f32 1.442695, %v3946_v17  ;;  %5190 = vmatpush.msra.mxu2 %v11671_v54  ;;  %v4365_v56 = vpack.c.bf16 %v6922_v2, %v6921_v11  ;;  %vm1991_vm15 = vcmp.eq.f32.partialorder %v7906_v23, %v1935_v58  ;;  %v5075_v2 = vmul.f32 %v13559_v6, %v11971_v27 }
 0x5ba   :  { %v4113_v0 = vadd.f32 1.0, %v7622_v51  ;;  %v3777_v28 = vpop.f32.mrf.mxu2  ;;  %v7624_v54 = vpop.eup %7623  ;;  %v11981_v15 = vsel %vm1991_vm15, 1.0, %v13121_v25  ;;  %v3832_v17 = vmax.f32 %v11880_v55, 0.0  ;;  %vm1992_vm1 = vcmp.eq.f32.partialorder %v7906_v23, %v1936_v26 }
 0x5bb   :  { %7625 = vpow2.f32 %v4056_v63  ;;  %v11963_v12 = vadd.f32 %v11730_v24, %v3777_v28  ;;  %6968 = vmatmul.msk.bf16.gmra.mxu0 %vm4393_vm10, %v4365_v56  ;;  %5191 = vmatpush.msra.mxu2 %v11649_v31  ;;  %v4221_v31 = vmul.f32 0.6931472, %v7624_v54  ;;  %13557 = vst [vmem:[#allocation45_spill] sm:$0xff] %v11981_v15  ;;  %v3833_v63 = vmax.f32 %v11905_v40, 0.0 }
 0x5bc   :  { %7627 = vlog2.f32 %v4113_v0  ;;  %v11978_v3 = vpop.f32.mrf.mxu1  ;;  %v1881_v58 = vmul.f32 8.0, %v13560_v37  ;;  %v11995_v54 = vsel %vm1992_vm1, 1.0, %v13121_v25  ;;  %v3834_v6 = vmax.f32 %v11928_v4, 0.0 }
 0x5bd   :  { %v3891_v24 = vand.u32 2147483647, %v11963_v12  ;;  %5192 = vmatpush.msra.mxu2 %v5078_v60  ;;  %v4280_v51 = vadd.f32 %v4221_v31, %v3832_v17  ;;  %13561 = vst [vmem:[#allocation52_spill] sm:$0xff] %v11995_v54 }
 0x5be   :  { %7036 = vmatmul.msk.f32.gmra.mxu1 %vm4393_vm10, %v11981_v15 }
 0x5bf   :  { %v3947_v42 = vsub.f32 0.0, %v3891_v24  ;;  %5193 = vmatpush.msra.mxu2 %v5077_v14  ;;  %v6923_v55 = vadd.f32 -0.6931472, %v4280_v51  ;;  %v1937_v14 = vadd.f32 %v1881_v58, %v13562_v29 }
 0x5c0   :  { %v11983_v10 = vpop.f32.mrf.mxu0 }
 0x5c1   :  { %v7626_v11 = vpop.eup %7625  ;;  %v4058_v46 = vmul.f32 1.442695, %v3947_v42  ;;  %5194 = vmatpush.msra.mxu2 %v5076_v49  ;;  %vm1993_vm3 = vcmp.eq.f32.partialorder %v7906_v23, %v1937_v14 }
 0x5c2   :  { %v7628_v59 = vpop.eup %7627  ;;  %v4114_v62 = vadd.f32 1.0, %v7626_v11  ;;  %v12007_v26 = vsel %vm1993_vm3, 1.0, %v13121_v25 }
 0x5c3   :  { %v4223_v56 = vmul.f32 0.6931472, %v7628_v59  ;;  %7629 = vpow2.f32 %v4058_v46  ;;  %5195 = vmatpush.msra.mxu2 %v5075_v2  ;;  %13563 = vst [vmem:[#allocation49_spill] sm:$0xff] %v12007_v26  ;;  %v3835_v59 = vmax.f32 %v11963_v12, 0.0 }
 0x5c4   :  { %7631 = vlog2.f32 %v4114_v62  ;;  %v5005_v60 = vpop.f32.mrf.mxu1 }
 0x5c5   :  { %v4281_v0 = vadd.f32 %v4223_v56, %v3833_v63 }
 0x5c6   :  { %7037 = vmatmul.msk.f32.gmra.mxu1 %vm4393_vm10, %v11995_v54 }
 0x5c7   :  { %v6924_v28 = vadd.f32 -0.6931472, %v4281_v0 }
 0x5c8   :  { %v11997_v16 = vpop.f32.mrf.mxu0 }
 0x5c9   :  { %v7630_v40 = vpop.eup %7629  ;;  %v4366_v24 = vpack.c.bf16 %v6924_v28, %v6923_v55 }
 0x5ca   :  { %v4115_v49 = vadd.f32 1.0, %v7630_v40  ;;  %v7632_v31 = vpop.eup %7631 }
 0x5cb   :  { %6969 = vmatmul.msk.bf16.gmra.mxu0 %vm4393_vm10, %v4366_v24  ;;  %v4225_v42 = vmul.f32 0.6931472, %v7632_v31 }
 0x5cc   :  { %7633 = vlog2.f32 %v4115_v49  ;;  %v12004_v57 = vpop.f32.mrf.mxu1 }
 0x5cd   :  { %v4282_v46 = vadd.f32 %v4225_v42, %v3834_v6 }
 0x5ce   :  { %7038 = vmatmul.msk.f32.gmra.mxu1 %vm4393_vm10, %v12007_v26 }
 0x5cf   :  { %v6925_v63 = vadd.f32 -0.6931472, %v4282_v46 }
 0x5d0   :  { %v4579_v11 = vpop.f32.mrf.mxu0 }
 0x5d1   :  { %v12011_v2 = vadd.f32 %v11772_v50, %v4579_v11 }
 0x5d2   :  { %v7634_v17 = vpop.eup %7633 }
 0x5d3   :  { %v4227_v62 = vmul.f32 0.6931472, %v7634_v17  ;;  %5895 = vrot.lane.b32.xlu0 %v12011_v2, %s7743_s26 }
 0x5d4   :  { %v12018_v37 = vpop.f32.mrf.mxu1 }
 0x5d5   :  { %v4283_v51 = vadd.f32 %v4227_v62, %v3835_v59 }
 0x5d7   :  { %v6926_v56 = vadd.f32 -0.6931472, %v4283_v51 }
 0x5d8   :  { %v4582_v4 = vpop.f32.mrf.mxu0 }
 0x5d9   :  { %v4583_v58 = vadd.f32 %v11772_v50, %v4582_v4  ;;  %v4367_v0 = vpack.c.bf16 %v6926_v56, %v6925_v63 }
 0x5db   :  { %v12021_v55 = vmul.f32 %v5005_v60, %v4583_v58  ;;  %5897 = vrot.lane.b32.xlu0 %v4583_v58, %s7743_s26  ;;  %6970 = vmatmul.msk.bf16.gmra.mxu0 %vm4393_vm10, %v4367_v0  ;;  %v2112_v0 = vadd.f32 0.5, %v7906_v23 }
 0x5dc   :  { %v12025_v12 = vpop.f32.mrf.mxu1 }
 0x5e0   :  { %v4584_v28 = vpop.f32.mrf.mxu0 }
 0x5e1   :  { %v12028_v29 = vadd.f32 %v11772_v50, %v4584_v28  ;;  %v13564_v28 = vld [vmem:[#allocation5_spill] sm:$0xff] }
 0x5e3   :  { %5899 = vrot.lane.b32.xlu0 %v12028_v29, %s7743_s26 }
 0x5e4   :  { %v12032_v14 = vpop.f32.mrf.mxu1 }
 0x5e8   :  { %v4587_v40 = vpop.f32.mrf.mxu0 }
 0x5e9   :  { %v12035_v24 = vadd.f32 %v11772_v50, %v4587_v40  ;;  %v2106_v40 = vadd.s32 128, %v13564_v28 }
 0x5eb   :  { %5901 = vrot.lane.b32.xlu0 %v12035_v24, %s7743_s26 }
 0x5ec   :  { %v5020_v60 = vpop.f32.mrf.mxu1 }
 0x5f0   :  { %v4589_v49 = vpop.f32.mrf.mxu0 }
 0x5f1   :  { %v12040_v31 = vadd.f32 %v11772_v50, %v4589_v49  ;;  %v2116_v49 = vmul.f32 0.14285715, %v2112_v0 }
 0x5f3   :  { %5903 = vrot.lane.b32.xlu0 %v12040_v31, %s7743_s26  ;;  %v12054_v26 = vfloor.f32 %v2116_v49 }
 0x5f4   :  { %v5023_v42 = vpop.f32.mrf.mxu1 }
 0x5f5   :  { %vm2124_vm2 = vcmp.eq.f32.partialorder %v13565_v48, %v12054_v26 }
 0x5f6   :  { %7039 = vmatmul.msk.f32.vlgmr.msra.gmra.mxu3 %vm2124_vm2, %v13566_v19 }
 0x5f8   :  { %v4592_v11 = vpop.f32.mrf.mxu0 }
 0x5f9   :  { %v4593_v6 = vadd.f32 %v11772_v50, %v4592_v11  ;;  %v2109_v11 = vcvt.s32.f32 %v2106_v40  ;;  %v13568_v40 = vld [vmem:[#allocation7_spill] sm:$0xff] }
 0x5fa   :  { %vm2128_vm5 = vcmp.eq.f32.partialorder %v13568_v40, %v12054_v26 }
 0x5fb   :  { %5905 = vrot.lane.b32.xlu1 %v4593_v6, %s7743_s26  ;;  %v2113_v54 = vadd.f32 0.5, %v2109_v11 }
 0x5fc   :  { %v5026_v17 = vpop.f32.mrf.mxu1 }
 0x5fe   :  { %7040 = vmatmul.msk.f32.gmra.mxu3 %vm2128_vm5, %v13566_v19 }
 0x600   :  { %v4594_v46 = vpop.f32.mrf.mxu0 }
 0x601   :  { %v4595_v59 = vadd.f32 %v11772_v50, %v4594_v46 }
 0x603   :  { %5907 = vrot.lane.b32.xlu2 %v4595_v59, %s7743_s26 }
 0x604   :  { %v5029_v62 = vpop.f32.mrf.mxu1 }
 0x608   :  { %v4597_v51 = vpop.f32.mrf.mxu0 }
 0x609   :  { %v4598_v63 = vadd.f32 %v11772_v50, %v4597_v51 }
 0x60b   :  { %5909 = vrot.lane.b32.xlu0 %v4598_v63, %s7743_s26 }
 0x60c   :  { %v5032_v4 = vpop.f32.mrf.mxu1 }
 0x610   :  { %v4599_v56 = vpop.f32.mrf.mxu0 }
 0x611   :  { %v4600_v58 = vadd.f32 %v11772_v50, %v4599_v56  ;;  %v2117_v56 = vmul.f32 0.14285715, %v2113_v54 }
 0x613   :  { %5911 = vrot.lane.b32.xlu1 %v4600_v58, %s7743_s26  ;;  %v12066_v23 = vfloor.f32 %v2117_v56  ;;  %v5104_v56 = vmul.f32 %v5026_v17, %v4600_v58  ;;  %v5102_v17 = vmul.f32 %v5020_v60, %v4595_v59  ;;  %v5101_v58 = vmul.f32 %v12032_v14, %v4593_v6 }
 0x614   :  { %v12057_v15 = vpop.f32.mrf.mxu1  ;;  %v4575_v14 = vadd.f32 %v11772_v50, %v11983_v10  ;;  %v5099_v6 = vmul.f32 %v12018_v37, %v12035_v24 }
 0x615   :  { %13567 = vst [vmem:[#allocation109_spill] sm:$0xff] %v12066_v23  ;;  %vm2125_vm4 = vcmp.eq.f32.partialorder %v13565_v48, %v12066_v23  ;;  %vm2129_vm6 = vcmp.eq.f32.partialorder %v13568_v40, %v12066_v23 }
 0x616   :  { %7047 = vmatmul.msk.f32.vlgmr.msra.gmra.mxu2 %vm2125_vm4, %v13566_v19 }
 0x618   :  { %v4602_v46 = vpop.f32.mrf.mxu0 }
 0x619   :  { %v4603_v51 = vadd.f32 %v11772_v50, %v4602_v46 }
 0x61b   :  { %5913 = vrot.lane.b32.xlu2 %v4603_v51, %s7743_s26  ;;  %v5105_v46 = vmul.f32 %v5029_v62, %v4603_v51  ;;  %v5103_v62 = vmul.f32 %v5023_v42, %v4598_v63  ;;  %v2107_v51 = vadd.s32 256, %v13564_v28  ;;  %v13570_v42 = vld [vmem:[#allocation12_spill] sm:$0xff]  ;;  %v13571_v63 = vld [vmem:[#allocation13_spill] sm:$0xff] }
 0x61c   :  { %v12080_v11 = vpop.f32.mrf.mxu1  ;;  %vm2136_vm11 = vcmp.eq.f32.partialorder %v13570_v42, %v12054_v26  ;;  %vm13070_vm13 = vcmp.eq.f32.partialorder %v13570_v42, %v12066_v23  ;;  %vm2140_vm12 = vcmp.eq.f32.partialorder %v13571_v63, %v12054_v26  ;;  %vm13067_vm0 = vcmp.eq.f32.partialorder %v13571_v63, %v12066_v23 }
 0x61d   :  { %v2110_v59 = vcvt.s32.f32 %v2107_v51 }
 0x61e   :  { %7048 = vmatmul.msk.f32.gmra.mxu2 %vm2129_vm6, %v13566_v19 }
 0x61f   :  { %v2114_v10 = vadd.f32 0.5, %v2110_v59 }
 0x620   :  { %v4604_v0 = vpop.f32.mrf.mxu0 }
 0x621   :  { %v4605_v54 = vadd.f32 %v11772_v50, %v4604_v0  ;;  %v13569_v0 = vld [vmem:[#allocation9_spill] sm:$0xff] }
 0x622   :  { %vm2132_vm7 = vcmp.eq.f32.partialorder %v13569_v0, %v12054_v26  ;;  %vm13079_vm9 = vcmp.eq.f32.partialorder %v13569_v0, %v12066_v23 }
 0x623   :  { %v5106_v49 = vmul.f32 %v5032_v4, %v4605_v54  ;;  %5915 = vrot.lane.b32.xlu0 %v4605_v54, %s7743_s26  ;;  %5859 = vrot.lane.b32.xlu2 %v11936_v21, %s7743_s26  ;;  %v4578_v4 = vadd.f32 %v11772_v50, %v11997_v16  ;;  %v2118_v54 = vmul.f32 0.14285715, %v2114_v10 }
 0x624   :  { %7041 = vmatmul.msk.f32.gmra.mxu3 %vm2132_vm7, %v13566_v19  ;;  %v12106_v16 = vpop.f32.mrf.mxu1 }
 0x625   :  { %5221 = vmatpush.msra.mxu0 %v5106_v49  ;;  %v13573_v49 = vld [vmem:[#allocation14_spill] sm:$0xff] }
 0x626   :  { %7049 = vmatmul.msk.f32.gmra.mxu2 %vm13079_vm9, %v13566_v19  ;;  %vm2144_vm14 = vcmp.eq.f32.partialorder %v13573_v49, %v12054_v26  ;;  %vm13069_vm1 = vcmp.eq.f32.partialorder %v13573_v49, %v12066_v23 }
 0x627   :  { %5222 = vmatpush.msra.mxu0 %v5105_v46  ;;  %v13574_v46 = vld [vmem:[#allocation17_spill] sm:$0xff] }
 0x628   :  { %v12092_v21 = vpop.f32.mrf.mxu0  ;;  %vm2148_vm3 = vcmp.eq.f32.partialorder %v13574_v46, %v12054_v26 }
 0x629   :  { %5223 = vmatpush.msra.mxu0 %v5104_v56 }
 0x62b   :  { %5893 = vrot.lane.b32.xlu0 %v4578_v4, %s7743_s26  ;;  %5857 = vrot.lane.b32.xlu2 %v11950_v32, %s7743_s26  ;;  %v5100_v32 = vmul.f32 %v12025_v12, %v12040_v31  ;;  %v5098_v12 = vmul.f32 %v12004_v57, %v12028_v29  ;;  %v4573_v29 = vadd.f32 %v11772_v50, %v11946_v41 }
 0x62c   :  { %5224 = vmatpush.msra.mxu0 %v5103_v62  ;;  %7042 = vmatmul.msk.f32.gmra.mxu3 %vm2136_vm11, %v13566_v19  ;;  %v12143_v37 = vpop.f32.mrf.mxu1  ;;  %v5095_v31 = vmul.f32 %v11940_v5, %v4578_v4  ;;  %v5094_v41 = vmul.f32 %v11915_v39, %v4575_v14  ;;  %v12167_v5 = vadd.f32 %v11772_v50, %v11895_v1 }
 0x62e   :  { %5225 = vmatpush.msra.mxu0 %v5102_v17  ;;  %7050 = vmatmul.msk.f32.gmra.mxu2 %vm13070_vm13, %v13566_v19  ;;  %v13575_v17 = vld [vmem:[#allocation19_spill] sm:$0xff] }
 0x630   :  { %5226 = vmatpush.msra.mxu0 %v5101_v58  ;;  %v12117_v60 = vpop.f32.mrf.mxu0 }
 0x632   :  { %5227 = vmatpush.msra.mxu0 %v5100_v32 }
 0x633   :  { %5891 = vrot.lane.b32.xlu0 %v4575_v14, %s7743_s26  ;;  %5855 = vrot.lane.b32.xlu2 %v11958_v9, %s7743_s26  ;;  %v5096_v9 = vmul.f32 %v11978_v3, %v12011_v2  ;;  %v4570_v3 = vadd.f32 %v11772_v50, %v11921_v34  ;;  %v12170_v2 = vfloor.f32 %v2118_v54  ;;  %v2108_v14 = vadd.s32 384, %v13564_v28 }
 0x634   :  { %5228 = vmatpush.msra.mxu0 %v5099_v6  ;;  %7043 = vmatmul.msk.f32.gmra.mxu3 %vm2140_vm12, %v13566_v19 }
 0x635   :  { %13572 = vst [vmem:[#allocation57_spill] sm:$0xff] %v12170_v2  ;;  %v5092_v39 = vmul.f32 %v11868_v47, %v4570_v3  ;;  %vm13068_vm15 = vcmp.eq.f32.partialorder %v13565_v48, %v12170_v2  ;;  %vm13073_vm13 = vcmp.eq.f32.partialorder %v13569_v0, %v12170_v2  ;;  %v2111_v6 = vcvt.s32.f32 %v2108_v14 }
 0x636   :  { %5229 = vmatpush.msra.mxu0 %v5098_v12  ;;  %7051 = vmatmul.msk.f32.gmra.mxu2 %vm13067_vm0, %v13566_v19  ;;  %vm13071_vm0 = vcmp.eq.f32.partialorder %v13568_v40, %v12170_v2 }
 0x638   :  { %5230 = vmatpush.msra.mxu0 %v12021_v55  ;;  %v4612_v57 = vpop.f32.mrf.mxu0  ;;  %v5047_v55 = vpop.f32.mrf.mxu1 }
 0x639   :  { %v12148_v24 = vadd.f32 %v11772_v50, %v4612_v57 }
 0x63a   :  { %5231 = vmatpush.msra.mxu0 %v5096_v9  ;;  %v2115_v9 = vadd.f32 0.5, %v2111_v6 }
 0x63b   :  { %5889 = vrot.lane.b32.xlu0 %v4573_v29, %s7743_s26  ;;  %5853 = vrot.lane.b32.xlu2 %v11971_v27, %s7743_s26  ;;  %v5093_v27 = vmul.f32 %v11890_v20, %v4573_v29  ;;  %v5091_v20 = vmul.f32 %v11851_v44, %v12167_v5 }
 0x63c   :  { %5232 = vmatpush.msra.mxu0 %v5095_v31  ;;  %5921 = vrot.lane.b32.xlu1 %v12148_v24, %s7743_s26  ;;  %v2119_v29 = vmul.f32 0.14285715, %v2115_v9 }
 0x63d   :  { %7044 = vmatmul.msk.f32.gmra.mxu3 %vm2144_vm14, %v13566_v19 }
 0x63e   :  { %5233 = vmatpush.msra.mxu0 %v5094_v41  ;;  %7052 = vmatmul.msk.f32.gmra.mxu2 %vm13069_vm1, %v13566_v19  ;;  %vm2152_vm1 = vcmp.eq.f32.partialorder %v13575_v17, %v12054_v26  ;;  %v2123_v41 = vfloor.f32 %v2119_v29 }
 0x640   :  { %5234 = vmatpush.msra.mxu0 %v5093_v27  ;;  %v4614_v34 = vpop.f32.mrf.mxu0  ;;  %v5050_v56 = vpop.f32.mrf.mxu1  ;;  %vm2143_vm9 = vcmp.eq.f32.partialorder %v13571_v63, %v2123_v41 }
 0x641   :  { %v4615_v1 = vadd.f32 %v11772_v50, %v4614_v34  ;;  %v5109_v34 = vmul.f32 %v12106_v16, %v12148_v24 }
 0x642   :  { %5235 = vmatpush.msra.mxu0 %v5092_v39  ;;  %v4608_v39 = vadd.f32 %v11772_v50, %v12092_v21  ;;  %v12316_v21 = vsel %vm2143_vm9, 1.0, %v13121_v25  ;;  %vm2155_vm9 = vcmp.eq.f32.partialorder %v13575_v17, %v2123_v41 }
 0x643   :  { %5887 = vrot.lane.b32.xlu0 %v4570_v3, %s7743_s26  ;;  %v4610_v3 = vadd.f32 %v11772_v50, %v12117_v60  ;;  %v5110_v27 = vmul.f32 %v12143_v37, %v4615_v1  ;;  %13580 = vst [vmem:[#allocation92_spill] sm:$0xff] %v12316_v21 }
 0x644   :  { %5236 = vmatpush.msra.mxu0 %v5091_v20  ;;  %5923 = vrot.lane.b32.xlu1 %v4615_v1, %s7743_s26  ;;  %v5107_v37 = vmul.f32 %v12057_v15, %v4608_v39  ;;  %v12334_v20 = vsel %vm2155_vm9, 1.0, %v13121_v25 }
 0x645   :  { %7055 = vmatmul.msk.f32.vlgmr.msra.gmra.mxu0 %vm13068_vm15, %v13566_v19  ;;  %7045 = vmatmul.msk.f32.gmra.mxu3 %vm2148_vm3, %v13566_v19  ;;  %vm13072_vm15 = vcmp.eq.f32.partialorder %v13574_v46, %v12066_v23  ;;  %v5108_v60 = vmul.f32 %v12080_v11, %v4610_v3  ;;  %13583 = vst [vmem:[#allocation30_spill] sm:$0xff] %v12334_v20 }
 0x646   :  { %7053 = vmatmul.msk.f32.gmra.mxu2 %vm13072_vm15, %v13566_v19  ;;  %vm13074_vm15 = vcmp.eq.f32.partialorder %v13570_v42, %v12170_v2 }
 0x648   :  { %v4617_v44 = vpop.f32.mrf.mxu0  ;;  %v5053_v58 = vpop.f32.mrf.mxu1 }
 0x649   :  { %v4618_v47 = vadd.f32 %v11772_v50, %v4617_v44 }
 0x64b   :  { %v5111_v54 = vmul.f32 %v5047_v55, %v4618_v47 }
 0x64c   :  { %5925 = vrot.lane.b32.xlu1 %v4618_v47, %s7743_s26 }
 0x64d   :  { %7056 = vmatmul.msk.f32.gmra.mxu0 %vm13071_vm0, %v13566_v19  ;;  %7046 = vmatmul.msk.f32.gmra.mxu3 %vm2152_vm1, %v13566_v19  ;;  %vm13076_vm0 = vcmp.eq.f32.partialorder %v13575_v17, %v12066_v23 }
 0x64e   :  { %7054 = vmatmul.msk.f32.gmra.mxu2 %vm13076_vm0, %v13566_v19  ;;  %vm13078_vm0 = vcmp.eq.f32.partialorder %v13574_v46, %v12170_v2 }
 0x650   :  { %v4619_v4 = vpop.f32.mrf.mxu0  ;;  %v5056_v12 = vpop.f32.mrf.mxu1 }
 0x651   :  { %v4620_v62 = vadd.f32 %v11772_v50, %v4619_v4  ;;  %v7258_v4 = vld [vmem:[%s12785_s5 + $0x18] sm:$0xff] }
 0x652   :  { %5338 = vmatpush.bf16.msrb.mxu2 %v7258_v4 }
 0x653   :  { %v5112_v31 = vmul.f32 %v5050_v56, %v4620_v62 }
 0x654   :  { %5927 = vrot.lane.b32.xlu1 %v4620_v62, %s7743_s26 }
 0x655   :  { %7057 = vmatmul.msk.f32.gmra.mxu0 %vm13073_vm13, %v13566_v19  ;;  %vm13075_vm13 = vcmp.eq.f32.partialorder %v13571_v63, %v12170_v2 }
 0x658   :  { %v4622_v51 = vpop.f32.mrf.mxu0 }
 0x659   :  { %v4623_v32 = vadd.f32 %v11772_v50, %v4622_v51 }
 0x65b   :  { %v5113_v57 = vmul.f32 %v5053_v58, %v4623_v32  ;;  %v7257_v58 = vld [vmem:[%s12785_s5 + $0x10] sm:$0xff] }
 0x65c   :  { %5929 = vrot.lane.b32.xlu1 %v4623_v32, %s7743_s26  ;;  %5339 = vmatpush.bf16.msrb.mxu2 %v7257_v58 }
 0x65d   :  { %7058 = vmatmul.msk.f32.gmra.mxu0 %vm13074_vm15, %v13566_v19  ;;  %vm13077_vm15 = vcmp.eq.f32.partialorder %v13573_v49, %v12170_v2 }
 0x660   :  { %v4624_v59 = vpop.f32.mrf.mxu0 }
 0x661   :  { %v4625_v10 = vadd.f32 %v11772_v50, %v4624_v59 }
 0x663   :  { %v5114_v28 = vmul.f32 %v5056_v12, %v4625_v10 }
 0x664   :  { %5931 = vrot.lane.b32.xlu1 %v4625_v10, %s7743_s26 }
 0x665   :  { %5270 = vmatpush.msrb.mxu3 %v5114_v28  ;;  %7059 = vmatmul.msk.f32.gmra.mxu0 %vm13075_vm13, %v13566_v19  ;;  %vm2127_vm13 = vcmp.eq.f32.partialorder %v13565_v48, %v2123_v41 }
 0x666   :  { %v12277_v1 = vsel %vm2127_vm13, 1.0, %v13121_v25  ;;  %vm2154_vm13 = vcmp.eq.f32.partialorder %v13575_v17, %v12170_v2 }
 0x667   :  { %5271 = vmatpush.msrb.mxu3 %v5113_v57  ;;  %13576 = vst [vmem:[#allocation114_spill] sm:$0xff] %v12277_v1 }
 0x669   :  { %5272 = vmatpush.msrb.mxu3 %v5112_v31 }
 0x66b   :  { %5273 = vmatpush.msrb.mxu3 %v5111_v54 }
 0x66c   :  { %5919 = vrot.lane.b32.xlu1 %v4610_v3, %s7743_s26 }
 0x66d   :  { %5274 = vmatpush.msrb.mxu3 %v5110_v27  ;;  %7060 = vmatmul.msk.f32.gmra.mxu0 %vm13077_vm15, %v13566_v19  ;;  %vm2131_vm15 = vcmp.eq.f32.partialorder %v13568_v40, %v2123_v41 }
 0x66e   :  { %v12290_v50 = vsel %vm2131_vm15, 1.0, %v13121_v25  ;;  %vm2139_vm15 = vcmp.eq.f32.partialorder %v13570_v42, %v2123_v41 }
 0x66f   :  { %5275 = vmatpush.msrb.mxu3 %v5109_v34  ;;  %13577 = vst [vmem:[#allocation69_spill] sm:$0xff] %v12290_v50  ;;  %v12310_v11 = vsel %vm2139_vm15, 1.0, %v13121_v25  ;;  %vm2151_vm15 = vcmp.eq.f32.partialorder %v13574_v46, %v2123_v41 }
 0x670   :  { %13579 = vst [vmem:[#allocation70_spill] sm:$0xff] %v12310_v11  ;;  %v12328_v24 = vsel %vm2151_vm15, 1.0, %v13121_v25 }
 0x671   :  { %5276 = vmatpush.msrb.mxu3 %v5108_v60  ;;  %13582 = vst [vmem:[#allocation89_spill] sm:$0xff] %v12328_v24 }
 0x673   :  { %5277 = vmatpush.msrb.mxu3 %v5107_v37 }
 0x674   :  { %5917 = vrot.lane.b32.xlu1 %v4608_v39, %s7743_s26  ;;  %7063 = vmatmul.msk.f32.vlgmr.msrb.gmra.mxu3 %vm4393_vm10, %v12277_v1 }
 0x675   :  { %7061 = vmatmul.msk.f32.gmra.mxu0 %vm13078_vm0, %v13566_v19  ;;  %vm2135_vm0 = vcmp.eq.f32.partialorder %v13569_v0, %v2123_v41 }
 0x676   :  { %v12304_v15 = vsel %vm2135_vm0, 1.0, %v13121_v25  ;;  %vm2147_vm0 = vcmp.eq.f32.partialorder %v13573_v49, %v2123_v41 }
 0x677   :  { %13578 = vst [vmem:[#allocation82_spill] sm:$0xff] %v12304_v15  ;;  %v12322_v16 = vsel %vm2147_vm0, 1.0, %v13121_v25 }
 0x678   :  { %13581 = vst [vmem:[#allocation75_spill] sm:$0xff] %v12322_v16 }
 0x67c   :  { %5885 = vrot.lane.b32.xlu1 %v12167_v5, %s7743_s26  ;;  %7064 = vmatmul.msk.f32.gmra.mxu3 %vm4393_vm10, %v12290_v50  ;;  %v5156_v5 = vpop.f32.mrf.mxu3 }
 0x67d   :  { %7062 = vmatmul.msk.f32.gmra.mxu0 %vm2154_vm13, %v13566_v19 }
 0x684   :  { %7065 = vmatmul.msk.f32.gmra.mxu3 %vm4393_vm10, %v12304_v15  ;;  %v5159_v55 = vpop.f32.mrf.mxu3 }
 0x68c   :  { %7066 = vmatmul.msk.f32.gmra.mxu3 %vm4393_vm10, %v12310_v11 }
 0x694   :  { %7067 = vmatmul.msk.f32.gmra.mxu3 %vm4393_vm10, %v12316_v21 }
 0x699   :  { %v5197_v25 = vpop.f32.mrf.mxu2 }
 0x69a   :  { %v5198_v28 = vadd.f32 %v5197_v25, %v5156_v5 }
 0x69c   :  { %7068 = vmatmul.msk.f32.gmra.mxu3 %vm4393_vm10, %v12322_v16 }
 0x6a1   :  { %v5200_v6 = vpop.f32.mrf.mxu2 }
 0x6a2   :  { %v5201_v57 = vadd.f32 %v5200_v6, %v5159_v55 }
 0x6a4   :  { %7069 = vmatmul.msk.f32.gmra.mxu3 %vm4393_vm10, %v12328_v24 }
 0x6a7   :  { %v5162_v44 = vpop.f32.mrf.mxu3 }
 0x6a9   :  { %v5203_v10 = vpop.f32.mrf.mxu2 }
 0x6aa   :  { %v5204_v4 = vadd.f32 %v5203_v10, %v5162_v44 }
 0x6ac   :  { %7070 = vmatmul.msk.f32.gmra.mxu3 %vm4393_vm10, %v12334_v20 }
 0x6af   :  { %v5165_v47 = vpop.f32.mrf.mxu3 }
 0x6b1   :  { %v5206_v27 = vpop.f32.mrf.mxu2 }
 0x6b2   :  { %v5207_v58 = vadd.f32 %v5206_v27, %v5165_v47 }
 0x6b7   :  { %v5168_v56 = vpop.f32.mrf.mxu3 }
 0x6b9   :  { %v5209_v37 = vpop.f32.mrf.mxu2 }
 0x6c0   :  { %v5171_v62 = vpop.f32.mrf.mxu3 }
 0x6c1   :  { %v5212_v6 = vpop.f32.mrf.mxu2 }
 0x6c2   :  { %v5238_v32 = vpop.f32.mrf.mxu0  ;;  %v5213_v44 = vadd.f32 %v5212_v6, %v5171_v62 }
 0x6c3   :  { %v5239_v29 = vadd.f32 %v5238_v32, %v5198_v28  ;;  %v7260_v32 = vld [vmem:[%s12785_s5 + $0x28] sm:$0xff]  ;;  %v5210_v28 = vadd.f32 %v5209_v37, %v5168_v56  ;;  %v12354_v37 = vld [vmem:[%s12786_s6] ss:$0 sm:$0xff] }
 0x6c4   :  { %5476 = vmatpush.bf16.msrb.mxu1 %v7260_v32 }
 0x6c8   :  { %v5174_v51 = vpop.f32.mrf.mxu3 }
 0x6ca   :  { %v5241_v59 = vpop.f32.mrf.mxu0 }
 0x6cb   :  { %v5242_v31 = vadd.f32 %v5241_v59, %v5201_v57  ;;  %v5215_v57 = vpop.f32.mrf.mxu2 }
 0x6d0   :  { %v5177_v14 = vpop.f32.mrf.mxu3 }
 0x6d2   :  { %v5244_v9 = vpop.f32.mrf.mxu0 }
 0x6d3   :  { %v5245_v24 = vadd.f32 %v5244_v9, %v5204_v4 }
 0x6da   :  { %v5247_v34 = vpop.f32.mrf.mxu0 }
 0x6db   :  { %v5248_v16 = vadd.f32 %v5247_v34, %v5207_v58 }
 0x6e2   :  { %v5250_v20 = vpop.f32.mrf.mxu0 }
 0x6e3   :  { %v5251_v47 = vadd.f32 %v5250_v20, %v5210_v28  ;;  %v7259_v28 = vld [vmem:[%s12785_s5 + $0x20] sm:$0xff] }
 0x6e4   :  { %5477 = vmatpush.bf16.msrb.mxu1 %v7259_v28 }
 0x6f7   :  { %v5279_v12 = vpop.f32.mrf.mxu3 }
 0x6f8   :  { %v5280_v3 = vadd.f32 %v5279_v12, %v5239_v29  ;;  %v5253_v12 = vpop.f32.mrf.mxu0 }
 0x6f9   :  { %v5254_v10 = vadd.f32 %v5253_v12, %v5213_v44 }
 0x6ff   :  { %v5282_v54 = vpop.f32.mrf.mxu3 }
 0x700   :  { %v5283_v41 = vadd.f32 %v5282_v54, %v5242_v31  ;;  %v5218_v54 = vpop.f32.mrf.mxu2 }
 0x701   :  { %v5219_v27 = vadd.f32 %v5218_v54, %v5177_v14 }
 0x702   :  { %v5303_v39 = vpack.c.bf16 %v5283_v41, %v5280_v3  ;;  %v5216_v41 = vadd.f32 %v5215_v57, %v5174_v51 }
 0x704   :  { %7079 = vmatmul.msk.bf16.vlgmr.msrb.gmra.mxu2 %vm3546_vm8, %v5303_v39 }
 0x707   :  { %v5285_v60 = vpop.f32.mrf.mxu3 }
 0x708   :  { %v5286_v5 = vadd.f32 %v5285_v60, %v5245_v24 }
 0x70f   :  { %v5288_v21 = vpop.f32.mrf.mxu3 }
 0x710   :  { %v5289_v55 = vadd.f32 %v5288_v21, %v5248_v16  ;;  %v5256_v21 = vpop.f32.mrf.mxu0 }
 0x711   :  { %v5257_v39 = vadd.f32 %v5256_v21, %v5216_v41 }
 0x712   :  { %v5304_v25 = vpack.c.bf16 %v5289_v55, %v5286_v5 }
 0x714   :  { %7080 = vmatmul.msk.bf16.gmra.mxu2 %vm3546_vm8, %v5304_v25 }
 0x717   :  { %v5291_v59 = vpop.f32.mrf.mxu3 }
 0x718   :  { %v5292_v29 = vadd.f32 %v5291_v59, %v5251_v47  ;;  %v5259_v3 = vpop.f32.mrf.mxu0 }
 0x719   :  { %v5260_v34 = vadd.f32 %v5259_v3, %v5219_v27 }
 0x71f   :  { %v5294_v9 = vpop.f32.mrf.mxu3 }
 0x720   :  { %v5295_v24 = vadd.f32 %v5294_v9, %v5254_v10 }
 0x722   :  { %v5305_v16 = vpack.c.bf16 %v5295_v24, %v5292_v29 }
 0x724   :  { %7081 = vmatmul.msk.bf16.gmra.mxu2 %vm3546_vm8, %v5305_v16 }
 0x727   :  { %v5297_v31 = vpop.f32.mrf.mxu3 }
 0x728   :  { %v5298_v56 = vadd.f32 %v5297_v31, %v5257_v39 }
 0x72f   :  { %v5300_v60 = vpop.f32.mrf.mxu3 }
 0x730   :  { %v5301_v62 = vadd.f32 %v5300_v60, %v5260_v34 }
 0x732   :  { %v5306_v20 = vpack.c.bf16 %v5301_v62, %v5298_v56 }
 0x734   :  { %7082 = vmatmul.msk.bf16.gmra.mxu2 %vm3546_vm8, %v5306_v20 }
 0x787   :  { %v5341_v4 = vpop.f32.mrf.mxu2 }
 0x788   :  { %v5342_v58 = vadd.f32 %v12354_v37, %v5341_v4 }
 0x78a   :  { %v5369_v5 = vand.u32 2147483647, %v5342_v58  ;;  %v5361_v34 = vmax.f32 %v5342_v58, 0.0 }
 0x78c   :  { %v5377_v55 = vsub.f32 0.0, %v5369_v5 }
 0x78e   :  { %v5385_v51 = vmul.f32 1.442695, %v5377_v55 }
 0x78f   :  { %v5343_v14 = vpop.f32.mrf.mxu2 }
 0x790   :  { %7635 = vpow2.f32 %v5385_v51  ;;  %v5344_v25 = vadd.f32 %v12354_v37, %v5343_v14 }
 0x792   :  { %v5370_v32 = vand.u32 2147483647, %v5344_v25  ;;  %v5362_v62 = vmax.f32 %v5344_v25, 0.0 }
 0x794   :  { %v5378_v6 = vsub.f32 0.0, %v5370_v32 }
 0x796   :  { %v7636_v59 = vpop.eup %7635  ;;  %v5387_v12 = vmul.f32 1.442695, %v5378_v6 }
 0x797   :  { %v5401_v44 = vadd.f32 1.0, %v7636_v59  ;;  %v5346_v47 = vpop.f32.mrf.mxu2 }
 0x798   :  { %7637 = vpow2.f32 %v5387_v12  ;;  %v5347_v10 = vadd.f32 %v12354_v37, %v5346_v47 }
 0x799   :  { %7639 = vlog2.f32 %v5401_v44 }
 0x79a   :  { %v5371_v9 = vand.u32 2147483647, %v5347_v10 }
 0x79c   :  { %v5379_v57 = vsub.f32 0.0, %v5371_v9 }
 0x79e   :  { %v7638_v29 = vpop.eup %7637  ;;  %v5389_v24 = vmul.f32 1.442695, %v5379_v57 }
 0x79f   :  { %v5402_v21 = vadd.f32 1.0, %v7638_v29  ;;  %v5348_v16 = vpop.f32.mrf.mxu2  ;;  %v7640_v54 = vpop.eup %7639 }
 0x7a0   :  { %7641 = vpow2.f32 %v5389_v24  ;;  %v5349_v31 = vadd.f32 %v12354_v37, %v5348_v16  ;;  %v5410_v41 = vmul.f32 0.6931472, %v7640_v54  ;;  %v5363_v54 = vmax.f32 %v5347_v10, 0.0 }
 0x7a1   :  { %7643 = vlog2.f32 %v5402_v21 }
 0x7a2   :  { %v5372_v3 = vand.u32 2147483647, %v5349_v31  ;;  %v5425_v5 = vadd.f32 %v5410_v41, %v5361_v34 }
 0x7a4   :  { %v5380_v27 = vsub.f32 0.0, %v5372_v3  ;;  %v7083_v6 = vadd.f32 -0.6931472, %v5425_v5 }
 0x7a6   :  { %v7642_v39 = vpop.eup %7641  ;;  %v5391_v60 = vmul.f32 1.442695, %v5380_v27  ;;  %v5364_v27 = vmax.f32 %v5349_v31, 0.0 }
 0x7a7   :  { %v7644_v56 = vpop.eup %7643  ;;  %v5403_v20 = vadd.f32 1.0, %v7642_v39  ;;  %v5351_v4 = vpop.f32.mrf.mxu2 }
 0x7a8   :  { %v5412_v55 = vmul.f32 0.6931472, %v7644_v56  ;;  %7645 = vpow2.f32 %v5391_v60  ;;  %v5352_v51 = vadd.f32 %v12354_v37, %v5351_v4 }
 0x7a9   :  { %7647 = vlog2.f32 %v5403_v20 }
 0x7aa   :  { %v5426_v14 = vadd.f32 %v5412_v55, %v5362_v62  ;;  %v5373_v32 = vand.u32 2147483647, %v5352_v51 }
 0x7ac   :  { %v7084_v59 = vadd.f32 -0.6931472, %v5426_v14  ;;  %v5381_v12 = vsub.f32 0.0, %v5373_v32 }
 0x7ae   :  { %v7646_v28 = vpop.eup %7645  ;;  %v5441_v44 = vpack.c.bf16 %v7084_v59, %v7083_v6  ;;  %v5393_v47 = vmul.f32 1.442695, %v5381_v12 }
 0x7af   :  { %v5404_v58 = vadd.f32 1.0, %v7646_v28  ;;  %v5353_v9 = vpop.f32.mrf.mxu2  ;;  %v7648_v57 = vpop.eup %7647 }
 0x7b0   :  { %7649 = vpow2.f32 %v5393_v47  ;;  %v5354_v25 = vadd.f32 %v12354_v37, %v5353_v9  ;;  %7099 = vmatmul.msk.bf16.vlgmr.msrb.gmra.mxu1 %vm3546_vm8, %v5441_v44  ;;  %v5414_v24 = vmul.f32 0.6931472, %v7648_v57  ;;  %v5365_v57 = vmax.f32 %v5352_v51, 0.0 }
 0x7b1   :  { %7651 = vlog2.f32 %v5404_v58 }
 0x7b2   :  { %v5374_v29 = vand.u32 2147483647, %v5354_v25  ;;  %v5427_v60 = vadd.f32 %v5414_v24, %v5363_v54  ;;  %v5366_v54 = vmax.f32 %v5354_v25, 0.0 }
 0x7b4   :  { %v5382_v21 = vsub.f32 0.0, %v5374_v29  ;;  %v7085_v5 = vadd.f32 -0.6931472, %v5427_v60 }
 0x7b6   :  { %v7650_v16 = vpop.eup %7649  ;;  %v5395_v3 = vmul.f32 1.442695, %v5382_v21 }
 0x7b7   :  { %v7652_v41 = vpop.eup %7651  ;;  %v5405_v39 = vadd.f32 1.0, %v7650_v16  ;;  %v5356_v34 = vpop.f32.mrf.mxu2 }
 0x7b8   :  { %v5416_v56 = vmul.f32 0.6931472, %v7652_v41  ;;  %7653 = vpow2.f32 %v5395_v3  ;;  %v5357_v62 = vadd.f32 %v12354_v37, %v5356_v34 }
 0x7b9   :  { %7655 = vlog2.f32 %v5405_v39 }
 0x7ba   :  { %v5428_v20 = vadd.f32 %v5416_v56, %v5364_v27  ;;  %v5375_v4 = vand.u32 2147483647, %v5357_v62  ;;  %v5367_v51 = vmax.f32 %v5357_v62, 0.0 }
 0x7bc   :  { %v7086_v55 = vadd.f32 -0.6931472, %v5428_v20  ;;  %v5383_v14 = vsub.f32 0.0, %v5375_v4 }
 0x7be   :  { %v7654_v32 = vpop.eup %7653  ;;  %v5442_v6 = vpack.c.bf16 %v7086_v55, %v7085_v5  ;;  %v5397_v59 = vmul.f32 1.442695, %v5383_v14 }
 0x7bf   :  { %v5406_v10 = vadd.f32 1.0, %v7654_v32  ;;  %v5358_v12 = vpop.f32.mrf.mxu2  ;;  %v7656_v28 = vpop.eup %7655 }
 0x7c0   :  { %7657 = vpow2.f32 %v5397_v59  ;;  %v5359_v31 = vadd.f32 %v12354_v37, %v5358_v12  ;;  %7100 = vmatmul.msk.bf16.gmra.mxu1 %vm3546_vm8, %v5442_v6  ;;  %v5418_v47 = vmul.f32 0.6931472, %v7656_v28  ;;  %v7261_v12 = vld [vmem:[%s12785_s5 + $0x30] sm:$0xff] }
 0x7c1   :  { %7659 = vlog2.f32 %v5406_v10  ;;  %v7262_v10 = vld [vmem:[%s12785_s5 + $0x38] sm:$0xff] }
 0x7c2   :  { %v5376_v44 = vand.u32 2147483647, %v5359_v31  ;;  %v5429_v16 = vadd.f32 %v5418_v47, %v5365_v57  ;;  %v5368_v55 = vmax.f32 %v5359_v31, 0.0  ;;  %5557 = vmatpush.bf16.msrb.mxu0 %v7262_v10  ;;  %v7282_v31 = vld [vmem:[%s12786_s6 + $0x1] ss:$0 sm:$0xff]  ;;  %v7705_v57 = vld [vmem:[%s12781_s1 + $0x8] sm:$0xff] }
 0x7c4   :  { %v5384_v58 = vsub.f32 0.0, %v5376_v44  ;;  %v7087_v27 = vadd.f32 -0.6931472, %v5429_v16 }
 0x7c6   :  { %v7658_v9 = vpop.eup %7657  ;;  %v5399_v29 = vmul.f32 1.442695, %v5384_v58  ;;  %5558 = vmatpush.bf16.msrb.mxu0 %v7261_v12  ;;  %v7704_v58 = vld [vmem:[%s12781_s1] sm:$0xff]  ;;  %v7710_v12 = vld [vmem:[%s12781_s1 + $0x30] sm:$0xff] }
 0x7c7   :  { %v7660_v24 = vpop.eup %7659  ;;  %v5407_v21 = vadd.f32 1.0, %v7658_v9 }
 0x7c8   :  { %v5420_v3 = vmul.f32 0.6931472, %v7660_v24  ;;  %7661 = vpow2.f32 %v5399_v29 }
 0x7c9   :  { %7663 = vlog2.f32 %v5407_v21 }
 0x7ca   :  { %v5430_v41 = vadd.f32 %v5420_v3, %v5366_v54 }
 0x7cc   :  { %v7088_v37 = vadd.f32 -0.6931472, %v5430_v41  ;;  %v7706_v41 = vld [vmem:[%s12781_s1 + $0x10] sm:$0xff] }
 0x7ce   :  { %v7662_v39 = vpop.eup %7661  ;;  %v5443_v34 = vpack.c.bf16 %v7088_v37, %v7087_v27  ;;  %v7707_v37 = vld [vmem:[%s12781_s1 + $0x18] sm:$0xff] }
 0x7cf   :  { %v5408_v60 = vadd.f32 1.0, %v7662_v39  ;;  %v7664_v56 = vpop.eup %7663 }
 0x7d0   :  { %7101 = vmatmul.msk.bf16.gmra.mxu1 %vm3546_vm8, %v5443_v34  ;;  %v5422_v20 = vmul.f32 0.6931472, %v7664_v56 }
 0x7d1   :  { %7665 = vlog2.f32 %v5408_v60 }
 0x7d2   :  { %v5431_v5 = vadd.f32 %v5422_v20, %v5367_v51 }
 0x7d4   :  { %v7089_v32 = vadd.f32 -0.6931472, %v5431_v5 }
 0x7d7   :  { %v7666_v4 = vpop.eup %7665 }
 0x7d8   :  { %v5424_v14 = vmul.f32 0.6931472, %v7666_v4  ;;  %v7708_v4 = vld [vmem:[%s12781_s1 + $0x20] sm:$0xff] }
 0x7da   :  { %v5432_v25 = vadd.f32 %v5424_v14, %v5368_v55  ;;  %v7709_v55 = vld [vmem:[%s12781_s1 + $0x28] sm:$0xff] }
 0x7dc   :  { %v7090_v6 = vadd.f32 -0.6931472, %v5432_v25 }
 0x7de   :  { %v5444_v59 = vpack.c.bf16 %v7090_v6, %v7089_v32 }
 0x7e0   :  { %7102 = vmatmul.msk.bf16.gmra.mxu1 %vm3546_vm8, %v5444_v59 }
 0x82d   :  { %v5479_v62 = vpop.f32.mrf.mxu1 }
 0x82e   :  { %v5480_v28 = vadd.f32 %v7282_v31, %v5479_v62 }
 0x830   :  { %v12383_v9 = vadd.f32 %v7704_v58, %v5480_v28  ;;  %v7711_v28 = vld [vmem:[%s12781_s1 + $0x38] sm:$0xff] }
 0x832   :  { %13584 = vst [vmem:[#allocation76_spill] sm:$0xff] %v12383_v9 }
 0x835   :  { %v5481_v44 = vpop.f32.mrf.mxu1 }
 0x836   :  { %v5482_v47 = vadd.f32 %v7282_v31, %v5481_v44 }
 0x838   :  { %v12388_v29 = vadd.f32 %v7705_v57, %v5482_v47 }
 0x83a   :  { %13585 = vst [vmem:[#allocation31_spill] sm:$0xff] %v12388_v29  ;;  %v5523_v24 = vpack.c.bf16 %v12388_v29, %v12383_v9  ;;  %v13623_v29 = vld [vmem:[#allocation28_spill] sm:$0xff] }
 0x83c   :  { %7125 = vmatmul.msk.bf16.vlgmr.msrb.gmra.mxu0 %vm3546_vm8, %v5523_v24 }
 0x83d   :  { %v5484_v21 = vpop.f32.mrf.mxu1 }
 0x83e   :  { %v5485_v16 = vadd.f32 %v7282_v31, %v5484_v21 }
 0x840   :  { %v12396_v27 = vadd.f32 %v7706_v41, %v5485_v16  ;;  %v13592_v41 = vld [vmem:[#allocation111_spill] sm:$0xff] }
 0x842   :  { %13586 = vst [vmem:[#allocation84_spill] sm:$0xff] %v12396_v27 }
 0x845   :  { %v5486_v54 = vpop.f32.mrf.mxu1 }
 0x846   :  { %v5487_v3 = vadd.f32 %v7282_v31, %v5486_v54 }
 0x848   :  { %v12401_v39 = vadd.f32 %v7707_v37, %v5487_v3  ;;  %v13593_v37 = vld [vmem:[#allocation72_spill] sm:$0xff] }
 0x84a   :  { %13587 = vst [vmem:[#allocation32_spill] sm:$0xff] %v12401_v39  ;;  %v5524_v34 = vpack.c.bf16 %v12401_v39, %v12396_v27 }
 0x84c   :  { %7126 = vmatmul.msk.bf16.gmra.mxu0 %vm3546_vm8, %v5524_v34  ;;  %v13594_v34 = vld [vmem:[#allocation113_spill] sm:$0xff] }
 0x84d   :  { %v5489_v60 = vpop.f32.mrf.mxu1 }
 0x84e   :  { %v5490_v56 = vadd.f32 %v7282_v31, %v5489_v60  ;;  %v13595_v60 = vld [vmem:[#allocation78_spill] sm:$0xff] }
 0x850   :  { %v12409_v5 = vadd.f32 %v7708_v4, %v5490_v56  ;;  %v13596_v56 = vld [vmem:[#allocation77_spill] sm:$0xff]  ;;  %v13599_v4 = vld [vmem:[#allocation11_spill] sm:$0xff] }
 0x852   :  { %13588 = vst [vmem:[#allocation86_spill] sm:$0xff] %v12409_v5 }
 0x855   :  { %v5491_v20 = vpop.f32.mrf.mxu1 }
 0x856   :  { %v5492_v51 = vadd.f32 %v7282_v31, %v5491_v20  ;;  %v13597_v20 = vld [vmem:[#allocation121_spill] sm:$0xff] }
 0x858   :  { %v12414_v14 = vadd.f32 %v7709_v55, %v5492_v51  ;;  %v13598_v51 = vld [vmem:[#allocation124_spill] sm:$0xff]  ;;  %v13600_v55 = vld [vmem:[#allocation125_spill] sm:$0xff] }
 0x85a   :  { %13589 = vst [vmem:[#allocation33_spill] sm:$0xff] %v12414_v14  ;;  %v5525_v25 = vpack.c.bf16 %v12414_v14, %v12409_v5  ;;  %v13622_v14 = vld [vmem:[#allocation21_spill] sm:$0xff] }
 0x85c   :  { %7127 = vmatmul.msk.bf16.gmra.mxu0 %vm3546_vm8, %v5525_v25  ;;  %v13601_v25 = vld [vmem:[#allocation128_spill] sm:$0xff] }
 0x85d   :  { %v5494_v32 = vpop.f32.mrf.mxu1 }
 0x85e   :  { %v5495_v6 = vadd.f32 %v7282_v31, %v5494_v32  ;;  %v13602_v32 = vld [vmem:[#allocation22_spill] sm:$0xff] }
 0x860   :  { %v12422_v62 = vadd.f32 %v7710_v12, %v5495_v6  ;;  %v13603_v6 = vld [vmem:[#allocation85_spill] sm:$0xff]  ;;  %v13606_v12 = vld [vmem:[#allocation15_spill] sm:$0xff] }
 0x862   :  { %13590 = vst [vmem:[#allocation90_spill] sm:$0xff] %v12422_v62 }
 0x865   :  { %v5496_v59 = vpop.f32.mrf.mxu1 }
 0x866   :  { %v5497_v10 = vadd.f32 %v7282_v31, %v5496_v59  ;;  %v13604_v59 = vld [vmem:[#allocation107_spill] sm:$0xff] }
 0x868   :  { %v12427_v44 = vadd.f32 %v7711_v28, %v5497_v10  ;;  %v13605_v10 = vld [vmem:[#allocation126_spill] sm:$0xff]  ;;  %v13607_v28 = vld [vmem:[#allocation127_spill] sm:$0xff] }
 0x86a   :  { %13591 = vst [vmem:[#allocation34_spill] sm:$0xff] %v12427_v44  ;;  %v5526_v47 = vpack.c.bf16 %v12427_v44, %v12422_v62 }
 0x86c   :  { %7128 = vmatmul.msk.bf16.gmra.mxu0 %vm3546_vm8, %v5526_v47  ;;  %v13608_v47 = vld [vmem:[#allocation25_spill] sm:$0xff] }
 0x8b9   :  { %v5560_v58 = vpop.f32.mrf.mxu0 }
 0x8c1   :  { %v5562_v57 = vpop.f32.mrf.mxu0 }
 0x8c9   :  { %v5565_v31 = vpop.f32.mrf.mxu0 }
 0x8d1   :  { %v5567_v24 = vpop.f32.mrf.mxu0 }
 0x8d9   :  { %v5570_v21 = vpop.f32.mrf.mxu0 }
 0x8e1   :  { %v5572_v16 = vpop.f32.mrf.mxu0 }
 0x8e9   :  { %v5575_v54 = vpop.f32.mrf.mxu0 }
 0x8f1   :  { %v5577_v3 = vpop.f32.mrf.mxu0 }
 0x8f2   :  { %5588 = vmatpush.msra.mxu3 %v5577_v3  ;;  %v13612_v3 = vld [vmem:[#allocation130_spill] sm:$0xff] }
 0x8f4   :  { %5589 = vmatpush.msra.mxu3 %v5575_v54 }
 0x8f6   :  { %5590 = vmatpush.msra.mxu3 %v5572_v16  ;;  %v13611_v16 = vld [vmem:[#allocation131_spill] sm:$0xff] }
 0x8f8   :  { %5591 = vmatpush.msra.mxu3 %v5570_v21 }
 0x8fa   :  { %5592 = vmatpush.msra.mxu3 %v5567_v24  ;;  %v13610_v24 = vld [vmem:[#allocation95_spill] sm:$0xff] }
 0x8fc   :  { %5593 = vmatpush.msra.mxu3 %v5565_v31 }
 0x8fe   :  { %5594 = vmatpush.msra.mxu3 %v5562_v57  ;;  %v13609_v57 = vld [vmem:[#allocation106_spill] sm:$0xff] }
 0x900   :  { %5595 = vmatpush.msra.mxu3 %v5560_v58 }
 0x901   :  { %7129 = vmatmul.msk.f32.vlgmr.msra.gmra.mxu3 %vm4393_vm10, %v13592_v41 }
 0x909   :  { %7130 = vmatmul.msk.f32.gmra.mxu3 %vm4393_vm10, %v13593_v37  ;;  %v13613_v37 = vld [vmem:[#allocation132_spill] sm:$0xff] }
 0x911   :  { %7131 = vmatmul.msk.f32.gmra.mxu3 %vm4393_vm10, %v13594_v34 }
 0x919   :  { %7132 = vmatmul.msk.f32.gmra.mxu3 %vm4393_vm10, %v13595_v60  ;;  %v13614_v60 = vld [vmem:[#allocation134_spill] sm:$0xff] }
 0x921   :  { %7133 = vmatmul.msk.f32.gmra.mxu3 %vm4393_vm10, %v13596_v56 }
 0x929   :  { %7134 = vmatmul.msk.f32.gmra.mxu3 %vm4393_vm10, %v13597_v20  ;;  %v13615_v20 = vld [vmem:[#allocation16_spill] sm:$0xff] }
 0x931   :  { %7135 = vmatmul.msk.f32.gmra.mxu3 %vm4393_vm10, %v13598_v51 }
 0x939   :  { %7136 = vmatmul.msk.f32.gmra.mxu3 %vm4393_vm10, %v13599_v4  ;;  %v13616_v4 = vld [vmem:[#allocation27_spill] sm:$0xff] }
 0x941   :  { %7137 = vmatmul.msk.f32.gmra.mxu3 %vm4393_vm10, %v13600_v55 }
 0x949   :  { %7138 = vmatmul.msk.f32.gmra.mxu3 %vm4393_vm10, %v13601_v25  ;;  %v13617_v25 = vld [vmem:[#allocation112_spill] sm:$0xff] }
 0x951   :  { %7139 = vmatmul.msk.f32.gmra.mxu3 %vm4393_vm10, %v13602_v32 }
 0x959   :  { %7140 = vmatmul.msk.f32.gmra.mxu3 %vm4393_vm10, %v13603_v6  ;;  %v13618_v6 = vld [vmem:[#allocation18_spill] sm:$0xff] }
 0x961   :  { %7141 = vmatmul.msk.f32.gmra.mxu3 %vm4393_vm10, %v13604_v59  ;;  %v5834_v59 = vpop.permute.xlu0 %5833 }
 0x969   :  { %7142 = vmatmul.msk.f32.gmra.mxu3 %vm4393_vm10, %v13605_v10 }
 0x971   :  { %7143 = vmatmul.msk.f32.gmra.mxu3 %vm4393_vm10, %v13606_v12  ;;  %v5836_v12 = vpop.permute.xlu2 %5835 }
 0x979   :  { %7144 = vmatmul.msk.f32.gmra.mxu3 %vm4393_vm10, %v13607_v28  ;;  %v13619_v28 = vld [vmem:[#allocation26_spill] sm:$0xff] }
 0x981   :  { %7145 = vmatmul.msk.f32.gmra.mxu3 %vm4393_vm10, %v13608_v47  ;;  %v5832_v47 = vpop.permute.xlu1 %5831 }
 0x984   :  { %v12466_v58 = vpop.f32.mrf.mxu3 }
 0x989   :  { %7146 = vmatmul.msk.f32.gmra.mxu3 %vm4393_vm10, %v13609_v57  ;;  %v5828_v57 = vpop.permute.xlu0 %5827 }
 0x98c   :  { %v12470_v31 = vpop.f32.mrf.mxu3 }
 0x991   :  { %7147 = vmatmul.msk.f32.gmra.mxu3 %vm4393_vm10, %v13610_v24 }
 0x994   :  { %v12474_v21 = vpop.f32.mrf.mxu3 }
 0x999   :  { %7148 = vmatmul.msk.f32.gmra.mxu3 %vm4393_vm10, %v13611_v16  ;;  %v13620_v16 = vld [vmem:[#allocation20_spill] sm:$0xff] }
 0x99c   :  { %v12478_v54 = vpop.f32.mrf.mxu3 }
 0x9a1   :  { %7149 = vmatmul.msk.f32.gmra.mxu3 %vm4393_vm10, %v13612_v3  ;;  %v5830_v3 = vpop.permute.xlu2 %5829 }
 0x9a4   :  { %v12482_v41 = vpop.f32.mrf.mxu3 }
 0x9a9   :  { %7150 = vmatmul.msk.f32.gmra.mxu3 %vm4393_vm10, %v13613_v37  ;;  %v5826_v37 = vpop.permute.xlu1 %5825  ;;  %v5824_v44 = vpop.permute.xlu2 %5823 }
 0x9ac   :  { %v5612_v34 = vpop.f32.mrf.mxu3 }
 0x9b1   :  { %7151 = vmatmul.msk.f32.gmra.mxu3 %vm4393_vm10, %v13614_v60  ;;  %v5842_v39 = vpop.permute.xlu2 %5841 }
 0x9b4   :  { %v5615_v56 = vpop.f32.mrf.mxu3 }
 0x9b9   :  { %7152 = vmatmul.msk.f32.gmra.mxu3 %vm4393_vm10, %v13615_v20  ;;  %v5822_v20 = vpop.permute.xlu0 %5821  ;;  %v5850_v15 = vpop.permute.xlu2 %5849 }
 0x9bc   :  { %v5618_v51 = vpop.f32.mrf.mxu3 }
 0x9c1   :  { %7153 = vmatmul.msk.f32.gmra.mxu3 %vm4393_vm10, %v13616_v4  ;;  %v13621_v4 = vld [vmem:[#allocation29_spill] sm:$0xff]  ;;  %v5840_v62 = vpop.permute.xlu0 %5839 }
 0x9c4   :  { %v5621_v55 = vpop.f32.mrf.mxu3 }
 0x9c9   :  { %7154 = vmatmul.msk.f32.gmra.mxu3 %vm4393_vm10, %v13617_v25  ;;  %v5838_v25 = vpop.permute.xlu1 %5837  ;;  %v5846_v27 = vpop.permute.xlu0 %5845 }
 0x9cc   :  { %v5624_v32 = vpop.f32.mrf.mxu3 }
 0x9d1   :  { %7155 = vmatmul.msk.f32.gmra.mxu3 %vm4393_vm10, %v13618_v6 }
 0x9d4   :  { %v5627_v10 = vpop.f32.mrf.mxu3 }
 0x9d5   :  { %v5999_v18 = vmul.f32 %v5842_v39, %v5627_v10 }
 0x9d9   :  { %7156 = vmatmul.msk.f32.gmra.mxu3 %vm4393_vm10, %v13619_v28  ;;  %v5844_v28 = vpop.permute.xlu1 %5843 }
 0x9dc   :  { %v5630_v24 = vpop.f32.mrf.mxu3 }
 0x9dd   :  { %v6000_v23 = vmul.f32 %v5844_v28, %v5630_v24 }
 0x9e1   :  { %7157 = vmatmul.msk.f32.gmra.mxu3 %vm4393_vm10, %v13620_v16  ;;  %v5852_v16 = vpop.permute.xlu1 %5851 }
 0x9e4   :  { %v5633_v60 = vpop.f32.mrf.mxu3 }
 0x9e9   :  { %7158 = vmatmul.msk.f32.gmra.mxu3 %vm4393_vm10, %v13621_v4  ;;  %v5848_v4 = vpop.permute.xlu0 %5847 }
 0x9ec   :  { %v5636_v6 = vpop.f32.mrf.mxu3 }
 0x9ed   :  { %v6002_v1 = vmul.f32 %v5848_v4, %v5636_v6 }
 0x9f1   :  { %7159 = vmatmul.msk.f32.gmra.mxu3 %vm4393_vm10, %v13622_v14  ;;  %v6001_v14 = vmul.f32 %v5846_v27, %v5633_v60  ;;  %v5990_v27 = vmul.f32 %v5824_v44, %v12470_v31 }
 0x9f4   :  { %v5639_v5 = vpop.f32.mrf.mxu3 }
 0x9f5   :  { %v6003_v50 = vmul.f32 %v5850_v15, %v5639_v5  ;;  %v5997_v15 = vmul.f32 %v5838_v25, %v5621_v55  ;;  %v12531_v5 = vpop.permute.xlu2 %5861  ;;  %v5874_v55 = vpop.permute.xlu1 %5873 }
 0x9f9   :  { %7160 = vmatmul.msk.f32.gmra.mxu3 %vm4393_vm10, %v13623_v29  ;;  %v5998_v29 = vmul.f32 %v5840_v62, %v5624_v32 }
 0x9fc   :  { %v5642_v9 = vpop.f32.mrf.mxu3 }
 0x9fd   :  { %v6004_v11 = vmul.f32 %v5852_v16, %v5642_v9  ;;  %v5996_v9 = vmul.f32 %v5836_v12, %v5618_v51  ;;  %v13624_v51 = vld [vmem:[#allocation96_spill] sm:$0xff] }
 0x9fe   :  { %v13626_v12 = vld [vmem:[#allocation100_spill] sm:$0xff] }
 0x9ff   :  { %6045 = vmatpush.msra.mxu2 %v6004_v11 }
 0xa01   :  { %7161 = vmatmul.msk.f32.gmra.mxu3 %vm4393_vm10, %v11503_v43  ;;  %6046 = vmatpush.msra.mxu2 %v6003_v50  ;;  %v5995_v43 = vmul.f32 %v5834_v59, %v5615_v56  ;;  %v13625_v59 = vld [vmem:[#allocation38_spill] sm:$0xff] }
 0xa03   :  { %6047 = vmatpush.msra.mxu2 %v6002_v1  ;;  %v5994_v1 = vmul.f32 %v5832_v47, %v5612_v34 }
 0xa04   :  { %v12508_v2 = vpop.f32.mrf.mxu3 }
 0xa05   :  { %6048 = vmatpush.msra.mxu2 %v6001_v14 }
 0xa07   :  { %6049 = vmatpush.msra.mxu2 %v6000_v23  ;;  %v5993_v23 = vmul.f32 %v5830_v3, %v12482_v41 }
 0xa09   :  { %7162 = vmatmul.msk.f32.gmra.mxu3 %vm4393_vm10, %v11521_v52  ;;  %6050 = vmatpush.msra.mxu2 %v5999_v18  ;;  %v5992_v52 = vmul.f32 %v5828_v57, %v12478_v54  ;;  %v5991_v18 = vmul.f32 %v5826_v37, %v12474_v21 }
 0xa0b   :  { %6051 = vmatpush.msra.mxu2 %v5998_v29 }
 0xa0c   :  { %v12512_v11 = vpop.f32.mrf.mxu3 }
 0xa0d   :  { %6052 = vmatpush.msra.mxu2 %v5997_v15 }
 0xa0f   :  { %6053 = vmatpush.msra.mxu2 %v5996_v9 }
 0xa11   :  { %7163 = vmatmul.msk.f32.gmra.mxu3 %vm4393_vm10, %v11543_v38  ;;  %6054 = vmatpush.msra.mxu2 %v5995_v43  ;;  %v5989_v38 = vmul.f32 %v5822_v20, %v12466_v58  ;;  %v13627_v20 = vld [vmem:[#allocation42_spill] sm:$0xff] }
 0xa13   :  { %6055 = vmatpush.msra.mxu2 %v5994_v1 }
 0xa14   :  { %v12517_v50 = vpop.f32.mrf.mxu3 }
 0xa15   :  { %6056 = vmatpush.msra.mxu2 %v5993_v23 }
 0xa17   :  { %6057 = vmatpush.msra.mxu2 %v5992_v52  ;;  %v13628_v52 = vld [vmem:[#allocation105_spill] sm:$0xff] }
 0xa19   :  { %7164 = vmatmul.msk.f32.gmra.mxu3 %vm4393_vm10, %v11569_v30  ;;  %6058 = vmatpush.msra.mxu2 %v5991_v18  ;;  %v12543_v30 = vpop.permute.xlu2 %5863 }
 0xa1b   :  { %6059 = vmatpush.msra.mxu2 %v5990_v27 }
 0xa1c   :  { %v12525_v39 = vpop.f32.mrf.mxu3 }
 0xa1d   :  { %6060 = vmatpush.msra.mxu2 %v5989_v38 }
 0xa1e   :  { %7185 = vmatmul.msk.f32.vlgmr.msra.gmra.mxu2 %vm2124_vm2, %v13566_v19 }
 0xa21   :  { %7165 = vmatmul.msk.f32.gmra.mxu3 %vm4393_vm10, %v11594_v45  ;;  %v5866_v45 = vpop.permute.xlu2 %5865 }
 0xa24   :  { %v12535_v62 = vpop.f32.mrf.mxu3 }
 0xa25   :  { %v6009_v18 = vmul.f32 %v12531_v5, %v12535_v62 }
 0xa26   :  { %7186 = vmatmul.msk.f32.gmra.mxu2 %vm2128_vm5, %v13566_v19 }
 0xa29   :  { %7166 = vmatmul.msk.f32.gmra.mxu3 %vm4393_vm10, %v11619_v8  ;;  %v5868_v21 = vpop.permute.xlu2 %5867 }
 0xa2c   :  { %v12545_v44 = vpop.f32.mrf.mxu3 }
 0xa2d   :  { %v6010_v23 = vmul.f32 %v12543_v30, %v12545_v44 }
 0xa2e   :  { %7187 = vmatmul.msk.f32.gmra.mxu2 %vm2132_vm7, %v13566_v19 }
 0xa31   :  { %7167 = vmatmul.msk.f32.gmra.mxu3 %vm4393_vm10, %v11639_v13 }
 0xa34   :  { %v5663_v58 = vpop.f32.mrf.mxu3 }
 0xa35   :  { %v6011_v31 = vmul.f32 %v5866_v45, %v5663_v58  ;;  %v13629_v58 = vld [vmem:[#allocation43_spill] sm:$0xff] }
 0xa36   :  { %7188 = vmatmul.msk.f32.gmra.mxu2 %vm2136_vm11, %v13566_v19 }
 0xa39   :  { %7168 = vmatmul.msk.f32.gmra.mxu3 %vm4393_vm10, %v11659_v36 }
 0xa3c   :  { %v5666_v8 = vpop.f32.mrf.mxu3 }
 0xa3d   :  { %v6012_v43 = vmul.f32 %v5868_v21, %v5666_v8  ;;  %v13636_v21 = vld [vmem:[#allocation49_spill] sm:$0xff] }
 0xa3e   :  { %7189 = vmatmul.msk.f32.gmra.mxu2 %vm2140_vm12, %v13566_v19 }
 0xa41   :  { %7169 = vmatmul.msk.f32.gmra.mxu3 %vm4393_vm10, %v11680_v7  ;;  %v5870_v7 = vpop.permute.xlu2 %5869 }
 0xa44   :  { %v5669_v13 = vpop.f32.mrf.mxu3 }
 0xa45   :  { %v6013_v15 = vmul.f32 %v5870_v7, %v5669_v13 }
 0xa46   :  { %7190 = vmatmul.msk.f32.gmra.mxu2 %vm2144_vm14, %v13566_v19 }
 0xa49   :  { %7170 = vmatmul.msk.f32.gmra.mxu3 %vm4393_vm10, %v11700_v61  ;;  %v5876_v61 = vpop.permute.xlu2 %5875 }
 0xa4c   :  { %v5672_v36 = vpop.f32.mrf.mxu3 }
 0xa4e   :  { %7191 = vmatmul.msk.f32.gmra.mxu2 %vm2148_vm3, %v13566_v19 }
 0xa51   :  { %7171 = vmatmul.msk.f32.gmra.mxu3 %vm4393_vm10, %v11721_v53  ;;  %v5882_v34 = vpop.permute.xlu2 %5881 }
 0xa54   :  { %v5675_v54 = vpop.f32.mrf.mxu3 }
 0xa55   :  { %v6015_v14 = vmul.f32 %v5874_v55, %v5675_v54 }
 0xa56   :  { %7192 = vmatmul.msk.f32.gmra.mxu2 %vm2152_vm1, %v13566_v19 }
 0xa59   :  { %7172 = vmatmul.msk.f32.gmra.mxu3 %vm4393_vm10, %v11746_v35  ;;  %v12587_v53 = vpop.permute.xlu2 %5907  ;;  %v5880_v35 = vpop.permute.xlu1 %5879 }
 0xa5c   :  { %v5678_v41 = vpop.f32.mrf.mxu3 }
 0xa5d   :  { %v6016_v16 = vmul.f32 %v5876_v61, %v5678_v41 }
 0xa61   :  { %7173 = vmatmul.msk.f32.gmra.mxu3 %vm4393_vm10, %v11767_v22  ;;  %v12591_v26 = vpop.permute.xlu2 %5913  ;;  %v5872_v22 = vpop.permute.xlu0 %5871 }
 0xa62   :  { %v5884_v47 = vpop.permute.xlu1 %5883  ;;  %v6014_v29 = vmul.f32 %v5872_v22, %v5672_v36 }
 0xa64   :  { %v5681_v56 = vpop.f32.mrf.mxu3 }
 0xa69   :  { %7174 = vmatmul.msk.f32.gmra.mxu3 %vm4393_vm10, %v13624_v51  ;;  %v5860_v57 = vpop.permute.xlu2 %5859  ;;  %v5878_v25 = vpop.permute.xlu0 %5877 }
 0xa6a   :  { %v6017_v6 = vmul.f32 %v5878_v25, %v5681_v56  ;;  %v6008_v27 = vmul.f32 %v5860_v57, %v12525_v39  ;;  %v13630_v39 = vld [vmem:[#allocation109_spill] sm:$0xff]  ;;  %v5906_v36 = vpop.permute.xlu1 %5905 }
 0xa6b   :  { %vm13633_vm2 = vcmp.eq.f32.partialorder %v13569_v0, %v13630_v39  ;;  %vm13637_vm5 = vcmp.eq.f32.partialorder %v13571_v63, %v13630_v39  ;;  %vm13639_vm7 = vcmp.eq.f32.partialorder %v13574_v46, %v13630_v39  ;;  %vm13640_vm11 = vcmp.eq.f32.partialorder %v13575_v17, %v13630_v39 }
 0xa6c   :  { %v5684_v32 = vpop.f32.mrf.mxu3 }
 0xa6d   :  { %v6018_v60 = vmul.f32 %v5880_v35, %v5684_v32 }
 0xa71   :  { %7175 = vmatmul.msk.f32.gmra.mxu3 %vm4393_vm10, %v13625_v59  ;;  %v5858_v4 = vpop.permute.xlu2 %5857  ;;  %v5896_v13 = vpop.permute.xlu0 %5895 }
 0xa72   :  { %v6007_v38 = vmul.f32 %v5858_v4, %v12517_v50  ;;  %v13631_v50 = vld [vmem:[#allocation108_spill] sm:$0xff]  ;;  %v5912_v61 = vpop.permute.xlu1 %5911 }
 0xa74   :  { %v5687_v10 = vpop.f32.mrf.mxu3 }
 0xa75   :  { %v6019_v37 = vmul.f32 %v5882_v34, %v5687_v10 }
 0xa79   :  { %7176 = vmatmul.msk.f32.gmra.mxu3 %vm4393_vm10, %v13626_v12  ;;  %v5856_v1 = vpop.permute.xlu2 %5855  ;;  %v5898_v54 = vpop.permute.xlu0 %5897 }
 0xa7a   :  { %v6006_v45 = vmul.f32 %v5856_v1, %v12512_v11  ;;  %v12653_v34 = vpop.permute.xlu1 %5921 }
 0xa7c   :  { %v5690_v24 = vpop.f32.mrf.mxu3 }
 0xa7d   :  { %v6020_v3 = vmul.f32 %v5884_v47, %v5690_v24 }
 0xa7f   :  { %6086 = vmatpush.msra.mxu1 %v6020_v3 }
 0xa81   :  { %7177 = vmatmul.msk.f32.gmra.mxu3 %vm4393_vm10, %v13627_v20  ;;  %6087 = vmatpush.msra.mxu1 %v6019_v37  ;;  %v5854_v30 = vpop.permute.xlu2 %5853  ;;  %v5900_v56 = vpop.permute.xlu0 %5899 }
 0xa82   :  { %v6005_v44 = vmul.f32 %v5854_v30, %v12508_v2  ;;  %v13632_v2 = vld [vmem:[#allocation45_spill] sm:$0xff]  ;;  %v12659_v55 = vpop.permute.xlu1 %5923 }
 0xa83   :  { %6088 = vmatpush.msra.mxu1 %v6018_v60 }
 0xa84   :  { %v12597_v28 = vpop.f32.mrf.mxu3 }
 0xa85   :  { %6089 = vmatpush.msra.mxu1 %v6017_v6 }
 0xa87   :  { %6090 = vmatpush.msra.mxu1 %v6016_v16 }
 0xa89   :  { %7178 = vmatmul.msk.f32.gmra.mxu3 %vm4393_vm10, %v11871_v33  ;;  %6091 = vmatpush.msra.mxu1 %v6015_v14  ;;  %v5902_v59 = vpop.permute.xlu0 %5901 }
 0xa8a   :  { %v12665_v10 = vpop.permute.xlu1 %5925 }
 0xa8b   :  { %6092 = vmatpush.msra.mxu1 %v6014_v29 }
 0xa8c   :  { %v12601_v9 = vpop.f32.mrf.mxu3 }
 0xa8d   :  { %6093 = vmatpush.msra.mxu1 %v6013_v15 }
 0xa8f   :  { %6094 = vmatpush.msra.mxu1 %v6012_v43 }
 0xa91   :  { %7179 = vmatmul.msk.f32.gmra.mxu3 %vm4393_vm10, %v13628_v52  ;;  %6095 = vmatpush.msra.mxu1 %v6011_v31  ;;  %v13634_v31 = vld [vmem:[#allocation52_spill] sm:$0xff]  ;;  %v5904_v12 = vpop.permute.xlu0 %5903 }
 0xa92   :  { %v5928_v57 = vpop.permute.xlu1 %5927 }
 0xa93   :  { %6096 = vmatpush.msra.mxu1 %v6010_v23 }
 0xa94   :  { %v12609_v33 = vpop.f32.mrf.mxu3 }
 0xa95   :  { %6097 = vmatpush.msra.mxu1 %v6009_v18 }
 0xa97   :  { %6098 = vmatpush.msra.mxu1 %v6008_v27 }
 0xa99   :  { %7180 = vmatmul.msk.f32.gmra.mxu3 %vm4393_vm10, %v13629_v58  ;;  %6099 = vmatpush.msra.mxu1 %v6007_v38  ;;  %v5910_v47 = vpop.permute.xlu0 %5909 }
 0xa9a   :  { %v5930_v37 = vpop.permute.xlu1 %5929 }
 0xa9b   :  { %6100 = vmatpush.msra.mxu1 %v6006_v45 }
 0xa9c   :  { %v12617_v5 = vpop.f32.mrf.mxu3 }
 0xa9d   :  { %6101 = vmatpush.msra.mxu1 %v6005_v44 }
 0xa9e   :  { %7193 = vmatmul.msk.f32.vlgmr.msra.gmra.mxu1 %vm2125_vm4, %v13566_v19  ;;  %vm13635_vm4 = vcmp.eq.f32.partialorder %v13570_v42, %v13630_v39 }
 0xaa1   :  { %7181 = vmatmul.msk.f32.gmra.mxu3 %vm4393_vm10, %v13631_v50  ;;  %v5916_v3 = vpop.permute.xlu0 %5915 }
 0xaa2   :  { %v5932_v25 = vpop.permute.xlu1 %5931 }
 0xaa4   :  { %v12625_v11 = vpop.f32.mrf.mxu3 }
 0xaa6   :  { %7194 = vmatmul.msk.f32.gmra.mxu1 %vm2129_vm6, %v13566_v19  ;;  %vm13638_vm6 = vcmp.eq.f32.partialorder %v13573_v49, %v13630_v39 }
 0xaa9   :  { %7182 = vmatmul.msk.f32.gmra.mxu3 %vm4393_vm10, %v13632_v2  ;;  %v5894_v20 = vpop.permute.xlu0 %5893 }
 0xaaa   :  { %v5920_v23 = vpop.permute.xlu1 %5919  ;;  %v6025_v39 = vmul.f32 %v5894_v20, %v12625_v11  ;;  %v13641_v11 = vld [vmem:[#allocation57_spill] sm:$0xff] }
 0xaab   :  { %vm13642_vm12 = vcmp.eq.f32.partialorder %v13565_v48, %v13641_v11  ;;  %vm13643_vm14 = vcmp.eq.f32.partialorder %v13568_v40, %v13641_v11  ;;  %vm13644_vm1 = vcmp.eq.f32.partialorder %v13569_v0, %v13641_v11  ;;  %vm13645_vm3 = vcmp.eq.f32.partialorder %v13570_v42, %v13641_v11 }
 0xaac   :  { %v5708_v62 = vpop.f32.mrf.mxu3  ;;  %vm13646_vm0 = vcmp.eq.f32.partialorder %v13571_v63, %v13641_v11  ;;  %vm13647_vm15 = vcmp.eq.f32.partialorder %v13573_v49, %v13641_v11  ;;  %vm13649_vm9 = vcmp.eq.f32.partialorder %v13574_v46, %v13641_v11  ;;  %v13651_v49 = vld [vmem:[#allocation82_spill] sm:$0xff]  ;;  %v13655_v46 = vld [vmem:[#allocation89_spill] sm:$0xff] }
 0xaad   :  { %v6026_v44 = vmul.f32 %v5896_v13, %v5708_v62 }
 0xaae   :  { %7195 = vmatmul.msk.f32.gmra.mxu1 %vm13633_vm2, %v13566_v19 }
 0xab1   :  { %7183 = vmatmul.msk.f32.gmra.mxu3 %vm4393_vm10, %v13634_v31  ;;  %v5892_v15 = vpop.permute.xlu0 %5891 }
 0xab2   :  { %v5918_v30 = vpop.permute.xlu1 %5917  ;;  %v6024_v50 = vmul.f32 %v5892_v15, %v12617_v5 }
 0xab4   :  { %v5711_v8 = vpop.f32.mrf.mxu3 }
 0xab5   :  { %v6027_v58 = vmul.f32 %v5898_v54, %v5711_v8 }
 0xab6   :  { %7196 = vmatmul.msk.f32.gmra.mxu1 %vm13635_vm4, %v13566_v19 }
 0xab9   :  { %7184 = vmatmul.msk.f32.gmra.mxu3 %vm4393_vm10, %v13636_v21 }
 0xabc   :  { %v5714_v7 = vpop.f32.mrf.mxu3 }
 0xabd   :  { %v6028_v45 = vmul.f32 %v5900_v56, %v5714_v7  ;;  %v13653_v56 = vld [vmem:[#allocation92_spill] sm:$0xff] }
 0xabe   :  { %7197 = vmatmul.msk.f32.gmra.mxu1 %vm13637_vm5, %v13566_v19 }
 0xac4   :  { %v5717_v41 = vpop.f32.mrf.mxu3 }
 0xac5   :  { %v6029_v27 = vmul.f32 %v5902_v59, %v5717_v41  ;;  %v13650_v41 = vld [vmem:[#allocation69_spill] sm:$0xff] }
 0xac6   :  { %7198 = vmatmul.msk.f32.gmra.mxu1 %vm13638_vm6, %v13566_v19 }
 0xacc   :  { %v5720_v51 = vpop.f32.mrf.mxu3 }
 0xacd   :  { %v6030_v18 = vmul.f32 %v5904_v12, %v5720_v51  ;;  %v13654_v51 = vld [vmem:[#allocation75_spill] sm:$0xff] }
 0xace   :  { %7199 = vmatmul.msk.f32.gmra.mxu1 %vm13639_vm7, %v13566_v19 }
 0xad4   :  { %v5723_v32 = vpop.f32.mrf.mxu3 }
 0xad5   :  { %v6031_v52 = vmul.f32 %v5906_v36, %v5723_v32  ;;  %v5886_v36 = vpop.permute.xlu1 %5885  ;;  %v13656_v32 = vld [vmem:[#allocation30_spill] sm:$0xff] }
 0xad6   :  { %7200 = vmatmul.msk.f32.gmra.mxu1 %vm13640_vm11, %v13566_v19  ;;  %v6021_v8 = vmul.f32 %v5886_v36, %v12597_v28 }
 0xadc   :  { %v5726_v35 = vpop.f32.mrf.mxu3 }
 0xadd   :  { %v6032_v1 = vmul.f32 %v12587_v53, %v5726_v35 }
 0xae4   :  { %v5729_v22 = vpop.f32.mrf.mxu3 }
 0xae5   :  { %v6033_v29 = vmul.f32 %v5910_v47, %v5729_v22  ;;  %v7263_v22 = vld [vmem:[%s12785_s5 + $0x40] sm:$0xff] }
 0xaec   :  { %v5732_v24 = vpop.f32.mrf.mxu3 }
 0xaed   :  { %v6034_v14 = vmul.f32 %v5912_v61, %v5732_v24  ;;  %v13648_v61 = vld [vmem:[#allocation114_spill] sm:$0xff] }
 0xaf4   :  { %v5735_v60 = vpop.f32.mrf.mxu3 }
 0xaf5   :  { %v6035_v4 = vmul.f32 %v12591_v26, %v5735_v60  ;;  %v5890_v26 = vpop.permute.xlu0 %5889 }
 0xaf6   :  { %v6023_v2 = vmul.f32 %v5890_v26, %v12609_v33 }
 0xafc   :  { %v5738_v6 = vpop.f32.mrf.mxu3 }
 0xafd   :  { %v6036_v16 = vmul.f32 %v5916_v3, %v5738_v6  ;;  %v5888_v31 = vpop.permute.xlu0 %5887 }
 0xafe   :  { %v6022_v21 = vmul.f32 %v5888_v31, %v12601_v9 }
 0xaff   :  { %6127 = vmatpush.msra.mxu0 %v6036_v16 }
 0xb01   :  { %6128 = vmatpush.msra.mxu0 %v6035_v4 }
 0xb03   :  { %6129 = vmatpush.msra.mxu0 %v6034_v14 }
 0xb04   :  { %v5741_v43 = vpop.f32.mrf.mxu3 }
 0xb05   :  { %6130 = vmatpush.msra.mxu0 %v6033_v29  ;;  %v6037_v54 = vmul.f32 %v5918_v30, %v5741_v43 }
 0xb07   :  { %6131 = vmatpush.msra.mxu0 %v6032_v1 }
 0xb09   :  { %6132 = vmatpush.msra.mxu0 %v6031_v52 }
 0xb0b   :  { %6133 = vmatpush.msra.mxu0 %v6030_v18 }
 0xb0c   :  { %v5744_v38 = vpop.f32.mrf.mxu3 }
 0xb0d   :  { %6134 = vmatpush.msra.mxu0 %v6029_v27  ;;  %v6038_v63 = vmul.f32 %v5920_v23, %v5744_v38 }
 0xb0f   :  { %6135 = vmatpush.msra.mxu0 %v6028_v45 }
 0xb11   :  { %6136 = vmatpush.msra.mxu0 %v6027_v58 }
 0xb13   :  { %6137 = vmatpush.msra.mxu0 %v6026_v44 }
 0xb14   :  { %v5747_v53 = vpop.f32.mrf.mxu3 }
 0xb15   :  { %6138 = vmatpush.msra.mxu0 %v6025_v39  ;;  %v6039_v42 = vmul.f32 %v12653_v34, %v5747_v53  ;;  %v13652_v34 = vld [vmem:[#allocation70_spill] sm:$0xff] }
 0xb17   :  { %6139 = vmatpush.msra.mxu0 %v6024_v50 }
 0xb19   :  { %6140 = vmatpush.msra.mxu0 %v6023_v2 }
 0xb1b   :  { %6141 = vmatpush.msra.mxu0 %v6022_v21 }
 0xb1c   :  { %v5750_v62 = vpop.f32.mrf.mxu3 }
 0xb1d   :  { %6142 = vmatpush.msra.mxu0 %v6021_v8  ;;  %v6040_v7 = vmul.f32 %v12659_v55, %v5750_v62  ;;  %v6062_v55 = vpop.f32.mrf.mxu2 }
 0xb1e   :  { %7201 = vmatmul.msk.f32.vlgmr.msra.gmra.mxu0 %vm13642_vm12, %v13566_v19 }
 0xb24   :  { %v5753_v5 = vpop.f32.mrf.mxu3 }
 0xb25   :  { %v6041_v0 = vmul.f32 %v12665_v10, %v5753_v5  ;;  %v7264_v10 = vld [vmem:[%s12785_s5 + $0x48] sm:$0xff] }
 0xb26   :  { %7202 = vmatmul.msk.f32.gmra.mxu0 %vm13643_vm14, %v13566_v19  ;;  %6244 = vmatpush.bf16.msrb.mxu1 %v7264_v10 }
 0xb2a   :  { %6245 = vmatpush.bf16.msrb.mxu1 %v7263_v22  ;;  %v7266_v22 = vld [vmem:[%s12785_s5 + $0x58] sm:$0xff] }
 0xb2b   :  { %6382 = vmatpush.bf16.msrb.mxu0 %v7266_v22 }
 0xb2c   :  { %v5756_v33 = vpop.f32.mrf.mxu3 }
 0xb2d   :  { %v6042_v13 = vmul.f32 %v5928_v57, %v5756_v33  ;;  %v6103_v57 = vpop.f32.mrf.mxu1 }
 0xb2e   :  { %7203 = vmatmul.msk.f32.gmra.mxu0 %vm13644_vm1, %v13566_v19  ;;  %v6104_v16 = vadd.f32 %v6103_v57, %v6062_v55 }
 0xb34   :  { %v5759_v28 = vpop.f32.mrf.mxu3 }
 0xb35   :  { %v6043_v40 = vmul.f32 %v5930_v37, %v5759_v28  ;;  %v6106_v37 = vpop.f32.mrf.mxu1 }
 0xb36   :  { %7204 = vmatmul.msk.f32.gmra.mxu0 %vm13645_vm3, %v13566_v19 }
 0xb3c   :  { %v5762_v48 = vpop.f32.mrf.mxu3 }
 0xb3d   :  { %v6044_v9 = vmul.f32 %v5932_v25, %v5762_v48  ;;  %v6109_v25 = vpop.f32.mrf.mxu1 }
 0xb3e   :  { %7205 = vmatmul.msk.f32.gmra.mxu0 %vm13646_vm0, %v13566_v19 }
 0xb3f   :  { %6176 = vmatpush.msrb.mxu2 %v6044_v9 }
 0xb41   :  { %6177 = vmatpush.msrb.mxu2 %v6043_v40 }
 0xb43   :  { %6178 = vmatpush.msrb.mxu2 %v6042_v13 }
 0xb45   :  { %6179 = vmatpush.msrb.mxu2 %v6041_v0  ;;  %v6112_v23 = vpop.f32.mrf.mxu1 }
 0xb46   :  { %7206 = vmatmul.msk.f32.gmra.mxu0 %vm13647_vm15, %v13566_v19 }
 0xb47   :  { %6180 = vmatpush.msrb.mxu2 %v6040_v7 }
 0xb49   :  { %6181 = vmatpush.msrb.mxu2 %v6039_v42 }
 0xb4b   :  { %6182 = vmatpush.msrb.mxu2 %v6038_v63 }
 0xb4d   :  { %6183 = vmatpush.msrb.mxu2 %v6037_v54  ;;  %v6115_v38 = vpop.f32.mrf.mxu1 }
 0xb4e   :  { %7209 = vmatmul.msk.f32.vlgmr.msrb.gmra.mxu2 %vm4393_vm10, %v13648_v61  ;;  %7207 = vmatmul.msk.f32.gmra.mxu0 %vm13649_vm9, %v13566_v19 }
 0xb55   :  { %v6118_v31 = vpop.f32.mrf.mxu1 }
 0xb56   :  { %7210 = vmatmul.msk.f32.gmra.mxu2 %vm4393_vm10, %v13650_v41  ;;  %7208 = vmatmul.msk.f32.gmra.mxu0 %vm2154_vm13, %v13566_v19  ;;  %v6065_v19 = vpop.f32.mrf.mxu2 }
 0xb57   :  { %v6107_v4 = vadd.f32 %v6106_v37, %v6065_v19 }
 0xb5d   :  { %v6121_v28 = vpop.f32.mrf.mxu1 }
 0xb5e   :  { %7211 = vmatmul.msk.f32.gmra.mxu2 %vm4393_vm10, %v13651_v49  ;;  %v6068_v17 = vpop.f32.mrf.mxu2 }
 0xb5f   :  { %v6110_v45 = vadd.f32 %v6109_v25, %v6068_v17 }
 0xb65   :  { %v6124_v7 = vpop.f32.mrf.mxu1 }
 0xb66   :  { %7212 = vmatmul.msk.f32.gmra.mxu2 %vm4393_vm10, %v13652_v34  ;;  %v6071_v59 = vpop.f32.mrf.mxu2 }
 0xb67   :  { %v6113_v26 = vadd.f32 %v6112_v23, %v6071_v59 }
 0xb6e   :  { %7213 = vmatmul.msk.f32.gmra.mxu2 %vm4393_vm10, %v13653_v56  ;;  %v6074_v35 = vpop.f32.mrf.mxu2 }
 0xb6f   :  { %v6116_v8 = vadd.f32 %v6115_v38, %v6074_v35 }
 0xb76   :  { %7214 = vmatmul.msk.f32.gmra.mxu2 %vm4393_vm10, %v13654_v51  ;;  %v6077_v12 = vpop.f32.mrf.mxu2 }
 0xb77   :  { %v6119_v62 = vadd.f32 %v6118_v31, %v6077_v12 }
 0xb7e   :  { %7215 = vmatmul.msk.f32.gmra.mxu2 %vm4393_vm10, %v13655_v46  ;;  %v6080_v47 = vpop.f32.mrf.mxu2  ;;  %v12738_v46 = vld [vmem:[%s12786_s6 + $0x2] ss:$0 sm:$0xff] }
 0xb7f   :  { %v6122_v63 = vadd.f32 %v6121_v28, %v6080_v47 }
 0xb86   :  { %7216 = vmatmul.msk.f32.gmra.mxu2 %vm4393_vm10, %v13656_v32  ;;  %v6083_v3 = vpop.f32.mrf.mxu2 }
 0xb87   :  { %v6125_v54 = vadd.f32 %v6124_v7, %v6083_v3  ;;  %v7265_v3 = vld [vmem:[%s12785_s5 + $0x50] sm:$0xff] }
 0xb88   :  { %6383 = vmatpush.bf16.msrb.mxu0 %v7265_v3 }
 0xb9b   :  { %v6144_v24 = vpop.f32.mrf.mxu0 }
 0xb9c   :  { %v6145_v14 = vadd.f32 %v6144_v24, %v6104_v16 }
 0xba3   :  { %v6147_v60 = vpop.f32.mrf.mxu0 }
 0xba4   :  { %v6148_v29 = vadd.f32 %v6147_v60, %v6107_v4 }
 0xbab   :  { %v6150_v6 = vpop.f32.mrf.mxu0 }
 0xbac   :  { %v6151_v30 = vadd.f32 %v6150_v6, %v6110_v45 }
 0xbb3   :  { %v6153_v18 = vpop.f32.mrf.mxu0 }
 0xbb4   :  { %v6154_v44 = vadd.f32 %v6153_v18, %v6113_v26 }
 0xbbb   :  { %v6156_v58 = vpop.f32.mrf.mxu0 }
 0xbbc   :  { %v6157_v11 = vadd.f32 %v6156_v58, %v6116_v8 }
 0xbc3   :  { %v6159_v36 = vpop.f32.mrf.mxu0 }
 0xbc4   :  { %v6160_v5 = vadd.f32 %v6159_v36, %v6119_v62 }
 0xbcb   :  { %v6162_v40 = vpop.f32.mrf.mxu0 }
 0xbcc   :  { %v6163_v61 = vadd.f32 %v6162_v40, %v6122_v63 }
 0xbd1   :  { %v6185_v20 = vpop.f32.mrf.mxu2 }
 0xbd2   :  { %v6186_v43 = vadd.f32 %v6185_v20, %v6145_v14 }
 0xbd3   :  { %v6165_v42 = vpop.f32.mrf.mxu0 }
 0xbd4   :  { %v6166_v41 = vadd.f32 %v6165_v42, %v6125_v54 }
 0xbd9   :  { %v6188_v15 = vpop.f32.mrf.mxu2 }
 0xbda   :  { %v6189_v1 = vadd.f32 %v6188_v15, %v6148_v29 }
 0xbdc   :  { %v6209_v52 = vpack.c.bf16 %v6189_v1, %v6186_v43 }
 0xbde   :  { %7225 = vmatmul.msk.bf16.vlgmr.msrb.gmra.mxu1 %vm3546_vm8, %v6209_v52 }
 0xbe1   :  { %v6191_v27 = vpop.f32.mrf.mxu2 }
 0xbe2   :  { %v6192_v53 = vadd.f32 %v6191_v27, %v6151_v30 }
 0xbe9   :  { %v6194_v39 = vpop.f32.mrf.mxu2 }
 0xbea   :  { %v6195_v50 = vadd.f32 %v6194_v39, %v6154_v44 }
 0xbec   :  { %v6210_v2 = vpack.c.bf16 %v6195_v50, %v6192_v53 }
 0xbee   :  { %7226 = vmatmul.msk.bf16.gmra.mxu1 %vm3546_vm8, %v6210_v2 }
 0xbf1   :  { %v6197_v21 = vpop.f32.mrf.mxu2 }
 0xbf2   :  { %v6198_v48 = vadd.f32 %v6197_v21, %v6157_v11 }
 0xbf9   :  { %v6200_v33 = vpop.f32.mrf.mxu2 }
 0xbfa   :  { %v6201_v9 = vadd.f32 %v6200_v33, %v6160_v5 }
 0xbfc   :  { %v6211_v13 = vpack.c.bf16 %v6201_v9, %v6198_v48 }
 0xbfe   :  { %7227 = vmatmul.msk.bf16.gmra.mxu1 %vm3546_vm8, %v6211_v13 }
 0xc01   :  { %v6203_v0 = vpop.f32.mrf.mxu2 }
 0xc02   :  { %v6204_v34 = vadd.f32 %v6203_v0, %v6163_v61 }
 0xc09   :  { %v6206_v49 = vpop.f32.mrf.mxu2 }
 0xc0a   :  { %v6207_v56 = vadd.f32 %v6206_v49, %v6166_v41 }
 0xc0c   :  { %v6212_v51 = vpack.c.bf16 %v6207_v56, %v6204_v34 }
 0xc0e   :  { %7228 = vmatmul.msk.bf16.gmra.mxu1 %vm3546_vm8, %v6212_v51 }
 0xc5b   :  { %v6247_v55 = vpop.f32.mrf.mxu1 }
 0xc5c   :  { %v6248_v32 = vadd.f32 %v12738_v46, %v6247_v55 }
 0xc5e   :  { %v6275_v19 = vand.u32 2147483647, %v6248_v32  ;;  %v6267_v27 = vmax.f32 %v6248_v32, 0.0 }
 0xc60   :  { %v6283_v17 = vsub.f32 0.0, %v6275_v19 }
 0xc62   :  { %v6291_v59 = vmul.f32 1.442695, %v6283_v17 }
 0xc63   :  { %v6249_v35 = vpop.f32.mrf.mxu1 }
 0xc64   :  { %7667 = vpow2.f32 %v6291_v59  ;;  %v6250_v10 = vadd.f32 %v12738_v46, %v6249_v35 }
 0xc66   :  { %v6276_v12 = vand.u32 2147483647, %v6250_v10  ;;  %v6268_v26 = vmax.f32 %v6250_v10, 0.0 }
 0xc68   :  { %v6284_v47 = vsub.f32 0.0, %v6276_v12 }
 0xc6a   :  { %v7668_v57 = vpop.eup %7667  ;;  %v6293_v24 = vmul.f32 1.442695, %v6284_v47 }
 0xc6b   :  { %v6307_v37 = vadd.f32 1.0, %v7668_v57  ;;  %v6252_v60 = vpop.f32.mrf.mxu1 }
 0xc6c   :  { %7669 = vpow2.f32 %v6293_v24  ;;  %v6253_v20 = vadd.f32 %v12738_v46, %v6252_v60 }
 0xc6d   :  { %7671 = vlog2.f32 %v6307_v37 }
 0xc6e   :  { %v6277_v25 = vand.u32 2147483647, %v6253_v20  ;;  %v6269_v7 = vmax.f32 %v6253_v20, 0.0 }
 0xc70   :  { %v6285_v6 = vsub.f32 0.0, %v6277_v25 }
 0xc72   :  { %v7670_v16 = vpop.eup %7669  ;;  %v6295_v4 = vmul.f32 1.442695, %v6285_v6 }
 0xc73   :  { %v6308_v14 = vadd.f32 1.0, %v7670_v16  ;;  %v6254_v29 = vpop.f32.mrf.mxu1  ;;  %v7672_v43 = vpop.eup %7671 }
 0xc74   :  { %7673 = vpow2.f32 %v6295_v4  ;;  %v6255_v15 = vadd.f32 %v12738_v46, %v6254_v29  ;;  %v6316_v23 = vmul.f32 0.6931472, %v7672_v43 }
 0xc75   :  { %7675 = vlog2.f32 %v6308_v14 }
 0xc76   :  { %v6278_v1 = vand.u32 2147483647, %v6255_v15  ;;  %v6331_v44 = vadd.f32 %v6316_v23, %v6267_v27  ;;  %v6270_v54 = vmax.f32 %v6255_v15, 0.0 }
 0xc78   :  { %v6286_v52 = vsub.f32 0.0, %v6278_v1  ;;  %v7229_v31 = vadd.f32 -0.6931472, %v6331_v44 }
 0xc7a   :  { %v7674_v18 = vpop.eup %7673  ;;  %v6297_v38 = vmul.f32 1.442695, %v6286_v52 }
 0xc7b   :  { %v7676_v45 = vpop.eup %7675  ;;  %v6309_v58 = vadd.f32 1.0, %v7674_v18  ;;  %v6257_v30 = vpop.f32.mrf.mxu1 }
 0xc7c   :  { %v6318_v39 = vmul.f32 0.6931472, %v7676_v45  ;;  %7677 = vpow2.f32 %v6297_v38  ;;  %v6258_v53 = vadd.f32 %v12738_v46, %v6257_v30 }
 0xc7d   :  { %7679 = vlog2.f32 %v6309_v58 }
 0xc7e   :  { %v6332_v50 = vadd.f32 %v6318_v39, %v6268_v26  ;;  %v6279_v2 = vand.u32 2147483647, %v6258_v53  ;;  %v6271_v20 = vmax.f32 %v6258_v53, 0.0 }
 0xc80   :  { %v7230_v21 = vadd.f32 -0.6931472, %v6332_v50  ;;  %v6287_v36 = vsub.f32 0.0, %v6279_v2  ;;  %v7284_v2 = vld [vmem:[%s12786_s6 + $0x3] ss:$0 sm:$0xff]  ;;  %s7744_s6 = smov [#allocation2]  }
 0xc81   :  { %s6427_s25 = sshll.u32 %s7744_s6, 4  ;;  %s6428_s25 = int_to_ptr.vmem [resolvable:$true] %s6427_s25 }
 0xc82   :  { %v7678_v8 = vpop.eup %7677  ;;  %v6347_v62 = vpack.c.bf16 %v7230_v21, %v7229_v31  ;;  %v6299_v11 = vmul.f32 1.442695, %v6287_v36  ;;  %v13657_v36 = vld [vmem:[#allocation76_spill] sm:$0xff] }
 0xc83   :  { %v6310_v5 = vadd.f32 1.0, %v7678_v8  ;;  %v6259_v33 = vpop.f32.mrf.mxu1  ;;  %v7680_v48 = vpop.eup %7679 }
 0xc84   :  { %7681 = vpow2.f32 %v6299_v11  ;;  %v6260_v28 = vadd.f32 %v12738_v46, %v6259_v33  ;;  %7245 = vmatmul.msk.bf16.vlgmr.msrb.gmra.mxu0 %vm3546_vm8, %v6347_v62  ;;  %v6320_v40 = vmul.f32 0.6931472, %v7680_v48 }
 0xc85   :  { %7683 = vlog2.f32 %v6310_v5  ;;  %v13658_v5 = vld [vmem:[#allocation31_spill] sm:$0xff] }
 0xc86   :  { %v6280_v9 = vand.u32 2147483647, %v6260_v28  ;;  %v6333_v49 = vadd.f32 %v6320_v40, %v6269_v7  ;;  %v6272_v14 = vmax.f32 %v6260_v28, 0.0  ;;  %v13660_v7 = vld [vmem:[#allocation32_spill] sm:$0xff] }
 0xc88   :  { %v6288_v13 = vsub.f32 0.0, %v6280_v9  ;;  %v7231_v32 = vadd.f32 -0.6931472, %v6333_v49  ;;  %v13659_v9 = vld [vmem:[#allocation84_spill] sm:$0xff] }
 0xc8a   :  { %v7682_v0 = vpop.eup %7681  ;;  %v6301_v42 = vmul.f32 1.442695, %v6288_v13 }
 0xc8b   :  { %v7684_v63 = vpop.eup %7683  ;;  %v6311_v61 = vadd.f32 1.0, %v7682_v0  ;;  %v6262_v41 = vpop.f32.mrf.mxu1 }
 0xc8c   :  { %v6322_v34 = vmul.f32 0.6931472, %v7684_v63  ;;  %7685 = vpow2.f32 %v6301_v42  ;;  %v6263_v56 = vadd.f32 %v12738_v46, %v6262_v41 }
 0xc8d   :  { %7687 = vlog2.f32 %v6311_v61  ;;  %v13661_v61 = vld [vmem:[#allocation86_spill] sm:$0xff] }
 0xc8e   :  { %v6334_v51 = vadd.f32 %v6322_v34, %v6270_v54  ;;  %v6281_v55 = vand.u32 2147483647, %v6263_v56  ;;  %v6273_v38 = vmax.f32 %v6263_v56, 0.0  ;;  %v13662_v56 = vld [vmem:[#allocation33_spill] sm:$0xff] }
 0xc90   :  { %v7232_v19 = vadd.f32 -0.6931472, %v6334_v51  ;;  %v6289_v17 = vsub.f32 0.0, %v6281_v55 }
 0xc92   :  { %v7686_v59 = vpop.eup %7685  ;;  %v6348_v35 = vpack.c.bf16 %v7232_v19, %v7231_v32  ;;  %v6303_v10 = vmul.f32 1.442695, %v6289_v17  ;;  %v13663_v19 = vld [vmem:[#allocation90_spill] sm:$0xff] }
 0xc93   :  { %v6312_v12 = vadd.f32 1.0, %v7686_v59  ;;  %v6264_v22 = vpop.f32.mrf.mxu1  ;;  %v7688_v57 = vpop.eup %7687 }
 0xc94   :  { %7689 = vpow2.f32 %v6303_v10  ;;  %v6265_v47 = vadd.f32 %v12738_v46, %v6264_v22  ;;  %7246 = vmatmul.msk.bf16.gmra.mxu0 %vm3546_vm8, %v6348_v35  ;;  %v6324_v3 = vmul.f32 0.6931472, %v7688_v57  ;;  %v13664_v10 = vld [vmem:[#allocation34_spill] sm:$0xff] }
 0xc95   :  { %7691 = vlog2.f32 %v6312_v12 }
 0xc96   :  { %v6282_v24 = vand.u32 2147483647, %v6265_v47  ;;  %v6335_v4 = vadd.f32 %v6324_v3, %v6271_v20  ;;  %v6274_v58 = vmax.f32 %v6265_v47, 0.0 }
 0xc98   :  { %v6290_v37 = vsub.f32 0.0, %v6282_v24  ;;  %v7233_v43 = vadd.f32 -0.6931472, %v6335_v4 }
 0xc9a   :  { %v7690_v60 = vpop.eup %7689  ;;  %v6305_v25 = vmul.f32 1.442695, %v6290_v37 }
 0xc9b   :  { %v7692_v6 = vpop.eup %7691  ;;  %v6313_v16 = vadd.f32 1.0, %v7690_v60 }
 0xc9c   :  { %v6326_v29 = vmul.f32 0.6931472, %v7692_v6  ;;  %7693 = vpow2.f32 %v6305_v25 }
 0xc9d   :  { %7695 = vlog2.f32 %v6313_v16 }
 0xc9e   :  { %v6336_v15 = vadd.f32 %v6326_v29, %v6272_v14 }
 0xca0   :  { %v7234_v46 = vadd.f32 -0.6931472, %v6336_v15 }
 0xca2   :  { %v7694_v1 = vpop.eup %7693  ;;  %v6349_v23 = vpack.c.bf16 %v7234_v46, %v7233_v43 }
 0xca3   :  { %v6314_v52 = vadd.f32 1.0, %v7694_v1  ;;  %v7696_v18 = vpop.eup %7695 }
 0xca4   :  { %7247 = vmatmul.msk.bf16.gmra.mxu0 %vm3546_vm8, %v6349_v23  ;;  %v6328_v27 = vmul.f32 0.6931472, %v7696_v18 }
 0xca5   :  { %7697 = vlog2.f32 %v6314_v52 }
 0xca6   :  { %v6337_v26 = vadd.f32 %v6328_v27, %v6273_v38 }
 0xca8   :  { %v7235_v39 = vadd.f32 -0.6931472, %v6337_v26 }
 0xcab   :  { %v7698_v45 = vpop.eup %7697 }
 0xcac   :  { %v6330_v30 = vmul.f32 0.6931472, %v7698_v45 }
 0xcae   :  { %v6338_v44 = vadd.f32 %v6330_v30, %v6274_v58 }
 0xcb0   :  { %v7236_v53 = vadd.f32 -0.6931472, %v6338_v44 }
 0xcb2   :  { %v6350_v50 = vpack.c.bf16 %v7236_v53, %v7235_v39 }
 0xcb4   :  { %7248 = vmatmul.msk.bf16.gmra.mxu0 %vm3546_vm8, %v6350_v50 }
 0xd01   :  { %v6385_v31 = vpop.f32.mrf.mxu0 }
 0xd02   :  { %v6386_v21 = vadd.f32 %v7284_v2, %v6385_v31 }
 0xd04   :  { %v6405_v8 = vadd.f32 %v6386_v21, %v13657_v36 }
 0xd06   :  { %6413 = vst.msk [vmem:[#allocation2] sm:$0xff] %vm3546_vm8, %v6405_v8 }
 0xd09   :  { %v6387_v62 = vpop.f32.mrf.mxu0 }
 0xd0a   :  { %v6388_v11 = vadd.f32 %v7284_v2, %v6387_v62 }
 0xd0c   :  { %v6406_v33 = vadd.f32 %v6388_v11, %v13658_v5 }
 0xd0e   :  { %6414 = vst.msk [vmem:[#allocation2 + $0x8] sm:$0xff] %vm3546_vm8, %v6406_v33 }
 0xd11   :  { %v6390_v28 = vpop.f32.mrf.mxu0 }
 0xd12   :  { %v6391_v48 = vadd.f32 %v7284_v2, %v6390_v28 }
 0xd14   :  { %v6407_v40 = vadd.f32 %v6391_v48, %v13659_v9 }
 0xd16   :  { %6415 = vst.msk [vmem:[#allocation2 + $0x10] sm:$0xff] %vm3546_vm8, %v6407_v40 }
 0xd19   :  { %v6392_v13 = vpop.f32.mrf.mxu0 }
 0xd1a   :  { %v6393_v0 = vadd.f32 %v7284_v2, %v6392_v13 }
 0xd1c   :  { %v6408_v42 = vadd.f32 %v6393_v0, %v13660_v7 }
 0xd1e   :  { %6416 = vst.msk [vmem:[#allocation2 + $0x18] sm:$0xff] %vm3546_vm8, %v6408_v42 }
 0xd21   :  { %v6395_v63 = vpop.f32.mrf.mxu0 }
 0xd22   :  { %v6396_v54 = vadd.f32 %v7284_v2, %v6395_v63 }
 0xd24   :  { %v6409_v41 = vadd.f32 %v6396_v54, %v13661_v61 }
 0xd26   :  { %6417 = vst.msk [vmem:[#allocation2 + $0x20] sm:$0xff] %vm3546_vm8, %v6409_v41 }
 0xd29   :  { %v6397_v49 = vpop.f32.mrf.mxu0 }
 0xd2a   :  { %v6398_v34 = vadd.f32 %v7284_v2, %v6397_v49 }
 0xd2c   :  { %v6410_v51 = vadd.f32 %v6398_v34, %v13662_v56 }
 0xd2e   :  { %6418 = vst.msk [vmem:[#allocation2 + $0x28] sm:$0xff] %vm3546_vm8, %v6410_v51 }
 0xd31   :  { %v6400_v55 = vpop.f32.mrf.mxu0 }
 0xd32   :  { %v6401_v32 = vadd.f32 %v7284_v2, %v6400_v55 }
 0xd34   :  { %v6411_v17 = vadd.f32 %v6401_v32, %v13663_v19 }
 0xd36   :  { %6419 = vst.msk [vmem:[#allocation2 + $0x30] sm:$0xff] %vm3546_vm8, %v6411_v17 }
 0xd39   :  { %v6402_v59 = vpop.f32.mrf.mxu0 }
 0xd3a   :  { %v6403_v35 = vadd.f32 %v7284_v2, %v6402_v59 }
 0xd3c   :  { %v6412_v12 = vadd.f32 %v6403_v35, %v13664_v10 }
 0xd3e   :  { %6420 = vst.msk [vmem:[#allocation2 + $0x38] sm:$0xff] %vm3546_vm8, %v6412_v12 }
 0xd3f   :  { %6435 = dma.vmem_to_hbm [thread:$0]  %s6428_s25, 1024, %s6430_s28, [#allocation3], %s7745_s29, %s7745_s29, %s7746_s30  }
 0xd40   :  { %7736 = dma.done.wait [#allocation3], 1024  }
 0xd41   :  { %7737 = vsyncadd [#allocation3], 4294966272 }
 0xd42   :  { %6442 = vsyncpa [#allocation3], 1 }

</bundles_post_ra>
